<compile_context>
chip_gen: v7x
topology: tpu7x:2x2x1
jax: 0.10.0
libtpu: 0.0.40
codegen_flags: <defaults>
</compile_context>

<pallas_src>
import numpy as np
import jax
import jax.numpy as jnp
from jax.experimental import pallas as pl
from jax.experimental.pallas import tpu as pltpu

# ---------------------------------------------------------------------------
# Static network geometry (LeNet on 1x32x32 input) and batching tile
# ---------------------------------------------------------------------------
BATCH_TILE = 8             # samples per grid step (multiple of 8 keeps row groups tile-aligned)
H1, W1 = 32, 32            # conv1 input spatial
HP1, WP1 = 15, 15          # pool1 output spatial
W2 = 15                    # conv2 input width (= pool1 width)
HP2, WP2 = 6, 6            # pool2 output spatial
M1 = 30 * W1               # 960  conv1 outputs computed at full input width
M2 = 13 * W2               # 195  conv2 outputs computed at full input width
XLEN1 = H1 * W1 + 2        # 1026 flat conv1 input (+2 pad keeps last tap slice in-bounds)
XLEN2 = W2 * W2 + 2        # 227  flat conv2 input (2 zero pad cols appended by sel1)
V1LEN = M1 - 1 - W1        # 927  columns of pool-1 "4-corner max" array
V2LEN = M2 - 1 - W2        # 179
NCLS = 10
OUT_PAD = 128              # lane-dense output width (first NCLS columns are real)


def _pool_select_matrix(win, hp, wp, vlen, out_cols):
    """0/1 matrix picking flat index 2*h*win + 2*w for each pooled position."""
    s = np.zeros((vlen, out_cols), np.float32)
    for p in range(hp * wp):
        s[2 * (p // wp) * win + 2 * (p % wp), p] = 1.0
    return s


# ---------------------------------------------------------------------------
# Fused kernel: one grid step = BATCH_TILE samples, everything stays in VMEM.
# Conv-stage activation layout: rows = channel*B + sample, lanes = flat spatial.
# ---------------------------------------------------------------------------
def _lenet_kernel(x_ref, w1_ref, b1_ref, w2_ref, b2_ref, sel1_ref, sel2_ref,
                  fw1_ref, fb1_ref, fw2_ref, fb2_ref, fw3_ref, fb3_ref, o_ref):
    f32, bf16 = jnp.float32, jnp.bfloat16
    B = BATCH_TILE

    # ---- conv1 (1->6, 3x3) + ReLU on the VPU; tap windows come from the ref ----
    xw = [x_ref[:, pl.ds((t // 3) * W1 + (t % 3), M1)] for t in range(9)]  # 9 x (B, 960)
    y1_parts = []
    for c in range(6):
        acc = w1_ref[0, c] * xw[0]
        for t in range(1, 9):
            acc = acc + w1_ref[t, c] * xw[t]
        y1_parts.append(jnp.maximum(acc + b1_ref[c], 0.0))
    y1 = jnp.concatenate(y1_parts, axis=0)                       # (6B, 960), row = c*B + b

    # ---- pool1: two shifted pair-maxes + 0/1 selection matmul (bf16 on MXU) ----
    z1 = jnp.maximum(y1[:, :M1 - 1], y1[:, 1:])
    v1 = jnp.maximum(z1[:, :V1LEN], z1[:, W1:W1 + V1LEN])        # (6B, 927)
    x2 = jnp.dot(v1.astype(bf16), sel1_ref[...],
                 preferred_element_type=f32)                     # (6B, 227)

    # ---- conv2 (6->16, 3x3) + ReLU as ONE MXU matmul ----------------------------
    # RHS = tap-stacked windows, rows ordered (cin, tap, sample); LHS = precomputed
    # batch-block-diagonal weight (16B, 6*9*B).  All row slices are 8-aligned.
    pieces = []
    for c in range(6):
        blk = x2[c * B:(c + 1) * B, :]                           # (B, 227)
        for t in range(9):
            s = (t // 3) * W2 + (t % 3)
            pieces.append(blk[:, s:s + M2])
    x2s = jnp.concatenate(pieces, axis=0).astype(bf16)           # (6*9*B, 195)
    y2 = jnp.dot(w2_ref[...], x2s, preferred_element_type=f32)   # (16B, 195)
    y2 = jnp.maximum(y2 + b2_ref[...], 0.0)

    # ---- pool2: pair-maxes + selection matmul -----------------------------------
    z2 = jnp.maximum(y2[:, :M2 - 1], y2[:, 1:])
    v2 = jnp.maximum(z2[:, :V2LEN], z2[:, W2:W2 + V2LEN])        # (16B, 179)
    p2 = jnp.dot(v2.astype(bf16), sel2_ref[...],
                 preferred_element_type=f32)                     # (16B, 36)

    # ---- PyTorch NCHW flatten: channel row-blocks -> lane blocks -> (B, 576) ----
    flat = jnp.concatenate([p2[o * B:(o + 1) * B, :] for o in range(16)],
                           axis=1).astype(bf16)                  # col = c*36 + h*6 + w

    # ---- fc1 -> fc2 -> fc3 as single bf16 matmuls with f32 accumulation ---------
    h = jnp.maximum(jnp.dot(flat, fw1_ref[...], preferred_element_type=f32)
                    + fb1_ref[...], 0.0)                         # (B, 120)
    h = jnp.maximum(jnp.dot(h.astype(bf16), fw2_ref[...], preferred_element_type=f32)
                    + fb2_ref[...], 0.0)                         # (B, 84)
    out = jnp.dot(h.astype(bf16), fw3_ref[...], preferred_element_type=f32) + fb3_ref[...]

    # lane-dense (B, 128) store; the wrapper slices the first NCLS columns
    o_ref[...] = jnp.concatenate([out, jnp.zeros((B, OUT_PAD - NCLS), f32)], axis=1)


# ---------------------------------------------------------------------------
# Wrappers
# ---------------------------------------------------------------------------
def _full_spec(shape):
    nd = len(shape)
    return pl.BlockSpec(shape, lambda i: (0,) * nd)


def _smem_spec():
    return pl.BlockSpec(memory_space=pltpu.MemorySpace.SMEM)


def prepare_params(params):
    """One-time repack of PyTorch-layout weights into kernel layouts (outside jit)."""
    B = BATCH_TILE
    p = {k: np.asarray(v, np.float32) for k, v in params.items()}
    bf16 = jnp.bfloat16

    # conv1 taps as SMEM scalars: [di*3+dj, cout]
    w1 = p["conv1_w"].transpose(2, 3, 0, 1).reshape(9, 6)
    # conv2: batch-block-diagonal weight: rows (cout, sample), cols (cin, tap, sample)
    w2t = p["conv2_w"].reshape(16, 6, 9)
    w2big = np.einsum("oct,bd->obctd", w2t,
                      np.eye(B, dtype=np.float32)).reshape(16 * B, 6 * 9 * B)
    b2col = np.repeat(p["conv2_b"], B).reshape(16 * B, 1)

    return {
        "w1": jnp.asarray(w1),                                   # (9, 6)   f32  SMEM
        "b1": jnp.asarray(p["conv1_b"]),                         # (6,)     f32  SMEM
        "w2": jnp.asarray(w2big, bf16),                          # (16B, 54B) bf16
        "b2": jnp.asarray(b2col),                                # (16B, 1) f32
        "sel1": jnp.asarray(_pool_select_matrix(W1, HP1, WP1, V1LEN, XLEN2), bf16),
        "sel2": jnp.asarray(_pool_select_matrix(W2, HP2, WP2, V2LEN, HP2 * WP2), bf16),
        # fc1 (120, 576) -> (576, 120); CHW flatten order already matches
        "fw1": jnp.asarray(p["fc1_w"].T, bf16),
        "fb1": jnp.asarray(p["fc1_b"].reshape(1, 120)),
        "fw2": jnp.asarray(p["fc2_w"].T, bf16),
        "fb2": jnp.asarray(p["fc2_b"].reshape(1, 84)),
        "fw3": jnp.asarray(p["fc3_w"].T, bf16),
        "fb3": jnp.asarray(p["fc3_b"].reshape(1, 10)),
    }


def net_forward(prep, x):
    """x: (N, 1, 32, 32) NCHW float32 -> (N, 10)."""
    n = x.shape[0]
    B = BATCH_TILE
    n_pad = -(-n // B) * B
    xf = jnp.pad(x.reshape(n, H1 * W1).astype(jnp.float32),
                 ((0, n_pad - n), (0, XLEN1 - H1 * W1)))         # (n_pad, 1026)

    out = pl.pallas_call(
        _lenet_kernel,
        out_shape=jax.ShapeDtypeStruct((n_pad, OUT_PAD), jnp.float32),
        grid=(n_pad // B,),
        in_specs=[
            pl.BlockSpec((B, XLEN1), lambda i: (i, 0)),          # batched input block
            _smem_spec(),                                        # w1 (9, 6)
            _smem_spec(),                                        # b1 (6,)
            _full_spec((16 * B, 6 * 9 * B)),                     # conv2 block-diag weight
            _full_spec((16 * B, 1)),                             # conv2 bias column
            _full_spec((V1LEN, XLEN2)),                          # sel1
            _full_spec((V2LEN, HP2 * WP2)),                      # sel2
            _full_spec((576, 120)), _full_spec((1, 120)),
            _full_spec((120, 84)), _full_spec((1, 84)),
            _full_spec((84, 10)), _full_spec((1, 10)),
        ],
        out_specs=pl.BlockSpec((B, OUT_PAD), lambda i: (i, 0)),
        compiler_params=pltpu.CompilerParams(dimension_semantics=("parallel",)),
    )(xf, prep["w1"], prep["b1"], prep["w2"], prep["b2"], prep["sel1"], prep["sel2"],
      prep["fw1"], prep["fb1"], prep["fw2"], prep["fb2"], prep["fw3"], prep["fb3"])
    return out[:n, :NCLS]


# ---------------------------------------------------------------------------
# Params (PyTorch-style init) and a pure-JAX f32 reference for the sanity check
# ---------------------------------------------------------------------------
def init_params(key):
    def uni(k, shape, fan_in):
        bound = 1.0 / float(fan_in) ** 0.5
        return jax.random.uniform(k, shape, jnp.float32, -bound, bound)

    ks = jax.random.split(key, 10)
    return {
        "conv1_w": uni(ks[0], (6, 1, 3, 3), 1 * 9),
        "conv1_b": uni(ks[1], (6,), 1 * 9),
        "conv2_w": uni(ks[2], (16, 6, 3, 3), 6 * 9),
        "conv2_b": uni(ks[3], (16,), 6 * 9),
        "fc1_w":   uni(ks[4], (120, 576), 576),
        "fc1_b":   uni(ks[5], (120,), 576),
        "fc2_w":   uni(ks[6], (84, 120), 120),
        "fc2_b":   uni(ks[7], (84,), 120),
        "fc3_w":   uni(ks[8], (10, 84), 84),
        "fc3_b":   uni(ks[9], (10,), 84),
    }


def _reference_forward(params, x):
    def conv_relu(x, w, b):
        N, C, H, W = x.shape
        Cout, Cin, KH, KW = w.shape
        Ho, Wo = H - KH + 1, W - KW + 1
        cols = [x[:, :, i:i + Ho, j:j + Wo] for i in range(KH) for j in range(KW)]
        pt = jnp.stack(cols, axis=2).transpose(0, 3, 4, 1, 2).reshape(N * Ho * Wo, Cin * KH * KW)
        out = pt @ w.reshape(Cout, -1).T + b
        return jnp.maximum(out, 0.0).reshape(N, Ho, Wo, Cout).transpose(0, 3, 1, 2)

    def pool(x):
        N, C, H, W = x.shape
        Hp, Wp = H // 2, W // 2
        c = [x[:, :, di:2 * Hp:2, dj:2 * Wp:2] for di in (0, 1) for dj in (0, 1)]
        return jnp.maximum(jnp.maximum(c[0], c[1]), jnp.maximum(c[2], c[3]))

    x = pool(conv_relu(x, params["conv1_w"], params["conv1_b"]))
    x = pool(conv_relu(x, params["conv2_w"], params["conv2_b"]))
    x = x.reshape(x.shape[0], -1)
    x = jnp.maximum(x @ params["fc1_w"].T + params["fc1_b"], 0.0)
    x = jnp.maximum(x @ params["fc2_w"].T + params["fc2_b"], 0.0)
    return x @ params["fc3_w"].T + params["fc3_b"]


if __name__ == "__main__":
    key = jax.random.PRNGKey(0)
    pkey, xkey = jax.random.split(key)
    params = init_params(pkey)
    prep = prepare_params(params)            # one-time weight repack, outside jit
    x = jax.random.normal(xkey, (2, 1, 32, 32), dtype=jnp.float32)

    out = jax.jit(net_forward)(prep, x)
    jax.block_until_ready(out)
    assert out.shape == (2, 10), out.shape

    ref = _reference_forward(params, x)
    # Tolerance accounts for bf16 MXU operands (f32 accumulation); errors measured ~1e-3.
    np.testing.assert_allclose(np.asarray(out), np.asarray(ref), rtol=2e-2, atol=2e-2)
    print("KERNEL_OK")
</pallas_src>

<mosaic_0001>
module attributes {stable_mosaic.version = 11 : i64} {
  func.func @_lenet_kernel(%arg0: i32, %arg1: memref<8x1026xf32, #tpu.memory_space<vmem>>, %arg2: memref<9x6xf32, #tpu.memory_space<smem>>, %arg3: memref<6xf32, #tpu.memory_space<smem>>, %arg4: memref<128x432xbf16, #tpu.memory_space<vmem>>, %arg5: memref<128x1xf32, #tpu.memory_space<vmem>>, %arg6: memref<927x227xbf16, #tpu.memory_space<vmem>>, %arg7: memref<179x36xbf16, #tpu.memory_space<vmem>>, %arg8: memref<576x120xbf16, #tpu.memory_space<vmem>>, %arg9: memref<1x120xf32, #tpu.memory_space<vmem>>, %arg10: memref<120x84xbf16, #tpu.memory_space<vmem>>, %arg11: memref<1x84xf32, #tpu.memory_space<vmem>>, %arg12: memref<84x10xbf16, #tpu.memory_space<vmem>>, %arg13: memref<1x10xf32, #tpu.memory_space<vmem>>, %arg14: memref<8x128xf32, #tpu.memory_space<vmem>>) attributes {dimension_semantics = [#tpu.dimension_semantics<parallel>], iteration_bounds = array<i64: 1>, scalar_prefetch = 0 : i64, scratch_operands = 0 : i64, tpu.core_type = #tpu.core_type<tc>, window_params = [{transform_indices = @transform_0, window_bounds = array<i64: 8, 1026>}, {transform_indices = @transform_1, window_bounds = array<i64: 9, 6>}, {transform_indices = @transform_2, window_bounds = array<i64: 6>}, {pipeline_mode = #tpu.pipeline_mode<synchronous>, transform_indices = @transform_3, window_bounds = array<i64: 128, 432>}, {pipeline_mode = #tpu.pipeline_mode<synchronous>, transform_indices = @transform_4, window_bounds = array<i64: 128, 1>}, {pipeline_mode = #tpu.pipeline_mode<synchronous>, transform_indices = @transform_5, window_bounds = array<i64: 927, 227>}, {pipeline_mode = #tpu.pipeline_mode<synchronous>, transform_indices = @transform_6, window_bounds = array<i64: 179, 36>}, {pipeline_mode = #tpu.pipeline_mode<synchronous>, transform_indices = @transform_7, window_bounds = array<i64: 576, 120>}, {pipeline_mode = #tpu.pipeline_mode<synchronous>, transform_indices = @transform_8, window_bounds = array<i64: 1, 120>}, {pipeline_mode = #tpu.pipeline_mode<synchronous>, transform_indices = @transform_9, window_bounds = array<i64: 120, 84>}, {pipeline_mode = #tpu.pipeline_mode<synchronous>, transform_indices = @transform_10, window_bounds = array<i64: 1, 84>}, {pipeline_mode = #tpu.pipeline_mode<synchronous>, transform_indices = @transform_11, window_bounds = array<i64: 84, 10>}, {pipeline_mode = #tpu.pipeline_mode<synchronous>, transform_indices = @transform_12, window_bounds = array<i64: 1, 10>}, {transform_indices = @transform_13, window_bounds = array<i64: 8, 128>}]} {
    %c0 = arith.constant 0 : index
    %c0_0 = arith.constant 0 : index
    %0 = vector.load %arg1[%c0, %c0_0] : memref<8x1026xf32, #tpu.memory_space<vmem>>, vector<8x960xf32>
    %c0_1 = arith.constant 0 : index
    %c1 = arith.constant 1 : index
    %1 = vector.load %arg1[%c0_1, %c1] : memref<8x1026xf32, #tpu.memory_space<vmem>>, vector<8x960xf32>
    %c0_2 = arith.constant 0 : index
    %c2 = arith.constant 2 : index
    %2 = vector.load %arg1[%c0_2, %c2] : memref<8x1026xf32, #tpu.memory_space<vmem>>, vector<8x960xf32>
    %c0_3 = arith.constant 0 : index
    %c32 = arith.constant 32 : index
    %3 = vector.load %arg1[%c0_3, %c32] : memref<8x1026xf32, #tpu.memory_space<vmem>>, vector<8x960xf32>
    %c0_4 = arith.constant 0 : index
    %c33 = arith.constant 33 : index
    %4 = vector.load %arg1[%c0_4, %c33] : memref<8x1026xf32, #tpu.memory_space<vmem>>, vector<8x960xf32>
    %c0_5 = arith.constant 0 : index
    %c34 = arith.constant 34 : index
    %5 = vector.load %arg1[%c0_5, %c34] : memref<8x1026xf32, #tpu.memory_space<vmem>>, vector<8x960xf32>
    %c0_6 = arith.constant 0 : index
    %c64 = arith.constant 64 : index
    %6 = vector.load %arg1[%c0_6, %c64] : memref<8x1026xf32, #tpu.memory_space<vmem>>, vector<8x960xf32>
    %c0_7 = arith.constant 0 : index
    %c65 = arith.constant 65 : index
    %7 = vector.load %arg1[%c0_7, %c65] : memref<8x1026xf32, #tpu.memory_space<vmem>>, vector<8x960xf32>
    %c0_8 = arith.constant 0 : index
    %c66 = arith.constant 66 : index
    %8 = vector.load %arg1[%c0_8, %c66] : memref<8x1026xf32, #tpu.memory_space<vmem>>, vector<8x960xf32>
    %c0_9 = arith.constant 0 : index
    %c0_10 = arith.constant 0 : index
    %9 = memref.load %arg2[%c0_9, %c0_10] : memref<9x6xf32, #tpu.memory_space<smem>>
    %10 = vector.broadcast %9 : f32 to vector<8x960xf32>
    %11 = arith.mulf %10, %0 : vector<8x960xf32>
    %c1_11 = arith.constant 1 : index
    %c0_12 = arith.constant 0 : index
    %12 = memref.load %arg2[%c1_11, %c0_12] : memref<9x6xf32, #tpu.memory_space<smem>>
    %13 = vector.broadcast %12 : f32 to vector<8x960xf32>
    %14 = arith.mulf %13, %1 : vector<8x960xf32>
    %15 = arith.addf %11, %14 : vector<8x960xf32>
    %c2_13 = arith.constant 2 : index
    %c0_14 = arith.constant 0 : index
    %16 = memref.load %arg2[%c2_13, %c0_14] : memref<9x6xf32, #tpu.memory_space<smem>>
    %17 = vector.broadcast %16 : f32 to vector<8x960xf32>
    %18 = arith.mulf %17, %2 : vector<8x960xf32>
    %19 = arith.addf %15, %18 : vector<8x960xf32>
    %c3 = arith.constant 3 : index
    %c0_15 = arith.constant 0 : index
    %20 = memref.load %arg2[%c3, %c0_15] : memref<9x6xf32, #tpu.memory_space<smem>>
    %21 = vector.broadcast %20 : f32 to vector<8x960xf32>
    %22 = arith.mulf %21, %3 : vector<8x960xf32>
    %23 = arith.addf %19, %22 : vector<8x960xf32>
    %c4 = arith.constant 4 : index
    %c0_16 = arith.constant 0 : index
    %24 = memref.load %arg2[%c4, %c0_16] : memref<9x6xf32, #tpu.memory_space<smem>>
    %25 = vector.broadcast %24 : f32 to vector<8x960xf32>
    %26 = arith.mulf %25, %4 : vector<8x960xf32>
    %27 = arith.addf %23, %26 : vector<8x960xf32>
    %c5 = arith.constant 5 : index
    %c0_17 = arith.constant 0 : index
    %28 = memref.load %arg2[%c5, %c0_17] : memref<9x6xf32, #tpu.memory_space<smem>>
    %29 = vector.broadcast %28 : f32 to vector<8x960xf32>
    %30 = arith.mulf %29, %5 : vector<8x960xf32>
    %31 = arith.addf %27, %30 : vector<8x960xf32>
    %c6 = arith.constant 6 : index
    %c0_18 = arith.constant 0 : index
    %32 = memref.load %arg2[%c6, %c0_18] : memref<9x6xf32, #tpu.memory_space<smem>>
    %33 = vector.broadcast %32 : f32 to vector<8x960xf32>
    %34 = arith.mulf %33, %6 : vector<8x960xf32>
    %35 = arith.addf %31, %34 : vector<8x960xf32>
    %c7 = arith.constant 7 : index
    %c0_19 = arith.constant 0 : index
    %36 = memref.load %arg2[%c7, %c0_19] : memref<9x6xf32, #tpu.memory_space<smem>>
    %37 = vector.broadcast %36 : f32 to vector<8x960xf32>
    %38 = arith.mulf %37, %7 : vector<8x960xf32>
    %39 = arith.addf %35, %38 : vector<8x960xf32>
    %c8 = arith.constant 8 : index
    %c0_20 = arith.constant 0 : index
    %40 = memref.load %arg2[%c8, %c0_20] : memref<9x6xf32, #tpu.memory_space<smem>>
    %41 = vector.broadcast %40 : f32 to vector<8x960xf32>
    %42 = arith.mulf %41, %8 : vector<8x960xf32>
    %43 = arith.addf %39, %42 : vector<8x960xf32>
    %c0_21 = arith.constant 0 : index
    %44 = memref.load %arg3[%c0_21] : memref<6xf32, #tpu.memory_space<smem>>
    %45 = vector.broadcast %44 : f32 to vector<8x960xf32>
    %46 = arith.addf %43, %45 : vector<8x960xf32>
    %cst = arith.constant 0.000000e+00 : f32
    %47 = vector.broadcast %cst : f32 to vector<8x960xf32>
    %48 = arith.maximumf %46, %47 : vector<8x960xf32>
    %c0_22 = arith.constant 0 : index
    %c1_23 = arith.constant 1 : index
    %49 = memref.load %arg2[%c0_22, %c1_23] : memref<9x6xf32, #tpu.memory_space<smem>>
    %50 = vector.broadcast %49 : f32 to vector<8x960xf32>
    %51 = arith.mulf %50, %0 : vector<8x960xf32>
    %c1_24 = arith.constant 1 : index
    %c1_25 = arith.constant 1 : index
    %52 = memref.load %arg2[%c1_24, %c1_25] : memref<9x6xf32, #tpu.memory_space<smem>>
    %53 = vector.broadcast %52 : f32 to vector<8x960xf32>
    %54 = arith.mulf %53, %1 : vector<8x960xf32>
    %55 = arith.addf %51, %54 : vector<8x960xf32>
    %c2_26 = arith.constant 2 : index
    %c1_27 = arith.constant 1 : index
    %56 = memref.load %arg2[%c2_26, %c1_27] : memref<9x6xf32, #tpu.memory_space<smem>>
    %57 = vector.broadcast %56 : f32 to vector<8x960xf32>
    %58 = arith.mulf %57, %2 : vector<8x960xf32>
    %59 = arith.addf %55, %58 : vector<8x960xf32>
    %c3_28 = arith.constant 3 : index
    %c1_29 = arith.constant 1 : index
    %60 = memref.load %arg2[%c3_28, %c1_29] : memref<9x6xf32, #tpu.memory_space<smem>>
    %61 = vector.broadcast %60 : f32 to vector<8x960xf32>
    %62 = arith.mulf %61, %3 : vector<8x960xf32>
    %63 = arith.addf %59, %62 : vector<8x960xf32>
    %c4_30 = arith.constant 4 : index
    %c1_31 = arith.constant 1 : index
    %64 = memref.load %arg2[%c4_30, %c1_31] : memref<9x6xf32, #tpu.memory_space<smem>>
    %65 = vector.broadcast %64 : f32 to vector<8x960xf32>
    %66 = arith.mulf %65, %4 : vector<8x960xf32>
    %67 = arith.addf %63, %66 : vector<8x960xf32>
    %c5_32 = arith.constant 5 : index
    %c1_33 = arith.constant 1 : index
    %68 = memref.load %arg2[%c5_32, %c1_33] : memref<9x6xf32, #tpu.memory_space<smem>>
    %69 = vector.broadcast %68 : f32 to vector<8x960xf32>
    %70 = arith.mulf %69, %5 : vector<8x960xf32>
    %71 = arith.addf %67, %70 : vector<8x960xf32>
    %c6_34 = arith.constant 6 : index
    %c1_35 = arith.constant 1 : index
    %72 = memref.load %arg2[%c6_34, %c1_35] : memref<9x6xf32, #tpu.memory_space<smem>>
    %73 = vector.broadcast %72 : f32 to vector<8x960xf32>
    %74 = arith.mulf %73, %6 : vector<8x960xf32>
    %75 = arith.addf %71, %74 : vector<8x960xf32>
    %c7_36 = arith.constant 7 : index
    %c1_37 = arith.constant 1 : index
    %76 = memref.load %arg2[%c7_36, %c1_37] : memref<9x6xf32, #tpu.memory_space<smem>>
    %77 = vector.broadcast %76 : f32 to vector<8x960xf32>
    %78 = arith.mulf %77, %7 : vector<8x960xf32>
    %79 = arith.addf %75, %78 : vector<8x960xf32>
    %c8_38 = arith.constant 8 : index
    %c1_39 = arith.constant 1 : index
    %80 = memref.load %arg2[%c8_38, %c1_39] : memref<9x6xf32, #tpu.memory_space<smem>>
    %81 = vector.broadcast %80 : f32 to vector<8x960xf32>
    %82 = arith.mulf %81, %8 : vector<8x960xf32>
    %83 = arith.addf %79, %82 : vector<8x960xf32>
    %c1_40 = arith.constant 1 : index
    %84 = memref.load %arg3[%c1_40] : memref<6xf32, #tpu.memory_space<smem>>
    %85 = vector.broadcast %84 : f32 to vector<8x960xf32>
    %86 = arith.addf %83, %85 : vector<8x960xf32>
    %cst_41 = arith.constant 0.000000e+00 : f32
    %87 = vector.broadcast %cst_41 : f32 to vector<8x960xf32>
    %88 = arith.maximumf %86, %87 : vector<8x960xf32>
    %c0_42 = arith.constant 0 : index
    %c2_43 = arith.constant 2 : index
    %89 = memref.load %arg2[%c0_42, %c2_43] : memref<9x6xf32, #tpu.memory_space<smem>>
    %90 = vector.broadcast %89 : f32 to vector<8x960xf32>
    %91 = arith.mulf %90, %0 : vector<8x960xf32>
    %c1_44 = arith.constant 1 : index
    %c2_45 = arith.constant 2 : index
    %92 = memref.load %arg2[%c1_44, %c2_45] : memref<9x6xf32, #tpu.memory_space<smem>>
    %93 = vector.broadcast %92 : f32 to vector<8x960xf32>
    %94 = arith.mulf %93, %1 : vector<8x960xf32>
    %95 = arith.addf %91, %94 : vector<8x960xf32>
    %c2_46 = arith.constant 2 : index
    %c2_47 = arith.constant 2 : index
    %96 = memref.load %arg2[%c2_46, %c2_47] : memref<9x6xf32, #tpu.memory_space<smem>>
    %97 = vector.broadcast %96 : f32 to vector<8x960xf32>
    %98 = arith.mulf %97, %2 : vector<8x960xf32>
    %99 = arith.addf %95, %98 : vector<8x960xf32>
    %c3_48 = arith.constant 3 : index
    %c2_49 = arith.constant 2 : index
    %100 = memref.load %arg2[%c3_48, %c2_49] : memref<9x6xf32, #tpu.memory_space<smem>>
    %101 = vector.broadcast %100 : f32 to vector<8x960xf32>
    %102 = arith.mulf %101, %3 : vector<8x960xf32>
    %103 = arith.addf %99, %102 : vector<8x960xf32>
    %c4_50 = arith.constant 4 : index
    %c2_51 = arith.constant 2 : index
    %104 = memref.load %arg2[%c4_50, %c2_51] : memref<9x6xf32, #tpu.memory_space<smem>>
    %105 = vector.broadcast %104 : f32 to vector<8x960xf32>
    %106 = arith.mulf %105, %4 : vector<8x960xf32>
    %107 = arith.addf %103, %106 : vector<8x960xf32>
    %c5_52 = arith.constant 5 : index
    %c2_53 = arith.constant 2 : index
    %108 = memref.load %arg2[%c5_52, %c2_53] : memref<9x6xf32, #tpu.memory_space<smem>>
    %109 = vector.broadcast %108 : f32 to vector<8x960xf32>
    %110 = arith.mulf %109, %5 : vector<8x960xf32>
    %111 = arith.addf %107, %110 : vector<8x960xf32>
    %c6_54 = arith.constant 6 : index
    %c2_55 = arith.constant 2 : index
    %112 = memref.load %arg2[%c6_54, %c2_55] : memref<9x6xf32, #tpu.memory_space<smem>>
    %113 = vector.broadcast %112 : f32 to vector<8x960xf32>
    %114 = arith.mulf %113, %6 : vector<8x960xf32>
    %115 = arith.addf %111, %114 : vector<8x960xf32>
    %c7_56 = arith.constant 7 : index
    %c2_57 = arith.constant 2 : index
    %116 = memref.load %arg2[%c7_56, %c2_57] : memref<9x6xf32, #tpu.memory_space<smem>>
    %117 = vector.broadcast %116 : f32 to vector<8x960xf32>
    %118 = arith.mulf %117, %7 : vector<8x960xf32>
    %119 = arith.addf %115, %118 : vector<8x960xf32>
    %c8_58 = arith.constant 8 : index
    %c2_59 = arith.constant 2 : index
    %120 = memref.load %arg2[%c8_58, %c2_59] : memref<9x6xf32, #tpu.memory_space<smem>>
    %121 = vector.broadcast %120 : f32 to vector<8x960xf32>
    %122 = arith.mulf %121, %8 : vector<8x960xf32>
    %123 = arith.addf %119, %122 : vector<8x960xf32>
    %c2_60 = arith.constant 2 : index
    %124 = memref.load %arg3[%c2_60] : memref<6xf32, #tpu.memory_space<smem>>
    %125 = vector.broadcast %124 : f32 to vector<8x960xf32>
    %126 = arith.addf %123, %125 : vector<8x960xf32>
    %cst_61 = arith.constant 0.000000e+00 : f32
    %127 = vector.broadcast %cst_61 : f32 to vector<8x960xf32>
    %128 = arith.maximumf %126, %127 : vector<8x960xf32>
    %c0_62 = arith.constant 0 : index
    %c3_63 = arith.constant 3 : index
    %129 = memref.load %arg2[%c0_62, %c3_63] : memref<9x6xf32, #tpu.memory_space<smem>>
    %130 = vector.broadcast %129 : f32 to vector<8x960xf32>
    %131 = arith.mulf %130, %0 : vector<8x960xf32>
    %c1_64 = arith.constant 1 : index
    %c3_65 = arith.constant 3 : index
    %132 = memref.load %arg2[%c1_64, %c3_65] : memref<9x6xf32, #tpu.memory_space<smem>>
    %133 = vector.broadcast %132 : f32 to vector<8x960xf32>
    %134 = arith.mulf %133, %1 : vector<8x960xf32>
    %135 = arith.addf %131, %134 : vector<8x960xf32>
    %c2_66 = arith.constant 2 : index
    %c3_67 = arith.constant 3 : index
    %136 = memref.load %arg2[%c2_66, %c3_67] : memref<9x6xf32, #tpu.memory_space<smem>>
    %137 = vector.broadcast %136 : f32 to vector<8x960xf32>
    %138 = arith.mulf %137, %2 : vector<8x960xf32>
    %139 = arith.addf %135, %138 : vector<8x960xf32>
    %c3_68 = arith.constant 3 : index
    %c3_69 = arith.constant 3 : index
    %140 = memref.load %arg2[%c3_68, %c3_69] : memref<9x6xf32, #tpu.memory_space<smem>>
    %141 = vector.broadcast %140 : f32 to vector<8x960xf32>
    %142 = arith.mulf %141, %3 : vector<8x960xf32>
    %143 = arith.addf %139, %142 : vector<8x960xf32>
    %c4_70 = arith.constant 4 : index
    %c3_71 = arith.constant 3 : index
    %144 = memref.load %arg2[%c4_70, %c3_71] : memref<9x6xf32, #tpu.memory_space<smem>>
    %145 = vector.broadcast %144 : f32 to vector<8x960xf32>
    %146 = arith.mulf %145, %4 : vector<8x960xf32>
    %147 = arith.addf %143, %146 : vector<8x960xf32>
    %c5_72 = arith.constant 5 : index
    %c3_73 = arith.constant 3 : index
    %148 = memref.load %arg2[%c5_72, %c3_73] : memref<9x6xf32, #tpu.memory_space<smem>>
    %149 = vector.broadcast %148 : f32 to vector<8x960xf32>
    %150 = arith.mulf %149, %5 : vector<8x960xf32>
    %151 = arith.addf %147, %150 : vector<8x960xf32>
    %c6_74 = arith.constant 6 : index
    %c3_75 = arith.constant 3 : index
    %152 = memref.load %arg2[%c6_74, %c3_75] : memref<9x6xf32, #tpu.memory_space<smem>>
    %153 = vector.broadcast %152 : f32 to vector<8x960xf32>
    %154 = arith.mulf %153, %6 : vector<8x960xf32>
    %155 = arith.addf %151, %154 : vector<8x960xf32>
    %c7_76 = arith.constant 7 : index
    %c3_77 = arith.constant 3 : index
    %156 = memref.load %arg2[%c7_76, %c3_77] : memref<9x6xf32, #tpu.memory_space<smem>>
    %157 = vector.broadcast %156 : f32 to vector<8x960xf32>
    %158 = arith.mulf %157, %7 : vector<8x960xf32>
    %159 = arith.addf %155, %158 : vector<8x960xf32>
    %c8_78 = arith.constant 8 : index
    %c3_79 = arith.constant 3 : index
    %160 = memref.load %arg2[%c8_78, %c3_79] : memref<9x6xf32, #tpu.memory_space<smem>>
    %161 = vector.broadcast %160 : f32 to vector<8x960xf32>
    %162 = arith.mulf %161, %8 : vector<8x960xf32>
    %163 = arith.addf %159, %162 : vector<8x960xf32>
    %c3_80 = arith.constant 3 : index
    %164 = memref.load %arg3[%c3_80] : memref<6xf32, #tpu.memory_space<smem>>
    %165 = vector.broadcast %164 : f32 to vector<8x960xf32>
    %166 = arith.addf %163, %165 : vector<8x960xf32>
    %cst_81 = arith.constant 0.000000e+00 : f32
    %167 = vector.broadcast %cst_81 : f32 to vector<8x960xf32>
    %168 = arith.maximumf %166, %167 : vector<8x960xf32>
    %c0_82 = arith.constant 0 : index
    %c4_83 = arith.constant 4 : index
    %169 = memref.load %arg2[%c0_82, %c4_83] : memref<9x6xf32, #tpu.memory_space<smem>>
    %170 = vector.broadcast %169 : f32 to vector<8x960xf32>
    %171 = arith.mulf %170, %0 : vector<8x960xf32>
    %c1_84 = arith.constant 1 : index
    %c4_85 = arith.constant 4 : index
    %172 = memref.load %arg2[%c1_84, %c4_85] : memref<9x6xf32, #tpu.memory_space<smem>>
    %173 = vector.broadcast %172 : f32 to vector<8x960xf32>
    %174 = arith.mulf %173, %1 : vector<8x960xf32>
    %175 = arith.addf %171, %174 : vector<8x960xf32>
    %c2_86 = arith.constant 2 : index
    %c4_87 = arith.constant 4 : index
    %176 = memref.load %arg2[%c2_86, %c4_87] : memref<9x6xf32, #tpu.memory_space<smem>>
    %177 = vector.broadcast %176 : f32 to vector<8x960xf32>
    %178 = arith.mulf %177, %2 : vector<8x960xf32>
    %179 = arith.addf %175, %178 : vector<8x960xf32>
    %c3_88 = arith.constant 3 : index
    %c4_89 = arith.constant 4 : index
    %180 = memref.load %arg2[%c3_88, %c4_89] : memref<9x6xf32, #tpu.memory_space<smem>>
    %181 = vector.broadcast %180 : f32 to vector<8x960xf32>
    %182 = arith.mulf %181, %3 : vector<8x960xf32>
    %183 = arith.addf %179, %182 : vector<8x960xf32>
    %c4_90 = arith.constant 4 : index
    %c4_91 = arith.constant 4 : index
    %184 = memref.load %arg2[%c4_90, %c4_91] : memref<9x6xf32, #tpu.memory_space<smem>>
    %185 = vector.broadcast %184 : f32 to vector<8x960xf32>
    %186 = arith.mulf %185, %4 : vector<8x960xf32>
    %187 = arith.addf %183, %186 : vector<8x960xf32>
    %c5_92 = arith.constant 5 : index
    %c4_93 = arith.constant 4 : index
    %188 = memref.load %arg2[%c5_92, %c4_93] : memref<9x6xf32, #tpu.memory_space<smem>>
    %189 = vector.broadcast %188 : f32 to vector<8x960xf32>
    %190 = arith.mulf %189, %5 : vector<8x960xf32>
    %191 = arith.addf %187, %190 : vector<8x960xf32>
    %c6_94 = arith.constant 6 : index
    %c4_95 = arith.constant 4 : index
    %192 = memref.load %arg2[%c6_94, %c4_95] : memref<9x6xf32, #tpu.memory_space<smem>>
    %193 = vector.broadcast %192 : f32 to vector<8x960xf32>
    %194 = arith.mulf %193, %6 : vector<8x960xf32>
    %195 = arith.addf %191, %194 : vector<8x960xf32>
    %c7_96 = arith.constant 7 : index
    %c4_97 = arith.constant 4 : index
    %196 = memref.load %arg2[%c7_96, %c4_97] : memref<9x6xf32, #tpu.memory_space<smem>>
    %197 = vector.broadcast %196 : f32 to vector<8x960xf32>
    %198 = arith.mulf %197, %7 : vector<8x960xf32>
    %199 = arith.addf %195, %198 : vector<8x960xf32>
    %c8_98 = arith.constant 8 : index
    %c4_99 = arith.constant 4 : index
    %200 = memref.load %arg2[%c8_98, %c4_99] : memref<9x6xf32, #tpu.memory_space<smem>>
    %201 = vector.broadcast %200 : f32 to vector<8x960xf32>
    %202 = arith.mulf %201, %8 : vector<8x960xf32>
    %203 = arith.addf %199, %202 : vector<8x960xf32>
    %c4_100 = arith.constant 4 : index
    %204 = memref.load %arg3[%c4_100] : memref<6xf32, #tpu.memory_space<smem>>
    %205 = vector.broadcast %204 : f32 to vector<8x960xf32>
    %206 = arith.addf %203, %205 : vector<8x960xf32>
    %cst_101 = arith.constant 0.000000e+00 : f32
    %207 = vector.broadcast %cst_101 : f32 to vector<8x960xf32>
    %208 = arith.maximumf %206, %207 : vector<8x960xf32>
    %c0_102 = arith.constant 0 : index
    %c5_103 = arith.constant 5 : index
    %209 = memref.load %arg2[%c0_102, %c5_103] : memref<9x6xf32, #tpu.memory_space<smem>>
    %210 = vector.broadcast %209 : f32 to vector<8x960xf32>
    %211 = arith.mulf %210, %0 : vector<8x960xf32>
    %c1_104 = arith.constant 1 : index
    %c5_105 = arith.constant 5 : index
    %212 = memref.load %arg2[%c1_104, %c5_105] : memref<9x6xf32, #tpu.memory_space<smem>>
    %213 = vector.broadcast %212 : f32 to vector<8x960xf32>
    %214 = arith.mulf %213, %1 : vector<8x960xf32>
    %215 = arith.addf %211, %214 : vector<8x960xf32>
    %c2_106 = arith.constant 2 : index
    %c5_107 = arith.constant 5 : index
    %216 = memref.load %arg2[%c2_106, %c5_107] : memref<9x6xf32, #tpu.memory_space<smem>>
    %217 = vector.broadcast %216 : f32 to vector<8x960xf32>
    %218 = arith.mulf %217, %2 : vector<8x960xf32>
    %219 = arith.addf %215, %218 : vector<8x960xf32>
    %c3_108 = arith.constant 3 : index
    %c5_109 = arith.constant 5 : index
    %220 = memref.load %arg2[%c3_108, %c5_109] : memref<9x6xf32, #tpu.memory_space<smem>>
    %221 = vector.broadcast %220 : f32 to vector<8x960xf32>
    %222 = arith.mulf %221, %3 : vector<8x960xf32>
    %223 = arith.addf %219, %222 : vector<8x960xf32>
    %c4_110 = arith.constant 4 : index
    %c5_111 = arith.constant 5 : index
    %224 = memref.load %arg2[%c4_110, %c5_111] : memref<9x6xf32, #tpu.memory_space<smem>>
    %225 = vector.broadcast %224 : f32 to vector<8x960xf32>
    %226 = arith.mulf %225, %4 : vector<8x960xf32>
    %227 = arith.addf %223, %226 : vector<8x960xf32>
    %c5_112 = arith.constant 5 : index
    %c5_113 = arith.constant 5 : index
    %228 = memref.load %arg2[%c5_112, %c5_113] : memref<9x6xf32, #tpu.memory_space<smem>>
    %229 = vector.broadcast %228 : f32 to vector<8x960xf32>
    %230 = arith.mulf %229, %5 : vector<8x960xf32>
    %231 = arith.addf %227, %230 : vector<8x960xf32>
    %c6_114 = arith.constant 6 : index
    %c5_115 = arith.constant 5 : index
    %232 = memref.load %arg2[%c6_114, %c5_115] : memref<9x6xf32, #tpu.memory_space<smem>>
    %233 = vector.broadcast %232 : f32 to vector<8x960xf32>
    %234 = arith.mulf %233, %6 : vector<8x960xf32>
    %235 = arith.addf %231, %234 : vector<8x960xf32>
    %c7_116 = arith.constant 7 : index
    %c5_117 = arith.constant 5 : index
    %236 = memref.load %arg2[%c7_116, %c5_117] : memref<9x6xf32, #tpu.memory_space<smem>>
    %237 = vector.broadcast %236 : f32 to vector<8x960xf32>
    %238 = arith.mulf %237, %7 : vector<8x960xf32>
    %239 = arith.addf %235, %238 : vector<8x960xf32>
    %c8_118 = arith.constant 8 : index
    %c5_119 = arith.constant 5 : index
    %240 = memref.load %arg2[%c8_118, %c5_119] : memref<9x6xf32, #tpu.memory_space<smem>>
    %241 = vector.broadcast %240 : f32 to vector<8x960xf32>
    %242 = arith.mulf %241, %8 : vector<8x960xf32>
    %243 = arith.addf %239, %242 : vector<8x960xf32>
    %c5_120 = arith.constant 5 : index
    %244 = memref.load %arg3[%c5_120] : memref<6xf32, #tpu.memory_space<smem>>
    %245 = vector.broadcast %244 : f32 to vector<8x960xf32>
    %246 = arith.addf %243, %245 : vector<8x960xf32>
    %cst_121 = arith.constant 0.000000e+00 : f32
    %247 = vector.broadcast %cst_121 : f32 to vector<8x960xf32>
    %248 = arith.maximumf %246, %247 : vector<8x960xf32>
    %249 = tpu.concatenate %48, %88, %128, %168, %208, %248 in 0 : vector<8x960xf32>, vector<8x960xf32>, vector<8x960xf32>, vector<8x960xf32>, vector<8x960xf32>, vector<8x960xf32> -> vector<48x960xf32>
    %250 = vector.extract_strided_slice %249 {offsets = [0, 0], sizes = [48, 959], strides = [1, 1]} : vector<48x960xf32> to vector<48x959xf32>
    %251 = vector.extract_strided_slice %249 {offsets = [0, 1], sizes = [48, 959], strides = [1, 1]} : vector<48x960xf32> to vector<48x959xf32>
    %252 = arith.maximumf %250, %251 : vector<48x959xf32>
    %253 = vector.extract_strided_slice %252 {offsets = [0, 0], sizes = [48, 927], strides = [1, 1]} : vector<48x959xf32> to vector<48x927xf32>
    %254 = vector.extract_strided_slice %252 {offsets = [0, 32], sizes = [48, 927], strides = [1, 1]} : vector<48x959xf32> to vector<48x927xf32>
    %255 = arith.maximumf %253, %254 : vector<48x927xf32>
    %256 = arith.truncf %255 : vector<48x927xf32> to vector<48x927xbf16>
    %c0_122 = arith.constant 0 : index
    %c0_123 = arith.constant 0 : index
    %257 = vector.load %arg6[%c0_122, %c0_123] : memref<927x227xbf16, #tpu.memory_space<vmem>>, vector<927x227xbf16>
    %cst_124 = arith.constant dense<0.000000e+00> : vector<48x227xf32>
    %258 = tpu.matmul %256, %257, %cst_124 {dimension_numbers = #tpu.dot_dimension_numbers<[1], [0], [0], [1], [0, 0, 1, 1], [], []>} : vector<48x927xbf16>, vector<927x227xbf16>, vector<48x227xf32> -> vector<48x227xf32>
    %259 = vector.extract_strided_slice %258 {offsets = [0, 0], sizes = [8, 227], strides = [1, 1]} : vector<48x227xf32> to vector<8x227xf32>
    %260 = vector.extract_strided_slice %259 {offsets = [0, 0], sizes = [8, 195], strides = [1, 1]} : vector<8x227xf32> to vector<8x195xf32>
    %261 = vector.extract_strided_slice %259 {offsets = [0, 1], sizes = [8, 195], strides = [1, 1]} : vector<8x227xf32> to vector<8x195xf32>
    %262 = vector.extract_strided_slice %259 {offsets = [0, 2], sizes = [8, 195], strides = [1, 1]} : vector<8x227xf32> to vector<8x195xf32>
    %263 = vector.extract_strided_slice %259 {offsets = [0, 15], sizes = [8, 195], strides = [1, 1]} : vector<8x227xf32> to vector<8x195xf32>
    %264 = vector.extract_strided_slice %259 {offsets = [0, 16], sizes = [8, 195], strides = [1, 1]} : vector<8x227xf32> to vector<8x195xf32>
    %265 = vector.extract_strided_slice %259 {offsets = [0, 17], sizes = [8, 195], strides = [1, 1]} : vector<8x227xf32> to vector<8x195xf32>
    %266 = vector.extract_strided_slice %259 {offsets = [0, 30], sizes = [8, 195], strides = [1, 1]} : vector<8x227xf32> to vector<8x195xf32>
    %267 = vector.extract_strided_slice %259 {offsets = [0, 31], sizes = [8, 195], strides = [1, 1]} : vector<8x227xf32> to vector<8x195xf32>
    %268 = vector.extract_strided_slice %259 {offsets = [0, 32], sizes = [8, 195], strides = [1, 1]} : vector<8x227xf32> to vector<8x195xf32>
    %269 = vector.extract_strided_slice %258 {offsets = [8, 0], sizes = [8, 227], strides = [1, 1]} : vector<48x227xf32> to vector<8x227xf32>
    %270 = vector.extract_strided_slice %269 {offsets = [0, 0], sizes = [8, 195], strides = [1, 1]} : vector<8x227xf32> to vector<8x195xf32>
    %271 = vector.extract_strided_slice %269 {offsets = [0, 1], sizes = [8, 195], strides = [1, 1]} : vector<8x227xf32> to vector<8x195xf32>
    %272 = vector.extract_strided_slice %269 {offsets = [0, 2], sizes = [8, 195], strides = [1, 1]} : vector<8x227xf32> to vector<8x195xf32>
    %273 = vector.extract_strided_slice %269 {offsets = [0, 15], sizes = [8, 195], strides = [1, 1]} : vector<8x227xf32> to vector<8x195xf32>
    %274 = vector.extract_strided_slice %269 {offsets = [0, 16], sizes = [8, 195], strides = [1, 1]} : vector<8x227xf32> to vector<8x195xf32>
    %275 = vector.extract_strided_slice %269 {offsets = [0, 17], sizes = [8, 195], strides = [1, 1]} : vector<8x227xf32> to vector<8x195xf32>
    %276 = vector.extract_strided_slice %269 {offsets = [0, 30], sizes = [8, 195], strides = [1, 1]} : vector<8x227xf32> to vector<8x195xf32>
    %277 = vector.extract_strided_slice %269 {offsets = [0, 31], sizes = [8, 195], strides = [1, 1]} : vector<8x227xf32> to vector<8x195xf32>
    %278 = vector.extract_strided_slice %269 {offsets = [0, 32], sizes = [8, 195], strides = [1, 1]} : vector<8x227xf32> to vector<8x195xf32>
    %279 = vector.extract_strided_slice %258 {offsets = [16, 0], sizes = [8, 227], strides = [1, 1]} : vector<48x227xf32> to vector<8x227xf32>
    %280 = vector.extract_strided_slice %279 {offsets = [0, 0], sizes = [8, 195], strides = [1, 1]} : vector<8x227xf32> to vector<8x195xf32>
    %281 = vector.extract_strided_slice %279 {offsets = [0, 1], sizes = [8, 195], strides = [1, 1]} : vector<8x227xf32> to vector<8x195xf32>
    %282 = vector.extract_strided_slice %279 {offsets = [0, 2], sizes = [8, 195], strides = [1, 1]} : vector<8x227xf32> to vector<8x195xf32>
    %283 = vector.extract_strided_slice %279 {offsets = [0, 15], sizes = [8, 195], strides = [1, 1]} : vector<8x227xf32> to vector<8x195xf32>
    %284 = vector.extract_strided_slice %279 {offsets = [0, 16], sizes = [8, 195], strides = [1, 1]} : vector<8x227xf32> to vector<8x195xf32>
    %285 = vector.extract_strided_slice %279 {offsets = [0, 17], sizes = [8, 195], strides = [1, 1]} : vector<8x227xf32> to vector<8x195xf32>
    %286 = vector.extract_strided_slice %279 {offsets = [0, 30], sizes = [8, 195], strides = [1, 1]} : vector<8x227xf32> to vector<8x195xf32>
    %287 = vector.extract_strided_slice %279 {offsets = [0, 31], sizes = [8, 195], strides = [1, 1]} : vector<8x227xf32> to vector<8x195xf32>
    %288 = vector.extract_strided_slice %279 {offsets = [0, 32], sizes = [8, 195], strides = [1, 1]} : vector<8x227xf32> to vector<8x195xf32>
    %289 = vector.extract_strided_slice %258 {offsets = [24, 0], sizes = [8, 227], strides = [1, 1]} : vector<48x227xf32> to vector<8x227xf32>
    %290 = vector.extract_strided_slice %289 {offsets = [0, 0], sizes = [8, 195], strides = [1, 1]} : vector<8x227xf32> to vector<8x195xf32>
    %291 = vector.extract_strided_slice %289 {offsets = [0, 1], sizes = [8, 195], strides = [1, 1]} : vector<8x227xf32> to vector<8x195xf32>
    %292 = vector.extract_strided_slice %289 {offsets = [0, 2], sizes = [8, 195], strides = [1, 1]} : vector<8x227xf32> to vector<8x195xf32>
    %293 = vector.extract_strided_slice %289 {offsets = [0, 15], sizes = [8, 195], strides = [1, 1]} : vector<8x227xf32> to vector<8x195xf32>
    %294 = vector.extract_strided_slice %289 {offsets = [0, 16], sizes = [8, 195], strides = [1, 1]} : vector<8x227xf32> to vector<8x195xf32>
    %295 = vector.extract_strided_slice %289 {offsets = [0, 17], sizes = [8, 195], strides = [1, 1]} : vector<8x227xf32> to vector<8x195xf32>
    %296 = vector.extract_strided_slice %289 {offsets = [0, 30], sizes = [8, 195], strides = [1, 1]} : vector<8x227xf32> to vector<8x195xf32>
    %297 = vector.extract_strided_slice %289 {offsets = [0, 31], sizes = [8, 195], strides = [1, 1]} : vector<8x227xf32> to vector<8x195xf32>
    %298 = vector.extract_strided_slice %289 {offsets = [0, 32], sizes = [8, 195], strides = [1, 1]} : vector<8x227xf32> to vector<8x195xf32>
    %299 = vector.extract_strided_slice %258 {offsets = [32, 0], sizes = [8, 227], strides = [1, 1]} : vector<48x227xf32> to vector<8x227xf32>
    %300 = vector.extract_strided_slice %299 {offsets = [0, 0], sizes = [8, 195], strides = [1, 1]} : vector<8x227xf32> to vector<8x195xf32>
    %301 = vector.extract_strided_slice %299 {offsets = [0, 1], sizes = [8, 195], strides = [1, 1]} : vector<8x227xf32> to vector<8x195xf32>
    %302 = vector.extract_strided_slice %299 {offsets = [0, 2], sizes = [8, 195], strides = [1, 1]} : vector<8x227xf32> to vector<8x195xf32>
    %303 = vector.extract_strided_slice %299 {offsets = [0, 15], sizes = [8, 195], strides = [1, 1]} : vector<8x227xf32> to vector<8x195xf32>
    %304 = vector.extract_strided_slice %299 {offsets = [0, 16], sizes = [8, 195], strides = [1, 1]} : vector<8x227xf32> to vector<8x195xf32>
    %305 = vector.extract_strided_slice %299 {offsets = [0, 17], sizes = [8, 195], strides = [1, 1]} : vector<8x227xf32> to vector<8x195xf32>
    %306 = vector.extract_strided_slice %299 {offsets = [0, 30], sizes = [8, 195], strides = [1, 1]} : vector<8x227xf32> to vector<8x195xf32>
    %307 = vector.extract_strided_slice %299 {offsets = [0, 31], sizes = [8, 195], strides = [1, 1]} : vector<8x227xf32> to vector<8x195xf32>
    %308 = vector.extract_strided_slice %299 {offsets = [0, 32], sizes = [8, 195], strides = [1, 1]} : vector<8x227xf32> to vector<8x195xf32>
    %309 = vector.extract_strided_slice %258 {offsets = [40, 0], sizes = [8, 227], strides = [1, 1]} : vector<48x227xf32> to vector<8x227xf32>
    %310 = vector.extract_strided_slice %309 {offsets = [0, 0], sizes = [8, 195], strides = [1, 1]} : vector<8x227xf32> to vector<8x195xf32>
    %311 = vector.extract_strided_slice %309 {offsets = [0, 1], sizes = [8, 195], strides = [1, 1]} : vector<8x227xf32> to vector<8x195xf32>
    %312 = vector.extract_strided_slice %309 {offsets = [0, 2], sizes = [8, 195], strides = [1, 1]} : vector<8x227xf32> to vector<8x195xf32>
    %313 = vector.extract_strided_slice %309 {offsets = [0, 15], sizes = [8, 195], strides = [1, 1]} : vector<8x227xf32> to vector<8x195xf32>
    %314 = vector.extract_strided_slice %309 {offsets = [0, 16], sizes = [8, 195], strides = [1, 1]} : vector<8x227xf32> to vector<8x195xf32>
    %315 = vector.extract_strided_slice %309 {offsets = [0, 17], sizes = [8, 195], strides = [1, 1]} : vector<8x227xf32> to vector<8x195xf32>
    %316 = vector.extract_strided_slice %309 {offsets = [0, 30], sizes = [8, 195], strides = [1, 1]} : vector<8x227xf32> to vector<8x195xf32>
    %317 = vector.extract_strided_slice %309 {offsets = [0, 31], sizes = [8, 195], strides = [1, 1]} : vector<8x227xf32> to vector<8x195xf32>
    %318 = vector.extract_strided_slice %309 {offsets = [0, 32], sizes = [8, 195], strides = [1, 1]} : vector<8x227xf32> to vector<8x195xf32>
    %319 = tpu.concatenate %260, %261, %262, %263, %264, %265, %266, %267, %268, %270, %271, %272, %273, %274, %275, %276 in 0 : vector<8x195xf32>, vector<8x195xf32>, vector<8x195xf32>, vector<8x195xf32>, vector<8x195xf32>, vector<8x195xf32>, vector<8x195xf32>, vector<8x195xf32>, vector<8x195xf32>, vector<8x195xf32>, vector<8x195xf32>, vector<8x195xf32>, vector<8x195xf32>, vector<8x195xf32>, vector<8x195xf32>, vector<8x195xf32> -> vector<128x195xf32>
    %320 = tpu.concatenate %277, %278, %280, %281, %282, %283, %284, %285, %286, %287, %288, %290, %291, %292, %293, %294 in 0 : vector<8x195xf32>, vector<8x195xf32>, vector<8x195xf32>, vector<8x195xf32>, vector<8x195xf32>, vector<8x195xf32>, vector<8x195xf32>, vector<8x195xf32>, vector<8x195xf32>, vector<8x195xf32>, vector<8x195xf32>, vector<8x195xf32>, vector<8x195xf32>, vector<8x195xf32>, vector<8x195xf32>, vector<8x195xf32> -> vector<128x195xf32>
    %321 = tpu.concatenate %295, %296, %297, %298, %300, %301, %302, %303, %304, %305, %306, %307, %308, %310, %311, %312 in 0 : vector<8x195xf32>, vector<8x195xf32>, vector<8x195xf32>, vector<8x195xf32>, vector<8x195xf32>, vector<8x195xf32>, vector<8x195xf32>, vector<8x195xf32>, vector<8x195xf32>, vector<8x195xf32>, vector<8x195xf32>, vector<8x195xf32>, vector<8x195xf32>, vector<8x195xf32>, vector<8x195xf32>, vector<8x195xf32> -> vector<128x195xf32>
    %322 = tpu.concatenate %313, %314, %315, %316, %317, %318 in 0 : vector<8x195xf32>, vector<8x195xf32>, vector<8x195xf32>, vector<8x195xf32>, vector<8x195xf32>, vector<8x195xf32> -> vector<48x195xf32>
    %323 = tpu.concatenate %319, %320, %321, %322 in 0 : vector<128x195xf32>, vector<128x195xf32>, vector<128x195xf32>, vector<48x195xf32> -> vector<432x195xf32>
    %324 = arith.truncf %323 : vector<432x195xf32> to vector<432x195xbf16>
    %c0_125 = arith.constant 0 : index
    %c0_126 = arith.constant 0 : index
    %325 = vector.load %arg4[%c0_125, %c0_126] : memref<128x432xbf16, #tpu.memory_space<vmem>>, vector<128x432xbf16>
    %cst_127 = arith.constant dense<0.000000e+00> : vector<128x195xf32>
    %326 = tpu.matmul %325, %324, %cst_127 {dimension_numbers = #tpu.dot_dimension_numbers<[1], [0], [0], [1], [0, 0, 1, 1], [], []>} : vector<128x432xbf16>, vector<432x195xbf16>, vector<128x195xf32> -> vector<128x195xf32>
    %c0_128 = arith.constant 0 : index
    %c0_129 = arith.constant 0 : index
    %327 = vector.load %arg5[%c0_128, %c0_129] : memref<128x1xf32, #tpu.memory_space<vmem>>, vector<128x1xf32>
    %328 = vector.broadcast %327 : vector<128x1xf32> to vector<128x195xf32>
    %329 = arith.addf %326, %328 : vector<128x195xf32>
    %cst_130 = arith.constant 0.000000e+00 : f32
    %330 = vector.broadcast %cst_130 : f32 to vector<128x195xf32>
    %331 = arith.maximumf %329, %330 : vector<128x195xf32>
    %332 = vector.extract_strided_slice %331 {offsets = [0, 0], sizes = [128, 194], strides = [1, 1]} : vector<128x195xf32> to vector<128x194xf32>
    %333 = vector.extract_strided_slice %331 {offsets = [0, 1], sizes = [128, 194], strides = [1, 1]} : vector<128x195xf32> to vector<128x194xf32>
    %334 = arith.maximumf %332, %333 : vector<128x194xf32>
    %335 = vector.extract_strided_slice %334 {offsets = [0, 0], sizes = [128, 179], strides = [1, 1]} : vector<128x194xf32> to vector<128x179xf32>
    %336 = vector.extract_strided_slice %334 {offsets = [0, 15], sizes = [128, 179], strides = [1, 1]} : vector<128x194xf32> to vector<128x179xf32>
    %337 = arith.maximumf %335, %336 : vector<128x179xf32>
    %338 = arith.truncf %337 : vector<128x179xf32> to vector<128x179xbf16>
    %c0_131 = arith.constant 0 : index
    %c0_132 = arith.constant 0 : index
    %339 = vector.load %arg7[%c0_131, %c0_132] : memref<179x36xbf16, #tpu.memory_space<vmem>>, vector<179x36xbf16>
    %cst_133 = arith.constant dense<0.000000e+00> : vector<128x36xf32>
    %340 = tpu.matmul %338, %339, %cst_133 {dimension_numbers = #tpu.dot_dimension_numbers<[1], [0], [0], [1], [0, 0, 1, 1], [], []>} : vector<128x179xbf16>, vector<179x36xbf16>, vector<128x36xf32> -> vector<128x36xf32>
    %341 = vector.extract_strided_slice %340 {offsets = [0, 0], sizes = [8, 36], strides = [1, 1]} : vector<128x36xf32> to vector<8x36xf32>
    %342 = vector.extract_strided_slice %340 {offsets = [8, 0], sizes = [8, 36], strides = [1, 1]} : vector<128x36xf32> to vector<8x36xf32>
    %343 = vector.extract_strided_slice %340 {offsets = [16, 0], sizes = [8, 36], strides = [1, 1]} : vector<128x36xf32> to vector<8x36xf32>
    %344 = vector.extract_strided_slice %340 {offsets = [24, 0], sizes = [8, 36], strides = [1, 1]} : vector<128x36xf32> to vector<8x36xf32>
    %345 = vector.extract_strided_slice %340 {offsets = [32, 0], sizes = [8, 36], strides = [1, 1]} : vector<128x36xf32> to vector<8x36xf32>
    %346 = vector.extract_strided_slice %340 {offsets = [40, 0], sizes = [8, 36], strides = [1, 1]} : vector<128x36xf32> to vector<8x36xf32>
    %347 = vector.extract_strided_slice %340 {offsets = [48, 0], sizes = [8, 36], strides = [1, 1]} : vector<128x36xf32> to vector<8x36xf32>
    %348 = vector.extract_strided_slice %340 {offsets = [56, 0], sizes = [8, 36], strides = [1, 1]} : vector<128x36xf32> to vector<8x36xf32>
    %349 = vector.extract_strided_slice %340 {offsets = [64, 0], sizes = [8, 36], strides = [1, 1]} : vector<128x36xf32> to vector<8x36xf32>
    %350 = vector.extract_strided_slice %340 {offsets = [72, 0], sizes = [8, 36], strides = [1, 1]} : vector<128x36xf32> to vector<8x36xf32>
    %351 = vector.extract_strided_slice %340 {offsets = [80, 0], sizes = [8, 36], strides = [1, 1]} : vector<128x36xf32> to vector<8x36xf32>
    %352 = vector.extract_strided_slice %340 {offsets = [88, 0], sizes = [8, 36], strides = [1, 1]} : vector<128x36xf32> to vector<8x36xf32>
    %353 = vector.extract_strided_slice %340 {offsets = [96, 0], sizes = [8, 36], strides = [1, 1]} : vector<128x36xf32> to vector<8x36xf32>
    %354 = vector.extract_strided_slice %340 {offsets = [104, 0], sizes = [8, 36], strides = [1, 1]} : vector<128x36xf32> to vector<8x36xf32>
    %355 = vector.extract_strided_slice %340 {offsets = [112, 0], sizes = [8, 36], strides = [1, 1]} : vector<128x36xf32> to vector<8x36xf32>
    %356 = vector.extract_strided_slice %340 {offsets = [120, 0], sizes = [8, 36], strides = [1, 1]} : vector<128x36xf32> to vector<8x36xf32>
    %357 = tpu.concatenate %341, %342, %343, %344, %345, %346, %347, %348, %349, %350, %351, %352, %353, %354, %355, %356 in 1 : vector<8x36xf32>, vector<8x36xf32>, vector<8x36xf32>, vector<8x36xf32>, vector<8x36xf32>, vector<8x36xf32>, vector<8x36xf32>, vector<8x36xf32>, vector<8x36xf32>, vector<8x36xf32>, vector<8x36xf32>, vector<8x36xf32>, vector<8x36xf32>, vector<8x36xf32>, vector<8x36xf32>, vector<8x36xf32> -> vector<8x576xf32>
    %358 = arith.truncf %357 : vector<8x576xf32> to vector<8x576xbf16>
    %c0_134 = arith.constant 0 : index
    %c0_135 = arith.constant 0 : index
    %359 = vector.load %arg8[%c0_134, %c0_135] : memref<576x120xbf16, #tpu.memory_space<vmem>>, vector<576x120xbf16>
    %cst_136 = arith.constant dense<0.000000e+00> : vector<8x120xf32>
    %360 = tpu.matmul %358, %359, %cst_136 {dimension_numbers = #tpu.dot_dimension_numbers<[1], [0], [0], [1], [0, 0, 1, 1], [], []>} : vector<8x576xbf16>, vector<576x120xbf16>, vector<8x120xf32> -> vector<8x120xf32>
    %c0_137 = arith.constant 0 : index
    %c0_138 = arith.constant 0 : index
    %361 = vector.load %arg9[%c0_137, %c0_138] : memref<1x120xf32, #tpu.memory_space<vmem>>, vector<1x120xf32>
    %362 = vector.broadcast %361 : vector<1x120xf32> to vector<8x120xf32>
    %363 = arith.addf %360, %362 : vector<8x120xf32>
    %cst_139 = arith.constant 0.000000e+00 : f32
    %364 = vector.broadcast %cst_139 : f32 to vector<8x120xf32>
    %365 = arith.maximumf %363, %364 : vector<8x120xf32>
    %366 = arith.truncf %365 : vector<8x120xf32> to vector<8x120xbf16>
    %c0_140 = arith.constant 0 : index
    %c0_141 = arith.constant 0 : index
    %367 = vector.load %arg10[%c0_140, %c0_141] : memref<120x84xbf16, #tpu.memory_space<vmem>>, vector<120x84xbf16>
    %cst_142 = arith.constant dense<0.000000e+00> : vector<8x84xf32>
    %368 = tpu.matmul %366, %367, %cst_142 {dimension_numbers = #tpu.dot_dimension_numbers<[1], [0], [0], [1], [0, 0, 1, 1], [], []>} : vector<8x120xbf16>, vector<120x84xbf16>, vector<8x84xf32> -> vector<8x84xf32>
    %c0_143 = arith.constant 0 : index
    %c0_144 = arith.constant 0 : index
    %369 = vector.load %arg11[%c0_143, %c0_144] : memref<1x84xf32, #tpu.memory_space<vmem>>, vector<1x84xf32>
    %370 = vector.broadcast %369 : vector<1x84xf32> to vector<8x84xf32>
    %371 = arith.addf %368, %370 : vector<8x84xf32>
    %cst_145 = arith.constant 0.000000e+00 : f32
    %372 = vector.broadcast %cst_145 : f32 to vector<8x84xf32>
    %373 = arith.maximumf %371, %372 : vector<8x84xf32>
    %374 = arith.truncf %373 : vector<8x84xf32> to vector<8x84xbf16>
    %c0_146 = arith.constant 0 : index
    %c0_147 = arith.constant 0 : index
    %375 = vector.load %arg12[%c0_146, %c0_147] : memref<84x10xbf16, #tpu.memory_space<vmem>>, vector<84x10xbf16>
    %cst_148 = arith.constant dense<0.000000e+00> : vector<8x10xf32>
    %376 = tpu.matmul %374, %375, %cst_148 {dimension_numbers = #tpu.dot_dimension_numbers<[1], [0], [0], [1], [0, 0, 1, 1], [], []>} : vector<8x84xbf16>, vector<84x10xbf16>, vector<8x10xf32> -> vector<8x10xf32>
    %c0_149 = arith.constant 0 : index
    %c0_150 = arith.constant 0 : index
    %377 = vector.load %arg13[%c0_149, %c0_150] : memref<1x10xf32, #tpu.memory_space<vmem>>, vector<1x10xf32>
    %378 = vector.broadcast %377 : vector<1x10xf32> to vector<8x10xf32>
    %379 = arith.addf %376, %378 : vector<8x10xf32>
    %cst_151 = arith.constant 0.000000e+00 : f32
    %380 = vector.broadcast %cst_151 : f32 to vector<8x118xf32>
    %381 = tpu.concatenate %379, %380 in 1 : vector<8x10xf32>, vector<8x118xf32> -> vector<8x128xf32>
    %c0_152 = arith.constant 0 : index
    %c0_153 = arith.constant 0 : index
    %382 = vector.load %arg14[%c0_152, %c0_153] : memref<8x128xf32, #tpu.memory_space<vmem>>, vector<8x128xf32>
    tpu.vector_store %arg14[%c0_152, %c0_153], %381 {strides = array<i32>} : memref<8x128xf32, #tpu.memory_space<vmem>>, vector<8x128xf32>,
    return
  }
  func.func @transform_0(%arg0: i32) -> (i32, i32) {
    %c0_i32 = arith.constant 0 : i32
    %c0_i32_0 = arith.constant 0 : i32
    return %arg0, %c0_i32 : i32, i32
  }
  func.func @transform_1(%arg0: i32) -> (i32, i32) {
    %c0_i32 = arith.constant 0 : i32
    %c0_i32_0 = arith.constant 0 : i32
    %c0_i32_1 = arith.constant 0 : i32
    return %c0_i32, %c0_i32_0 : i32, i32
  }
  func.func @transform_2(%arg0: i32) -> i32 {
    %c0_i32 = arith.constant 0 : i32
    %c0_i32_0 = arith.constant 0 : i32
    return %c0_i32 : i32
  }
  func.func @transform_3(%arg0: i32) -> (i32, i32) {
    %c0_i32 = arith.constant 0 : i32
    %c0_i32_0 = arith.constant 0 : i32
    %c0_i32_1 = arith.constant 0 : i32
    return %c0_i32, %c0_i32_0 : i32, i32
  }
  func.func @transform_4(%arg0: i32) -> (i32, i32) {
    %c0_i32 = arith.constant 0 : i32
    %c0_i32_0 = arith.constant 0 : i32
    %c0_i32_1 = arith.constant 0 : i32
    return %c0_i32, %c0_i32_0 : i32, i32
  }
  func.func @transform_5(%arg0: i32) -> (i32, i32) {
    %c0_i32 = arith.constant 0 : i32
    %c0_i32_0 = arith.constant 0 : i32
    %c0_i32_1 = arith.constant 0 : i32
    return %c0_i32, %c0_i32_0 : i32, i32
  }
  func.func @transform_6(%arg0: i32) -> (i32, i32) {
    %c0_i32 = arith.constant 0 : i32
    %c0_i32_0 = arith.constant 0 : i32
    %c0_i32_1 = arith.constant 0 : i32
    return %c0_i32, %c0_i32_0 : i32, i32
  }
  func.func @transform_7(%arg0: i32) -> (i32, i32) {
    %c0_i32 = arith.constant 0 : i32
    %c0_i32_0 = arith.constant 0 : i32
    %c0_i32_1 = arith.constant 0 : i32
    return %c0_i32, %c0_i32_0 : i32, i32
  }
  func.func @transform_8(%arg0: i32) -> (i32, i32) {
    %c0_i32 = arith.constant 0 : i32
    %c0_i32_0 = arith.constant 0 : i32
    %c0_i32_1 = arith.constant 0 : i32
    return %c0_i32, %c0_i32_0 : i32, i32
  }
  func.func @transform_9(%arg0: i32) -> (i32, i32) {
    %c0_i32 = arith.constant 0 : i32
    %c0_i32_0 = arith.constant 0 : i32
    %c0_i32_1 = arith.constant 0 : i32
    return %c0_i32, %c0_i32_0 : i32, i32
  }
  func.func @transform_10(%arg0: i32) -> (i32, i32) {
    %c0_i32 = arith.constant 0 : i32
    %c0_i32_0 = arith.constant 0 : i32
    %c0_i32_1 = arith.constant 0 : i32
    return %c0_i32, %c0_i32_0 : i32, i32
  }
  func.func @transform_11(%arg0: i32) -> (i32, i32) {
    %c0_i32 = arith.constant 0 : i32
    %c0_i32_0 = arith.constant 0 : i32
    %c0_i32_1 = arith.constant 0 : i32
    return %c0_i32, %c0_i32_0 : i32, i32
  }
  func.func @transform_12(%arg0: i32) -> (i32, i32) {
    %c0_i32 = arith.constant 0 : i32
    %c0_i32_0 = arith.constant 0 : i32
    %c0_i32_1 = arith.constant 0 : i32
    return %c0_i32, %c0_i32_0 : i32, i32
  }
  func.func @transform_13(%arg0: i32) -> (i32, i32) {
    %c0_i32 = arith.constant 0 : i32
    %c0_i32_0 = arith.constant 0 : i32
    return %arg0, %c0_i32 : i32, i32
  }
}

</mosaic_0001>

<bundles_post_ra>
// kernel: net_forward.1
= control target key start
LH: loop header
LB: loop body
LE: loop exit
PB: predicated region body
PF: predicated region fallthrough
CT: control target
= control target key end

     0   :  { %18 = vsyncpa [#allocation4], 0  ;;  %s14642_s0 = inlined_call_operand.vmem [shape: f32[8,1026], index: 0, kind: input, shape index: {}]   ;;  %s14643_s1 = inlined_call_operand.vmem [shape: f32[9,6], index: 1, kind: input, shape index: {}]   ;;  %s14644_s2 = inlined_call_operand.vmem [shape: f32[6], index: 2, kind: input, shape index: {}]   ;;  %s14645_s3 = inlined_call_operand.vmem [shape: bf16[128,432], index: 3, kind: input, shape index: {}]   ;;  %s14646_s4 = inlined_call_operand.vmem [shape: f32[128,1], index: 4, kind: input, shape index: {}]   ;;  %s14647_s5 = inlined_call_operand.vmem [shape: bf16[927,227], index: 5, kind: input, shape index: {}]   ;;  %s14648_s6 = inlined_call_operand.vmem [shape: bf16[179,36], index: 6, kind: input, shape index: {}]   ;;  %s14649_s7 = inlined_call_operand.hbm [shape: bf16[576,120], index: 7, kind: input, shape index: {}]   ;;  %s14650_s8 = inlined_call_operand.vmem [shape: f32[1,120], index: 8, kind: input, shape index: {}]   ;;  %s14651_s9 = inlined_call_operand.vmem [shape: bf16[120,84], index: 9, kind: input, shape index: {}]   ;;  %s14652_s10 = inlined_call_operand.vmem [shape: f32[1,84], index: 10, kind: input, shape index: {}]   ;;  %s14653_s11 = inlined_call_operand.vmem [shape: bf16[84,10], index: 11, kind: input, shape index: {}]   ;;  %s14654_s12 = inlined_call_operand.vmem [shape: f32[1,10], index: 12, kind: input, shape index: {}]   ;;  %s14655_s13 = inlined_call_operand.vmem [shape: f32[8,128], index: 13, kind: output, shape index: {}]  }
   0x1   :  { %19 = vsyncpa [#allocation6], 0  ;;  %s28_s27 = sshll.u32 %s14643_s1, 4  ;;  %s29_s27 = int_to_ptr.vmem [resolvable:$true] %s28_s27 }
   0x2   :  { %20 = vsyncpa [#allocation3], 0  ;;  %s41_s30 = sshll.u32 %s14644_s2, 4  ;;  %s8785_s14 = scalar_lea.vmem %s29_s27, 256  ;;  %s42_s30 = int_to_ptr.vmem [resolvable:$true] %s41_s30 }
   0x3   :  { %p8786_p0 = scmp.ne.s32.totalorder %s29_s27, %s8785_s14  ;;  %p8790_p1 = scmp.lt.s32.totalorder %s29_s27, %s29_s27 }
   0x4   :  { %p8791_p2 = scmp.lt.s32.totalorder %s8785_s14, %s8785_s14 }
   0x6   :  { %p8792_p3 = por %p8791_p2, %p8790_p1 }
   0x8   :  { %p8793_p4 = pnand %p8792_p3, %p8786_p0 }
   0xa   :  { %8796 = shalt.err (!%p8793_p4)
}
   0xb   :  { %s8837_s15 = smov [#allocation2]   ;;  %s8838_s16 = smov 128  }
   0xc   :  { %s8839_s17 = smov 8   ;;  %s8797_s18 = scalar_lea.vmem %s42_s30, 16 }
   0xd   :  { %34 = dma.vmem_to_smem %s29_s27, 256, %s8837_s15, [#allocation4], %s8838_s16, %s8838_s16, %s8839_s17  }
   0xe   :  { %p8798_p5 = scmp.ne.s32.totalorder %s42_s30, %s8797_s18  ;;  %p8802_p6 = scmp.lt.s32.totalorder %s42_s30, %s42_s30 }
   0xf   :  { %p8803_p7 = scmp.lt.s32.totalorder %s8797_s18, %s8797_s18 }
  0x11   :  { %p8804_p8 = por %p8803_p7, %p8802_p6 }
  0x13   :  { %p8805_p9 = pnand %p8804_p8, %p8798_p5 }
  0x15   :  { %8808 = shalt.err (!%p8805_p9)
}
  0x16   :  { %s8840_s1 = smov [#allocation5]   ;;  %s8841_s2 = smov [#allocation7]  }
  0x17   :  { %44 = dma.vmem_to_smem %s42_s30, 16, %s8840_s1, [#allocation6]  }
  0x18   :  { %s58_s19 = sshll.u32 %s8841_s2, 4  ;;  %s8809_s22 = scalar_lea.hbm %s14649_s7, 4608  ;;  %s59_s19 = int_to_ptr.vmem [resolvable:$true] %s58_s19 }
  0x19   :  { %p8810_p10 = scmp.ne.s32.totalorder %s14649_s7, %s8809_s22  ;;  %p8813_p11 = scmp.lt.u32.totalorder %s8809_s22, %s14649_s7 }
  0x1b   :  { %p8815_p12 = pnand %p8813_p11, %p8810_p10 }
  0x1d   :  { %8818 = shalt.err (!%p8815_p12)
}
  0x1e   :  { %s8819_s27 = scalar_lea.vmem %s59_s19, 4608  ;;  %p8824_p0 = scmp.lt.s32.totalorder %s59_s19, %s59_s19 }
  0x1f   :  { %p8820_p13 = scmp.ne.s32.totalorder %s59_s19, %s8819_s27  ;;  %p8825_p1 = scmp.lt.s32.totalorder %s8819_s27, %s8819_s27 }
  0x21   :  { %p8826_p2 = por %p8825_p1, %p8824_p0 }
  0x23   :  { %p8827_p3 = pnand %p8826_p2, %p8820_p13 }
  0x25   :  { %8830 = shalt.err (!%p8827_p3)
}
  0x26   :  { %s8842_s28 = smov 64   ;;  %s8843_s29 = smov 4  }
  0x27   :  { %64 = dma.hbm_to_vmem [thread:$0]  %s14649_s7, 4608, %s59_s19, [#allocation3], %s8842_s28, %s8842_s28, %s8843_s29  }
  0x28   :  { %8831 = dma.done.wait [#allocation4], 256  }
  0x29   :  { %8832 = vsyncadd [#allocation4], 4294967040 }
  0x2a   :  { %8833 = dma.done.wait [#allocation6], 16  }
  0x2b   :  { %8834 = vsyncadd [#allocation6], 4294967280 }
  0x2c   :  { %8835 = dma.done.wait [#allocation3], 4608  }
  0x2d   :  { %8836 = vsyncadd [#allocation3], 4294962688 }
  0x2e   :  { %84 = sfence }
  0x2f   :  { %s7109_s15 = sld [smem:[#allocation2 + $0x80]]  ;;  %v8978_v0 = vld [vmem:[%s14642_s0 + $0x18] sm:$0xff]  ;;  %v8983_v1 = vld [vmem:[%s14642_s0 + $0x8] sm:$0xff]  ;;  %s7118_s2 = sld [smem:[#allocation2 + $0x81]]  ;;  %v8988_v2 = vld [vmem:[%s14642_s0 + $0x20] sm:$0xff]  ;;  %vm139_vm0 = vcmask 1039360  }
  0x30   :  { %v8993_v3 = vld [vmem:[%s14642_s0 + $0x10] sm:$0xff]  ;;  %s8844_s22 = smov 127   ;;  %s7110_s23 = sld [smem:[#allocation2 + $0x100]]  ;;  %v9024_v14 = vld [vmem:[%s14642_s0] sm:$0xff]  ;;  %vm197_vm1 = vcmask 1031168   ;;  %vm255_vm2 = vcmask 785408  }
  0x31   :  { %s7119_s26 = sld [smem:[#allocation2 + $0x101]]  ;;  %s8845_s27 = smov 126   ;;  %vm313_vm3 = vcmask 777216   ;;  %vm371_vm4 = vcmask 769024   ;;  %vm429_vm5 = vcmask 523264   ;;  %vm491_vm6 = vcmask 515072  }
  0x32   :  { %s7111_s29 = sld [smem:[#allocation2 + $0x180]]  ;;  %s7120_s30 = sld [smem:[#allocation2 + $0x181]]  ;;  %vm554_vm7 = vcmask 506880   ;;  %vm4359_vm8 = vcmask 1046528   ;;  %vm4360_vm9 = vcmask 1047552   ;;  %vm4349_vm10 = vcmask 252928  }
  0x33   :  { %s8846_s14 = smov 96   ;;  %s7121_s16 = sld [smem:[#allocation2 + $0x201]]  ;;  %vm4739_vm11 = vcmask 244736   ;;  %vm4745_vm12 = vcmask 236544   ;;  %vm4751_vm13 = vcmask 130048   ;;  %vm4757_vm14 = vcmask 121856  }
  0x34   :  { %s8847_s17 = smov 95   ;;  %s7113_s18 = sld [smem:[#allocation2 + $0x280]]  ;;  %vm4763_vm15 = vcmask 113664  }
  0x35   :  { %v8995_v4 = vstv %s7109_s15  ;;  %v9007_v9 = vstv %s7118_s2  ;;  %s7112_s15 = sld [smem:[#allocation2 + $0x200]]  ;;  %s7122_s1 = sld [smem:[#allocation2 + $0x281]] }
  0x36   :  { %15152 = vst [vmem:[#allocation11_spill] sm:$0xff] %v8995_v4  ;;  %v110_v5 = vmul.f32 %v8995_v4, %v8978_v0  ;;  %v108_v6 = vmul.f32 %v8995_v4, %v8983_v1  ;;  %v111_v7 = vmul.f32 %v8995_v4, %v8988_v2  ;;  %v109_v8 = vmul.f32 %v8995_v4, %v8993_v3  ;;  %s8848_s2 = smov 94   ;;  %s7114_s7 = sld [smem:[#allocation2 + $0x300]] }
  0x37   :  { %15153 = vst [vmem:[#allocation12_spill] sm:$0xff] %v9007_v9  ;;  %v611_v10 = vmul.f32 %v9007_v9, %v8993_v3  ;;  %v610_v11 = vmul.f32 %v9007_v9, %v8983_v1  ;;  %v613_v12 = vmul.f32 %v9007_v9, %v8988_v2  ;;  %v612_v13 = vmul.f32 %v9007_v9, %v8978_v0  ;;  %s7123_s19 = sld [smem:[#allocation2 + $0x301]]  ;;  %s7115_s20 = sld [smem:[#allocation2 + $0x380]] }
  0x38   :  { %129 = vrot.lane.b32.xlu1 %v110_v5, %s8844_s22  ;;  %125 = vrot.lane.b32.xlu0 %v108_v6, %s8844_s22  ;;  %v609_v15 = vmul.f32 %v9007_v9, %v9024_v14  ;;  %v107_v16 = vmul.f32 %v8995_v4, %v9024_v14  ;;  %v9032_v17 = vstv %s7110_s23  ;;  %v9046_v22 = vstv %s7119_s26  ;;  %s7124_s21 = sld [smem:[#allocation2 + $0x381]]  ;;  %s8849_s23 = smov 63  }
  0x39   :  { %15154 = vst [vmem:[#allocation13_spill] sm:$0xff] %v9032_v17  ;;  %v167_v18 = vmul.f32 %v9032_v17, %v8993_v3  ;;  %v166_v19 = vmul.f32 %v9032_v17, %v8983_v1  ;;  %v169_v20 = vmul.f32 %v9032_v17, %v8988_v2  ;;  %v168_v21 = vmul.f32 %v9032_v17, %v8978_v0  ;;  %s7116_s24 = sld [smem:[#allocation2 + $0x400]]  ;;  %s7125_s25 = sld [smem:[#allocation2 + $0x401]] }
  0x3a   :  { %15155 = vst [vmem:[#allocation14_spill] sm:$0xff] %v9046_v22  ;;  %v668_v23 = vmul.f32 %v9046_v22, %v8993_v3  ;;  %v667_v24 = vmul.f32 %v9046_v22, %v8983_v1  ;;  %v670_v25 = vmul.f32 %v9046_v22, %v8988_v2  ;;  %v669_v26 = vmul.f32 %v9046_v22, %v8978_v0  ;;  %s8850_s26 = smov 62  }
  0x3b   :  { %v666_v27 = vmul.f32 %v9046_v22, %v9024_v14  ;;  %v165_v28 = vmul.f32 %v9032_v17, %v9024_v14  ;;  %v9066_v29 = vstv %s7111_s29  ;;  %v9080_v34 = vstv %s7120_s30  ;;  %s7128_s29 = sld [smem:[#allocation2 + $0x82]]  ;;  %s7138_s30 = sld [smem:[#allocation2 + $0x83]] }
  0x3c   :  { %131 = vrot.lane.b32.xlu1 %v111_v7, %s8844_s22  ;;  %127 = vrot.lane.b32.xlu0 %v109_v8, %s8844_s22  ;;  %15156 = vst [vmem:[#allocation15_spill] sm:$0xff] %v9066_v29  ;;  %v225_v30 = vmul.f32 %v9066_v29, %v8993_v3  ;;  %v224_v31 = vmul.f32 %v9066_v29, %v8983_v1  ;;  %15157 = vst [vmem:[#allocation16_spill] sm:$0xff] %v9080_v34  ;;  %v9100_v41 = vstv %s7112_s15  ;;  %s7129_s15 = sld [smem:[#allocation2 + $0x102]] }
  0x3d   :  { %v227_v32 = vmul.f32 %v9066_v29, %v8988_v2  ;;  %v226_v33 = vmul.f32 %v9066_v29, %v8978_v0  ;;  %v725_v35 = vmul.f32 %v9080_v34, %v8993_v3  ;;  %v724_v36 = vmul.f32 %v9080_v34, %v8983_v1  ;;  %15158 = vst [vmem:[#allocation17_spill] sm:$0xff] %v9100_v41 }
  0x3e   :  { %v727_v37 = vmul.f32 %v9080_v34, %v8988_v2  ;;  %v726_v38 = vmul.f32 %v9080_v34, %v8978_v0  ;;  %v723_v39 = vmul.f32 %v9080_v34, %v9024_v14  ;;  %v223_v40 = vmul.f32 %v9066_v29, %v9024_v14 }
  0x3f   :  { %v283_v42 = vmul.f32 %v9100_v41, %v8993_v3  ;;  %v282_v43 = vmul.f32 %v9100_v41, %v8983_v1  ;;  %v285_v44 = vmul.f32 %v9100_v41, %v8988_v2  ;;  %v284_v45 = vmul.f32 %v9100_v41, %v8978_v0 }
  0x40   :  { %629 = vrot.lane.b32.xlu1 %v611_v10, %s8844_s22  ;;  %627 = vrot.lane.b32.xlu0 %v610_v11, %s8844_s22  ;;  %v9114_v46 = vstv %s7121_s16  ;;  %v281_v52 = vmul.f32 %v9100_v41, %v9024_v14  ;;  %v9134_v53 = vstv %s7113_s18  ;;  %s7144_s16 = sld [smem:[#allocation2 + $0x383]]  ;;  %s7150_s18 = sld [smem:[#allocation2 + $0x184]] }
  0x41   :  { %15159 = vst [vmem:[#allocation18_spill] sm:$0xff] %v9114_v46  ;;  %v782_v47 = vmul.f32 %v9114_v46, %v8993_v3  ;;  %v781_v48 = vmul.f32 %v9114_v46, %v8983_v1  ;;  %v784_v49 = vmul.f32 %v9114_v46, %v8988_v2  ;;  %v783_v50 = vmul.f32 %v9114_v46, %v8978_v0 }
  0x42   :  { %v780_v51 = vmul.f32 %v9114_v46, %v9024_v14  ;;  %15160 = vst [vmem:[#allocation19_spill] sm:$0xff] %v9134_v53  ;;  %v341_v54 = vmul.f32 %v9134_v53, %v8993_v3  ;;  %v340_v55 = vmul.f32 %v9134_v53, %v8983_v1  ;;  %v343_v56 = vmul.f32 %v9134_v53, %v8988_v2 }
  0x43   :  { %v342_v57 = vmul.f32 %v9134_v53, %v8978_v0  ;;  %v9148_v58 = vstv %s7122_s1  ;;  %v339_v5 = vmul.f32 %v9134_v53, %v9024_v14  ;;  %v9168_v6 = vstv %s7114_s7  ;;  %s7139_s1 = sld [smem:[#allocation2 + $0x103]]  ;;  %s7132_s7 = sld [smem:[#allocation2 + $0x282]] }
  0x44   :  { %633 = vrot.lane.b32.xlu1 %v613_v12, %s8844_s22  ;;  %631 = vrot.lane.b32.xlu0 %v612_v13, %s8844_s22  ;;  %15161 = vst [vmem:[#allocation20_spill] sm:$0xff] %v9148_v58  ;;  %v839_v59 = vmul.f32 %v9148_v58, %v8993_v3  ;;  %v838_v60 = vmul.f32 %v9148_v58, %v8983_v1  ;;  %15162 = vst [vmem:[#allocation21_spill] sm:$0xff] %v9168_v6  ;;  %v9182_v12 = vstv %s7123_s19  ;;  %s7142_s19 = sld [smem:[#allocation2 + $0x283]] }
  0x45   :  { %v841_v61 = vmul.f32 %v9148_v58, %v8988_v2  ;;  %v840_v62 = vmul.f32 %v9148_v58, %v8978_v0  ;;  %v837_v63 = vmul.f32 %v9148_v58, %v9024_v14  ;;  %v399_v7 = vmul.f32 %v9168_v6, %v8993_v3  ;;  %15163 = vst [vmem:[#allocation22_spill] sm:$0xff] %v9182_v12 }
  0x46   :  { %v398_v8 = vmul.f32 %v9168_v6, %v8983_v1  ;;  %v401_v10 = vmul.f32 %v9168_v6, %v8988_v2  ;;  %v400_v11 = vmul.f32 %v9168_v6, %v8978_v0  ;;  %v896_v13 = vmul.f32 %v9182_v12, %v8993_v3 }
  0x48   :  { %625 = vrot.lane.b32.xlu1 %v609_v15, %s8844_s22  ;;  %123 = vrot.lane.b32.xlu0 %v107_v16, %s8844_s22  ;;  %v895_v15 = vmul.f32 %v9182_v12, %v8983_v1  ;;  %v898_v16 = vmul.f32 %v9182_v12, %v8988_v2 }
  0x4c   :  { %185 = vrot.lane.b32.xlu1 %v167_v18, %s8845_s27  ;;  %183 = vrot.lane.b32.xlu0 %v166_v19, %s8845_s27  ;;  %v897_v18 = vmul.f32 %v9182_v12, %v8978_v0  ;;  %v894_v19 = vmul.f32 %v9182_v12, %v9024_v14 }
  0x50   :  { %189 = vrot.lane.b32.xlu1 %v169_v20, %s8845_s27  ;;  %187 = vrot.lane.b32.xlu0 %v168_v21, %s8845_s27  ;;  %v397_v20 = vmul.f32 %v9168_v6, %v9024_v14  ;;  %v9202_v21 = vstv %s7115_s20  ;;  %s7148_s20 = sld [smem:[#allocation2 + $0x84]] }
  0x51   :  { %15164 = vst [vmem:[#allocation23_spill] sm:$0xff] %v9202_v21 }
  0x54   :  { %686 = vrot.lane.b32.xlu1 %v668_v23, %s8845_s27  ;;  %684 = vrot.lane.b32.xlu0 %v667_v24, %s8845_s27 }
  0x58   :  { %690 = vrot.lane.b32.xlu1 %v670_v25, %s8845_s27  ;;  %688 = vrot.lane.b32.xlu0 %v669_v26, %s8845_s27  ;;  %v457_v25 = vmul.f32 %v9202_v21, %v8993_v3  ;;  %v456_v26 = vmul.f32 %v9202_v21, %v8983_v1 }
  0x5c   :  { %682 = vrot.lane.b32.xlu1 %v666_v27, %s8845_s27  ;;  %181 = vrot.lane.b32.xlu0 %v165_v28, %s8845_s27 }
  0x60   :  { %243 = vrot.lane.b32.xlu1 %v225_v30, %s8846_s14  ;;  %241 = vrot.lane.b32.xlu0 %v224_v31, %s8846_s14  ;;  %v459_v30 = vmul.f32 %v9202_v21, %v8988_v2  ;;  %v458_v31 = vmul.f32 %v9202_v21, %v8978_v0 }
  0x64   :  { %247 = vrot.lane.b32.xlu1 %v227_v32, %s8846_s14  ;;  %245 = vrot.lane.b32.xlu0 %v226_v33, %s8846_s14  ;;  %v9224_v32 = vstv %s7124_s21  ;;  %s7158_s21 = sld [smem:[#allocation2 + $0x85]] }
  0x65   :  { %15166 = vst [vmem:[#allocation25_spill] sm:$0xff] %v9224_v32 }
  0x68   :  { %743 = vrot.lane.b32.xlu1 %v725_v35, %s8846_s14  ;;  %741 = vrot.lane.b32.xlu0 %v724_v36, %s8846_s14  ;;  %v953_v36 = vmul.f32 %v9224_v32, %v8993_v3 }
  0x6c   :  { %747 = vrot.lane.b32.xlu1 %v727_v37, %s8846_s14  ;;  %745 = vrot.lane.b32.xlu0 %v726_v38, %s8846_s14  ;;  %v952_v37 = vmul.f32 %v9224_v32, %v8983_v1 }
  0x70   :  { %739 = vrot.lane.b32.xlu1 %v723_v39, %s8846_s14  ;;  %239 = vrot.lane.b32.xlu0 %v223_v40, %s8846_s14  ;;  %v955_v40 = vmul.f32 %v9224_v32, %v8988_v2 }
  0x74   :  { %301 = vrot.lane.b32.xlu1 %v283_v42, %s8847_s17  ;;  %299 = vrot.lane.b32.xlu0 %v282_v43, %s8847_s17  ;;  %v954_v42 = vmul.f32 %v9224_v32, %v8978_v0 }
  0x78   :  { %305 = vrot.lane.b32.xlu1 %v285_v44, %s8847_s17  ;;  %303 = vrot.lane.b32.xlu0 %v284_v45, %s8847_s17  ;;  %v951_v45 = vmul.f32 %v9224_v32, %v9024_v14 }
  0x7c   :  { %800 = vrot.lane.b32.xlu1 %v782_v47, %s8847_s17  ;;  %798 = vrot.lane.b32.xlu0 %v781_v48, %s8847_s17  ;;  %v455_v47 = vmul.f32 %v9202_v21, %v9024_v14  ;;  %v9256_v48 = vstv %s7116_s24  ;;  %s7133_s24 = sld [smem:[#allocation2 + $0x302]] }
  0x7d   :  { %15168 = vst [vmem:[#allocation27_spill] sm:$0xff] %v9256_v48 }
  0x80   :  { %804 = vrot.lane.b32.xlu1 %v784_v49, %s8847_s17  ;;  %802 = vrot.lane.b32.xlu0 %v783_v50, %s8847_s17 }
  0x84   :  { %796 = vrot.lane.b32.xlu1 %v780_v51, %s8847_s17  ;;  %297 = vrot.lane.b32.xlu0 %v281_v52, %s8847_s17  ;;  %v520_v51 = vmul.f32 %v9256_v48, %v8993_v3  ;;  %v519_v52 = vmul.f32 %v9256_v48, %v8983_v1 }
  0x88   :  { %359 = vrot.lane.b32.xlu1 %v341_v54, %s8848_s2  ;;  %357 = vrot.lane.b32.xlu0 %v340_v55, %s8848_s2 }
  0x8c   :  { %363 = vrot.lane.b32.xlu1 %v343_v56, %s8848_s2  ;;  %361 = vrot.lane.b32.xlu0 %v342_v57, %s8848_s2  ;;  %v522_v56 = vmul.f32 %v9256_v48, %v8988_v2  ;;  %v521_v57 = vmul.f32 %v9256_v48, %v8978_v0 }
  0x90   :  { %857 = vrot.lane.b32.xlu1 %v839_v59, %s8848_s2  ;;  %855 = vrot.lane.b32.xlu0 %v838_v60, %s8848_s2  ;;  %v9278_v59 = vstv %s7125_s25  ;;  %s7143_s25 = sld [smem:[#allocation2 + $0x303]] }
  0x91   :  { %15170 = vst [vmem:[#allocation29_spill] sm:$0xff] %v9278_v59 }
  0x94   :  { %861 = vrot.lane.b32.xlu1 %v841_v61, %s8848_s2  ;;  %859 = vrot.lane.b32.xlu0 %v840_v62, %s8848_s2  ;;  %v1015_v62 = vmul.f32 %v9278_v59, %v8993_v3 }
  0x98   :  { %853 = vrot.lane.b32.xlu1 %v837_v63, %s8848_s2  ;;  %355 = vrot.lane.b32.xlu0 %v339_v5, %s8848_s2  ;;  %v1014_v63 = vmul.f32 %v9278_v59, %v8983_v1 }
  0x9c   :  { %417 = vrot.lane.b32.xlu1 %v399_v7, %s8842_s28  ;;  %415 = vrot.lane.b32.xlu0 %v398_v8, %s8842_s28  ;;  %v1017_v8 = vmul.f32 %v9278_v59, %v8988_v2 }
  0xa0   :  { %421 = vrot.lane.b32.xlu1 %v401_v10, %s8842_s28  ;;  %419 = vrot.lane.b32.xlu0 %v400_v11, %s8842_s28  ;;  %v1016_v10 = vmul.f32 %v9278_v59, %v8978_v0 }
  0xa4   :  { %914 = vrot.lane.b32.xlu1 %v896_v13, %s8842_s28  ;;  %912 = vrot.lane.b32.xlu0 %v895_v15, %s8842_s28  ;;  %v1013_v15 = vmul.f32 %v9278_v59, %v9024_v14 }
  0xa8   :  { %918 = vrot.lane.b32.xlu1 %v898_v16, %s8842_s28  ;;  %916 = vrot.lane.b32.xlu0 %v897_v18, %s8842_s28  ;;  %v518_v16 = vmul.f32 %v9256_v48, %v9024_v14  ;;  %v9310_v18 = vstv %s7128_s29  ;;  %s7130_s29 = sld [smem:[#allocation2 + $0x182]] }
  0xa9   :  { %15172 = vst [vmem:[#allocation31_spill] sm:$0xff] %v9310_v18 }
  0xaa   :  { %v9204_v23 = vpop.permute.xlu1 %129  ;;  %v9206_v24 = vpop.permute.xlu0 %125 }
  0xac   :  { %910 = vrot.lane.b32.xlu1 %v894_v19, %s8842_s28  ;;  %413 = vrot.lane.b32.xlu0 %v397_v20, %s8842_s28 }
  0xae   :  { %v9214_v27 = vpop.permute.xlu1 %131  ;;  %v9216_v28 = vpop.permute.xlu0 %127 }
  0xaf   :  { %15165 = vst [vmem:[#allocation24_spill] sm:$0xff] %v9214_v27 }
  0xb0   :  { %477 = vrot.lane.b32.xlu1 %v457_v25, %s8849_s23  ;;  %475 = vrot.lane.b32.xlu0 %v456_v26, %s8849_s23  ;;  %v1105_v25 = vmul.f32 %v9310_v18, %v8993_v3  ;;  %v1104_v26 = vmul.f32 %v9310_v18, %v8983_v1 }
  0xb2   :  { %v9226_v33 = vpop.permute.xlu1 %629  ;;  %v9228_v35 = vpop.permute.xlu0 %627 }
  0xb4   :  { %481 = vrot.lane.b32.xlu1 %v459_v30, %s8849_s23  ;;  %479 = vrot.lane.b32.xlu0 %v458_v31, %s8849_s23 }
  0xb6   :  { %v9236_v38 = vpop.permute.xlu1 %633  ;;  %v9238_v39 = vpop.permute.xlu0 %631 }
  0xb7   :  { %15167 = vst [vmem:[#allocation26_spill] sm:$0xff] %v9236_v38 }
  0xb8   :  { %973 = vrot.lane.b32.xlu1 %v953_v36, %s8849_s23  ;;  %971 = vrot.lane.b32.xlu0 %v952_v37, %s8849_s23  ;;  %v1107_v36 = vmul.f32 %v9310_v18, %v8988_v2  ;;  %v1106_v37 = vmul.f32 %v9310_v18, %v8978_v0 }
  0xba   :  { %v9246_v43 = vpop.permute.xlu1 %625  ;;  %v9248_v44 = vpop.permute.xlu0 %123 }
  0xbc   :  { %977 = vrot.lane.b32.xlu1 %v955_v40, %s8849_s23  ;;  %975 = vrot.lane.b32.xlu0 %v954_v42, %s8849_s23  ;;  %v9332_v40 = vstv %s7138_s30  ;;  %s7140_s30 = sld [smem:[#allocation2 + $0x183]] }
  0xbd   :  { %15174 = vst [vmem:[#allocation33_spill] sm:$0xff] %v9332_v40 }
  0xbe   :  { %v9258_v49 = vpop.permute.xlu1 %185  ;;  %v9260_v50 = vpop.permute.xlu0 %183 }
  0xc0   :  { %969 = vrot.lane.b32.xlu1 %v951_v45, %s8849_s23  ;;  %473 = vrot.lane.b32.xlu0 %v455_v47, %s8849_s23  ;;  %v1599_v47 = vmul.f32 %v9332_v40, %v8993_v3 }
  0xc2   :  { %v9268_v54 = vpop.permute.xlu1 %189  ;;  %v9270_v55 = vpop.permute.xlu0 %187 }
  0xc3   :  { %15169 = vst [vmem:[#allocation28_spill] sm:$0xff] %v9268_v54 }
  0xc4   :  { %540 = vrot.lane.b32.xlu1 %v520_v51, %s8850_s26  ;;  %538 = vrot.lane.b32.xlu0 %v519_v52, %s8850_s26  ;;  %v1598_v51 = vmul.f32 %v9332_v40, %v8983_v1 }
  0xc6   :  { %v9280_v60 = vpop.permute.xlu1 %686  ;;  %v9282_v61 = vpop.permute.xlu0 %684 }
  0xc8   :  { %544 = vrot.lane.b32.xlu1 %v522_v56, %s8850_s26  ;;  %542 = vrot.lane.b32.xlu0 %v521_v57, %s8850_s26  ;;  %v1601_v56 = vmul.f32 %v9332_v40, %v8988_v2  ;;  %v9355_v57 = vld [vmem:[%s14642_s0 + $0x18] sm:$0xff]  ;;  %v1103_v2 = vmul.f32 %v9310_v18, %v9024_v14 }
  0xc9   :  { %v1600_v1 = vmul.f32 %v9355_v57, %v9332_v40 }
  0xca   :  { %v9290_v5 = vpop.permute.xlu1 %690  ;;  %v9292_v7 = vpop.permute.xlu0 %688 }
  0xcb   :  { %15171 = vst [vmem:[#allocation30_spill] sm:$0xff] %v9290_v5 }
  0xcc   :  { %1035 = vrot.lane.b32.xlu1 %v1015_v62, %s8850_s26  ;;  %1033 = vrot.lane.b32.xlu0 %v1014_v63, %s8850_s26  ;;  %v1597_v63 = vmul.f32 %v9332_v40, %v9024_v14 }
  0xce   :  { %v9300_v11 = vpop.permute.xlu1 %682  ;;  %v9302_v13 = vpop.permute.xlu0 %181 }
  0xd0   :  { %1039 = vrot.lane.b32.xlu1 %v1017_v8, %s8850_s26  ;;  %1037 = vrot.lane.b32.xlu0 %v1016_v10, %s8850_s26  ;;  %v9369_v8 = vstv %s7129_s15  ;;  %s7131_s15 = sld [smem:[#allocation2 + $0x202]] }
  0xd1   :  { %15176 = vst [vmem:[#allocation35_spill] sm:$0xff] %v9369_v8 }
  0xd2   :  { %v9312_v19 = vpop.permute.xlu1 %243  ;;  %v9314_v20 = vpop.permute.xlu0 %241 }
  0xd4   :  { %1031 = vrot.lane.b32.xlu1 %v1013_v15, %s8850_s26  ;;  %536 = vrot.lane.b32.xlu0 %v518_v16, %s8850_s26  ;;  %v9380_v16 = vld [vmem:[%s14642_s0 + $0x10] sm:$0xff] }
  0xd6   :  { %v9322_v30 = vpop.permute.xlu1 %247  ;;  %v9324_v31 = vpop.permute.xlu0 %245 }
  0xd7   :  { %15173 = vst [vmem:[#allocation32_spill] sm:$0xff] %v9322_v30 }
  0xd8   :  { %1123 = vrot.lane.b32.xlu1 %v1105_v25, %s8844_s22  ;;  %1121 = vrot.lane.b32.xlu0 %v1104_v26, %s8844_s22  ;;  %v1162_v25 = vmul.f32 %v9380_v16, %v9369_v8  ;;  %v9387_v26 = vld [vmem:[%s14642_s0 + $0x8] sm:$0xff] }
  0xda   :  { %v9334_v42 = vpop.permute.xlu1 %743  ;;  %v9336_v45 = vpop.permute.xlu0 %741 }
  0xdc   :  { %1127 = vrot.lane.b32.xlu1 %v1107_v36, %s8844_s22  ;;  %1125 = vrot.lane.b32.xlu0 %v1106_v37, %s8844_s22  ;;  %v1161_v36 = vmul.f32 %v9387_v26, %v9369_v8 }
  0xde   :  { %v9344_v52 = vpop.permute.xlu1 %747  ;;  %v9346_v0 = vpop.permute.xlu0 %745 }
  0xdf   :  { %15175 = vst [vmem:[#allocation34_spill] sm:$0xff] %v9344_v52 }
  0xe0   :  { %1617 = vrot.lane.b32.xlu1 %v1599_v47, %s8844_s22  ;;  %1615 = vrot.lane.b32.xlu0 %v1598_v51, %s8844_s22  ;;  %v9400_v51 = vld [vmem:[%s14642_s0 + $0x20] sm:$0xff] }
  0xe2   :  { %v9359_v3 = vpop.permute.xlu1 %739  ;;  %v9361_v62 = vpop.permute.xlu0 %239 }
  0xe4   :  { %1621 = vrot.lane.b32.xlu1 %v1601_v56, %s8844_s22  ;;  %1619 = vrot.lane.b32.xlu0 %v1600_v1, %s8844_s22  ;;  %v1164_v56 = vmul.f32 %v9400_v51, %v9369_v8  ;;  %v1163_v1 = vmul.f32 %v9355_v57, %v9369_v8 }
  0xe6   :  { %v9371_v10 = vpop.permute.xlu1 %301  ;;  %v9373_v15 = vpop.permute.xlu0 %299 }
  0xe8   :  { %1613 = vrot.lane.b32.xlu1 %v1597_v63, %s8844_s22  ;;  %1119 = vrot.lane.b32.xlu0 %v1103_v2, %s8844_s22  ;;  %v9406_v63 = vstv %s7139_s1  ;;  %s7141_s1 = sld [smem:[#allocation2 + $0x203]] }
  0xe9   :  { %15178 = vst [vmem:[#allocation37_spill] sm:$0xff] %v9406_v63  ;;  %v1654_v21 = vmul.f32 %v9406_v63, %v9024_v14 }
  0xea   :  { %v9391_v37 = vpop.permute.xlu1 %305  ;;  %v9393_v47 = vpop.permute.xlu0 %303 }
  0xeb   :  { %15177 = vst [vmem:[#allocation36_spill] sm:$0xff] %v9391_v37 }
  0xec   :  { %1180 = vrot.lane.b32.xlu1 %v1162_v25, %s8845_s27  ;;  %1178 = vrot.lane.b32.xlu0 %v1161_v36, %s8845_s27  ;;  %v1656_v25 = vmul.f32 %v9380_v16, %v9406_v63  ;;  %v1655_v36 = vmul.f32 %v9387_v26, %v9406_v63 }
  0xee   :  { %v9408_v2 = vpop.permute.xlu1 %800  ;;  %v9410_v40 = vpop.permute.xlu0 %798 }
  0xf0   :  { %1184 = vrot.lane.b32.xlu1 %v1164_v56, %s8845_s27  ;;  %1182 = vrot.lane.b32.xlu0 %v1163_v1, %s8845_s27  ;;  %v1658_v56 = vmul.f32 %v9400_v51, %v9406_v63  ;;  %v1657_v1 = vmul.f32 %v9355_v57, %v9406_v63 }
  0xf2   :  { %v9418_v18 = vpop.permute.xlu1 %804  ;;  %v9420_v59 = vpop.permute.xlu0 %802 }
  0xf3   :  { %15179 = vst [vmem:[#allocation38_spill] sm:$0xff] %v9418_v18  ;;  %15180 = vst [vmem:[#allocation39_spill] sm:$0xff] %v9420_v59  ;;  %v644_v18 = vsel %vm139_vm0, %v9238_v39, %v9236_v38 }
  0xf4   :  { %1674 = vrot.lane.b32.xlu1 %v1656_v25, %s8845_s27  ;;  %1672 = vrot.lane.b32.xlu0 %v1655_v36, %s8845_s27  ;;  %v1160_v25 = vmul.f32 %v9369_v8, %v9024_v14  ;;  %v9438_v36 = vstv %s7130_s29  ;;  %s7149_s29 = sld [smem:[#allocation2 + $0x104]] }
  0xf5   :  { %15183 = vst [vmem:[#allocation42_spill] sm:$0xff] %v9438_v36  ;;  %v1221_v8 = vmul.f32 %v9400_v51, %v9438_v36 }
  0xf6   :  { %v9428_v48 = vpop.permute.xlu1 %796  ;;  %v9430_v32 = vpop.permute.xlu0 %297 }
  0xf7   :  { %15181 = vst [vmem:[#allocation40_spill] sm:$0xff] %v9428_v48  ;;  %15182 = vst [vmem:[#allocation41_spill] sm:$0xff] %v9430_v32 }
  0xf8   :  { %1678 = vrot.lane.b32.xlu1 %v1658_v56, %s8845_s27  ;;  %1676 = vrot.lane.b32.xlu0 %v1657_v1, %s8845_s27  ;;  %v1219_v56 = vmul.f32 %v9380_v16, %v9438_v36  ;;  %v1218_v1 = vmul.f32 %v9387_v26, %v9438_v36 }
  0xfa   :  { %v9440_v12 = vpop.permute.xlu1 %359  ;;  %v9442_v6 = vpop.permute.xlu0 %357 }
  0xfb   :  { %15184 = vst [vmem:[#allocation43_spill] sm:$0xff] %v9440_v12  ;;  %15185 = vst [vmem:[#allocation44_spill] sm:$0xff] %v9442_v6 }
  0xfc   :  { %1670 = vrot.lane.b32.xlu1 %v1654_v21, %s8845_s27  ;;  %1176 = vrot.lane.b32.xlu0 %v1160_v25, %s8845_s27  ;;  %v1220_v21 = vmul.f32 %v9355_v57, %v9438_v36  ;;  %v9460_v25 = vstv %s7140_s30  ;;  %s7159_s30 = sld [smem:[#allocation2 + $0x105]] }
  0xfd   :  { %15188 = vst [vmem:[#allocation47_spill] sm:$0xff] %v9460_v25 }
  0xfe   :  { %v9450_v63 = vpop.permute.xlu1 %363  ;;  %v9452_v14 = vpop.permute.xlu0 %361 }
  0xff   :  { %15186 = vst [vmem:[#allocation45_spill] sm:$0xff] %v9450_v63  ;;  %15187 = vst [vmem:[#allocation46_spill] sm:$0xff] %v9452_v14 }
 0x100   :  { %1237 = vrot.lane.b32.xlu1 %v1219_v56, %s8846_s14  ;;  %1235 = vrot.lane.b32.xlu0 %v1218_v1, %s8846_s14  ;;  %v1713_v56 = vmul.f32 %v9380_v16, %v9460_v25  ;;  %v1712_v1 = vmul.f32 %v9387_v26, %v9460_v25 }
 0x102   :  { %v9462_v58 = vpop.permute.xlu1 %857  ;;  %v9464_v6 = vpop.permute.xlu0 %855 }
 0x103   :  { %15189 = vst [vmem:[#allocation48_spill] sm:$0xff] %v9462_v58  ;;  %15190 = vst [vmem:[#allocation49_spill] sm:$0xff] %v9464_v6 }
 0x104   :  { %1241 = vrot.lane.b32.xlu1 %v1221_v8, %s8846_s14  ;;  %1239 = vrot.lane.b32.xlu0 %v1220_v21, %s8846_s14  ;;  %v1715_v8 = vmul.f32 %v9400_v51, %v9460_v25  ;;  %v1714_v21 = vmul.f32 %v9355_v57, %v9460_v25 }
 0x106   :  { %v9472_v63 = vpop.permute.xlu1 %861  ;;  %v9474_v14 = vpop.permute.xlu0 %859 }
 0x107   :  { %15191 = vst [vmem:[#allocation50_spill] sm:$0xff] %v9472_v63  ;;  %15192 = vst [vmem:[#allocation51_spill] sm:$0xff] %v9474_v14  ;;  %v9497_v14 = vstv %s7131_s15  ;;  %s7134_s15 = sld [smem:[#allocation2 + $0x382]] }
 0x108   :  { %1731 = vrot.lane.b32.xlu1 %v1713_v56, %s8846_s14  ;;  %1729 = vrot.lane.b32.xlu0 %v1712_v1, %s8846_s14  ;;  %v9491_v56 = vld [vmem:[%s14642_s0] sm:$0xff]  ;;  %15195 = vst [vmem:[#allocation54_spill] sm:$0xff] %v9497_v14 }
 0x109   :  { %v1711_v1 = vmul.f32 %v9491_v56, %v9460_v25  ;;  %v1217_v63 = vmul.f32 %v9491_v56, %v9438_v36 }
 0x10a   :  { %v9482_v6 = vpop.permute.xlu1 %853  ;;  %v9484_v58 = vpop.permute.xlu0 %355 }
 0x10b   :  { %15193 = vst [vmem:[#allocation52_spill] sm:$0xff] %v9482_v6  ;;  %15194 = vst [vmem:[#allocation53_spill] sm:$0xff] %v9484_v58 }
 0x10c   :  { %1735 = vrot.lane.b32.xlu1 %v1715_v8, %s8846_s14  ;;  %1733 = vrot.lane.b32.xlu0 %v1714_v21, %s8846_s14  ;;  %v1276_v8 = vmul.f32 %v9380_v16, %v9497_v14  ;;  %v1275_v21 = vmul.f32 %v9387_v26, %v9497_v14 }
 0x10e   :  { %v9499_v6 = vpop.permute.xlu1 %417  ;;  %v9501_v58 = vpop.permute.xlu0 %415 }
 0x10f   :  { %15196 = vst [vmem:[#allocation55_spill] sm:$0xff] %v9499_v6  ;;  %15197 = vst [vmem:[#allocation56_spill] sm:$0xff] %v9501_v58  ;;  %v1278_v58 = vmul.f32 %v9400_v51, %v9497_v14 }
 0x110   :  { %1727 = vrot.lane.b32.xlu1 %v1711_v1, %s8846_s14  ;;  %1233 = vrot.lane.b32.xlu0 %v1217_v63, %s8846_s14  ;;  %v1277_v63 = vmul.f32 %v9355_v57, %v9497_v14  ;;  %v9519_v1 = vstv %s7141_s1  ;;  %s7160_s1 = sld [smem:[#allocation2 + $0x185]] }
 0x111   :  { %15200 = vst [vmem:[#allocation59_spill] sm:$0xff] %v9519_v1 }
 0x112   :  { %v9509_v25 = vpop.permute.xlu1 %421  ;;  %v9511_v36 = vpop.permute.xlu0 %419 }
 0x113   :  { %15198 = vst [vmem:[#allocation57_spill] sm:$0xff] %v9509_v25  ;;  %15199 = vst [vmem:[#allocation58_spill] sm:$0xff] %v9511_v36 }
 0x114   :  { %1294 = vrot.lane.b32.xlu1 %v1276_v8, %s8847_s17  ;;  %1292 = vrot.lane.b32.xlu0 %v1275_v21, %s8847_s17  ;;  %v1770_v8 = vmul.f32 %v9380_v16, %v9519_v1  ;;  %v1769_v21 = vmul.f32 %v9387_v26, %v9519_v1 }
 0x116   :  { %v9521_v6 = vpop.permute.xlu1 %914  ;;  %v9523_v12 = vpop.permute.xlu0 %912 }
 0x117   :  { %15201 = vst [vmem:[#allocation60_spill] sm:$0xff] %v9521_v6  ;;  %15202 = vst [vmem:[#allocation61_spill] sm:$0xff] %v9523_v12 }
 0x118   :  { %1298 = vrot.lane.b32.xlu1 %v1278_v58, %s8847_s17  ;;  %1296 = vrot.lane.b32.xlu0 %v1277_v63, %s8847_s17  ;;  %v1772_v58 = vmul.f32 %v9400_v51, %v9519_v1  ;;  %v1771_v63 = vmul.f32 %v9355_v57, %v9519_v1 }
 0x11a   :  { %v9531_v25 = vpop.permute.xlu1 %918  ;;  %v9533_v36 = vpop.permute.xlu0 %916 }
 0x11b   :  { %15203 = vst [vmem:[#allocation62_spill] sm:$0xff] %v9531_v25  ;;  %15204 = vst [vmem:[#allocation63_spill] sm:$0xff] %v9533_v36  ;;  %v1768_v25 = vmul.f32 %v9491_v56, %v9519_v1 }
 0x11c   :  { %1788 = vrot.lane.b32.xlu1 %v1770_v8, %s8847_s17  ;;  %1786 = vrot.lane.b32.xlu0 %v1769_v21, %s8847_s17  ;;  %v1274_v8 = vmul.f32 %v9491_v56, %v9497_v14  ;;  %v9551_v21 = vstv %s7132_s7  ;;  %s7135_s7 = sld [smem:[#allocation2 + $0x402]] }
 0x11d   :  { %15207 = vst [vmem:[#allocation66_spill] sm:$0xff] %v9551_v21 }
 0x11e   :  { %v9541_v12 = vpop.permute.xlu1 %910  ;;  %v9543_v6 = vpop.permute.xlu0 %413 }
 0x11f   :  { %15205 = vst [vmem:[#allocation64_spill] sm:$0xff] %v9541_v12  ;;  %15206 = vst [vmem:[#allocation65_spill] sm:$0xff] %v9543_v6 }
 0x120   :  { %1792 = vrot.lane.b32.xlu1 %v1772_v58, %s8847_s17  ;;  %1790 = vrot.lane.b32.xlu0 %v1771_v63, %s8847_s17  ;;  %v1333_v58 = vmul.f32 %v9380_v16, %v9551_v21  ;;  %v1332_v63 = vmul.f32 %v9387_v26, %v9551_v21 }
 0x122   :  { %v9553_v36 = vpop.permute.xlu1 %477  ;;  %v9555_v32 = vpop.permute.xlu0 %475 }
 0x123   :  { %15208 = vst [vmem:[#allocation67_spill] sm:$0xff] %v9553_v36  ;;  %15209 = vst [vmem:[#allocation68_spill] sm:$0xff] %v9555_v32  ;;  %v1335_v32 = vmul.f32 %v9400_v51, %v9551_v21 }
 0x124   :  { %1784 = vrot.lane.b32.xlu1 %v1768_v25, %s8847_s17  ;;  %1290 = vrot.lane.b32.xlu0 %v1274_v8, %s8847_s17  ;;  %v1334_v25 = vmul.f32 %v9355_v57, %v9551_v21  ;;  %v9573_v8 = vstv %s7142_s19  ;;  %s7145_s19 = sld [smem:[#allocation2 + $0x403]] }
 0x125   :  { %15212 = vst [vmem:[#allocation71_spill] sm:$0xff] %v9573_v8 }
 0x126   :  { %v9563_v1 = vpop.permute.xlu1 %481  ;;  %v9565_v14 = vpop.permute.xlu0 %479 }
 0x127   :  { %15210 = vst [vmem:[#allocation69_spill] sm:$0xff] %v9563_v1  ;;  %15211 = vst [vmem:[#allocation70_spill] sm:$0xff] %v9565_v14 }
 0x128   :  { %1351 = vrot.lane.b32.xlu1 %v1333_v58, %s8848_s2  ;;  %1349 = vrot.lane.b32.xlu0 %v1332_v63, %s8848_s2  ;;  %v1827_v58 = vmul.f32 %v9380_v16, %v9573_v8  ;;  %v1826_v63 = vmul.f32 %v9387_v26, %v9573_v8 }
 0x12a   :  { %v9575_v36 = vpop.permute.xlu1 %973  ;;  %v9577_v6 = vpop.permute.xlu0 %971 }
 0x12b   :  { %15213 = vst [vmem:[#allocation72_spill] sm:$0xff] %v9575_v36  ;;  %15214 = vst [vmem:[#allocation73_spill] sm:$0xff] %v9577_v6  ;;  %v1829_v6 = vmul.f32 %v9400_v51, %v9573_v8 }
 0x12c   :  { %1355 = vrot.lane.b32.xlu1 %v1335_v32, %s8848_s2  ;;  %1353 = vrot.lane.b32.xlu0 %v1334_v25, %s8848_s2  ;;  %v1828_v32 = vmul.f32 %v9355_v57, %v9573_v8  ;;  %v9595_v25 = vstv %s7148_s20  ;;  %s7151_s20 = sld [smem:[#allocation2 + $0x204]] }
 0x12d   :  { %15217 = vst [vmem:[#allocation76_spill] sm:$0xff] %v9595_v25 }
 0x12e   :  { %v9585_v1 = vpop.permute.xlu1 %977  ;;  %v9587_v14 = vpop.permute.xlu0 %975 }
 0x12f   :  { %15215 = vst [vmem:[#allocation74_spill] sm:$0xff] %v9585_v1  ;;  %15216 = vst [vmem:[#allocation75_spill] sm:$0xff] %v9587_v14 }
 0x130   :  { %1845 = vrot.lane.b32.xlu1 %v1827_v58, %s8848_s2  ;;  %1843 = vrot.lane.b32.xlu0 %v1826_v63, %s8848_s2  ;;  %v2093_v58 = vmul.f32 %v9380_v16, %v9595_v25  ;;  %v2092_v63 = vmul.f32 %v9387_v26, %v9595_v25 }
 0x132   :  { %v9597_v36 = vpop.permute.xlu1 %969  ;;  %v9599_v12 = vpop.permute.xlu0 %473 }
 0x133   :  { %15218 = vst [vmem:[#allocation77_spill] sm:$0xff] %v9597_v36  ;;  %15219 = vst [vmem:[#allocation78_spill] sm:$0xff] %v9599_v12  ;;  %v2095_v12 = vmul.f32 %v9400_v51, %v9595_v25 }
 0x134   :  { %1849 = vrot.lane.b32.xlu1 %v1829_v6, %s8848_s2  ;;  %1847 = vrot.lane.b32.xlu0 %v1828_v32, %s8848_s2  ;;  %v2094_v6 = vmul.f32 %v9355_v57, %v9595_v25  ;;  %v9617_v32 = vstv %s7158_s21  ;;  %s7161_s21 = sld [smem:[#allocation2 + $0x205]] }
 0x135   :  { %15222 = vst [vmem:[#allocation81_spill] sm:$0xff] %v9617_v32 }
 0x136   :  { %v9607_v1 = vpop.permute.xlu1 %540  ;;  %v9609_v14 = vpop.permute.xlu0 %538 }
 0x137   :  { %15220 = vst [vmem:[#allocation79_spill] sm:$0xff] %v9607_v1  ;;  %15221 = vst [vmem:[#allocation80_spill] sm:$0xff] %v9609_v14 }
 0x138   :  { %2111 = vrot.lane.b32.xlu1 %v2093_v58, %s8844_s22  ;;  %2109 = vrot.lane.b32.xlu0 %v2092_v63, %s8844_s22  ;;  %v2587_v58 = vmul.f32 %v9380_v16, %v9617_v32  ;;  %v2586_v63 = vmul.f32 %v9387_v26, %v9617_v32 }
 0x13a   :  { %v9619_v36 = vpop.permute.xlu1 %544  ;;  %v9621_v48 = vpop.permute.xlu0 %542 }
 0x13b   :  { %15223 = vst [vmem:[#allocation82_spill] sm:$0xff] %v9619_v36  ;;  %15224 = vst [vmem:[#allocation83_spill] sm:$0xff] %v9621_v48  ;;  %v2589_v36 = vmul.f32 %v9400_v51, %v9617_v32 }
 0x13c   :  { %2115 = vrot.lane.b32.xlu1 %v2095_v12, %s8844_s22  ;;  %2113 = vrot.lane.b32.xlu0 %v2094_v6, %s8844_s22  ;;  %v2588_v12 = vmul.f32 %v9355_v57, %v9617_v32 }
 0x13e   :  { %v9629_v14 = vpop.permute.xlu1 %1035  ;;  %v9631_v1 = vpop.permute.xlu0 %1033 }
 0x13f   :  { %15225 = vst [vmem:[#allocation84_spill] sm:$0xff] %v9629_v14  ;;  %15226 = vst [vmem:[#allocation85_spill] sm:$0xff] %v9631_v1 }
 0x140   :  { %2605 = vrot.lane.b32.xlu1 %v2587_v58, %s8844_s22  ;;  %2603 = vrot.lane.b32.xlu0 %v2586_v63, %s8844_s22  ;;  %v1825_v58 = vmul.f32 %v9491_v56, %v9573_v8  ;;  %v1331_v63 = vmul.f32 %v9491_v56, %v9551_v21 }
 0x142   :  { %v9639_v6 = vpop.permute.xlu1 %1039  ;;  %v9641_v48 = vpop.permute.xlu0 %1037 }
 0x143   :  { %15227 = vst [vmem:[#allocation86_spill] sm:$0xff] %v9639_v6  ;;  %15228 = vst [vmem:[#allocation87_spill] sm:$0xff] %v9641_v48  ;;  %v2585_v6 = vmul.f32 %v9491_v56, %v9617_v32 }
 0x144   :  { %2609 = vrot.lane.b32.xlu1 %v2589_v36, %s8844_s22  ;;  %2607 = vrot.lane.b32.xlu0 %v2588_v12, %s8844_s22  ;;  %v2091_v36 = vmul.f32 %v9491_v56, %v9595_v25  ;;  %v9659_v12 = vstv %s7133_s24  ;;  %s7155_s24 = sld [smem:[#allocation2 + $0x404]] }
 0x145   :  { %15231 = vst [vmem:[#allocation90_spill] sm:$0xff] %v9659_v12 }
 0x146   :  { %v9649_v1 = vpop.permute.xlu1 %1031  ;;  %v9651_v14 = vpop.permute.xlu0 %536 }
 0x147   :  { %15229 = vst [vmem:[#allocation88_spill] sm:$0xff] %v9649_v1  ;;  %15230 = vst [vmem:[#allocation89_spill] sm:$0xff] %v9651_v14 }
 0x148   :  { %1841 = vrot.lane.b32.xlu1 %v1825_v58, %s8848_s2  ;;  %1347 = vrot.lane.b32.xlu0 %v1331_v63, %s8848_s2  ;;  %v1390_v58 = vmul.f32 %v9380_v16, %v9659_v12  ;;  %v1389_v63 = vmul.f32 %v9387_v26, %v9659_v12 }
 0x14a   :  { %v9661_v8 = vpop.permute.xlu1 %1123  ;;  %v9663_v21 = vpop.permute.xlu0 %1121 }
 0x14b   :  { %15232 = vst [vmem:[#allocation91_spill] sm:$0xff] %v9661_v8  ;;  %15233 = vst [vmem:[#allocation92_spill] sm:$0xff] %v9663_v21  ;;  %v1392_v21 = vmul.f32 %v9400_v51, %v9659_v12 }
 0x14c   :  { %2601 = vrot.lane.b32.xlu1 %v2585_v6, %s8844_s22  ;;  %2107 = vrot.lane.b32.xlu0 %v2091_v36, %s8844_s22  ;;  %v1391_v6 = vmul.f32 %v9355_v57, %v9659_v12  ;;  %v9681_v36 = vstv %s7143_s25  ;;  %s95_s25 = sld [smem:[#allocation2]] }
 0x14d   :  { %15236 = vst [vmem:[#allocation95_spill] sm:$0xff] %v9681_v36 }
 0x14e   :  { %v9671_v32 = vpop.permute.xlu1 %1127  ;;  %v9673_v25 = vpop.permute.xlu0 %1125 }
 0x14f   :  { %15234 = vst [vmem:[#allocation93_spill] sm:$0xff] %v9671_v32  ;;  %15235 = vst [vmem:[#allocation94_spill] sm:$0xff] %v9673_v25 }
 0x150   :  { %1408 = vrot.lane.b32.xlu1 %v1390_v58, %s8842_s28  ;;  %1406 = vrot.lane.b32.xlu0 %v1389_v63, %s8842_s28  ;;  %v1884_v58 = vmul.f32 %v9380_v16, %v9681_v36  ;;  %v1883_v63 = vmul.f32 %v9387_v26, %v9681_v36 }
 0x152   :  { %v9683_v8 = vpop.permute.xlu1 %1617  ;;  %v9685_v14 = vpop.permute.xlu0 %1615 }
 0x153   :  { %15237 = vst [vmem:[#allocation96_spill] sm:$0xff] %v9683_v8  ;;  %15238 = vst [vmem:[#allocation97_spill] sm:$0xff] %v9685_v14  ;;  %v1886_v14 = vmul.f32 %v9400_v51, %v9681_v36 }
 0x154   :  { %1412 = vrot.lane.b32.xlu1 %v1392_v21, %s8842_s28  ;;  %1410 = vrot.lane.b32.xlu0 %v1391_v6, %s8842_s28  ;;  %v1885_v21 = vmul.f32 %v9355_v57, %v9681_v36  ;;  %v9703_v6 = vstv %s7149_s29  ;;  %s7117_s29 = sld [smem:[#allocation2 + $0x1]] }
 0x155   :  { %15241 = vst [vmem:[#allocation100_spill] sm:$0xff] %v9703_v6 }
 0x156   :  { %v9693_v32 = vpop.permute.xlu1 %1621  ;;  %v9695_v25 = vpop.permute.xlu0 %1619 }
 0x157   :  { %15239 = vst [vmem:[#allocation98_spill] sm:$0xff] %v9693_v32  ;;  %15240 = vst [vmem:[#allocation99_spill] sm:$0xff] %v9695_v25 }
 0x158   :  { %1902 = vrot.lane.b32.xlu1 %v1884_v58, %s8842_s28  ;;  %1900 = vrot.lane.b32.xlu0 %v1883_v63, %s8842_s28  ;;  %v2150_v58 = vmul.f32 %v9380_v16, %v9703_v6  ;;  %v2149_v63 = vmul.f32 %v9387_v26, %v9703_v6 }
 0x15a   :  { %v9705_v8 = vpop.permute.xlu1 %1613  ;;  %v9707_v1 = vpop.permute.xlu0 %1119 }
 0x15b   :  { %15242 = vst [vmem:[#allocation101_spill] sm:$0xff] %v9705_v8  ;;  %15243 = vst [vmem:[#allocation102_spill] sm:$0xff] %v9707_v1  ;;  %v2152_v1 = vmul.f32 %v9400_v51, %v9703_v6 }
 0x15c   :  { %1906 = vrot.lane.b32.xlu1 %v1886_v14, %s8842_s28  ;;  %1904 = vrot.lane.b32.xlu0 %v1885_v21, %s8842_s28  ;;  %v2151_v14 = vmul.f32 %v9355_v57, %v9703_v6  ;;  %v9725_v21 = vstv %s7159_s30  ;;  %s7165_s30 = sld [smem:[#allocation2 + $0x405]] }
 0x15d   :  { %15246 = vst [vmem:[#allocation105_spill] sm:$0xff] %v9725_v21 }
 0x15e   :  { %v9715_v32 = vpop.permute.xlu1 %1180  ;;  %v9717_v25 = vpop.permute.xlu0 %1178 }
 0x15f   :  { %15244 = vst [vmem:[#allocation103_spill] sm:$0xff] %v9715_v32  ;;  %15245 = vst [vmem:[#allocation104_spill] sm:$0xff] %v9717_v25 }
 0x160   :  { %2168 = vrot.lane.b32.xlu1 %v2150_v58, %s8845_s27  ;;  %2166 = vrot.lane.b32.xlu0 %v2149_v63, %s8845_s27  ;;  %v2644_v58 = vmul.f32 %v9380_v16, %v9725_v21  ;;  %v2643_v63 = vmul.f32 %v9387_v26, %v9725_v21 }
 0x162   :  { %v9727_v8 = vpop.permute.xlu1 %1184  ;;  %v9729_v48 = vpop.permute.xlu0 %1182 }
 0x163   :  { %15247 = vst [vmem:[#allocation106_spill] sm:$0xff] %v9727_v8  ;;  %15248 = vst [vmem:[#allocation107_spill] sm:$0xff] %v9729_v48  ;;  %v2646_v8 = vmul.f32 %v9400_v51, %v9725_v21 }
 0x164   :  { %2172 = vrot.lane.b32.xlu1 %v2152_v1, %s8845_s27  ;;  %2170 = vrot.lane.b32.xlu0 %v2151_v14, %s8845_s27  ;;  %v2645_v1 = vmul.f32 %v9355_v57, %v9725_v21 }
 0x166   :  { %v9737_v25 = vpop.permute.xlu1 %1674  ;;  %v9739_v32 = vpop.permute.xlu0 %1672 }
 0x167   :  { %15249 = vst [vmem:[#allocation108_spill] sm:$0xff] %v9737_v25  ;;  %15250 = vst [vmem:[#allocation109_spill] sm:$0xff] %v9739_v32 }
 0x168   :  { %2662 = vrot.lane.b32.xlu1 %v2644_v58, %s8845_s27  ;;  %2660 = vrot.lane.b32.xlu0 %v2643_v63, %s8845_s27  ;;  %v1882_v58 = vmul.f32 %v9491_v56, %v9681_v36  ;;  %v1388_v63 = vmul.f32 %v9491_v56, %v9659_v12 }
 0x16a   :  { %v9747_v14 = vpop.permute.xlu1 %1678  ;;  %v9749_v48 = vpop.permute.xlu0 %1676 }
 0x16b   :  { %15251 = vst [vmem:[#allocation110_spill] sm:$0xff] %v9747_v14  ;;  %15252 = vst [vmem:[#allocation111_spill] sm:$0xff] %v9749_v48  ;;  %v2642_v14 = vmul.f32 %v9491_v56, %v9725_v21 }
 0x16c   :  { %2666 = vrot.lane.b32.xlu1 %v2646_v8, %s8845_s27  ;;  %2664 = vrot.lane.b32.xlu0 %v2645_v1, %s8845_s27  ;;  %v2148_v8 = vmul.f32 %v9491_v56, %v9703_v6  ;;  %v9767_v1 = vstv %s7134_s15  ;;  %s7152_s15 = sld [smem:[#allocation2 + $0x284]] }
 0x16d   :  { %15255 = vst [vmem:[#allocation114_spill] sm:$0xff] %v9767_v1 }
 0x16e   :  { %v9757_v32 = vpop.permute.xlu1 %1670  ;;  %v9759_v25 = vpop.permute.xlu0 %1176 }
 0x16f   :  { %15253 = vst [vmem:[#allocation112_spill] sm:$0xff] %v9757_v32  ;;  %15254 = vst [vmem:[#allocation113_spill] sm:$0xff] %v9759_v25 }
 0x170   :  { %1898 = vrot.lane.b32.xlu1 %v1882_v58, %s8842_s28  ;;  %1404 = vrot.lane.b32.xlu0 %v1388_v63, %s8842_s28  ;;  %v1447_v58 = vmul.f32 %v9380_v16, %v9767_v1  ;;  %v1446_v63 = vmul.f32 %v9387_v26, %v9767_v1 }
 0x172   :  { %v9769_v48 = vpop.permute.xlu1 %1237  ;;  %v9771_v36 = vpop.permute.xlu0 %1235 }
 0x173   :  { %15256 = vst [vmem:[#allocation115_spill] sm:$0xff] %v9769_v48  ;;  %15257 = vst [vmem:[#allocation116_spill] sm:$0xff] %v9771_v36  ;;  %v1449_v36 = vmul.f32 %v9400_v51, %v9767_v1 }
 0x174   :  { %2658 = vrot.lane.b32.xlu1 %v2642_v14, %s8845_s27  ;;  %2164 = vrot.lane.b32.xlu0 %v2148_v8, %s8845_s27  ;;  %v1448_v14 = vmul.f32 %v9355_v57, %v9767_v1  ;;  %v9789_v8 = vstv %s7144_s16  ;;  %s7162_s16 = sld [smem:[#allocation2 + $0x285]] }
 0x175   :  { %15260 = vst [vmem:[#allocation119_spill] sm:$0xff] %v9789_v8 }
 0x176   :  { %v9779_v25 = vpop.permute.xlu1 %1241  ;;  %v9781_v32 = vpop.permute.xlu0 %1239 }
 0x177   :  { %15258 = vst [vmem:[#allocation117_spill] sm:$0xff] %v9779_v25  ;;  %15259 = vst [vmem:[#allocation118_spill] sm:$0xff] %v9781_v32 }
 0x178   :  { %1467 = vrot.lane.b32.xlu1 %v1447_v58, %s8849_s23  ;;  %1465 = vrot.lane.b32.xlu0 %v1446_v63, %s8849_s23  ;;  %v1941_v58 = vmul.f32 %v9380_v16, %v9789_v8  ;;  %v1940_v63 = vmul.f32 %v9387_v26, %v9789_v8 }
 0x17a   :  { %v9791_v48 = vpop.permute.xlu1 %1731  ;;  %v9793_v21 = vpop.permute.xlu0 %1729 }
 0x17b   :  { %15261 = vst [vmem:[#allocation120_spill] sm:$0xff] %v9791_v48  ;;  %15262 = vst [vmem:[#allocation121_spill] sm:$0xff] %v9793_v21  ;;  %v1943_v21 = vmul.f32 %v9400_v51, %v9789_v8 }
 0x17c   :  { %1471 = vrot.lane.b32.xlu1 %v1449_v36, %s8849_s23  ;;  %1469 = vrot.lane.b32.xlu0 %v1448_v14, %s8849_s23  ;;  %v1942_v36 = vmul.f32 %v9355_v57, %v9789_v8  ;;  %v9811_v14 = vstv %s7150_s18  ;;  %s7153_s18 = sld [smem:[#allocation2 + $0x304]] }
 0x17d   :  { %15265 = vst [vmem:[#allocation124_spill] sm:$0xff] %v9811_v14 }
 0x17e   :  { %v9801_v25 = vpop.permute.xlu1 %1735  ;;  %v9803_v32 = vpop.permute.xlu0 %1733 }
 0x17f   :  { %15263 = vst [vmem:[#allocation122_spill] sm:$0xff] %v9801_v25  ;;  %15264 = vst [vmem:[#allocation123_spill] sm:$0xff] %v9803_v32 }
 0x180   :  { %1961 = vrot.lane.b32.xlu1 %v1941_v58, %s8849_s23  ;;  %1959 = vrot.lane.b32.xlu0 %v1940_v63, %s8849_s23  ;;  %v2207_v58 = vmul.f32 %v9380_v16, %v9811_v14  ;;  %v2206_v63 = vmul.f32 %v9387_v26, %v9811_v14 }
 0x182   :  { %v9813_v48 = vpop.permute.xlu1 %1727  ;;  %v9815_v6 = vpop.permute.xlu0 %1233 }
 0x183   :  { %15266 = vst [vmem:[#allocation125_spill] sm:$0xff] %v9813_v48  ;;  %15267 = vst [vmem:[#allocation126_spill] sm:$0xff] %v9815_v6  ;;  %v2209_v6 = vmul.f32 %v9400_v51, %v9811_v14 }
 0x184   :  { %1965 = vrot.lane.b32.xlu1 %v1943_v21, %s8849_s23  ;;  %1963 = vrot.lane.b32.xlu0 %v1942_v36, %s8849_s23  ;;  %v2208_v21 = vmul.f32 %v9355_v57, %v9811_v14  ;;  %v9833_v36 = vstv %s7160_s1  ;;  %s7163_s1 = sld [smem:[#allocation2 + $0x305]] }
 0x185   :  { %15270 = vst [vmem:[#allocation129_spill] sm:$0xff] %v9833_v36 }
 0x186   :  { %v9823_v25 = vpop.permute.xlu1 %1294  ;;  %v9825_v32 = vpop.permute.xlu0 %1292 }
 0x187   :  { %15268 = vst [vmem:[#allocation127_spill] sm:$0xff] %v9823_v25  ;;  %15269 = vst [vmem:[#allocation128_spill] sm:$0xff] %v9825_v32 }
 0x188   :  { %2225 = vrot.lane.b32.xlu1 %v2207_v58, %s8846_s14  ;;  %2223 = vrot.lane.b32.xlu0 %v2206_v63, %s8846_s14  ;;  %v2701_v58 = vmul.f32 %v9380_v16, %v9833_v36  ;;  %v2700_v63 = vmul.f32 %v9387_v26, %v9833_v36 }
 0x18a   :  { %v9835_v48 = vpop.permute.xlu1 %1298  ;;  %v9837_v12 = vpop.permute.xlu0 %1296 }
 0x18b   :  { %15271 = vst [vmem:[#allocation130_spill] sm:$0xff] %v9835_v48  ;;  %15272 = vst [vmem:[#allocation131_spill] sm:$0xff] %v9837_v12  ;;  %v2703_v48 = vmul.f32 %v9400_v51, %v9833_v36 }
 0x18c   :  { %2229 = vrot.lane.b32.xlu1 %v2209_v6, %s8846_s14  ;;  %2227 = vrot.lane.b32.xlu0 %v2208_v21, %s8846_s14  ;;  %v2702_v6 = vmul.f32 %v9355_v57, %v9833_v36 }
 0x18e   :  { %v9845_v32 = vpop.permute.xlu1 %1788  ;;  %v9847_v25 = vpop.permute.xlu0 %1786 }
 0x18f   :  { %15273 = vst [vmem:[#allocation132_spill] sm:$0xff] %v9845_v32  ;;  %15274 = vst [vmem:[#allocation133_spill] sm:$0xff] %v9847_v25 }
 0x190   :  { %2719 = vrot.lane.b32.xlu1 %v2701_v58, %s8846_s14  ;;  %2717 = vrot.lane.b32.xlu0 %v2700_v63, %s8846_s14  ;;  %v1939_v58 = vmul.f32 %v9491_v56, %v9789_v8  ;;  %v1445_v63 = vmul.f32 %v9491_v56, %v9767_v1 }
 0x192   :  { %v9855_v21 = vpop.permute.xlu1 %1792  ;;  %v9857_v12 = vpop.permute.xlu0 %1790 }
 0x193   :  { %15275 = vst [vmem:[#allocation134_spill] sm:$0xff] %v9855_v21  ;;  %15276 = vst [vmem:[#allocation135_spill] sm:$0xff] %v9857_v12  ;;  %v2699_v21 = vmul.f32 %v9491_v56, %v9833_v36 }
 0x194   :  { %2723 = vrot.lane.b32.xlu1 %v2703_v48, %s8846_s14  ;;  %2721 = vrot.lane.b32.xlu0 %v2702_v6, %s8846_s14  ;;  %v2205_v48 = vmul.f32 %v9491_v56, %v9811_v14  ;;  %v9875_v6 = vstv %s7135_s7  ;;  %s7154_s7 = sld [smem:[#allocation2 + $0x384]] }
 0x195   :  { %15279 = vst [vmem:[#allocation138_spill] sm:$0xff] %v9875_v6  ;;  %v1511_v36 = vmul.f32 %v9400_v51, %v9875_v6 }
 0x196   :  { %v9865_v25 = vpop.permute.xlu1 %1784  ;;  %v9867_v32 = vpop.permute.xlu0 %1290 }
 0x197   :  { %15277 = vst [vmem:[#allocation136_spill] sm:$0xff] %v9865_v25  ;;  %15278 = vst [vmem:[#allocation137_spill] sm:$0xff] %v9867_v32 }
 0x198   :  { %1957 = vrot.lane.b32.xlu1 %v1939_v58, %s8849_s23  ;;  %1463 = vrot.lane.b32.xlu0 %v1445_v63, %s8849_s23  ;;  %v1509_v58 = vmul.f32 %v9380_v16, %v9875_v6  ;;  %v1508_v63 = vmul.f32 %v9387_v26, %v9875_v6 }
 0x19a   :  { %v9877_v12 = vpop.permute.xlu1 %1351  ;;  %v9879_v8 = vpop.permute.xlu0 %1349 }
 0x19b   :  { %15280 = vst [vmem:[#allocation139_spill] sm:$0xff] %v9877_v12  ;;  %15281 = vst [vmem:[#allocation140_spill] sm:$0xff] %v9879_v8 }
 0x19c   :  { %2715 = vrot.lane.b32.xlu1 %v2699_v21, %s8846_s14  ;;  %2221 = vrot.lane.b32.xlu0 %v2205_v48, %s8846_s14  ;;  %v1510_v21 = vmul.f32 %v9355_v57, %v9875_v6  ;;  %v9897_v48 = vstv %s7145_s19  ;;  %s7164_s19 = sld [smem:[#allocation2 + $0x385]] }
 0x19d   :  { %15284 = vst [vmem:[#allocation143_spill] sm:$0xff] %v9897_v48 }
 0x19e   :  { %v9887_v32 = vpop.permute.xlu1 %1355  ;;  %v9889_v25 = vpop.permute.xlu0 %1353 }
 0x19f   :  { %15282 = vst [vmem:[#allocation141_spill] sm:$0xff] %v9887_v32  ;;  %15283 = vst [vmem:[#allocation142_spill] sm:$0xff] %v9889_v25 }
 0x1a0   :  { %1529 = vrot.lane.b32.xlu1 %v1509_v58, %s8850_s26  ;;  %1527 = vrot.lane.b32.xlu0 %v1508_v63, %s8850_s26  ;;  %v2003_v58 = vmul.f32 %v9380_v16, %v9897_v48  ;;  %v2002_v63 = vmul.f32 %v9387_v26, %v9897_v48 }
 0x1a2   :  { %v9899_v14 = vpop.permute.xlu1 %1845  ;;  %v9901_v8 = vpop.permute.xlu0 %1843 }
 0x1a3   :  { %15285 = vst [vmem:[#allocation144_spill] sm:$0xff] %v9899_v14  ;;  %15286 = vst [vmem:[#allocation145_spill] sm:$0xff] %v9901_v8  ;;  %v2005_v8 = vmul.f32 %v9400_v51, %v9897_v48 }
 0x1a4   :  { %1533 = vrot.lane.b32.xlu1 %v1511_v36, %s8850_s26  ;;  %1531 = vrot.lane.b32.xlu0 %v1510_v21, %s8850_s26  ;;  %v2004_v36 = vmul.f32 %v9355_v57, %v9897_v48  ;;  %v9919_v21 = vstv %s7151_s20  ;;  %s11159_s20 = sld [smem:[#allocation2 + $0x4]] }
 0x1a5   :  { %15289 = vst [vmem:[#allocation148_spill] sm:$0xff] %v9919_v21 }
 0x1a6   :  { %v9909_v32 = vpop.permute.xlu1 %1849  ;;  %v9911_v25 = vpop.permute.xlu0 %1847 }
 0x1a7   :  { %15287 = vst [vmem:[#allocation146_spill] sm:$0xff] %v9909_v32  ;;  %15288 = vst [vmem:[#allocation147_spill] sm:$0xff] %v9911_v25 }
 0x1a8   :  { %2023 = vrot.lane.b32.xlu1 %v2003_v58, %s8850_s26  ;;  %2021 = vrot.lane.b32.xlu0 %v2002_v63, %s8850_s26  ;;  %v2264_v58 = vmul.f32 %v9380_v16, %v9919_v21  ;;  %v2263_v63 = vmul.f32 %v9387_v26, %v9919_v21 }
 0x1aa   :  { %v9921_v14 = vpop.permute.xlu1 %2111  ;;  %v9923_v12 = vpop.permute.xlu0 %2109 }
 0x1ab   :  { %15290 = vst [vmem:[#allocation149_spill] sm:$0xff] %v9921_v14  ;;  %15291 = vst [vmem:[#allocation150_spill] sm:$0xff] %v9923_v12  ;;  %v2266_v12 = vmul.f32 %v9400_v51, %v9919_v21 }
 0x1ac   :  { %2027 = vrot.lane.b32.xlu1 %v2005_v8, %s8850_s26  ;;  %2025 = vrot.lane.b32.xlu0 %v2004_v36, %s8850_s26  ;;  %v2265_v8 = vmul.f32 %v9355_v57, %v9919_v21  ;;  %v9941_v36 = vstv %s7161_s21  ;;  %s11173_s21 = sld [smem:[#allocation2 + $0x5]] }
 0x1ad   :  { %15294 = vst [vmem:[#allocation153_spill] sm:$0xff] %v9941_v36 }
 0x1ae   :  { %v9931_v32 = vpop.permute.xlu1 %2115  ;;  %v9933_v25 = vpop.permute.xlu0 %2113 }
 0x1af   :  { %15292 = vst [vmem:[#allocation151_spill] sm:$0xff] %v9931_v32  ;;  %15293 = vst [vmem:[#allocation152_spill] sm:$0xff] %v9933_v25 }
 0x1b0   :  { %2282 = vrot.lane.b32.xlu1 %v2264_v58, %s8847_s17  ;;  %2280 = vrot.lane.b32.xlu0 %v2263_v63, %s8847_s17  ;;  %v2758_v58 = vmul.f32 %v9380_v16, %v9941_v36  ;;  %v2757_v63 = vmul.f32 %v9387_v26, %v9941_v36 }
 0x1b2   :  { %v9943_v14 = vpop.permute.xlu1 %2605  ;;  %v9945_v1 = vpop.permute.xlu0 %2603 }
 0x1b3   :  { %15295 = vst [vmem:[#allocation154_spill] sm:$0xff] %v9943_v14  ;;  %15296 = vst [vmem:[#allocation155_spill] sm:$0xff] %v9945_v1  ;;  %v2760_v1 = vmul.f32 %v9400_v51, %v9941_v36 }
 0x1b4   :  { %2286 = vrot.lane.b32.xlu1 %v2266_v12, %s8847_s17  ;;  %2284 = vrot.lane.b32.xlu0 %v2265_v8, %s8847_s17  ;;  %v2759_v12 = vmul.f32 %v9355_v57, %v9941_v36 }
 0x1b6   :  { %v9953_v32 = vpop.permute.xlu1 %2609  ;;  %v9955_v25 = vpop.permute.xlu0 %2607 }
 0x1b7   :  { %15297 = vst [vmem:[#allocation156_spill] sm:$0xff] %v9953_v32  ;;  %15298 = vst [vmem:[#allocation157_spill] sm:$0xff] %v9955_v25  ;;  %v2001_v32 = vmul.f32 %v9491_v56, %v9897_v48 }
 0x1b8   :  { %2776 = vrot.lane.b32.xlu1 %v2758_v58, %s8847_s17  ;;  %2774 = vrot.lane.b32.xlu0 %v2757_v63, %s8847_s17  ;;  %v1507_v58 = vmul.f32 %v9491_v56, %v9875_v6 }
 0x1ba   :  { %v9963_v8 = vpop.permute.xlu1 %1841  ;;  %v9965_v14 = vpop.permute.xlu0 %1347 }
 0x1bb   :  { %15299 = vst [vmem:[#allocation158_spill] sm:$0xff] %v9963_v8  ;;  %15300 = vst [vmem:[#allocation159_spill] sm:$0xff] %v9965_v14  ;;  %v2756_v14 = vmul.f32 %v9491_v56, %v9941_v36 }
 0x1bc   :  { %2780 = vrot.lane.b32.xlu1 %v2760_v1, %s8847_s17  ;;  %2778 = vrot.lane.b32.xlu0 %v2759_v12, %s8847_s17  ;;  %v2262_v1 = vmul.f32 %v9491_v56, %v9919_v21  ;;  %v9986_v12 = vld [vmem:[%s14642_s0 + $0x30] sm:$0xff] }
 0x1bd   :  { %v615_v48 = vmul.f32 %v9007_v9, %v9986_v12 }
 0x1be   :  { %v9973_v63 = vpop.permute.xlu1 %2601  ;;  %v9975_v25 = vpop.permute.xlu0 %2107 }
 0x1bf   :  { %15301 = vst [vmem:[#allocation160_spill] sm:$0xff] %v9973_v63  ;;  %15302 = vst [vmem:[#allocation161_spill] sm:$0xff] %v9975_v25  ;;  %v9991_v63 = vld [vmem:[%s14642_s0 + $0x28] sm:$0xff]  ;;  %v113_v25 = vmul.f32 %v8995_v4, %v9986_v12 }
 0x1c0   :  { %2019 = vrot.lane.b32.xlu1 %v2001_v32, %s8850_s26  ;;  %1525 = vrot.lane.b32.xlu0 %v1507_v58, %s8850_s26  ;;  %v112_v36 = vmul.f32 %v8995_v4, %v9991_v63 }
 0x1c2   :  { %v9993_v32 = vpop.permute.xlu1 %1408  ;;  %v9995_v58 = vpop.permute.xlu0 %1406 }
 0x1c3   :  { %15303 = vst [vmem:[#allocation162_spill] sm:$0xff] %v9993_v32  ;;  %15304 = vst [vmem:[#allocation163_spill] sm:$0xff] %v9995_v58 }
 0x1c4   :  { %2772 = vrot.lane.b32.xlu1 %v2756_v14, %s8847_s17  ;;  %2278 = vrot.lane.b32.xlu0 %v2262_v1, %s8847_s17  ;;  %v614_v14 = vmul.f32 %v9007_v9, %v9991_v63  ;;  %v10013_v1 = vstv %s7152_s15  ;;  %s8871_s15 = smov 108  }
 0x1c5   :  { %15307 = vst [vmem:[#allocation166_spill] sm:$0xff] %v10013_v1  ;;  %v2323_v58 = vmul.f32 %v9400_v51, %v10013_v1 }
 0x1c6   :  { %v10003_v8 = vpop.permute.xlu1 %1412  ;;  %v10005_v21 = vpop.permute.xlu0 %1410 }
 0x1c7   :  { %15305 = vst [vmem:[#allocation164_spill] sm:$0xff] %v10003_v8  ;;  %15306 = vst [vmem:[#allocation165_spill] sm:$0xff] %v10005_v21 }
 0x1c8   :  { %135 = vrot.lane.b32.xlu1 %v113_v25, %s8844_s22  ;;  %133 = vrot.lane.b32.xlu0 %v112_v36, %s8844_s22  ;;  %v2321_v25 = vmul.f32 %v9380_v16, %v10013_v1  ;;  %v2320_v36 = vmul.f32 %v9387_v26, %v10013_v1 }
 0x1ca   :  { %v10015_v6 = vpop.permute.xlu1 %1902  ;;  %v10017_v4 = vpop.permute.xlu0 %1900 }
 0x1cb   :  { %15308 = vst [vmem:[#allocation167_spill] sm:$0xff] %v10015_v6  ;;  %15309 = vst [vmem:[#allocation168_spill] sm:$0xff] %v10017_v4 }
 0x1cc   :  { %637 = vrot.lane.b32.xlu1 %v615_v48, %s8844_s22  ;;  %635 = vrot.lane.b32.xlu0 %v614_v14, %s8844_s22  ;;  %v2322_v48 = vmul.f32 %v9355_v57, %v10013_v1  ;;  %v10035_v14 = vstv %s7162_s16  ;;  %s8872_s16 = smov 52  }
 0x1cd   :  { %15312 = vst [vmem:[#allocation171_spill] sm:$0xff] %v10035_v14 }
 0x1ce   :  { %v10025_v8 = vpop.permute.xlu1 %1906  ;;  %v10027_v9 = vpop.permute.xlu0 %1904 }
 0x1cf   :  { %15310 = vst [vmem:[#allocation169_spill] sm:$0xff] %v10025_v8  ;;  %15311 = vst [vmem:[#allocation170_spill] sm:$0xff] %v10027_v9 }
 0x1d0   :  { %2339 = vrot.lane.b32.xlu1 %v2321_v25, %s8848_s2  ;;  %2337 = vrot.lane.b32.xlu0 %v2320_v36, %s8848_s2  ;;  %v2815_v25 = vmul.f32 %v9380_v16, %v10035_v14  ;;  %v2814_v36 = vmul.f32 %v9387_v26, %v10035_v14 }
 0x1d2   :  { %v10037_v4 = vpop.permute.xlu1 %2168  ;;  %v10039_v6 = vpop.permute.xlu0 %2166 }
 0x1d3   :  { %15313 = vst [vmem:[#allocation172_spill] sm:$0xff] %v10037_v4  ;;  %15314 = vst [vmem:[#allocation173_spill] sm:$0xff] %v10039_v6  ;;  %v2817_v6 = vmul.f32 %v9400_v51, %v10035_v14 }
 0x1d4   :  { %2343 = vrot.lane.b32.xlu1 %v2323_v58, %s8848_s2  ;;  %2341 = vrot.lane.b32.xlu0 %v2322_v48, %s8848_s2  ;;  %v2816_v58 = vmul.f32 %v9355_v57, %v10035_v14 }
 0x1d6   :  { %v10047_v8 = vpop.permute.xlu1 %2172  ;;  %v10049_v9 = vpop.permute.xlu0 %2170 }
 0x1d7   :  { %15315 = vst [vmem:[#allocation174_spill] sm:$0xff] %v10047_v8  ;;  %15316 = vst [vmem:[#allocation175_spill] sm:$0xff] %v10049_v9  ;;  %v2813_v8 = vmul.f32 %v9491_v56, %v10035_v14 }
 0x1d8   :  { %2833 = vrot.lane.b32.xlu1 %v2815_v25, %s8848_s2  ;;  %2831 = vrot.lane.b32.xlu0 %v2814_v36, %s8848_s2  ;;  %v2319_v25 = vmul.f32 %v9491_v56, %v10013_v1 }
 0x1da   :  { %v10057_v48 = vpop.permute.xlu1 %2662  ;;  %v10059_v4 = vpop.permute.xlu0 %2660 }
 0x1db   :  { %15317 = vst [vmem:[#allocation176_spill] sm:$0xff] %v10057_v48  ;;  %15318 = vst [vmem:[#allocation177_spill] sm:$0xff] %v10059_v4 }
 0x1dc   :  { %2837 = vrot.lane.b32.xlu1 %v2817_v6, %s8848_s2  ;;  %2835 = vrot.lane.b32.xlu0 %v2816_v58, %s8848_s2  ;;  %v171_v6 = vmul.f32 %v9032_v17, %v9986_v12  ;;  %v170_v58 = vmul.f32 %v9032_v17, %v9991_v63 }
 0x1de   :  { %v10067_v36 = vpop.permute.xlu1 %2666  ;;  %v10069_v9 = vpop.permute.xlu0 %2664 }
 0x1df   :  { %15319 = vst [vmem:[#allocation178_spill] sm:$0xff] %v10067_v36  ;;  %15320 = vst [vmem:[#allocation179_spill] sm:$0xff] %v10069_v9  ;;  %v672_v36 = vmul.f32 %v9046_v22, %v9986_v12 }
 0x1e0   :  { %2829 = vrot.lane.b32.xlu1 %v2813_v8, %s8848_s2  ;;  %2335 = vrot.lane.b32.xlu0 %v2319_v25, %s8848_s2  ;;  %v671_v8 = vmul.f32 %v9046_v22, %v9991_v63  ;;  %v10087_v25 = vstv %s7153_s18  ;;  %s11487_s18 = sld [smem:[#allocation5 + $0x5]] }
 0x1e1   :  { %15323 = vst [vmem:[#allocation182_spill] sm:$0xff] %v10087_v25 }
 0x1e2   :  { %v10077_v4 = vpop.permute.xlu1 %1898  ;;  %v10079_v48 = vpop.permute.xlu0 %1404 }
 0x1e3   :  { %15321 = vst [vmem:[#allocation180_spill] sm:$0xff] %v10077_v4  ;;  %15322 = vst [vmem:[#allocation181_spill] sm:$0xff] %v10079_v48 }
 0x1e4   :  { %193 = vrot.lane.b32.xlu1 %v171_v6, %s8845_s27  ;;  %191 = vrot.lane.b32.xlu0 %v170_v58, %s8845_s27  ;;  %v2378_v6 = vmul.f32 %v9380_v16, %v10087_v25  ;;  %v2377_v58 = vmul.f32 %v9387_v26, %v10087_v25 }
 0x1e6   :  { %v10089_v9 = vpop.permute.xlu1 %2658  ;;  %v10091_v17 = vpop.permute.xlu0 %2164 }
 0x1e7   :  { %15324 = vst [vmem:[#allocation183_spill] sm:$0xff] %v10089_v9  ;;  %15325 = vst [vmem:[#allocation184_spill] sm:$0xff] %v10091_v17  ;;  %v2380_v17 = vmul.f32 %v9400_v51, %v10087_v25 }
 0x1e8   :  { %694 = vrot.lane.b32.xlu1 %v672_v36, %s8845_s27  ;;  %692 = vrot.lane.b32.xlu0 %v671_v8, %s8845_s27  ;;  %v2379_v36 = vmul.f32 %v9355_v57, %v10087_v25  ;;  %v10109_v8 = vstv %s7163_s1  ;;  %s8877_s1 = smov 104  }
 0x1e9   :  { %15328 = vst [vmem:[#allocation187_spill] sm:$0xff] %v10109_v8 }
 0x1ea   :  { %v10099_v14 = vpop.permute.xlu1 %1467  ;;  %v10101_v22 = vpop.permute.xlu0 %1465 }
 0x1eb   :  { %15326 = vst [vmem:[#allocation185_spill] sm:$0xff] %v10099_v14  ;;  %15327 = vst [vmem:[#allocation186_spill] sm:$0xff] %v10101_v22  ;;  %v142_v14 = vsel %vm139_vm0, %v9216_v28, %v9204_v23 }
 0x1ec   :  { %2396 = vrot.lane.b32.xlu1 %v2378_v6, %s8842_s28  ;;  %2394 = vrot.lane.b32.xlu0 %v2377_v58, %s8842_s28  ;;  %v2872_v6 = vmul.f32 %v9380_v16, %v10109_v8  ;;  %v2871_v58 = vmul.f32 %v9387_v26, %v10109_v8 }
 0x1ee   :  { %v10111_v9 = vpop.permute.xlu1 %1471  ;;  %v10113_v1 = vpop.permute.xlu0 %1469 }
 0x1ef   :  { %15329 = vst [vmem:[#allocation188_spill] sm:$0xff] %v10111_v9  ;;  %15330 = vst [vmem:[#allocation189_spill] sm:$0xff] %v10113_v1  ;;  %v2874_v9 = vmul.f32 %v9400_v51, %v10109_v8  ;;  %v642_v1 = vsel %vm139_vm0, %v9228_v35, %v9226_v33 }
 0x1f0   :  { %2400 = vrot.lane.b32.xlu1 %v2380_v17, %s8842_s28  ;;  %2398 = vrot.lane.b32.xlu0 %v2379_v36, %s8842_s28  ;;  %v2873_v17 = vmul.f32 %v9355_v57, %v10109_v8 }
 0x1f2   :  { %v10121_v48 = vpop.permute.xlu1 %1961  ;;  %v10123_v4 = vpop.permute.xlu0 %1959 }
 0x1f3   :  { %15331 = vst [vmem:[#allocation190_spill] sm:$0xff] %v10121_v48  ;;  %15332 = vst [vmem:[#allocation191_spill] sm:$0xff] %v10123_v4  ;;  %v2870_v4 = vmul.f32 %v9491_v56, %v10109_v8 }
 0x1f4   :  { %2890 = vrot.lane.b32.xlu1 %v2872_v6, %s8842_s28  ;;  %2888 = vrot.lane.b32.xlu0 %v2871_v58, %s8842_s28  ;;  %v2376_v6 = vmul.f32 %v9491_v56, %v10087_v25  ;;  %v729_v25 = vmul.f32 %v9080_v34, %v9986_v12 }
 0x1f6   :  { %v10131_v36 = vpop.permute.xlu1 %1965  ;;  %v10133_v22 = vpop.permute.xlu0 %1963 }
 0x1f7   :  { %15333 = vst [vmem:[#allocation192_spill] sm:$0xff] %v10131_v36  ;;  %15334 = vst [vmem:[#allocation193_spill] sm:$0xff] %v10133_v22  ;;  %v141_v22 = vsel %vm139_vm0, %v9206_v24, %v9216_v28  ;;  %v641_v28 = vsel %vm139_vm0, %v9246_v43, %v9228_v35  ;;  %v199_v35 = vsel %vm197_vm1, %v9260_v50, %v9258_v49 }
 0x1f8   :  { %2894 = vrot.lane.b32.xlu1 %v2874_v9, %s8842_s28  ;;  %2892 = vrot.lane.b32.xlu0 %v2873_v17, %s8842_s28  ;;  %v229_v9 = vmul.f32 %v9066_v29, %v9986_v12  ;;  %v228_v17 = vmul.f32 %v9066_v29, %v9991_v63  ;;  %v200_v43 = vsel %vm197_vm1, %v9258_v49, %v9270_v55 }
 0x1fa   :  { %v10141_v58 = vpop.permute.xlu1 %2225  ;;  %v10143_v48 = vpop.permute.xlu0 %2223 }
 0x1fb   :  { %15335 = vst [vmem:[#allocation194_spill] sm:$0xff] %v10141_v58  ;;  %15336 = vst [vmem:[#allocation195_spill] sm:$0xff] %v10143_v48 }
 0x1fc   :  { %2886 = vrot.lane.b32.xlu1 %v2870_v4, %s8842_s28  ;;  %2392 = vrot.lane.b32.xlu0 %v2376_v6, %s8842_s28  ;;  %v728_v4 = vmul.f32 %v9080_v34, %v9991_v63  ;;  %v10161_v6 = vstv %s7154_s7  ;;  %s11026_s7 = sld [smem:[#allocation5 + $0x3]] }
 0x1fd   :  { %15339 = vst [vmem:[#allocation198_spill] sm:$0xff] %v10161_v6 }
 0x1fe   :  { %v10151_v36 = vpop.permute.xlu1 %2229  ;;  %v10153_v8 = vpop.permute.xlu0 %2227 }
 0x1ff   :  { %15337 = vst [vmem:[#allocation196_spill] sm:$0xff] %v10151_v36  ;;  %15338 = vst [vmem:[#allocation197_spill] sm:$0xff] %v10153_v8 }
 0x200   :  { %251 = vrot.lane.b32.xlu1 %v229_v9, %s8846_s14  ;;  %249 = vrot.lane.b32.xlu0 %v228_v17, %s8846_s14  ;;  %v2435_v9 = vmul.f32 %v9380_v16, %v10161_v6  ;;  %v2434_v17 = vmul.f32 %v9387_v26, %v10161_v6 }
 0x202   :  { %v10163_v48 = vpop.permute.xlu1 %2719  ;;  %v10165_v29 = vpop.permute.xlu0 %2717 }
 0x203   :  { %15340 = vst [vmem:[#allocation199_spill] sm:$0xff] %v10163_v48  ;;  %15341 = vst [vmem:[#allocation200_spill] sm:$0xff] %v10165_v29  ;;  %v2437_v29 = vmul.f32 %v9400_v51, %v10161_v6 }
 0x204   :  { %751 = vrot.lane.b32.xlu1 %v729_v25, %s8846_s14  ;;  %749 = vrot.lane.b32.xlu0 %v728_v4, %s8846_s14  ;;  %v2436_v25 = vmul.f32 %v9355_v57, %v10161_v6  ;;  %v10183_v4 = vstv %s7164_s19  ;;  %s11047_s19 = sld [smem:[#allocation5 + $0x2]] }
 0x205   :  { %15344 = vst [vmem:[#allocation203_spill] sm:$0xff] %v10183_v4  ;;  %v2931_v57 = vmul.f32 %v9400_v51, %v10183_v4  ;;  %v2433_v51 = vmul.f32 %v9491_v56, %v10161_v6 }
 0x206   :  { %v10173_v36 = vpop.permute.xlu1 %2723  ;;  %v10175_v34 = vpop.permute.xlu0 %2721 }
 0x207   :  { %15342 = vst [vmem:[#allocation201_spill] sm:$0xff] %v10173_v36  ;;  %15343 = vst [vmem:[#allocation202_spill] sm:$0xff] %v10175_v34 }
 0x208   :  { %2455 = vrot.lane.b32.xlu1 %v2435_v9, %s8849_s23  ;;  %2453 = vrot.lane.b32.xlu0 %v2434_v17, %s8849_s23  ;;  %v2929_v9 = vmul.f32 %v9380_v16, %v10183_v4  ;;  %v2928_v17 = vmul.f32 %v9387_v26, %v10183_v4 }
 0x20a   :  { %v10185_v48 = vpop.permute.xlu1 %1957  ;;  %v10187_v8 = vpop.permute.xlu0 %1463 }
 0x20b   :  { %15345 = vst [vmem:[#allocation204_spill] sm:$0xff] %v10185_v48  ;;  %15346 = vst [vmem:[#allocation205_spill] sm:$0xff] %v10187_v8  ;;  %v10246_v8 = vstv %s95_s25  ;;  %s10529_s25 = sld [smem:[#allocation5]] }
 0x20c   :  { %2459 = vrot.lane.b32.xlu1 %v2437_v29, %s8849_s23  ;;  %2457 = vrot.lane.b32.xlu0 %v2436_v25, %s8849_s23  ;;  %v10206_v29 = vld [vmem:[%s14642_s0 + $0x18] sm:$0xff]  ;;  %15358 = vst [vmem:[#allocation217_spill] sm:$0xff] %v10246_v8 }
 0x20d   :  { %v2930_v16 = vmul.f32 %v10206_v29, %v10183_v4 }
 0x20e   :  { %v10195_v36 = vpop.permute.xlu1 %2715  ;;  %v10197_v34 = vpop.permute.xlu0 %2221 }
 0x20f   :  { %15347 = vst [vmem:[#allocation206_spill] sm:$0xff] %v10195_v36  ;;  %15348 = vst [vmem:[#allocation207_spill] sm:$0xff] %v10197_v34  ;;  %v10240_v36 = vstv %s7155_s24  ;;  %s10502_s24 = sld [smem:[#allocation5 + $0x1]] }
 0x210   :  { %2949 = vrot.lane.b32.xlu1 %v2929_v9, %s8849_s23  ;;  %2947 = vrot.lane.b32.xlu0 %v2928_v17, %s8849_s23  ;;  %v2927_v9 = vmul.f32 %v9491_v56, %v10183_v4  ;;  %15355 = vst [vmem:[#allocation214_spill] sm:$0xff] %v10240_v36 }
 0x212   :  { %v10210_v26 = vpop.permute.xlu1 %1529  ;;  %v10212_v25 = vpop.permute.xlu0 %1527 }
 0x213   :  { %15349 = vst [vmem:[#allocation208_spill] sm:$0xff] %v10210_v26  ;;  %15350 = vst [vmem:[#allocation209_spill] sm:$0xff] %v10212_v25 }
 0x214   :  { %2953 = vrot.lane.b32.xlu1 %v2931_v57, %s8849_s23  ;;  %2951 = vrot.lane.b32.xlu0 %v2930_v16, %s8849_s23  ;;  %v287_v57 = vmul.f32 %v9100_v41, %v9986_v12  ;;  %v286_v16 = vmul.f32 %v9100_v41, %v9991_v63 }
 0x216   :  { %v10220_v17 = vpop.permute.xlu1 %1533  ;;  %v10222_v34 = vpop.permute.xlu0 %1531 }
 0x217   :  { %15351 = vst [vmem:[#allocation210_spill] sm:$0xff] %v10220_v17  ;;  %15352 = vst [vmem:[#allocation211_spill] sm:$0xff] %v10222_v34  ;;  %v10290_v34 = vstv %s7165_s30  ;;  %s7137_s30 = sld [smem:[#allocation2 + $0x3]] }
 0x218   :  { %2945 = vrot.lane.b32.xlu1 %v2927_v9, %s8849_s23  ;;  %2451 = vrot.lane.b32.xlu0 %v2433_v51, %s8849_s23  ;;  %v786_v9 = vmul.f32 %v9114_v46, %v9986_v12  ;;  %v785_v51 = vmul.f32 %v9114_v46, %v9991_v63  ;;  %v10260_v46 = vld [vmem:[%s14642_s0 + $0x8] sm:$0xff]  ;;  %15362 = vst [vmem:[#allocation221_spill] sm:$0xff] %v10290_v34 }
 0x219   :  { %v2496_v48 = vmul.f32 %v10260_v46, %v10240_v36  ;;  %v98_v25 = vmul.f32 %v10260_v46, %v10246_v8 }
 0x21a   :  { %v10230_v4 = vpop.permute.xlu1 %2023  ;;  %v10232_v6 = vpop.permute.xlu0 %2021 }
 0x21b   :  { %15353 = vst [vmem:[#allocation212_spill] sm:$0xff] %v10230_v4  ;;  %15354 = vst [vmem:[#allocation213_spill] sm:$0xff] %v10232_v6  ;;  %v2498_v6 = vmul.f32 %v10206_v29, %v10240_v36 }
 0x21c   :  { %309 = vrot.lane.b32.xlu1 %v287_v57, %s8847_s17  ;;  %307 = vrot.lane.b32.xlu0 %v286_v16, %s8847_s17  ;;  %v10253_v57 = vld [vmem:[%s14642_s0 + $0x10] sm:$0xff] }
 0x21d   :  { %v2497_v16 = vmul.f32 %v10253_v57, %v10240_v36  ;;  %v99_v17 = vmul.f32 %v10253_v57, %v10246_v8 }
 0x21e   :  { %v10242_v58 = vpop.permute.xlu1 %2027  ;;  %v10244_v41 = vpop.permute.xlu0 %2025 }
 0x21f   :  { %15356 = vst [vmem:[#allocation215_spill] sm:$0xff] %v10242_v58  ;;  %15357 = vst [vmem:[#allocation216_spill] sm:$0xff] %v10244_v41  ;;  %v10264_v58 = vstv %s7117_s29  ;;  %v100_v41 = vmul.f32 %v10206_v29, %v10246_v8  ;;  %s7127_s29 = sld [smem:[#allocation2 + $0x2]] }
 0x220   :  { %808 = vrot.lane.b32.xlu1 %v786_v9, %s8847_s17  ;;  %806 = vrot.lane.b32.xlu0 %v785_v51, %s8847_s17  ;;  %15359 = vst [vmem:[#allocation218_spill] sm:$0xff] %v10264_v58  ;;  %v600_v4 = vmul.f32 %v10260_v46, %v10264_v58  ;;  %v601_v26 = vmul.f32 %v10253_v57, %v10264_v58 }
 0x221   :  { %v599_v59 = vmul.f32 %v9491_v56, %v10264_v58 }
 0x222   :  { %v10266_v9 = vpop.permute.xlu1 %2282  ;;  %v10268_v51 = vpop.permute.xlu0 %2280 }
 0x223   :  { %15360 = vst [vmem:[#allocation219_spill] sm:$0xff] %v10266_v9  ;;  %15361 = vst [vmem:[#allocation220_spill] sm:$0xff] %v10268_v51  ;;  %v8772_v9 = vld [vmem:[%s14642_s0 + $0x20] sm:$0xff] }
 0x224   :  { %2517 = vrot.lane.b32.xlu1 %v2497_v16, %s8850_s26  ;;  %2515 = vrot.lane.b32.xlu0 %v2496_v48, %s8850_s26  ;;  %v2499_v51 = vmul.f32 %v8772_v9, %v10240_v36  ;;  %v602_v16 = vmul.f32 %v10206_v29, %v10264_v58  ;;  %v143_v48 = vsel %vm139_vm0, %v9204_v23, %v9214_v27 }
 0x225   :  { %v643_v27 = vsel %vm139_vm0, %v9226_v33, %v9238_v39  ;;  %v97_v23 = vmul.f32 %v9491_v56, %v10246_v8  ;;  %v2991_v33 = vmul.f32 %v10253_v57, %v10290_v34  ;;  %v2990_v39 = vmul.f32 %v10260_v46, %v10290_v34  ;;  %v15490_v8 = vld [vmem:[#allocation97_spill] sm:$0xff] }
 0x226   :  { %v10304_v32 = vpop.permute.xlu1 %2286  ;;  %v10306_v21 = vpop.permute.xlu0 %2284  ;;  %v158_v38 = vadd.f32 %v143_v48, %v100_v41  ;;  %v156_v58 = vadd.f32 %v141_v22, %v98_v25  ;;  %v140_v56 = vsel %vm139_vm0, %v9248_v44, %v9206_v24  ;;  %v699_v24 = vsel %vm197_vm1, %v9282_v61, %v9280_v60 }
 0x227   :  { %15363 = vst [vmem:[#allocation222_spill] sm:$0xff] %v10304_v32  ;;  %15364 = vst [vmem:[#allocation223_spill] sm:$0xff] %v10306_v21  ;;  %v157_v32 = vadd.f32 %v142_v14, %v99_v17  ;;  %v657_v21 = vadd.f32 %v642_v1, %v600_v4  ;;  %v658_v1 = vadd.f32 %v643_v27, %v601_v26 }
 0x228   :  { %2521 = vrot.lane.b32.xlu1 %v2499_v51, %s8850_s26  ;;  %2519 = vrot.lane.b32.xlu0 %v2498_v6, %s8850_s26  ;;  %v201_v6 = vsel %vm197_vm1, %v9270_v55, %v9268_v54  ;;  %v659_v14 = vadd.f32 %v644_v18, %v602_v16  ;;  %v656_v4 = vadd.f32 %v641_v28, %v599_v59  ;;  %v15483_v54 = vld [vmem:[#allocation92_spill] sm:$0xff] }
 0x229   :  { %v700_v44 = vsel %vm197_vm1, %v9280_v60, %v9292_v7  ;;  %v2993_v49 = vmul.f32 %v8772_v9, %v10290_v34  ;;  %v2992_v55 = vmul.f32 %v10206_v29, %v10290_v34  ;;  %v155_v27 = vadd.f32 %v140_v56, %v97_v23 }
 0x22a   :  { %v10339_v41 = vpop.permute.xlu1 %2776  ;;  %v10341_v22 = vpop.permute.xlu0 %2774  ;;  %v214_v18 = vadd.f32 %v199_v35, %v156_v58  ;;  %v215_v59 = vadd.f32 %v200_v43, %v157_v32  ;;  %v216_v26 = vadd.f32 %v201_v6, %v158_v38  ;;  %v701_v25 = vsel %vm197_vm1, %v9292_v7, %v9290_v5 }
 0x22b   :  { %v698_v60 = vsel %vm197_vm1, %v9300_v11, %v9282_v61  ;;  %v198_v17 = vsel %vm197_vm1, %v9302_v13, %v9260_v50  ;;  %v257_v9 = vsel %vm255_vm2, %v9314_v20, %v9312_v19  ;;  %v714_v38 = vadd.f32 %v699_v24, %v657_v21  ;;  %v10384_v11 = vld [vmem:[%s14642_s0] sm:$0xff] }
 0x22c   :  { %3011 = vrot.lane.b32.xlu1 %v2991_v33, %s8850_s26  ;;  %3009 = vrot.lane.b32.xlu0 %v2990_v39, %s8850_s26  ;;  %v715_v58 = vadd.f32 %v700_v44, %v658_v1  ;;  %v258_v7 = vsel %vm255_vm2, %v9312_v19, %v9324_v31  ;;  %v259_v61 = vsel %vm255_vm2, %v9324_v31, %v9322_v30  ;;  %v15366_v44 = vld [vmem:[#allocation39_spill] sm:$0xff]  ;;  %v15418_v30 = vld [vmem:[#allocation86_spill] sm:$0xff] }
 0x22d   :  { %v756_v50 = vsel %vm255_vm2, %v9336_v45, %v9334_v42  ;;  %v2989_v13 = vmul.f32 %v10384_v11, %v10290_v34  ;;  %v2495_v19 = vmul.f32 %v10384_v11, %v10240_v36  ;;  %v716_v31 = vadd.f32 %v701_v25, %v659_v14  ;;  %v15492_v36 = vld [vmem:[#allocation98_spill] sm:$0xff] }
 0x22e   :  { %v10366_v51 = vpop.permute.xlu1 %2780  ;;  %v10368_v32 = vpop.permute.xlu0 %2778  ;;  %v713_v21 = vadd.f32 %v698_v60, %v656_v4  ;;  %v213_v16 = vadd.f32 %v198_v17, %v155_v27  ;;  %v272_v48 = vadd.f32 %v257_v9, %v214_v18  ;;  %v757_v23 = vsel %vm255_vm2, %v9334_v42, %v9346_v0  ;;  %v15369_v17 = vld [vmem:[#allocation41_spill] sm:$0xff] }
 0x22f   :  { %15365 = vst [vmem:[#allocation224_spill] sm:$0xff] %v10366_v51  ;;  %v758_v28 = vsel %vm255_vm2, %v9346_v0, %v9344_v52  ;;  %v755_v33 = vsel %vm255_vm2, %v9359_v3, %v9336_v45  ;;  %v256_v39 = vsel %vm255_vm2, %v9361_v62, %v9314_v20  ;;  %v273_v43 = vadd.f32 %v258_v7, %v215_v59  ;;  %v15372_v7 = vld [vmem:[#allocation20_spill] sm:$0xff]  ;;  %v15417_v52 = vld [vmem:[#allocation87_spill] sm:$0xff] }
 0x230   :  { %3015 = vrot.lane.b32.xlu1 %v2993_v49, %s8850_s26  ;;  %3013 = vrot.lane.b32.xlu0 %v2992_v55, %s8850_s26  ;;  %v274_v6 = vadd.f32 %v259_v61, %v216_v26  ;;  %v771_v1 = vadd.f32 %v756_v50, %v714_v38  ;;  %v315_v42 = vsel %vm313_vm3, %v9373_v15, %v9371_v10  ;;  %v15367_v55 = vld [vmem:[#allocation38_spill] sm:$0xff]  ;;  %v15370_v38 = vld [vmem:[#allocation43_spill] sm:$0xff] }
 0x231   :  { %v316_v0 = vsel %vm313_vm3, %v9371_v10, %v9393_v47  ;;  %v345_v20 = vmul.f32 %v9134_v53, %v9986_v12  ;;  %v344_v45 = vmul.f32 %v9134_v53, %v9991_v63  ;;  %v772_v3 = vadd.f32 %v757_v23, %v715_v58  ;;  %v15375_v23 = vld [vmem:[#allocation48_spill] sm:$0xff] }
 0x232   :  { %v10402_v56 = vpop.permute.xlu1 %2019  ;;  %v10404_v35 = vpop.permute.xlu0 %1525  ;;  %v773_v62 = vadd.f32 %v758_v28, %v716_v31  ;;  %v770_v14 = vadd.f32 %v755_v33, %v713_v21  ;;  %v271_v4 = vadd.f32 %v256_v39, %v213_v16  ;;  %v317_v24 = vsel %vm313_vm3, %v9393_v47, %v9391_v37  ;;  %v15368_v47 = vld [vmem:[#allocation40_spill] sm:$0xff]  ;;  %v15374_v16 = vld [vmem:[#allocation45_spill] sm:$0xff]  ;;  %v15377_v39 = vld [vmem:[#allocation51_spill] sm:$0xff] }
 0x233   :  { %v813_v10 = vsel %vm313_vm3, %v9410_v40, %v9408_v2  ;;  %v814_v49 = vsel %vm313_vm3, %v9408_v2, %v15366_v44  ;;  %v815_v27 = vsel %vm313_vm3, %v15366_v44, %v15367_v55  ;;  %v330_v26 = vadd.f32 %v315_v42, %v272_v48  ;;  %v15371_v2 = vld [vmem:[#allocation44_spill] sm:$0xff]  ;;  %v15376_v28 = vld [vmem:[#allocation49_spill] sm:$0xff] }
 0x234   :  { %3007 = vrot.lane.b32.xlu1 %v2989_v13, %s8850_s26  ;;  %2513 = vrot.lane.b32.xlu0 %v2495_v19, %s8850_s26  ;;  %v331_v25 = vadd.f32 %v316_v0, %v273_v43  ;;  %v812_v60 = vsel %vm313_vm3, %v15368_v47, %v9410_v40  ;;  %v314_v9 = vsel %vm313_vm3, %v15369_v17, %v9373_v15  ;;  %v15373_v15 = vld [vmem:[#allocation46_spill] sm:$0xff] }
 0x235   :  { %v373_v58 = vsel %vm371_vm4, %v15371_v2, %v15370_v38  ;;  %v843_v61 = vmul.f32 %v15372_v7, %v9986_v12  ;;  %v842_v50 = vmul.f32 %v15372_v7, %v9991_v63  ;;  %v332_v40 = vadd.f32 %v317_v24, %v274_v6 }
 0x236   :  { %v10430_v18 = vpop.permute.xlu1 %2772  ;;  %v10432_v59 = vpop.permute.xlu0 %2278  ;;  %v828_v13 = vadd.f32 %v813_v10, %v771_v1  ;;  %v829_v19 = vadd.f32 %v814_v49, %v772_v3  ;;  %v830_v31 = vadd.f32 %v815_v27, %v773_v62  ;;  %v374_v21 = vsel %vm371_vm4, %v15370_v38, %v15373_v15  ;;  %v15381_v62 = vld [vmem:[#allocation52_spill] sm:$0xff]  ;;  %v15382_v10 = vld [vmem:[#allocation21_spill] sm:$0xff] }
 0x237   :  { %v375_v48 = vsel %vm371_vm4, %v15373_v15, %v15374_v16  ;;  %v870_v33 = vsel %vm371_vm4, %v15376_v28, %v15375_v23  ;;  %v871_v43 = vsel %vm371_vm4, %v15375_v23, %v15377_v39  ;;  %v827_v42 = vadd.f32 %v812_v60, %v770_v14  ;;  %v15383_v60 = vld [vmem:[#allocation53_spill] sm:$0xff]  ;;  %v15385_v38 = vld [vmem:[#allocation56_spill] sm:$0xff] }
 0x238   :  { %367 = vrot.lane.b32.xlu1 %v345_v20, %s8848_s2  ;;  %365 = vrot.lane.b32.xlu0 %v344_v45, %s8848_s2  ;;  %v329_v0 = vadd.f32 %v314_v9, %v271_v4  ;;  %v388_v20 = vadd.f32 %v373_v58, %v330_v26  ;;  %v15380_v45 = vld [vmem:[#allocation50_spill] sm:$0xff]  ;;  %v869_v24 = vsel %vm371_vm4, %v15381_v62, %v15376_v28  ;;  %v15384_v9 = vld [vmem:[#allocation55_spill] sm:$0xff]  ;;  %v15407_v16 = vld [vmem:[#allocation84_spill] sm:$0xff] }
 0x239   :  { %v872_v3 = vsel %vm371_vm4, %v15377_v39, %v15380_v45  ;;  %v403_v44 = vmul.f32 %v15382_v10, %v9986_v12  ;;  %v402_v14 = vmul.f32 %v15382_v10, %v9991_v63  ;;  %v389_v4 = vadd.f32 %v374_v21, %v331_v25  ;;  %v15392_v21 = vld [vmem:[#allocation63_spill] sm:$0xff]  ;;  %v15393_v28 = vld [vmem:[#allocation62_spill] sm:$0xff] }
 0x23a   :  { %v10461_v6 = vpop.permute.xlu1 %135  ;;  %v10463_v1 = vpop.permute.xlu0 %133  ;;  %v390_v49 = vadd.f32 %v375_v48, %v332_v40  ;;  %v885_v27 = vadd.f32 %v870_v33, %v828_v13  ;;  %v886_v26 = vadd.f32 %v871_v43, %v829_v19  ;;  %v887_v47 = vadd.f32 %v872_v3, %v830_v31  ;;  %v15389_v40 = vld [vmem:[#allocation57_spill] sm:$0xff]  ;;  %v15390_v19 = vld [vmem:[#allocation60_spill] sm:$0xff]  ;;  %v15394_v39 = vld [vmem:[#allocation22_spill] sm:$0xff] }
 0x23b   :  { %15378 = vst [vmem:[#allocation39_spill] sm:$0xff] %v10461_v6  ;;  %15379 = vst [vmem:[#allocation40_spill] sm:$0xff] %v10463_v1  ;;  %v372_v17 = vsel %vm371_vm4, %v15383_v60, %v15371_v2  ;;  %v431_v58 = vsel %vm429_vm5, %v15385_v38, %v15384_v9  ;;  %v884_v25 = vadd.f32 %v869_v24, %v827_v42  ;;  %v15391_v31 = vld [vmem:[#allocation61_spill] sm:$0xff]  ;;  %v15395_v60 = vld [vmem:[#allocation64_spill] sm:$0xff]  ;;  %v10566_v10 = vstv %s10502_s24  ;;  %s8857_s24 = smov 15  }
 0x23c   :  { %865 = vrot.lane.b32.xlu1 %v843_v61, %s8848_s2  ;;  %863 = vrot.lane.b32.xlu0 %v842_v50, %s8848_s2  ;;  %v15386_v61 = vld [vmem:[#allocation58_spill] sm:$0xff]  ;;  %v927_v2 = vsel %vm429_vm5, %v15391_v31, %v15390_v19  ;;  %v928_v48 = vsel %vm429_vm5, %v15390_v19, %v15392_v21  ;;  %v929_v33 = vsel %vm429_vm5, %v15392_v21, %v15393_v28  ;;  %v15396_v19 = vld [vmem:[#allocation65_spill] sm:$0xff]  ;;  %v15397_v21 = vld [vmem:[#allocation67_spill] sm:$0xff] }
 0x23d   :  { %v432_v50 = vsel %vm429_vm5, %v15384_v9, %v15386_v61  ;;  %v433_v13 = vsel %vm429_vm5, %v15386_v61, %v15389_v40  ;;  %v900_v43 = vmul.f32 %v15394_v39, %v9986_v12  ;;  %v899_v42 = vmul.f32 %v15394_v39, %v9991_v63  ;;  %v15399_v40 = vld [vmem:[#allocation70_spill] sm:$0xff]  ;;  %v15408_v39 = vld [vmem:[#allocation85_spill] sm:$0xff]  ;;  %15414 = vst [vmem:[#allocation46_spill] sm:$0xff] %v10566_v10  ;;  %v15489_v1 = vld [vmem:[#allocation96_spill] sm:$0xff] }
 0x23e   :  { %v10486_v15 = vpop.permute.xlu1 %637  ;;  %v10488_v23 = vpop.permute.xlu0 %635  ;;  %v387_v3 = vadd.f32 %v372_v17, %v329_v0  ;;  %v446_v62 = vadd.f32 %v431_v58, %v388_v20  ;;  %v447_v24 = vadd.f32 %v432_v50, %v389_v4  ;;  %v926_v9 = vsel %vm429_vm5, %v15395_v60, %v15391_v31  ;;  %v15401_v50 = vld [vmem:[#allocation73_spill] sm:$0xff]  ;;  %v15402_v31 = vld [vmem:[#allocation23_spill] sm:$0xff] }
 0x23f   :  { %15387 = vst [vmem:[#allocation41_spill] sm:$0xff] %v10486_v15  ;;  %15388 = vst [vmem:[#allocation43_spill] sm:$0xff] %v10488_v23  ;;  %v448_v61 = vadd.f32 %v433_v13, %v390_v49  ;;  %v494_v45 = vsel %vm491_vm6, %v15397_v21, %v15399_v40  ;;  %v942_v4 = vadd.f32 %v927_v2, %v885_v27  ;;  %v15400_v49 = vld [vmem:[#allocation72_spill] sm:$0xff]  ;;  %v15403_v2 = vld [vmem:[#allocation69_spill] sm:$0xff] }
 0x240   :  { %425 = vrot.lane.b32.xlu1 %v403_v44, %s8842_s28  ;;  %423 = vrot.lane.b32.xlu0 %v402_v14, %s8842_s28  ;;  %v430_v44 = vsel %vm429_vm5, %v15396_v19, %v15385_v38  ;;  %v15398_v14 = vld [vmem:[#allocation68_spill] sm:$0xff]  ;;  %v943_v17 = vadd.f32 %v928_v48, %v886_v26  ;;  %v944_v58 = vadd.f32 %v929_v33, %v887_v47  ;;  %v15406_v19 = vld [vmem:[#allocation79_spill] sm:$0xff]  ;;  %v15487_v23 = vld [vmem:[#allocation93_spill] sm:$0xff] }
 0x241   :  { %v493_v28 = vsel %vm491_vm6, %v15398_v14, %v15397_v21  ;;  %v988_v13 = vsel %vm491_vm6, %v15401_v50, %v15400_v49  ;;  %v941_v38 = vadd.f32 %v926_v9, %v884_v25  ;;  %v461_v60 = vmul.f32 %v15402_v31, %v9986_v12  ;;  %v15404_v9 = vld [vmem:[#allocation75_spill] sm:$0xff] }
 0x242   :  { %v10522_v0 = vpop.permute.xlu1 %2339  ;;  %v10524_v20 = vpop.permute.xlu0 %2337  ;;  %v460_v27 = vmul.f32 %v15402_v31, %v9991_v63  ;;  %v445_v26 = vadd.f32 %v430_v44, %v387_v3  ;;  %v509_v47 = vadd.f32 %v493_v28, %v446_v62  ;;  %v495_v25 = vsel %vm491_vm6, %v15399_v40, %v15403_v2  ;;  %v15410_v62 = vld [vmem:[#allocation74_spill] sm:$0xff]  ;;  %v15411_v40 = vld [vmem:[#allocation77_spill] sm:$0xff]  ;;  %v15412_v44 = vld [vmem:[#allocation80_spill] sm:$0xff] }
 0x243   :  { %v510_v48 = vadd.f32 %v494_v45, %v447_v24  ;;  %v1004_v33 = vadd.f32 %v988_v13, %v942_v4  ;;  %v1050_v31 = vsel %vm554_vm7, %v15408_v39, %v15407_v16  ;;  %v990_v45 = vsel %vm491_vm6, %v15404_v9, %v15410_v62 }
 0x244   :  { %922 = vrot.lane.b32.xlu1 %v900_v43, %s8842_s28  ;;  %920 = vrot.lane.b32.xlu0 %v899_v42, %s8842_s28  ;;  %v989_v43 = vsel %vm491_vm6, %v15400_v49, %v15404_v9  ;;  %v15405_v42 = vld [vmem:[#allocation83_spill] sm:$0xff]  ;;  %v987_v24 = vsel %vm491_vm6, %v15411_v40, %v15401_v50  ;;  %v556_v4 = vsel %vm554_vm7, %v15412_v44, %v15406_v19  ;;  %v15413_v49 = vld [vmem:[#allocation82_spill] sm:$0xff]  ;;  %v15415_v9 = vld [vmem:[#allocation25_spill] sm:$0xff] }
 0x245   :  { %v557_v21 = vsel %vm554_vm7, %v15406_v19, %v15405_v42  ;;  %v558_v13 = vsel %vm554_vm7, %v15405_v42, %v15413_v49  ;;  %v511_v2 = vadd.f32 %v495_v25, %v448_v61  ;;  %v957_v62 = vmul.f32 %v15415_v9, %v9986_v12  ;;  %v15416_v19 = vld [vmem:[#allocation78_spill] sm:$0xff] }
 0x246   :  { %v10549_v3 = vpop.permute.xlu1 %2343  ;;  %v10551_v28 = vpop.permute.xlu0 %2341  ;;  %v956_v50 = vmul.f32 %v15415_v9, %v9991_v63  ;;  %v1005_v40 = vadd.f32 %v989_v43, %v943_v17  ;;  %v492_v55 = vsel %vm491_vm6, %v15416_v19, %v15398_v14  ;;  %v573_v42 = vadd.f32 %v557_v21, %v510_v48  ;;  %v15419_v14 = vld [vmem:[#allocation88_spill] sm:$0xff] }
 0x247   :  { %15409 = vst [vmem:[#allocation44_spill] sm:$0xff] %v10549_v3  ;;  %v1066_v61 = vadd.f32 %v1050_v31, %v1004_v33  ;;  %v1006_v25 = vadd.f32 %v990_v45, %v944_v58  ;;  %v1003_v49 = vadd.f32 %v987_v24, %v941_v38  ;;  %v572_v37 = vadd.f32 %v556_v4, %v509_v47  ;;  %v15420_v58 = vld [vmem:[#allocation89_spill] sm:$0xff] }
 0x248   :  { %485 = vrot.lane.b32.xlu1 %v461_v60, %s8849_s23  ;;  %483 = vrot.lane.b32.xlu0 %v460_v27, %s8849_s23  ;;  %v574_v60 = vadd.f32 %v558_v13, %v511_v2  ;;  %v1051_v9 = vsel %vm554_vm7, %v15407_v16, %v15417_v52  ;;  %v1052_v17 = vsel %vm554_vm7, %v15417_v52, %v15418_v30  ;;  %v10594_v2 = vstv %s10529_s25  ;;  %v15422_v16 = vld [vmem:[#allocation27_spill] sm:$0xff]  ;;  %v15429_v4 = vld [vmem:[#allocation29_spill] sm:$0xff]  ;;  %s8858_s25 = smov 1  }
 0x249   :  { %v1049_v31 = vsel %vm554_vm7, %v15419_v14, %v15408_v39  ;;  %v555_v38 = vsel %vm554_vm7, %v15420_v58, %v15412_v44  ;;  %v508_v47 = vadd.f32 %v492_v55, %v445_v26  ;;  %15421 = vst [vmem:[#allocation48_spill] sm:$0xff] %v10594_v2  ;;  %v524_v48 = vmul.f32 %v15422_v16, %v9986_v12 }
 0x24a   :  { %v10577_v7 = vpop.permute.xlu1 %2833  ;;  %v10579_v27 = vpop.permute.xlu0 %2831  ;;  %v523_v52 = vmul.f32 %v15422_v16, %v9991_v63  ;;  %v10603_v33 = vadd.f32 %v10594_v2, %v573_v42  ;;  %v10606_v39 = vadd.f32 %v10566_v10, %v1066_v61  ;;  %v1067_v43 = vadd.f32 %v1051_v9, %v1005_v40 }
 0x24b   :  { %v1068_v55 = vadd.f32 %v1052_v17, %v1006_v25  ;;  %v1065_v26 = vadd.f32 %v1049_v31, %v1003_v49  ;;  %v571_v21 = vadd.f32 %v555_v38, %v508_v47  ;;  %v10613_v24 = vadd.f32 %v10594_v2, %v572_v37 }
 0x24c   :  { %981 = vrot.lane.b32.xlu1 %v957_v62, %s8849_s23  ;;  %979 = vrot.lane.b32.xlu0 %v956_v50, %s8849_s23  ;;  %15423 = vst [vmem:[#allocation49_spill] sm:$0xff] %v10603_v33  ;;  %15424 = vst [vmem:[#allocation51_spill] sm:$0xff] %v10606_v39  ;;  %v10616_v44 = vadd.f32 %v10594_v2, %v574_v60  ;;  %v1019_v13 = vmul.f32 %v15429_v4, %v9986_v12  ;;  %v14883_v9 = vmax.f32 %v10603_v33, 0.0 }
 0x24d   :  { %15427 = vst [vmem:[#allocation55_spill] sm:$0xff] %v10613_v24  ;;  %v1018_v49 = vmul.f32 %v15429_v4, %v9991_v63  ;;  %v14881_v50 = vmax.f32 %v10606_v39, 0.0  ;;  %v10627_v37 = vadd.f32 %v10566_v10, %v1067_v43  ;;  %v10630_v40 = vadd.f32 %v10566_v10, %v1068_v55 }
 0x24e   :  { %v10608_v45 = vpop.permute.xlu1 %2837  ;;  %v10610_v62 = vpop.permute.xlu0 %2835  ;;  %15428 = vst [vmem:[#allocation56_spill] sm:$0xff] %v10616_v44  ;;  %v10633_v19 = vadd.f32 %v10566_v10, %v1065_v26  ;;  %v10636_v42 = vadd.f32 %v10594_v2, %v571_v21  ;;  %v14882_v60 = vmax.f32 %v10613_v24, 0.0  ;;  %v14876_v17 = vmax.f32 %v10616_v44, 0.0 }
 0x24f   :  { %15425 = vst [vmem:[#allocation52_spill] sm:$0xff] %v10608_v45  ;;  %15426 = vst [vmem:[#allocation53_spill] sm:$0xff] %v10610_v62  ;;  %v14880_v58 = vmax.f32 %v10627_v37, 0.0  ;;  %v14878_v38 = vmax.f32 %v10630_v40, 0.0  ;;  %v1630_v34 = vsel %vm139_vm0, %v15490_v8, %v15489_v1  ;;  %v15576_v62 = vld [vmem:[#allocation216_spill] sm:$0xff] }
 0x250   :  { %548 = vrot.lane.b32.xlu1 %v524_v48, %s8850_s26  ;;  %546 = vrot.lane.b32.xlu0 %v523_v52, %s8850_s26  ;;  %15430 = vst [vmem:[#allocation58_spill] sm:$0xff] %v10627_v37  ;;  %15431 = vst [vmem:[#allocation60_spill] sm:$0xff] %v10630_v40  ;;  %v7668_v14 = vpack.i.bf16 %v14881_v50, %v14876_v17  ;;  %v7663_v31 = vpack.i.bf16 %v14883_v9, %v14882_v60  ;;  %v14879_v47 = vmax.f32 %v10633_v19, 0.0  ;;  %v15446_v50 = vld [vmem:[#allocation35_spill] sm:$0xff]  ;;  %v15449_v40 = vld [vmem:[#allocation37_spill] sm:$0xff] }
 0x251   :  { %15432 = vst [vmem:[#allocation61_spill] sm:$0xff] %v10633_v19  ;;  %15433 = vst [vmem:[#allocation63_spill] sm:$0xff] %v10636_v42  ;;  %v14877_v48 = vmax.f32 %v10636_v42, 0.0  ;;  %v1165_v60 = vmul.f32 %v15446_v50, %v9991_v63  ;;  %v1659_v44 = vmul.f32 %v15449_v40, %v9991_v63 }
 0x252   :  { %v10638_v61 = vpop.permute.xlu1 %2829  ;;  %v10640_v25 = vpop.permute.xlu0 %2335 }
 0x253   :  { %15434 = vst [vmem:[#allocation64_spill] sm:$0xff] %v10638_v61  ;;  %15435 = vst [vmem:[#allocation65_spill] sm:$0xff] %v10640_v25  ;;  %v7678_v55 = vpack.i.bf16 %v14879_v47, %v14877_v48 }
 0x254   :  { %1043 = vrot.lane.b32.xlu1 %v1019_v13, %s8850_s26  ;;  %1041 = vrot.lane.b32.xlu0 %v1018_v49, %s8850_s26  ;;  %v7673_v13 = vpack.i.bf16 %v14878_v38, %v14880_v58  ;;  %v15440_v49 = vld [vmem:[#allocation31_spill] sm:$0xff]  ;;  %v15443_v38 = vld [vmem:[#allocation33_spill] sm:$0xff] }
 0x255   :  { %v1602_v47 = vmul.f32 %v15443_v38, %v9991_v63 }
 0x256   :  { %v10658_v52 = vpop.permute.xlu1 %193  ;;  %v10660_v43 = vpop.permute.xlu0 %191 }
 0x257   :  { %15436 = vst [vmem:[#allocation67_spill] sm:$0xff] %v10658_v52  ;;  %15437 = vst [vmem:[#allocation68_spill] sm:$0xff] %v10660_v43  ;;  %v15482_v52 = vld [vmem:[#allocation91_spill] sm:$0xff] }
 0x258   :  { %7669 = vrot.lane.b32.xlu1 %v7668_v14, %s8844_s22  ;;  %7664 = vrot.lane.b32.xlu0 %v7663_v31, %s8844_s22  ;;  %v1108_v14 = vmul.f32 %v15440_v49, %v9991_v63  ;;  %v1109_v31 = vmul.f32 %v15440_v49, %v9986_v12 }
 0x25a   :  { %v10668_v26 = vpop.permute.xlu1 %694  ;;  %v10670_v21 = vpop.permute.xlu0 %692 }
 0x25b   :  { %15438 = vst [vmem:[#allocation70_spill] sm:$0xff] %v10668_v26  ;;  %15439 = vst [vmem:[#allocation72_spill] sm:$0xff] %v10670_v21 }
 0x25c   :  { %7674 = vrot.lane.b32.xlu0 %v7673_v13, %s8844_s22  ;;  %7679 = vrot.lane.b32.xlu1 %v7678_v55, %s8844_s22  ;;  %v1603_v55 = vmul.f32 %v15443_v38, %v9986_v12 }
 0x25e   :  { %v10682_v17 = vpop.permute.xlu1 %2396  ;;  %v10684_v48 = vpop.permute.xlu0 %2394 }
 0x25f   :  { %15441 = vst [vmem:[#allocation73_spill] sm:$0xff] %v10682_v17  ;;  %15442 = vst [vmem:[#allocation75_spill] sm:$0xff] %v10684_v48 }
 0x260   :  { %1129 = vrot.lane.b32.xlu0 %v1108_v14, %s8844_s22  ;;  %1131 = vrot.lane.b32.xlu1 %v1109_v31, %s8844_s22  ;;  %v1166_v14 = vmul.f32 %v15446_v50, %v9986_v12  ;;  %v15452_v50 = vld [vmem:[#allocation42_spill] sm:$0xff] }
 0x261   :  { %v1222_v49 = vmul.f32 %v15452_v50, %v9991_v63 }
 0x262   :  { %v10692_v13 = vpop.permute.xlu1 %2400  ;;  %v10694_v58 = vpop.permute.xlu0 %2398 }
 0x263   :  { %15444 = vst [vmem:[#allocation83_spill] sm:$0xff] %v10692_v13  ;;  %15445 = vst [vmem:[#allocation79_spill] sm:$0xff] %v10694_v58 }
 0x264   :  { %1623 = vrot.lane.b32.xlu0 %v1602_v47, %s8844_s22  ;;  %1625 = vrot.lane.b32.xlu1 %v1603_v55, %s8844_s22  ;;  %v1660_v47 = vmul.f32 %v15449_v40, %v9986_v12  ;;  %v15455_v40 = vld [vmem:[#allocation47_spill] sm:$0xff] }
 0x265   :  { %v1716_v4 = vmul.f32 %v15455_v40, %v9991_v63 }
 0x266   :  { %v10702_v31 = vpop.permute.xlu1 %2890  ;;  %v10704_v9 = vpop.permute.xlu0 %2888 }
 0x267   :  { %15447 = vst [vmem:[#allocation84_spill] sm:$0xff] %v10702_v31  ;;  %15448 = vst [vmem:[#allocation85_spill] sm:$0xff] %v10704_v9 }
 0x268   :  { %1186 = vrot.lane.b32.xlu0 %v1165_v60, %s8845_s27  ;;  %1188 = vrot.lane.b32.xlu1 %v1166_v14, %s8845_s27  ;;  %v1223_v60 = vmul.f32 %v15452_v50, %v9986_v12  ;;  %v15458_v50 = vld [vmem:[#allocation54_spill] sm:$0xff] }
 0x269   :  { %v1279_v16 = vmul.f32 %v15458_v50, %v9991_v63 }
 0x26a   :  { %v10712_v55 = vpop.permute.xlu1 %2894  ;;  %v10714_v38 = vpop.permute.xlu0 %2892 }
 0x26b   :  { %15450 = vst [vmem:[#allocation77_spill] sm:$0xff] %v10712_v55  ;;  %15451 = vst [vmem:[#allocation80_spill] sm:$0xff] %v10714_v38 }
 0x26c   :  { %1680 = vrot.lane.b32.xlu0 %v1659_v44, %s8845_s27  ;;  %1682 = vrot.lane.b32.xlu1 %v1660_v47, %s8845_s27  ;;  %v1717_v44 = vmul.f32 %v15455_v40, %v9986_v12  ;;  %v15461_v40 = vld [vmem:[#allocation59_spill] sm:$0xff] }
 0x26d   :  { %v1773_v42 = vmul.f32 %v15461_v40, %v9991_v63 }
 0x26e   :  { %v10722_v14 = vpop.permute.xlu1 %2886  ;;  %v10724_v10 = vpop.permute.xlu0 %2392 }
 0x26f   :  { %15453 = vst [vmem:[#allocation78_spill] sm:$0xff] %v10722_v14  ;;  %15454 = vst [vmem:[#allocation87_spill] sm:$0xff] %v10724_v10  ;;  %v15496_v10 = vld [vmem:[#allocation102_spill] sm:$0xff] }
 0x270   :  { %1243 = vrot.lane.b32.xlu0 %v1222_v49, %s8846_s14  ;;  %1245 = vrot.lane.b32.xlu1 %v1223_v60, %s8846_s14  ;;  %v1280_v49 = vmul.f32 %v15458_v50, %v9986_v12  ;;  %v15464_v50 = vld [vmem:[#allocation66_spill] sm:$0xff] }
 0x271   :  { %v1336_v37 = vmul.f32 %v15464_v50, %v9991_v63 }
 0x272   :  { %v10732_v47 = vpop.permute.xlu1 %251  ;;  %v10734_v2 = vpop.permute.xlu0 %249 }
 0x273   :  { %15456 = vst [vmem:[#allocation88_spill] sm:$0xff] %v10732_v47  ;;  %15457 = vst [vmem:[#allocation89_spill] sm:$0xff] %v10734_v2 }
 0x274   :  { %1737 = vrot.lane.b32.xlu0 %v1716_v4, %s8846_s14  ;;  %1739 = vrot.lane.b32.xlu1 %v1717_v44, %s8846_s14  ;;  %v1774_v4 = vmul.f32 %v15461_v40, %v9986_v12  ;;  %v15467_v40 = vld [vmem:[#allocation71_spill] sm:$0xff] }
 0x275   :  { %v1830_v24 = vmul.f32 %v15467_v40, %v9991_v63 }
 0x276   :  { %v10742_v60 = vpop.permute.xlu1 %751  ;;  %v10744_v30 = vpop.permute.xlu0 %749 }
 0x277   :  { %15459 = vst [vmem:[#allocation225_spill] sm:$0xff] %v10742_v60  ;;  %15460 = vst [vmem:[#allocation226_spill] sm:$0xff] %v10744_v30 }
 0x278   :  { %1300 = vrot.lane.b32.xlu0 %v1279_v16, %s8847_s17  ;;  %1302 = vrot.lane.b32.xlu1 %v1280_v49, %s8847_s17  ;;  %v1337_v16 = vmul.f32 %v15464_v50, %v9986_v12  ;;  %v15470_v50 = vld [vmem:[#allocation76_spill] sm:$0xff] }
 0x279   :  { %v2096_v60 = vmul.f32 %v15470_v50, %v9991_v63 }
 0x27a   :  { %v10752_v44 = vpop.permute.xlu1 %2455  ;;  %v10754_v19 = vpop.permute.xlu0 %2453 }
 0x27b   :  { %15462 = vst [vmem:[#allocation227_spill] sm:$0xff] %v10752_v44  ;;  %15463 = vst [vmem:[#allocation228_spill] sm:$0xff] %v10754_v19  ;;  %v15540_v19 = vld [vmem:[#allocation145_spill] sm:$0xff] }
 0x27c   :  { %1794 = vrot.lane.b32.xlu0 %v1773_v42, %s8847_s17  ;;  %1796 = vrot.lane.b32.xlu1 %v1774_v4, %s8847_s17  ;;  %v1831_v42 = vmul.f32 %v15467_v40, %v9986_v12 }
 0x27e   :  { %v10762_v49 = vpop.permute.xlu1 %2459  ;;  %v10764_v39 = vpop.permute.xlu0 %2457 }
 0x27f   :  { %15465 = vst [vmem:[#allocation229_spill] sm:$0xff] %v10762_v49  ;;  %15466 = vst [vmem:[#allocation230_spill] sm:$0xff] %v10764_v39  ;;  %v15499_v49 = vld [vmem:[#allocation107_spill] sm:$0xff]  ;;  %v15538_v39 = vld [vmem:[#allocation141_spill] sm:$0xff] }
 0x280   :  { %1357 = vrot.lane.b32.xlu0 %v1336_v37, %s8848_s2  ;;  %1359 = vrot.lane.b32.xlu1 %v1337_v16, %s8848_s2  ;;  %v2097_v37 = vmul.f32 %v15470_v50, %v9986_v12  ;;  %v15476_v50 = vld [vmem:[#allocation90_spill] sm:$0xff] }
 0x281   :  { %v1393_v26 = vmul.f32 %v15476_v50, %v9991_v63 }
 0x282   :  { %v10772_v4 = vpop.permute.xlu1 %2949  ;;  %v10774_v33 = vpop.permute.xlu0 %2947 }
 0x283   :  { %15468 = vst [vmem:[#allocation231_spill] sm:$0xff] %v10772_v4  ;;  %15469 = vst [vmem:[#allocation232_spill] sm:$0xff] %v10774_v33 }
 0x284   :  { %1851 = vrot.lane.b32.xlu0 %v1830_v24, %s8848_s2  ;;  %1853 = vrot.lane.b32.xlu1 %v1831_v42, %s8848_s2  ;;  %v15473_v24 = vld [vmem:[#allocation81_spill] sm:$0xff] }
 0x285   :  { %v2590_v40 = vmul.f32 %v15473_v24, %v9991_v63  ;;  %v2591_v42 = vmul.f32 %v15473_v24, %v9986_v12  ;;  %v10808_v24 = vstv %s7137_s30  ;;  %s8867_s30 = smov 2  }
 0x286   :  { %v10782_v16 = vpop.permute.xlu1 %2953  ;;  %v10784_v30 = vpop.permute.xlu0 %2951  ;;  %15480 = vst [vmem:[#allocation240_spill] sm:$0xff] %v10808_v24  ;;  %v1589_v15 = vmul.f32 %v10253_v57, %v10808_v24 }
 0x287   :  { %15471 = vst [vmem:[#allocation233_spill] sm:$0xff] %v10782_v16  ;;  %15472 = vst [vmem:[#allocation234_spill] sm:$0xff] %v10784_v30  ;;  %v1135_v16 = vsel %vm139_vm0, %v15496_v10, %v15483_v54  ;;  %v15497_v30 = vld [vmem:[#allocation103_spill] sm:$0xff] }
 0x288   :  { %2117 = vrot.lane.b32.xlu0 %v2096_v60, %s8844_s22  ;;  %2119 = vrot.lane.b32.xlu1 %v2097_v37, %s8844_s22  ;;  %v1394_v60 = vmul.f32 %v15476_v50, %v9986_v12  ;;  %v10802_v37 = vstv %s7127_s29  ;;  %s8865_s29 = smov 114  }
 0x289   :  { %15477 = vst [vmem:[#allocation237_spill] sm:$0xff] %v10802_v37  ;;  %v1094_v50 = vmul.f32 %v10260_v46, %v10802_v37 }
 0x28a   :  { %v10792_v47 = vpop.permute.xlu1 %2945  ;;  %v10794_v2 = vpop.permute.xlu0 %2451 }
 0x28b   :  { %15474 = vst [vmem:[#allocation235_spill] sm:$0xff] %v10792_v47  ;;  %15475 = vst [vmem:[#allocation236_spill] sm:$0xff] %v10794_v2  ;;  %v15491_v2 = vld [vmem:[#allocation99_spill] sm:$0xff] }
 0x28c   :  { %2611 = vrot.lane.b32.xlu0 %v2590_v40, %s8844_s22  ;;  %2613 = vrot.lane.b32.xlu1 %v2591_v42, %s8844_s22  ;;  %v15481_v40 = vld [vmem:[#allocation95_spill] sm:$0xff]  ;;  %v1631_v47 = vsel %vm139_vm0, %v15489_v1, %v15491_v2  ;;  %v15498_v1 = vld [vmem:[#allocation104_spill] sm:$0xff] }
 0x28d   :  { %v1887_v42 = vmul.f32 %v15481_v40, %v9991_v63  ;;  %v1888_v53 = vmul.f32 %v15481_v40, %v9986_v12  ;;  %v1096_v63 = vmul.f32 %v10206_v29, %v10802_v37  ;;  %v1588_v40 = vmul.f32 %v10260_v46, %v10808_v24  ;;  %v10851_v46 = vld [vmem:[%s14642_s0 + $0x30] sm:$0xff] }
 0x28e   :  { %v10804_v5 = vpop.permute.xlu1 %309  ;;  %v10806_v21 = vpop.permute.xlu0 %307  ;;  %v1193_v14 = vsel %vm197_vm1, %v15498_v1, %v15497_v30 }
 0x28f   :  { %15478 = vst [vmem:[#allocation238_spill] sm:$0xff] %v10804_v5  ;;  %15479 = vst [vmem:[#allocation239_spill] sm:$0xff] %v10806_v21  ;;  %v1136_v5 = vsel %vm139_vm0, %v15483_v54, %v15482_v52  ;;  %v1095_v21 = vmul.f32 %v10253_v57, %v10802_v37  ;;  %v1646_v54 = vadd.f32 %v1631_v47, %v1589_v15 }
 0x290   :  { %1414 = vrot.lane.b32.xlu0 %v1393_v26, %s8842_s28  ;;  %1416 = vrot.lane.b32.xlu1 %v1394_v60, %s8842_s28  ;;  %v15486_v60 = vld [vmem:[#allocation94_spill] sm:$0xff] }
 0x291   :  { %v1137_v12 = vsel %vm139_vm0, %v15482_v52, %v15486_v60  ;;  %v1138_v6 = vsel %vm139_vm0, %v15486_v60, %v15487_v23  ;;  %v15488_v52 = vld [vmem:[#allocation100_spill] sm:$0xff]  ;;  %v1151_v60 = vadd.f32 %v1136_v5, %v1094_v50  ;;  %v1093_v23 = vmul.f32 %v10384_v11, %v10802_v37 }
 0x292   :  { %v10823_v43 = vpop.permute.xlu1 %808  ;;  %v10825_v26 = vpop.permute.xlu0 %806  ;;  %v2154_v57 = vmul.f32 %v10851_v46, %v15488_v52  ;;  %v1632_v5 = vsel %vm139_vm0, %v15491_v2, %v15492_v36  ;;  %v1153_v37 = vadd.f32 %v1138_v6, %v1096_v63  ;;  %v1194_v2 = vsel %vm197_vm1, %v15497_v30, %v15499_v49  ;;  %v15501_v36 = vld [vmem:[#allocation106_spill] sm:$0xff] }
 0x293   :  { %15484 = vst [vmem:[#allocation91_spill] sm:$0xff] %v10823_v43  ;;  %15485 = vst [vmem:[#allocation92_spill] sm:$0xff] %v10825_v26  ;;  %v10844_v43 = vld [vmem:[%s14642_s0 + $0x28] sm:$0xff]  ;;  %v1645_v63 = vadd.f32 %v1630_v34, %v1588_v40  ;;  %v1195_v30 = vsel %vm197_vm1, %v15499_v49, %v15501_v36  ;;  %v1208_v15 = vadd.f32 %v1193_v14, %v1151_v60  ;;  %v15515_v36 = vld [vmem:[#allocation121_spill] sm:$0xff] }
 0x294   :  { %1908 = vrot.lane.b32.xlu0 %v1887_v42, %s8842_s28  ;;  %1910 = vrot.lane.b32.xlu1 %v1888_v53, %s8842_s28  ;;  %v2153_v26 = vmul.f32 %v10844_v43, %v15488_v52  ;;  %v1590_v53 = vmul.f32 %v10206_v29, %v10808_v24  ;;  %v1587_v42 = vmul.f32 %v10384_v11, %v10808_v24  ;;  %v15493_v29 = vld [vmem:[#allocation101_spill] sm:$0xff]  ;;  %v15508_v49 = vld [vmem:[#allocation112_spill] sm:$0xff] }
 0x295   :  { %v1629_v50 = vsel %vm139_vm0, %v15493_v29, %v15490_v8  ;;  %v1152_v11 = vadd.f32 %v1137_v12, %v1095_v21  ;;  %v15500_v8 = vld [vmem:[#allocation105_spill] sm:$0xff]  ;;  %v10892_v29 = vadd.f32 %v1135_v16, %v1093_v23  ;;  %v15507_v23 = vld [vmem:[#allocation110_spill] sm:$0xff] }
 0x296   :  { %v10873_v24 = vpop.permute.xlu1 %2517  ;;  %v10875_v52 = vpop.permute.xlu0 %2515  ;;  %v2647_v21 = vmul.f32 %v10844_v43, %v15500_v8  ;;  %v2648_v6 = vmul.f32 %v10851_v46, %v15500_v8  ;;  %v1647_v10 = vadd.f32 %v1632_v5, %v1590_v53  ;;  %v1644_v12 = vadd.f32 %v1629_v50, %v1587_v42  ;;  %v15509_v53 = vld [vmem:[#allocation115_spill] sm:$0xff]  ;;  %v15510_v42 = vld [vmem:[#allocation116_spill] sm:$0xff] }
 0x297   :  { %15494 = vst [vmem:[#allocation94_spill] sm:$0xff] %v10873_v24  ;;  %15495 = vst [vmem:[#allocation96_spill] sm:$0xff] %v10875_v52  ;;  %v15502_v52 = vld [vmem:[#allocation108_spill] sm:$0xff]  ;;  %v15504_v24 = vld [vmem:[#allocation111_spill] sm:$0xff]  ;;  %v1209_v47 = vadd.f32 %v1194_v2, %v1152_v11  ;;  %v1250_v5 = vsel %vm255_vm2, %v15510_v42, %v15509_v53  ;;  %v1210_v50 = vadd.f32 %v1195_v30, %v1153_v37 }
 0x298   :  { %2174 = vrot.lane.b32.xlu0 %v2153_v26, %s8845_s27  ;;  %2176 = vrot.lane.b32.xlu1 %v2154_v57, %s8845_s27  ;;  %v15503_v26 = vld [vmem:[#allocation109_spill] sm:$0xff]  ;;  %v1688_v55 = vsel %vm197_vm1, %v15502_v52, %v15504_v24  ;;  %v1689_v16 = vsel %vm197_vm1, %v15504_v24, %v15507_v23  ;;  %v15512_v2 = vld [vmem:[#allocation118_spill] sm:$0xff]  ;;  %v15516_v8 = vld [vmem:[#allocation123_spill] sm:$0xff] }
 0x299   :  { %v1687_v57 = vsel %vm197_vm1, %v15503_v26, %v15502_v52  ;;  %v1686_v40 = vsel %vm197_vm1, %v15508_v49, %v15503_v26  ;;  %v15511_v52 = vld [vmem:[#allocation114_spill] sm:$0xff]  ;;  %v1703_v11 = vadd.f32 %v1688_v55, %v1646_v54  ;;  %v1251_v26 = vsel %vm255_vm2, %v15509_v53, %v15512_v2  ;;  %v15513_v49 = vld [vmem:[#allocation117_spill] sm:$0xff] }
 0x29a   :  { %v10903_v33 = vpop.permute.xlu1 %2521  ;;  %v10905_v34 = vpop.permute.xlu0 %2519  ;;  %v1450_v14 = vmul.f32 %v10844_v43, %v15511_v52  ;;  %v1451_v60 = vmul.f32 %v10851_v46, %v15511_v52  ;;  %v1702_v24 = vadd.f32 %v1687_v57, %v1645_v63  ;;  %v1252_v23 = vsel %vm255_vm2, %v15512_v2, %v15513_v49  ;;  %v15517_v52 = vld [vmem:[#allocation122_spill] sm:$0xff]  ;;  %v15520_v57 = vld [vmem:[#allocation113_spill] sm:$0xff] }
 0x29b   :  { %15505 = vst [vmem:[#allocation97_spill] sm:$0xff] %v10903_v33  ;;  %15506 = vst [vmem:[#allocation99_spill] sm:$0xff] %v10905_v34  ;;  %v1746_v55 = vsel %vm255_vm2, %v15516_v8, %v15517_v52  ;;  %v1704_v54 = vadd.f32 %v1689_v16, %v1647_v10  ;;  %v10941_v30 = vadd.f32 %v1686_v40, %v1644_v12 }
 0x29c   :  { %2668 = vrot.lane.b32.xlu0 %v2647_v21, %s8845_s27  ;;  %2670 = vrot.lane.b32.xlu1 %v2648_v6, %s8845_s27  ;;  %v15514_v21 = vld [vmem:[#allocation120_spill] sm:$0xff]  ;;  %v10946_v53 = vsel %vm197_vm1, %v15520_v57, %v15498_v1  ;;  %v1265_v2 = vadd.f32 %v1250_v5, %v1208_v15  ;;  %v1266_v49 = vadd.f32 %v1251_v26, %v1209_v47  ;;  %v15524_v15 = vld [vmem:[#allocation131_spill] sm:$0xff]  ;;  %v15525_v5 = vld [vmem:[#allocation130_spill] sm:$0xff] }
 0x29d   :  { %v1744_v6 = vsel %vm255_vm2, %v15515_v36, %v15514_v21  ;;  %v1745_v33 = vsel %vm255_vm2, %v15514_v21, %v15516_v8  ;;  %v15521_v21 = vld [vmem:[#allocation119_spill] sm:$0xff]  ;;  %v1267_v10 = vadd.f32 %v1252_v23, %v1210_v50  ;;  %v1761_v40 = vadd.f32 %v1746_v55, %v1704_v54  ;;  %v15527_v26 = vld [vmem:[#allocation133_spill] sm:$0xff]  ;;  %v15533_v54 = vld [vmem:[#allocation134_spill] sm:$0xff] }
 0x29e   :  { %v10937_v37 = vpop.permute.xlu1 %3011  ;;  %v10939_v63 = vpop.permute.xlu0 %3009  ;;  %v1944_v8 = vmul.f32 %v10844_v43, %v15521_v21  ;;  %v1945_v52 = vmul.f32 %v10851_v46, %v15521_v21  ;;  %v1759_v12 = vadd.f32 %v1744_v6, %v1702_v24  ;;  %v1760_v16 = vadd.f32 %v1745_v33, %v1703_v11  ;;  %v15530_v50 = vld [vmem:[#allocation125_spill] sm:$0xff]  ;;  %v15531_v11 = vld [vmem:[#allocation126_spill] sm:$0xff]  ;;  %v15532_v55 = vld [vmem:[#allocation135_spill] sm:$0xff] }
 0x29f   :  { %15518 = vst [vmem:[#allocation101_spill] sm:$0xff] %v10937_v37  ;;  %15519 = vst [vmem:[#allocation102_spill] sm:$0xff] %v10939_v63  ;;  %v15522_v63 = vld [vmem:[#allocation127_spill] sm:$0xff]  ;;  %v15523_v37 = vld [vmem:[#allocation128_spill] sm:$0xff]  ;;  %v10973_v24 = vsel %vm255_vm2, %v15530_v50, %v15515_v36  ;;  %v10978_v6 = vsel %vm255_vm2, %v15531_v11, %v15510_v42 }
 0x2a0   :  { %1473 = vrot.lane.b32.xlu0 %v1450_v14, %s8849_s23  ;;  %1475 = vrot.lane.b32.xlu1 %v1451_v60, %s8849_s23  ;;  %v1307_v1 = vsel %vm313_vm3, %v15523_v37, %v15522_v63  ;;  %v1308_v47 = vsel %vm313_vm3, %v15522_v63, %v15524_v15  ;;  %v1309_v14 = vsel %vm313_vm3, %v15524_v15, %v15525_v5  ;;  %v15526_v60 = vld [vmem:[#allocation132_spill] sm:$0xff]  ;;  %v15534_v5 = vld [vmem:[#allocation139_spill] sm:$0xff] }
 0x2a1   :  { %v1801_v57 = vsel %vm313_vm3, %v15527_v26, %v15526_v60  ;;  %v1802_v63 = vsel %vm313_vm3, %v15526_v60, %v15532_v55  ;;  %v1803_v15 = vsel %vm313_vm3, %v15532_v55, %v15533_v54  ;;  %v15535_v21 = vld [vmem:[#allocation140_spill] sm:$0xff]  ;;  %v1322_v11 = vadd.f32 %v1307_v1, %v1265_v2  ;;  %v15537_v55 = vld [vmem:[#allocation142_spill] sm:$0xff] }
 0x2a2   :  { %v10966_v23 = vpop.permute.xlu1 %3015  ;;  %v10968_v33 = vpop.permute.xlu0 %3013  ;;  %v15536_v36 = vld [vmem:[#allocation124_spill] sm:$0xff]  ;;  %v1323_v60 = vadd.f32 %v1308_v47, %v1266_v49  ;;  %v1816_v34 = vadd.f32 %v1801_v57, %v1759_v12  ;;  %v1817_v4 = vadd.f32 %v1802_v63, %v1760_v16  ;;  %v1365_v54 = vsel %vm371_vm4, %v15534_v5, %v15537_v55  ;;  %v15544_v16 = vld [vmem:[#allocation146_spill] sm:$0xff]  ;;  %v15545_v47 = vld [vmem:[#allocation165_spill] sm:$0xff] }
 0x2a3   :  { %15528 = vst [vmem:[#allocation103_spill] sm:$0xff] %v10966_v23  ;;  %15529 = vst [vmem:[#allocation104_spill] sm:$0xff] %v10968_v33  ;;  %v1364_v23 = vsel %vm371_vm4, %v15535_v21, %v15534_v5  ;;  %v2210_v42 = vmul.f32 %v10844_v43, %v15536_v36  ;;  %v2211_v50 = vmul.f32 %v10851_v46, %v15536_v36  ;;  %v15546_v5 = vld [vmem:[#allocation162_spill] sm:$0xff]  ;;  %v15547_v57 = vld [vmem:[#allocation129_spill] sm:$0xff] }
 0x2a4   :  { %1967 = vrot.lane.b32.xlu0 %v1944_v8, %s8849_s23  ;;  %1969 = vrot.lane.b32.xlu1 %v1945_v52, %s8849_s23  ;;  %v1324_v33 = vadd.f32 %v1309_v14, %v1267_v10  ;;  %v1366_v8 = vsel %vm371_vm4, %v15537_v55, %v15538_v39  ;;  %v15539_v52 = vld [vmem:[#allocation144_spill] sm:$0xff]  ;;  %v1818_v49 = vadd.f32 %v1803_v15, %v1761_v40  ;;  %v15543_v10 = vld [vmem:[#allocation147_spill] sm:$0xff] }
 0x2a5   :  { %v1858_v44 = vsel %vm371_vm4, %v15540_v19, %v15539_v52  ;;  %v1379_v2 = vadd.f32 %v1364_v23, %v1322_v11  ;;  %v1859_v12 = vsel %vm371_vm4, %v15539_v52, %v15543_v10  ;;  %v1860_v1 = vsel %vm371_vm4, %v15543_v10, %v15544_v16  ;;  %v15548_v55 = vld [vmem:[#allocation167_spill] sm:$0xff]  ;;  %v15549_v52 = vld [vmem:[#allocation168_spill] sm:$0xff] }
 0x2a6   :  { %v11004_v38 = vpop.permute.xlu1 %3007  ;;  %v11006_v36 = vpop.permute.xlu0 %2513  ;;  %v1422_v14 = vsel %vm429_vm5, %v15546_v5, %v15545_v47  ;;  %v2704_v40 = vmul.f32 %v10844_v43, %v15547_v57  ;;  %v2705_v23 = vmul.f32 %v10851_v46, %v15547_v57  ;;  %v1380_v63 = vadd.f32 %v1365_v54, %v1323_v60  ;;  %v15551_v39 = vld [vmem:[#allocation164_spill] sm:$0xff]  ;;  %v15557_v57 = vld [vmem:[#allocation190_spill] sm:$0xff] }
 0x2a7   :  { %15541 = vst [vmem:[#allocation107_spill] sm:$0xff] %v11004_v38  ;;  %15542 = vst [vmem:[#allocation108_spill] sm:$0xff] %v11006_v36  ;;  %v1381_v15 = vadd.f32 %v1366_v8, %v1324_v33  ;;  %v1873_v11 = vadd.f32 %v1858_v44, %v1816_v34  ;;  %v1915_v10 = vsel %vm429_vm5, %v15549_v52, %v15548_v55  ;;  %v15552_v38 = vld [vmem:[#allocation170_spill] sm:$0xff]  ;;  %v15555_v8 = vld [vmem:[#allocation189_spill] sm:$0xff] }
 0x2a8   :  { %2231 = vrot.lane.b32.xlu0 %v2210_v42, %s8846_s14  ;;  %2233 = vrot.lane.b32.xlu1 %v2211_v50, %s8846_s14  ;;  %v1874_v16 = vadd.f32 %v1859_v12, %v1817_v4  ;;  %v15550_v42 = vld [vmem:[#allocation163_spill] sm:$0xff]  ;;  %v1423_v36 = vsel %vm429_vm5, %v15545_v47, %v15551_v39  ;;  %v1916_v33 = vsel %vm429_vm5, %v15548_v55, %v15552_v38  ;;  %v15556_v4 = vld [vmem:[#allocation185_spill] sm:$0xff]  ;;  %v15559_v47 = vld [vmem:[#allocation138_spill] sm:$0xff] }
 0x2a9   :  { %v1421_v50 = vsel %vm429_vm5, %v15550_v42, %v15546_v5  ;;  %v1875_v54 = vadd.f32 %v1860_v1, %v1818_v49  ;;  %v1437_v60 = vadd.f32 %v1422_v14, %v1380_v63  ;;  %v1483_v12 = vsel %vm491_vm6, %v15556_v4, %v15555_v8  ;;  %v15558_v5 = vld [vmem:[#allocation191_spill] sm:$0xff]  ;;  %v15560_v63 = vld [vmem:[#allocation169_spill] sm:$0xff] }
 0x2aa   :  { %v11037_v44 = vpop.permute.xlu1 %367  ;;  %v11039_v34 = vpop.permute.xlu0 %365  ;;  %v1976_v9 = vsel %vm491_vm6, %v15558_v5, %v15557_v57  ;;  %v1930_v31 = vadd.f32 %v1915_v10, %v1873_v11  ;;  %v1512_v55 = vmul.f32 %v10844_v43, %v15559_v47  ;;  %v1513_v49 = vmul.f32 %v10851_v46, %v15559_v47  ;;  %v15561_v11 = vld [vmem:[#allocation186_spill] sm:$0xff] }
 0x2ab   :  { %15553 = vst [vmem:[#allocation109_spill] sm:$0xff] %v11037_v44  ;;  %15554 = vst [vmem:[#allocation111_spill] sm:$0xff] %v11039_v34  ;;  %v1436_v1 = vadd.f32 %v1421_v50, %v1379_v2  ;;  %v1438_v14 = vadd.f32 %v1423_v36, %v1381_v15  ;;  %v1917_v39 = vsel %vm429_vm5, %v15552_v38, %v15560_v63  ;;  %v15565_v36 = vld [vmem:[#allocation193_spill] sm:$0xff]  ;;  %v15567_v50 = vld [vmem:[#allocation211_spill] sm:$0xff] }
 0x2ac   :  { %2725 = vrot.lane.b32.xlu0 %v2704_v40, %s8846_s14  ;;  %2727 = vrot.lane.b32.xlu1 %v2705_v23, %s8846_s14  ;;  %v1931_v44 = vadd.f32 %v1916_v33, %v1874_v16  ;;  %v1482_v10 = vsel %vm491_vm6, %v15561_v11, %v15556_v4  ;;  %v15562_v40 = vld [vmem:[#allocation188_spill] sm:$0xff]  ;;  %v1499_v34 = vadd.f32 %v1483_v12, %v1437_v60  ;;  %v15570_v60 = vld [vmem:[#allocation213_spill] sm:$0xff]  ;;  %v15573_v47 = vld [vmem:[#allocation210_spill] sm:$0xff] }
 0x2ad   :  { %v1484_v23 = vsel %vm491_vm6, %v15555_v8, %v15562_v40  ;;  %v1992_v13 = vadd.f32 %v1976_v9, %v1930_v31  ;;  %v1977_v38 = vsel %vm491_vm6, %v15557_v57, %v15565_v36  ;;  %v15566_v16 = vld [vmem:[#allocation192_spill] sm:$0xff]  ;;  %v15571_v31 = vld [vmem:[#allocation209_spill] sm:$0xff]  ;;  %v15572_v57 = vld [vmem:[#allocation143_spill] sm:$0xff]  ;;  %v1498_v63 = vadd.f32 %v1482_v10, %v1436_v1 }
 0x2ae   :  { %v11064_v58 = vpop.permute.xlu1 %865  ;;  %v11066_v2 = vpop.permute.xlu0 %863  ;;  %v1978_v15 = vsel %vm491_vm6, %v15565_v36, %v15566_v16  ;;  %v15568_v33 = vld [vmem:[#allocation208_spill] sm:$0xff]  ;;  %v2006_v40 = vmul.f32 %v10844_v43, %v15572_v57  ;;  %v2007_v36 = vmul.f32 %v10851_v46, %v15572_v57  ;;  %v1932_v16 = vadd.f32 %v1917_v39, %v1875_v54  ;;  %v15577_v54 = vld [vmem:[#allocation215_spill] sm:$0xff] }
 0x2af   :  { %15563 = vst [vmem:[#allocation112_spill] sm:$0xff] %v11064_v58  ;;  %15564 = vst [vmem:[#allocation115_spill] sm:$0xff] %v11066_v2  ;;  %v1545_v4 = vsel %vm554_vm7, %v15568_v33, %v15567_v50  ;;  %v15569_v8 = vld [vmem:[#allocation212_spill] sm:$0xff]  ;;  %v1544_v12 = vsel %vm554_vm7, %v15571_v31, %v15568_v33  ;;  %v1546_v58 = vsel %vm554_vm7, %v15567_v50, %v15573_v47  ;;  %v11093_v2 = vstv %s11026_s7  ;;  %s8853_s7 = smov 31  }
 0x2b0   :  { %v2038_v9 = vsel %vm554_vm7, %v15570_v60, %v15569_v8  ;;  %1535 = vrot.lane.b32.xlu0 %v1512_v55, %s8850_s26  ;;  %1537 = vrot.lane.b32.xlu1 %v1513_v49, %s8850_s26  ;;  %15574 = vst [vmem:[#allocation116_spill] sm:$0xff] %v11093_v2  ;;  %v1500_v33 = vadd.f32 %v1484_v23, %v1438_v14  ;;  %v11106_v10 = vstv %s11047_s19  ;;  %v15619_v57 = vld [vmem:[#allocation172_spill] sm:$0xff]  ;;  %s8854_s19 = smov 16  }
 0x2b1   :  { %v1993_v48 = vadd.f32 %v1977_v38, %v1931_v44  ;;  %v1561_v55 = vadd.f32 %v1545_v4, %v1499_v34  ;;  %v2054_v17 = vadd.f32 %v2038_v9, %v1992_v13  ;;  %v1994_v61 = vadd.f32 %v1978_v15, %v1932_v16  ;;  %15578 = vst [vmem:[#allocation120_spill] sm:$0xff] %v11106_v10  ;;  %v15579_v13 = vld [vmem:[#allocation148_spill] sm:$0xff] }
 0x2b2   :  { %v11095_v49 = vpop.permute.xlu1 %425  ;;  %v11097_v25 = vpop.permute.xlu0 %423  ;;  %v1560_v45 = vadd.f32 %v1544_v12, %v1498_v63  ;;  %v2039_v39 = vsel %vm554_vm7, %v15569_v8, %v15576_v62  ;;  %v2040_v1 = vsel %vm554_vm7, %v15576_v62, %v15577_v54  ;;  %v1562_v14 = vadd.f32 %v1546_v58, %v1500_v33  ;;  %v15580_v62 = vld [vmem:[#allocation136_spill] sm:$0xff] }
 0x2b3   :  { %15575 = vst [vmem:[#allocation118_spill] sm:$0xff] %v11095_v49  ;;  %v2267_v44 = vmul.f32 %v10844_v43, %v15579_v13  ;;  %v2268_v34 = vmul.f32 %v10851_v46, %v15579_v13  ;;  %v1207_v63 = vadd.f32 %v10946_v53, %v10892_v29  ;;  %v1758_v23 = vadd.f32 %v10973_v24, %v10941_v30 }
 0x2b4   :  { %2029 = vrot.lane.b32.xlu0 %v2006_v40, %s8850_s26  ;;  %2031 = vrot.lane.b32.xlu1 %v2007_v36, %s8850_s26  ;;  %v1800_v58 = vsel %vm313_vm3, %v15580_v62, %v15527_v26  ;;  %v15581_v40 = vld [vmem:[#allocation137_spill] sm:$0xff]  ;;  %v11125_v16 = vadd.f32 %v11106_v10, %v1561_v55  ;;  %v11128_v15 = vadd.f32 %v11093_v2, %v2054_v17  ;;  %v15585_v26 = vld [vmem:[#allocation158_spill] sm:$0xff] }
 0x2b5   :  { %v1306_v38 = vsel %vm313_vm3, %v15581_v40, %v15523_v37  ;;  %v2055_v50 = vadd.f32 %v2039_v39, %v1993_v48  ;;  %v2056_v4 = vadd.f32 %v2040_v1, %v1994_v61  ;;  %v1264_v30 = vadd.f32 %v10978_v6, %v1207_v63  ;;  %v15586_v37 = vld [vmem:[#allocation159_spill] sm:$0xff]  ;;  %v15589_v61 = vld [vmem:[#allocation153_spill] sm:$0xff]  ;;  %v15595_v40 = vld [vmem:[#allocation204_spill] sm:$0xff] }
 0x2b6   :  { %15582 = vst [vmem:[#allocation121_spill] sm:$0xff] %v11125_v16  ;;  %15583 = vst [vmem:[#allocation123_spill] sm:$0xff] %v11128_v15  ;;  %v11130_v29 = vpop.permute.xlu1 %922  ;;  %v11132_v53 = vpop.permute.xlu0 %920  ;;  %v1857_v24 = vsel %vm371_vm4, %v15585_v26, %v15540_v19  ;;  %v1363_v8 = vsel %vm371_vm4, %v15586_v37, %v15535_v21  ;;  %v11142_v9 = vadd.f32 %v11106_v10, %v1560_v45  ;;  %v15590_v21 = vld [vmem:[#allocation180_spill] sm:$0xff]  ;;  %v15591_v36 = vld [vmem:[#allocation181_spill] sm:$0xff]  ;;  %v14982_v55 = vmax.f32 %v11125_v16, 0.0 }
 0x2b7   :  { %15584 = vst [vmem:[#allocation113_spill] sm:$0xff] %v11130_v29  ;;  %v11145_v17 = vadd.f32 %v11106_v10, %v1562_v14  ;;  %v2761_v48 = vmul.f32 %v10844_v43, %v15589_v61  ;;  %v2762_v19 = vmul.f32 %v10851_v46, %v15589_v61  ;;  %v1815_v6 = vadd.f32 %v1800_v58, %v1758_v23  ;;  %v15616_v16 = vld [vmem:[#allocation160_spill] sm:$0xff] }
 0x2b8   :  { %15587 = vst [vmem:[#allocation127_spill] sm:$0xff] %v11142_v9  ;;  %2288 = vrot.lane.b32.xlu0 %v2267_v44, %s8847_s17  ;;  %2290 = vrot.lane.b32.xlu1 %v2268_v34, %s8847_s17  ;;  %v1321_v12 = vadd.f32 %v1306_v38, %v1264_v30  ;;  %v1914_v45 = vsel %vm429_vm5, %v15590_v21, %v15549_v52  ;;  %v14981_v39 = vmax.f32 %v11128_v15, 0.0  ;;  %v14983_v63 = vmax.f32 %v11142_v9, 0.0  ;;  %v11188_v30 = vld [vmem:[%s14642_s0 + $0x38] sm:$0xff]  ;;  %v15598_v21 = vld [vmem:[#allocation11_spill] sm:$0xff]  ;;  %v15615_v15 = vld [vmem:[#allocation156_spill] sm:$0xff] }
 0x2b9   :  { %15588 = vst [vmem:[#allocation128_spill] sm:$0xff] %v11145_v17  ;;  %v1420_v33 = vsel %vm429_vm5, %v15591_v36, %v15550_v42  ;;  %v11164_v1 = vadd.f32 %v11093_v2, %v2055_v50  ;;  %v11167_v14 = vadd.f32 %v11093_v2, %v2056_v4  ;;  %v1872_v52 = vadd.f32 %v1857_v24, %v1815_v6  ;;  %v15596_v50 = vld [vmem:[#allocation205_spill] sm:$0xff] }
 0x2ba   :  { %v11169_v44 = vpop.permute.xlu1 %485  ;;  %v11171_v34 = vpop.permute.xlu0 %483  ;;  %v1378_v42 = vadd.f32 %v1363_v8, %v1321_v12  ;;  %v14978_v23 = vmax.f32 %v11145_v17, 0.0  ;;  %v1975_v38 = vsel %vm491_vm6, %v15595_v40, %v15558_v5  ;;  %v1481_v4 = vsel %vm491_vm6, %v15596_v50, %v15561_v11 }
 0x2bb   :  { %15592 = vst [vmem:[#allocation131_spill] sm:$0xff] %v11164_v1  ;;  %15593 = vst [vmem:[#allocation132_spill] sm:$0xff] %v11167_v14  ;;  %v1929_v62 = vadd.f32 %v1914_v45, %v1872_v52  ;;  %v14980_v26 = vmax.f32 %v11164_v1, 0.0  ;;  %v14979_v24 = vmax.f32 %v11167_v14, 0.0  ;;  %v7683_v5 = vpack.i.bf16 %v14982_v55, %v14983_v63  ;;  %v15612_v55 = vld [vmem:[#allocation155_spill] sm:$0xff]  ;;  %v15614_v1 = vld [vmem:[#allocation157_spill] sm:$0xff] }
 0x2bc   :  { %15594 = vst [vmem:[#allocation133_spill] sm:$0xff] %v11169_v44  ;;  %2782 = vrot.lane.b32.xlu0 %v2761_v48, %s8847_s17  ;;  %2784 = vrot.lane.b32.xlu1 %v2762_v19, %s8847_s17  ;;  %v1435_v58 = vadd.f32 %v1420_v33, %v1378_v42  ;;  %v7688_v11 = vpack.i.bf16 %v14981_v39, %v14978_v23  ;;  %v11215_v36 = vstv %s11159_s20  ;;  %v15608_v23 = vld [vmem:[#allocation150_spill] sm:$0xff]  ;;  %v15610_v39 = vld [vmem:[#allocation151_spill] sm:$0xff]  ;;  %s8855_s20 = smov 29  }
 0x2bd   :  { %v2037_v48 = vsel %vm554_vm7, %v10402_v56, %v15570_v60  ;;  %v1543_v19 = vsel %vm554_vm7, %v10404_v35, %v15571_v31  ;;  %v1991_v6 = vadd.f32 %v1975_v38, %v1929_v62  ;;  %v114_v45 = vmul.f32 %v15598_v21, %v11188_v30  ;;  %15599 = vst [vmem:[#allocation126_spill] sm:$0xff] %v11215_v36  ;;  %v15602_v31 = vld [vmem:[#allocation12_spill] sm:$0xff]  ;;  %v15613_v14 = vld [vmem:[#allocation171_spill] sm:$0xff] }
 0x2be   :  { %v11192_v37 = vpop.permute.xlu1 %981  ;;  %v11194_v8 = vpop.permute.xlu0 %979  ;;  %v1497_v12 = vadd.f32 %v1481_v4, %v1435_v58  ;;  %v7693_v35 = vpack.i.bf16 %v14979_v24, %v14980_v26  ;;  %v11226_v60 = vstv %s11173_s21  ;;  %v616_v62 = vmul.f32 %v15602_v31, %v11188_v30  ;;  %v15603_v58 = vld [vmem:[#allocation166_spill] sm:$0xff]  ;;  %v8776_v38 = vld [vmem:[%s14642_s0 + $0x8] sm:$0xff]  ;;  %v8777_v4 = vld [vmem:[%s14642_s0 + $0x10] sm:$0xff]  ;;  %s11526_s21 = sld [smem:[#allocation5 + $0x4]] }
 0x2bf   :  { %15597 = vst [vmem:[#allocation125_spill] sm:$0xff] %v11192_v37  ;;  %v2053_v33 = vadd.f32 %v2037_v48, %v1991_v6  ;;  %15601 = vst [vmem:[#allocation139_spill] sm:$0xff] %v11226_v60  ;;  %v2324_v40 = vmul.f32 %v10844_v43, %v15603_v58  ;;  %v2082_v50 = vmul.f32 %v8776_v38, %v11215_v36  ;;  %v15607_v31 = vld [vmem:[#allocation149_spill] sm:$0xff]  ;;  %v15609_v26 = vld [vmem:[#allocation152_spill] sm:$0xff] }
 0x2c0   :  { %7684 = vrot.lane.b32.xlu0 %v7683_v5, %s8844_s22  ;;  %7689 = vrot.lane.b32.xlu1 %v7688_v11, %s8844_s22  ;;  %v1559_v52 = vadd.f32 %v1543_v19, %v1497_v12  ;;  %v2083_v5 = vmul.f32 %v8777_v4, %v11215_v36  ;;  %v8778_v11 = vld [vmem:[%s14642_s0 + $0x18] sm:$0xff]  ;;  %v2576_v19 = vmul.f32 %v8776_v38, %v11226_v60 }
 0x2c1   :  { %v2084_v48 = vmul.f32 %v8778_v11, %v11215_v36  ;;  %v2577_v6 = vmul.f32 %v8777_v4, %v11226_v60  ;;  %v11249_v12 = vadd.f32 %v11093_v2, %v2053_v33  ;;  %v2124_v24 = vsel %vm139_vm0, %v15608_v23, %v15607_v31 }
 0x2c2   :  { %v11217_v42 = vpop.permute.xlu1 %548  ;;  %v11219_v56 = vpop.permute.xlu0 %546  ;;  %v11252_v21 = vadd.f32 %v11106_v10, %v1559_v52  ;;  %v2125_v38 = vsel %vm139_vm0, %v15607_v31, %v15609_v26  ;;  %v2126_v33 = vsel %vm139_vm0, %v15609_v26, %v15610_v39  ;;  %v2578_v4 = vmul.f32 %v8778_v11, %v11226_v60  ;;  %v15611_v52 = vld [vmem:[#allocation154_spill] sm:$0xff]  ;;  %v15617_v10 = vld [vmem:[#allocation161_spill] sm:$0xff] }
 0x2c3   :  { %15600 = vst [vmem:[#allocation135_spill] sm:$0xff] %v11217_v42  ;;  %15604 = vst [vmem:[#allocation140_spill] sm:$0xff] %v11249_v12  ;;  %v2618_v63 = vsel %vm139_vm0, %v15612_v55, %v15611_v52  ;;  %v2325_v17 = vmul.f32 %v10851_v46, %v15603_v58  ;;  %v2818_v31 = vmul.f32 %v10844_v43, %v15613_v14  ;;  %v15000_v54 = vmax.f32 %v11249_v12, 0.0  ;;  %v15631_v12 = vld [vmem:[#allocation195_spill] sm:$0xff] }
 0x2c4   :  { %7694 = vrot.lane.b32.xlu0 %v7693_v35, %s8844_s22  ;;  %137 = vrot.lane.b32.xlu1 %v114_v45, %s8844_s22  ;;  %15605 = vst [vmem:[#allocation142_spill] sm:$0xff] %v11252_v21  ;;  %v2619_v26 = vsel %vm139_vm0, %v15611_v52, %v15614_v1  ;;  %v2620_v11 = vsel %vm139_vm0, %v15614_v1, %v15615_v15  ;;  %v15001_v1 = vmax.f32 %v11252_v21, 0.0 }
 0x2c5   :  { %v2617_v9 = vsel %vm139_vm0, %v15616_v16, %v15612_v55  ;;  %v2123_v52 = vsel %vm139_vm0, %v15617_v10, %v15608_v23  ;;  %v2139_v39 = vadd.f32 %v2124_v24, %v2082_v50  ;;  %v2140_v61 = vadd.f32 %v2125_v38, %v2083_v5  ;;  %v8480_v55 = vld [vmem:[%s14647_s5 + $0x4] ss:$8 sps:$4 sm:$0xff]  }
 0x2c6   :  { %v11254_v45 = vpop.permute.xlu1 %1043  ;;  %v11256_v35 = vpop.permute.xlu0 %1041  ;;  %v2141_v58 = vadd.f32 %v2126_v33, %v2084_v48  ;;  %v2634_v13 = vadd.f32 %v2619_v26, %v2577_v6  ;;  %v2819_v10 = vmul.f32 %v10851_v46, %v15613_v14  ;;  %v2635_v23 = vadd.f32 %v2620_v11, %v2578_v4  ;;  %v15622_v48 = vld [vmem:[#allocation174_spill] sm:$0xff]  ;;  %v15624_v6 = vld [vmem:[#allocation177_spill] sm:$0xff]  ;;  %v15625_v33 = vld [vmem:[#allocation179_spill] sm:$0xff]  ;;  %4369 = vmatprep.subr.bf16.mxu0 %v8480_v55 }
 0x2c7   :  { %15606 = vst [vmem:[#allocation144_spill] sm:$0xff] %v11254_v45  ;;  %v8482_v4 = vld [vmem:[%s14647_s5] ss:$8 sps:$4 sm:$0xff]   ;;  %v15627_v11 = vld [vmem:[#allocation178_spill] sm:$0xff] }
 0x2c8   :  { %639 = vrot.lane.b32.xlu0 %v616_v62, %s8844_s22  ;;  %2345 = vrot.lane.b32.xlu1 %v2324_v40, %s8848_s2  ;;  %v8779_v62 = vld [vmem:[%s14642_s0] sm:$0xff]  ;;  %v15638_v45 = vld [vmem:[#allocation202_spill] sm:$0xff] }
 0x2c9   :  { %v2575_v40 = vmul.f32 %v8779_v62, %v11226_v60  ;;  %v2081_v2 = vmul.f32 %v8779_v62, %v11215_v36  ;;  %v2633_v62 = vadd.f32 %v2618_v63, %v2576_v19  ;;  %v15620_v60 = vld [vmem:[#allocation173_spill] sm:$0xff]  ;;  %v15621_v63 = vld [vmem:[#allocation175_spill] sm:$0xff]  ;;  %v15623_v19 = vld [vmem:[#allocation176_spill] sm:$0xff]  ;;  %4370 = vmatpush1.bf16.msra.mxu0 %v8482_v4 }
 0x2ca   :  { %v11296_v47 = vpop.permute.xlu1 %7669  ;;  %v11298_v15 = vpop.permute.xlu0 %7664  ;;  %v2181_v16 = vsel %vm197_vm1, %v15620_v60, %v15619_v57  ;;  %v2182_v5 = vsel %vm197_vm1, %v15619_v57, %v15621_v63  ;;  %v2675_v38 = vsel %vm197_vm1, %v15624_v6, %v15623_v19  ;;  %v15636_v14 = vld [vmem:[#allocation199_spill] sm:$0xff]  ;;  %v15637_v36 = vld [vmem:[#allocation200_spill] sm:$0xff] }
 0x2cb   :  { %15618 = vst [vmem:[#allocation145_spill] sm:$0xff] %v11296_v47  ;;  %v2632_v24 = vadd.f32 %v2617_v9, %v2575_v40  ;;  %v2138_v50 = vadd.f32 %v2123_v52, %v2081_v2  ;;  %v7698_v2 = vpack.i.bf16 %v15000_v54, %v15001_v1  ;;  %v2196_v26 = vadd.f32 %v2181_v16, %v2139_v39  ;;  %v15628_v52 = vld [vmem:[#allocation183_spill] sm:$0xff]  ;;  %v15630_v1 = vld [vmem:[#allocation194_spill] sm:$0xff]  ;;  %v15632_v39 = vld [vmem:[#allocation13_spill] sm:$0xff] }
 0x2cc   :  { %2347 = vrot.lane.b32.xlu0 %v2325_v17, %s8848_s2  ;;  %2839 = vrot.lane.b32.xlu1 %v2818_v31, %s8848_s2  ;;  %v2183_v17 = vsel %vm197_vm1, %v15621_v63, %v15622_v48  ;;  %v2676_v31 = vsel %vm197_vm1, %v15623_v19, %v15625_v33  ;;  %v2677_v40 = vsel %vm197_vm1, %v15625_v33, %v15627_v11  ;;  %v15629_v19 = vld [vmem:[#allocation184_spill] sm:$0xff]  ;;  %v15633_v33 = vld [vmem:[#allocation14_spill] sm:$0xff]  ;;  %v15634_v48 = vld [vmem:[#allocation197_spill] sm:$0xff] }
 0x2cd   :  { %v2674_v63 = vsel %vm197_vm1, %v15628_v52, %v15624_v6  ;;  %v2180_v54 = vsel %vm197_vm1, %v15629_v19, %v15620_v60  ;;  %v2238_v55 = vsel %vm255_vm2, %v15631_v12, %v15630_v1  ;;  %v172_v16 = vmul.f32 %v15632_v39, %v11188_v30  ;;  %v8483_v6 = vld [vmem:[%s14647_s5 + $0x14] ss:$8 sps:$4 sm:$0xff]  }
 0x2ce   :  { %v11326_v9 = vpop.permute.xlu0 %7674  ;;  %v11328_v57 = vpop.permute.xlu1 %7679  ;;  %v673_v21 = vmul.f32 %v15633_v33, %v11188_v30  ;;  %v2197_v52 = vadd.f32 %v2182_v5, %v2140_v61  ;;  %v2198_v60 = vadd.f32 %v2183_v17, %v2141_v58  ;;  %v2690_v19 = vadd.f32 %v2675_v38, %v2633_v62  ;;  %4371 = vmatprep.subr.bf16.mxu0 %v8483_v6  ;;  %v15640_v38 = vld [vmem:[#allocation201_spill] sm:$0xff] }
 0x2cf   :  { %15626 = vst [vmem:[#allocation147_spill] sm:$0xff] %v11326_v9  ;;  %v2691_v11 = vadd.f32 %v2676_v31, %v2634_v13  ;;  %v2732_v33 = vsel %vm255_vm2, %v15637_v36, %v15636_v14  ;;  %v2733_v61 = vsel %vm255_vm2, %v15636_v14, %v15638_v45  ;;  %v2692_v62 = vadd.f32 %v2677_v40, %v2635_v23  ;;  %v15641_v14 = vld [vmem:[#allocation182_spill] sm:$0xff]  ;;  %v8486_v23 = vld [vmem:[%s14647_s5 + $0x24] ss:$8 sps:$4 sm:$0xff]  }
 0x2d0   :  { %2841 = vrot.lane.b32.xlu0 %v2819_v10, %s8848_s2  ;;  %7699 = vrot.lane.b32.xlu1 %v7698_v2, %s8844_s22  ;;  %v2239_v10 = vsel %vm255_vm2, %v15630_v1, %v15634_v48  ;;  %v15635_v2 = vld [vmem:[#allocation196_spill] sm:$0xff]  ;;  %v8485_v1 = vld [vmem:[%s14647_s5 + $0x10] ss:$8 sps:$4 sm:$0xff]   ;;  %v2689_v5 = vadd.f32 %v2674_v63, %v2632_v24  ;;  %v2253_v17 = vadd.f32 %v2238_v55, %v2196_v26  ;;  %v15644_v55 = vld [vmem:[#allocation219_spill] sm:$0xff] }
 0x2d1   :  { %v2240_v39 = vsel %vm255_vm2, %v15634_v48, %v15635_v2  ;;  %v2195_v48 = vadd.f32 %v2180_v54, %v2138_v50  ;;  %v2734_v31 = vsel %vm255_vm2, %v15638_v45, %v15640_v38  ;;  %v2381_v4 = vmul.f32 %v10844_v43, %v15641_v14  ;;  %4372 = vmatpush1.bf16.msra.mxu0 %v8485_v1  ;;  %v15642_v45 = vld [vmem:[#allocation206_spill] sm:$0xff]  ;;  %v15646_v2 = vld [vmem:[#allocation223_spill] sm:$0xff] }
 0x2d2   :  { %v11366_v58 = vpop.permute.xlu0 %1129  ;;  %v11368_v13 = vpop.permute.xlu1 %1131  ;;  %v2382_v6 = vmul.f32 %v10851_v46, %v15641_v14  ;;  %v2254_v54 = vadd.f32 %v2239_v10, %v2197_v52  ;;  %v2255_v24 = vadd.f32 %v2240_v39, %v2198_v60  ;;  %v2747_v50 = vadd.f32 %v2732_v33, %v2690_v19  ;;  %4373 = vmatprep.subr.bf16.mxu0 %v8486_v23  ;;  %v15648_v10 = vld [vmem:[#allocation222_spill] sm:$0xff]  ;;  %v15649_v1 = vld [vmem:[#allocation187_spill] sm:$0xff] }
 0x2d3   :  { %15639 = vst [vmem:[#allocation165_spill] sm:$0xff] %v11368_v13  ;;  %v2748_v26 = vadd.f32 %v2733_v61, %v2691_v11  ;;  %v2731_v40 = vsel %vm255_vm2, %v15642_v45, %v15637_v36  ;;  %v2296_v52 = vsel %vm313_vm3, %v15644_v55, %v15646_v2  ;;  %v8488_v36 = vld [vmem:[%s14647_s5 + $0x20] ss:$8 sps:$4 sm:$0xff]   ;;  %v2749_v19 = vadd.f32 %v2734_v31, %v2692_v62  ;;  %v8489_v31 = vld [vmem:[%s14647_s5 + $0x34] ss:$8 sps:$4 sm:$0xff]  }
 0x2d4   :  { %195 = vrot.lane.b32.xlu0 %v172_v16, %s8845_s27  ;;  %696 = vrot.lane.b32.xlu1 %v673_v21, %s8845_s27  ;;  %v15643_v21 = vld [vmem:[#allocation207_spill] sm:$0xff]  ;;  %v15645_v16 = vld [vmem:[#allocation220_spill] sm:$0xff]  ;;  %v2789_v39 = vsel %vm313_vm3, %v10341_v22, %v10339_v41  ;;  %v2790_v33 = vsel %vm313_vm3, %v10339_v41, %v10368_v32  ;;  %v2791_v61 = vsel %vm313_vm3, %v10368_v32, %v10366_v51 }
 0x2d5   :  { %v2237_v63 = vsel %vm255_vm2, %v15643_v21, %v15631_v12  ;;  %v2295_v38 = vsel %vm313_vm3, %v15645_v16, %v15644_v55  ;;  %v2297_v12 = vsel %vm313_vm3, %v15646_v2, %v15648_v10  ;;  %v2875_v62 = vmul.f32 %v10844_v43, %v15649_v1  ;;  %4374 = vmatpush1.bf16.msra.mxu0 %v8488_v36  ;;  %v15652_v55 = vld [vmem:[#allocation16_spill] sm:$0xff] }
 0x2d6   :  { %v11397_v60 = vpop.permute.xlu0 %1623  ;;  %v11399_v11 = vpop.permute.xlu1 %1625  ;;  %v2876_v2 = vmul.f32 %v10851_v46, %v15649_v1  ;;  %v2746_v23 = vadd.f32 %v2731_v40, %v2689_v5  ;;  %v2252_v41 = vadd.f32 %v2237_v63, %v2195_v48  ;;  %v2310_v45 = vadd.f32 %v2295_v38, %v2253_v17  ;;  %4375 = vmatprep.subr.bf16.mxu0 %v8489_v31  ;;  %v15680_v1 = vld [vmem:[#allocation101_spill] sm:$0xff] }
 0x2d7   :  { %15647 = vst [vmem:[#allocation162_spill] sm:$0xff] %v11399_v11  ;;  %v2311_v21 = vadd.f32 %v2296_v52, %v2254_v54  ;;  %v2788_v32 = vsel %vm313_vm3, %v10430_v18, %v10341_v22  ;;  %v2353_v5 = vsel %vm371_vm4, %v10522_v0, %v10551_v28  ;;  %v8491_v22 = vld [vmem:[%s14647_s5 + $0x30] ss:$8 sps:$4 sm:$0xff]   ;;  %v2312_v18 = vadd.f32 %v2297_v12, %v2255_v24  ;;  %v8492_v24 = vld [vmem:[%s14647_s5 + $0x44] ss:$8 sps:$4 sm:$0xff]  }
 0x2d8   :  { %2402 = vrot.lane.b32.xlu0 %v2381_v4, %s8842_s28  ;;  %2404 = vrot.lane.b32.xlu1 %v2382_v6, %s8842_s28  ;;  %v2294_v4 = vsel %vm313_vm3, %v10432_v59, %v15645_v16  ;;  %v2352_v6 = vsel %vm371_vm4, %v10524_v20, %v10522_v0  ;;  %v2804_v38 = vadd.f32 %v2789_v39, %v2747_v50  ;;  %v15651_v0 = vld [vmem:[#allocation15_spill] sm:$0xff]  ;;  %v15654_v39 = vld [vmem:[#allocation52_spill] sm:$0xff] }
 0x2d9   :  { %v2805_v59 = vadd.f32 %v2790_v33, %v2748_v26  ;;  %v2806_v54 = vadd.f32 %v2791_v61, %v2749_v19  ;;  %v2354_v40 = vsel %vm371_vm4, %v10551_v28, %v10549_v3  ;;  %v230_v63 = vmul.f32 %v15651_v0, %v11188_v30  ;;  %4376 = vmatpush1.bf16.msra.mxu0 %v8491_v22  ;;  %v15653_v19 = vld [vmem:[#allocation53_spill] sm:$0xff]  ;;  %v15655_v61 = vld [vmem:[#allocation64_spill] sm:$0xff] }
 0x2da   :  { %v11437_v48 = vpop.permute.xlu0 %1186  ;;  %v11439_v17 = vpop.permute.xlu1 %1188  ;;  %v730_v16 = vmul.f32 %v15652_v55, %v11188_v30  ;;  %v2803_v50 = vadd.f32 %v2788_v32, %v2746_v23  ;;  %v2309_v26 = vadd.f32 %v2294_v4, %v2252_v41  ;;  %v2367_v52 = vadd.f32 %v2352_v6, %v2310_v45  ;;  %4377 = vmatprep.subr.bf16.mxu0 %v8492_v24  ;;  %v8494_v23 = vld [vmem:[%s14647_s5 + $0x40] ss:$8 sps:$4 sm:$0xff]   ;;  %v8495_v0 = vld [vmem:[%s14647_s5 + $0x54] ss:$8 sps:$4 sm:$0xff]  }
 0x2db   :  { %15650 = vst [vmem:[#allocation167_spill] sm:$0xff] %v11439_v17  ;;  %v2368_v36 = vadd.f32 %v2353_v5, %v2311_v21  ;;  %v2846_v28 = vsel %vm371_vm4, %v10579_v27, %v10577_v7  ;;  %v2847_v12 = vsel %vm371_vm4, %v10577_v7, %v15653_v19  ;;  %v2848_v33 = vsel %vm371_vm4, %v15653_v19, %v15654_v39  ;;  %v15658_v7 = vld [vmem:[#allocation65_spill] sm:$0xff]  ;;  %v15660_v32 = vld [vmem:[#allocation75_spill] sm:$0xff] }
 0x2dc   :  { %2896 = vrot.lane.b32.xlu0 %v2875_v62, %s8842_s28  ;;  %2898 = vrot.lane.b32.xlu1 %v2876_v2, %s8842_s28  ;;  %v2845_v62 = vsel %vm371_vm4, %v15655_v61, %v10579_v27  ;;  %v2369_v41 = vadd.f32 %v2354_v40, %v2312_v18  ;;  %v2351_v45 = vsel %vm371_vm4, %v15658_v7, %v10524_v20  ;;  %v15659_v21 = vld [vmem:[#allocation73_spill] sm:$0xff]  ;;  %v15661_v6 = vld [vmem:[#allocation79_spill] sm:$0xff]  ;;  %v15663_v18 = vld [vmem:[#allocation198_spill] sm:$0xff]  ;;  %v11566_v17 = vstv %s11487_s18  ;;  %s8876_s18 = smov 32  }
 0x2dd   :  { %v2409_v4 = vsel %vm429_vm5, %v15660_v32, %v15659_v21  ;;  %v2410_v27 = vsel %vm429_vm5, %v15659_v21, %v15661_v6  ;;  %v15662_v5 = vld [vmem:[#allocation83_spill] sm:$0xff]  ;;  %v2438_v20 = vmul.f32 %v10844_v43, %v15663_v18  ;;  %v2439_v40 = vmul.f32 %v10851_v46, %v15663_v18  ;;  %4378 = vmatpush1.bf16.msra.mxu0 %v8494_v23 }
 0x2de   :  { %v11468_v2 = vpop.permute.xlu0 %1680  ;;  %v11470_v31 = vpop.permute.xlu1 %1682  ;;  %v2411_v22 = vsel %vm429_vm5, %v15661_v6, %v15662_v5  ;;  %v2861_v55 = vadd.f32 %v2846_v28, %v2804_v38  ;;  %v2862_v24 = vadd.f32 %v2847_v12, %v2805_v59  ;;  %v2863_v19 = vadd.f32 %v2848_v33, %v2806_v54  ;;  %v15665_v6 = vld [vmem:[#allocation85_spill] sm:$0xff]  ;;  %4379 = vmatprep.subr.bf16.mxu0 %v8495_v0  ;;  %v15668_v54 = vld [vmem:[#allocation80_spill] sm:$0xff]  ;;  %v15670_v28 = vld [vmem:[#allocation227_spill] sm:$0xff] }
 0x2df   :  { %15656 = vst [vmem:[#allocation168_spill] sm:$0xff] %v11468_v2  ;;  %15657 = vst [vmem:[#allocation163_spill] sm:$0xff] %v11470_v31  ;;  %v2860_v61 = vadd.f32 %v2845_v62, %v2803_v50  ;;  %v11498_v7 = vadd.f32 %v2351_v45, %v2309_v26  ;;  %v2425_v21 = vadd.f32 %v2410_v27, %v2368_v36  ;;  %v8497_v38 = vld [vmem:[%s14647_s5 + $0x50] ss:$8 sps:$4 sm:$0xff]   ;;  %v15669_v26 = vld [vmem:[#allocation203_spill] sm:$0xff] }
 0x2e0   :  { %253 = vrot.lane.b32.xlu0 %v230_v63, %s8846_s14  ;;  %753 = vrot.lane.b32.xlu1 %v730_v16, %s8846_s14  ;;  %v2424_v63 = vadd.f32 %v2409_v4, %v2367_v52  ;;  %v15664_v16 = vld [vmem:[#allocation84_spill] sm:$0xff]  ;;  %v2426_v59 = vadd.f32 %v2411_v22, %v2369_v41  ;;  %v2932_v52 = vmul.f32 %v10844_v43, %v15669_v26  ;;  %v15672_v62 = vld [vmem:[#allocation230_spill] sm:$0xff]  ;;  %v15673_v45 = vld [vmem:[#allocation231_spill] sm:$0xff] }
 0x2e1   :  { %v2903_v5 = vsel %vm429_vm5, %v15665_v6, %v15664_v16  ;;  %v2904_v50 = vsel %vm429_vm5, %v15664_v16, %v15668_v54  ;;  %v2933_v36 = vmul.f32 %v10851_v46, %v15669_v26  ;;  %v15671_v12 = vld [vmem:[#allocation228_spill] sm:$0xff]  ;;  %v2471_v23 = vsel %vm491_vm6, %v15670_v28, %v15672_v62  ;;  %v15675_v22 = vld [vmem:[#allocation77_spill] sm:$0xff]  ;;  %4380 = vmatpush1.bf16.msra.mxu0 %v8497_v38  ;;  %v15684_v38 = vld [vmem:[#allocation18_spill] sm:$0xff] }
 0x2e2   :  { %v11503_v39 = vpop.permute.xlu0 %1243  ;;  %v11505_v3 = vpop.permute.xlu1 %1245  ;;  %v2470_v33 = vsel %vm491_vm6, %v15671_v12, %v15670_v28  ;;  %v15674_v41 = vld [vmem:[#allocation232_spill] sm:$0xff]  ;;  %v2918_v27 = vadd.f32 %v2903_v5, %v2861_v55  ;;  %v2905_v0 = vsel %vm429_vm5, %v15668_v54, %v15675_v22  ;;  %v15676_v16 = vld [vmem:[#allocation229_spill] sm:$0xff]  ;;  %v15679_v5 = vld [vmem:[#allocation94_spill] sm:$0xff]  ;;  %15688 = vst [vmem:[#allocation191_spill] sm:$0xff] %v11566_v17 }
 0x2e3   :  { %15666 = vst [vmem:[#allocation170_spill] sm:$0xff] %v11503_v39  ;;  %15667 = vst [vmem:[#allocation189_spill] sm:$0xff] %v11505_v3  ;;  %v2964_v4 = vsel %vm491_vm6, %v15674_v41, %v15673_v45  ;;  %v2472_v51 = vsel %vm491_vm6, %v15672_v62, %v15676_v16  ;;  %v15677_v28 = vld [vmem:[#allocation17_spill] sm:$0xff]  ;;  %v8498_v26 = vld [vmem:[%s14647_s5 + $0x64] ss:$8 sps:$4 sm:$0xff]   ;;  %v2486_v3 = vadd.f32 %v2470_v33, %v2424_v63 }
 0x2e4   :  { %2461 = vrot.lane.b32.xlu0 %v2438_v20, %s8849_s23  ;;  %2463 = vrot.lane.b32.xlu1 %v2439_v40, %s8849_s23  ;;  %v288_v10 = vmul.f32 %v15677_v28, %v11188_v30  ;;  %v2919_v20 = vadd.f32 %v2904_v50, %v2862_v24  ;;  %v15678_v40 = vld [vmem:[#allocation99_spill] sm:$0xff]  ;;  %v15681_v54 = vld [vmem:[#allocation102_spill] sm:$0xff]  ;;  %v787_v28 = vmul.f32 %v15684_v38, %v11188_v30  ;;  %v15687_v2 = vld [vmem:[#allocation97_spill] sm:$0xff] }
 0x2e5   :  { %v2533_v55 = vsel %vm554_vm7, %v15679_v5, %v15678_v40  ;;  %v3026_v22 = vsel %vm554_vm7, %v15681_v54, %v15680_v1  ;;  %v8500_v16 = vld [vmem:[%s14647_s5 + $0x60] ss:$8 sps:$4 sm:$0xff]   ;;  %v15685_v24 = vld [vmem:[#allocation78_spill] sm:$0xff]  ;;  %v2487_v39 = vadd.f32 %v2471_v23, %v2425_v21  ;;  %v2980_v14 = vadd.f32 %v2964_v4, %v2918_v27  ;;  %4381 = vmatprep.subr.bf16.mxu0 %v8498_v26  ;;  %v15690_v21 = vld [vmem:[#allocation233_spill] sm:$0xff] }
 0x2e6   :  { %v11547_v18 = vpop.permute.xlu0 %1737  ;;  %v11549_v62 = vpop.permute.xlu1 %1739  ;;  %v2902_v50 = vsel %vm429_vm5, %v15685_v24, %v15665_v6  ;;  %v2488_v31 = vadd.f32 %v2472_v51, %v2426_v59  ;;  %v2534_v38 = vsel %vm554_vm7, %v15678_v40, %v15687_v2  ;;  %v15689_v6 = vld [vmem:[#allocation234_spill] sm:$0xff]  ;;  %4382 = vmatpush1.bf16.msra.mxu0 %v8500_v16  ;;  %v2920_v23 = vadd.f32 %v2905_v0, %v2863_v19  ;;  %v15693_v0 = vld [vmem:[#allocation104_spill] sm:$0xff]  ;;  %v15694_v16 = vld [vmem:[#allocation103_spill] sm:$0xff] }
 0x2e7   :  { %15682 = vst [vmem:[#allocation185_spill] sm:$0xff] %v11547_v18  ;;  %15683 = vst [vmem:[#allocation190_spill] sm:$0xff] %v11549_v62  ;;  %v15686_v18 = vld [vmem:[#allocation96_spill] sm:$0xff]  ;;  %v2965_v63 = vsel %vm491_vm6, %v15673_v45, %v15689_v6  ;;  %v2966_v51 = vsel %vm491_vm6, %v15689_v6, %v15690_v21  ;;  %v2549_v59 = vadd.f32 %v2533_v55, %v2487_v39  ;;  %v8501_v33 = vld [vmem:[%s14647_s5 + $0x74] ss:$8 sps:$4 sm:$0xff]   ;;  %v7667_v21 = vunpack.i.h.bf16 %v11298_v15 }
 0x2e8   :  { %v2532_v62 = vsel %vm554_vm7, %v15686_v18, %v15679_v5  ;;  %2955 = vrot.lane.b32.xlu0 %v2932_v52, %s8849_s23  ;;  %2957 = vrot.lane.b32.xlu1 %v2933_v36, %s8849_s23  ;;  %v3042_v26 = vadd.f32 %v3026_v22, %v2980_v14  ;;  %v15691_v52 = vld [vmem:[#allocation87_spill] sm:$0xff]  ;;  %v15692_v27 = vld [vmem:[#allocation214_spill] sm:$0xff]  ;;  %v2550_v19 = vadd.f32 %v2534_v38, %v2488_v31 }
 0x2e9   :  { %v2408_v36 = vsel %vm429_vm5, %v15691_v52, %v15660_v32  ;;  %v2500_v40 = vmul.f32 %v10844_v43, %v15692_v27  ;;  %v2501_v14 = vmul.f32 %v10851_v46, %v15692_v27  ;;  %v8503_v39 = vld [vmem:[%s14647_s5 + $0x70] ss:$8 sps:$4 sm:$0xff]   ;;  %v2548_v22 = vadd.f32 %v2532_v62, %v2486_v3  ;;  %4383 = vmatprep.subr.bf16.mxu0 %v8501_v33  ;;  %v15696_v3 = vld [vmem:[#allocation235_spill] sm:$0xff] }
 0x2ea   :  { %v11582_v4 = vpop.permute.xlu0 %1300  ;;  %v11584_v45 = vpop.permute.xlu1 %1302  ;;  %v3027_v32 = vsel %vm554_vm7, %v15680_v1, %v15693_v0  ;;  %v3028_v5 = vsel %vm554_vm7, %v15693_v0, %v15694_v16  ;;  %v2917_v55 = vadd.f32 %v2902_v50, %v2860_v61  ;;  %v2981_v24 = vadd.f32 %v2965_v63, %v2919_v20  ;;  %v15697_v1 = vld [vmem:[#allocation236_spill] sm:$0xff]  ;;  %4384 = vmatpush1.bf16.msra.mxu0 %v8503_v39 }
 0x2eb   :  { %v2982_v6 = vadd.f32 %v2966_v51, %v2920_v23  ;;  %v11600_v52 = vstv %s11526_s21  ;;  %v2963_v31 = vsel %vm491_vm6, %v15696_v3, %v15674_v41  ;;  %v2469_v62 = vsel %vm491_vm6, %v15697_v1, %v15671_v12  ;;  %v15700_v12 = vld [vmem:[#allocation221_spill] sm:$0xff]  ;;  %s8856_s21 = smov 14  }
 0x2ec   :  { %15695 = vst [vmem:[#allocation186_spill] sm:$0xff] %v11600_v52  ;;  %311 = vrot.lane.b32.xlu0 %v288_v10, %s8847_s17  ;;  %810 = vrot.lane.b32.xlu1 %v787_v28, %s8847_s17  ;;  %v11611_v38 = vadd.f32 %v11600_v52, %v2549_v59  ;;  %v11614_v61 = vadd.f32 %v11566_v17, %v3042_v26  ;;  %v8504_v10 = vld [vmem:[%s14647_s5 + $0x84] ss:$8 sps:$4 sm:$0xff]   ;;  %v8506_v59 = vld [vmem:[%s14647_s5 + $0x80] ss:$8 sps:$4 sm:$0xff]  }
 0x2ed   :  { %v2423_v20 = vadd.f32 %v2408_v36, %v11498_v7  ;;  %v3043_v28 = vadd.f32 %v3027_v32, %v2981_v24  ;;  %v3044_v50 = vadd.f32 %v3028_v5, %v2982_v6  ;;  %v2994_v51 = vmul.f32 %v10844_v43, %v15700_v12  ;;  %v15703_v7 = vld [vmem:[#allocation107_spill] sm:$0xff]  ;;  %v15704_v36 = vld [vmem:[#allocation108_spill] sm:$0xff]  ;;  %4385 = vmatprep.subr.bf16.mxu0 %v8504_v10  ;;  %v8509_v1 = vld [vmem:[%s14647_s5 + $0x90] ss:$8 sps:$4 sm:$0xff]  }
 0x2ee   :  { %15698 = vst [vmem:[#allocation193_spill] sm:$0xff] %v11611_v38  ;;  %15699 = vst [vmem:[#allocation211_spill] sm:$0xff] %v11614_v61  ;;  %v11620_v41 = vpop.permute.xlu0 %1794  ;;  %v11622_v63 = vpop.permute.xlu1 %1796  ;;  %v11630_v26 = vadd.f32 %v11600_v52, %v2548_v22  ;;  %v11633_v33 = vadd.f32 %v11600_v52, %v2550_v19  ;;  %v3025_v23 = vsel %vm554_vm7, %v15703_v7, %v15681_v54  ;;  %v11648_v19 = vld [vmem:[%s14642_s0 + $0x20] sm:$0xff]  ;;  %v15705_v54 = vld [vmem:[#allocation217_spill] sm:$0xff]  ;;  %4386 = vmatpush1.bf16.msra.mxu0 %v8506_v59 }
 0x2ef   :  { %v2531_v39 = vsel %vm554_vm7, %v15704_v36, %v15686_v18  ;;  %v2979_v0 = vadd.f32 %v2963_v31, %v2917_v55  ;;  %v2485_v32 = vadd.f32 %v2469_v62, %v2423_v20  ;;  %v2995_v22 = vmul.f32 %v10851_v46, %v15700_v12  ;;  %v15708_v10 = vld [vmem:[#allocation218_spill] sm:$0xff]  ;;  %v15709_v59 = vld [vmem:[#allocation40_spill] sm:$0xff]  ;;  %v15711_v36 = vld [vmem:[#allocation39_spill] sm:$0xff] }
 0x2f0   :  { %15701 = vst [vmem:[#allocation208_spill] sm:$0xff] %v11630_v26  ;;  %15702 = vst [vmem:[#allocation212_spill] sm:$0xff] %v11633_v33  ;;  %2523 = vrot.lane.b32.xlu0 %v2500_v40, %s8850_s26  ;;  %2525 = vrot.lane.b32.xlu1 %v2501_v14, %s8850_s26  ;;  %v101_v5 = vmul.f32 %v11648_v19, %v15705_v54  ;;  %v8507_v40 = vld [vmem:[%s14647_s5 + $0x94] ss:$8 sps:$4 sm:$0xff]   ;;  %v11658_v14 = vadd.f32 %v11566_v17, %v3043_v28  ;;  %v15022_v28 = vmax.f32 %v11630_v26, 0.0  ;;  %v15710_v7 = vld [vmem:[#allocation24_spill] sm:$0xff] }
 0x2f1   :  { %v11661_v46 = vadd.f32 %v11566_v17, %v3044_v50  ;;  %v3041_v24 = vadd.f32 %v3025_v23, %v2979_v0  ;;  %v2547_v6 = vadd.f32 %v2531_v39, %v2485_v32  ;;  %v102_v62 = vmul.f32 %v10844_v43, %v15705_v54  ;;  %4387 = vmatprep.subr.bf16.mxu0 %v8507_v40  ;;  %v15712_v0 = vld [vmem:[#allocation43_spill] sm:$0xff]  ;;  %v15713_v32 = vld [vmem:[#allocation26_spill] sm:$0xff]  ;;  %v15714_v40 = vld [vmem:[#allocation41_spill] sm:$0xff] }
 0x2f2   :  { %15706 = vst [vmem:[#allocation213_spill] sm:$0xff] %v11658_v14  ;;  %v11663_v3 = vpop.permute.xlu0 %1357  ;;  %v11665_v31 = vpop.permute.xlu1 %1359  ;;  %v603_v20 = vmul.f32 %v11648_v19, %v15708_v10  ;;  %v144_v23 = vsel %vm139_vm0, %v15710_v7, %v15709_v59  ;;  %v145_v39 = vsel %vm139_vm0, %v15709_v59, %v15711_v36  ;;  %v645_v55 = vsel %vm139_vm0, %v15713_v32, %v15712_v0  ;;  %v15735_v26 = vld [vmem:[#allocation225_spill] sm:$0xff] }
 0x2f3   :  { %15707 = vst [vmem:[#allocation209_spill] sm:$0xff] %v11661_v46  ;;  %v604_v50 = vmul.f32 %v10844_v43, %v15708_v10  ;;  %v646_v18 = vsel %vm139_vm0, %v15712_v0, %v15714_v40  ;;  %v15715_v7 = vmax.f32 %v11611_v38, 0.0  ;;  %v15716_v36 = vmax.f32 %v11633_v33, 0.0  ;;  %4388 = vmatpush1.bf16.msra.mxu0 %v8509_v1  ;;  %v8512_v1 = vld [vmem:[%s14647_s5 + $0xa0] ss:$8 sps:$4 sm:$0xff]  }
 0x2f4   :  { %3017 = vrot.lane.b32.xlu0 %v2994_v51, %s8850_s26  ;;  %3019 = vrot.lane.b32.xlu1 %v2995_v22, %s8850_s26  ;;  %v15717_v32 = vmax.f32 %v11614_v61, 0.0  ;;  %v8510_v51 = vld [vmem:[%s14647_s5 + $0xa4] ss:$8 sps:$4 sm:$0xff]   ;;  %v11706_v0 = vadd.f32 %v11566_v17, %v3041_v24  ;;  %v11709_v40 = vadd.f32 %v11600_v52, %v2547_v6  ;;  %v660_v33 = vadd.f32 %v645_v55, %v603_v20  ;;  %v15725_v20 = vld [vmem:[#allocation30_spill] sm:$0xff] }
 0x2f5   :  { %v7703_v59 = vpack.i.bf16 %v15715_v7, %v15022_v28  ;;  %4389 = vmatprep.subr.bf16.mxu0 %v8510_v51  ;;  %v15720_v43 = vld [vmem:[#allocation68_spill] sm:$0xff]  ;;  %v15722_v17 = vld [vmem:[#allocation67_spill] sm:$0xff]  ;;  %v661_v55 = vadd.f32 %v646_v18, %v604_v50  ;;  %v15731_v38 = vmax.f32 %v11658_v14, 0.0 }
 0x2f6   :  { %v7708_v54 = vpack.i.bf16 %v15717_v32, %v15716_v36  ;;  %15718 = vst [vmem:[#allocation216_spill] sm:$0xff] %v11706_v0  ;;  %15719 = vst [vmem:[#allocation136_spill] sm:$0xff] %v11709_v40  ;;  %v11711_v7 = vpop.permute.xlu0 %1851  ;;  %v11713_v28 = vpop.permute.xlu1 %1853  ;;  %v159_v36 = vadd.f32 %v144_v23, %v101_v5  ;;  %v160_v32 = vadd.f32 %v145_v39, %v102_v62  ;;  %v15721_v22 = vld [vmem:[#allocation28_spill] sm:$0xff]  ;;  %v15723_v10 = vld [vmem:[#allocation19_spill] sm:$0xff] }
 0x2f7   :  { %v202_v24 = vsel %vm197_vm1, %v15721_v22, %v15720_v43  ;;  %v203_v6 = vsel %vm197_vm1, %v15720_v43, %v15722_v17  ;;  %v346_v61 = vmul.f32 %v15723_v10, %v11188_v30  ;;  %v8513_v5 = vld [vmem:[%s14647_s5 + $0xb4] ss:$8 sps:$4 sm:$0xff]   ;;  %v15724_v62 = vld [vmem:[#allocation72_spill] sm:$0xff]  ;;  %4390 = vmatpush1.bf16.msra.mxu0 %v8512_v1  ;;  %v8515_v1 = vld [vmem:[%s14647_s5 + $0xb0] ss:$8 sps:$4 sm:$0xff]  }
 0x2f8   :  { %7704 = vrot.lane.b32.xlu0 %v7703_v59, %s8844_s22  ;;  %7709 = vrot.lane.b32.xlu1 %v7708_v54, %s8844_s22  ;;  %v702_v23 = vsel %vm197_vm1, %v15725_v20, %v15724_v62  ;;  %v15726_v39 = vld [vmem:[#allocation70_spill] sm:$0xff]  ;;  %v15727_v43 = vld [vmem:[#allocation89_spill] sm:$0xff]  ;;  %v15728_v59 = vld [vmem:[#allocation32_spill] sm:$0xff] }
 0x2f9   :  { %v703_v51 = vsel %vm197_vm1, %v15724_v62, %v15726_v39  ;;  %v260_v54 = vsel %vm255_vm2, %v15728_v59, %v15727_v43  ;;  %v15729_v22 = vld [vmem:[#allocation88_spill] sm:$0xff]  ;;  %v15732_v62 = vmax.f32 %v11661_v46, 0.0  ;;  %4391 = vmatprep.subr.bf16.mxu0 %v8513_v5  ;;  %v217_v59 = vadd.f32 %v202_v24, %v159_v36  ;;  %v15734_v17 = vld [vmem:[#allocation34_spill] sm:$0xff]  ;;  %v11769_v36 = vld [vmem:[%s14642_s0 + $0x40] sm:$0xff] }
 0x2fa   :  { %v261_v10 = vsel %vm255_vm2, %v15727_v43, %v15729_v22  ;;  %v11745_v50 = vpop.permute.xlu0 %2117  ;;  %v11747_v20 = vpop.permute.xlu1 %2119  ;;  %v218_v43 = vadd.f32 %v203_v6, %v160_v32  ;;  %v15733_v22 = vld [vmem:[#allocation226_spill] sm:$0xff]  ;;  %v717_v16 = vadd.f32 %v702_v23, %v660_v33  ;;  %v718_v14 = vadd.f32 %v703_v51, %v661_v55  ;;  %v15737_v33 = vld [vmem:[#allocation239_spill] sm:$0xff]  ;;  %v15738_v6 = vld [vmem:[#allocation36_spill] sm:$0xff] }
 0x2fb   :  { %15730 = vst [vmem:[#allocation137_spill] sm:$0xff] %v11747_v20  ;;  %v7713_v39 = vpack.i.bf16 %v15732_v62, %v15731_v38  ;;  %v759_v18 = vsel %vm255_vm2, %v15734_v17, %v15733_v22  ;;  %v760_v52 = vsel %vm255_vm2, %v15733_v22, %v15735_v26  ;;  %v15736_v38 = vld [vmem:[#allocation20_spill] sm:$0xff]  ;;  %v275_v32 = vadd.f32 %v260_v54, %v217_v59  ;;  %v15739_v23 = vld [vmem:[#allocation238_spill] sm:$0xff] }
 0x2fc   :  { %369 = vrot.lane.b32.xlu1 %v346_v61, %s8848_s2  ;;  %v844_v5 = vmul.f32 %v15736_v38, %v11188_v30  ;;  %v8516_v17 = vld [vmem:[%s14647_s5 + $0xc4] ss:$8 sps:$4 sm:$0xff]   ;;  %v276_v24 = vadd.f32 %v261_v10, %v218_v43  ;;  %v318_v55 = vsel %vm313_vm3, %v15738_v6, %v15737_v33  ;;  %v319_v61 = vsel %vm313_vm3, %v15737_v33, %v15739_v23  ;;  %v15741_v62 = vld [vmem:[#allocation38_spill] sm:$0xff] }
 0x2fd   :  { %7714 = vrot.lane.b32.xlu0 %v7713_v39, %s8844_s22  ;;  %4392 = vmatpush1.bf16.msra.mxu0 %v8515_v1  ;;  %v774_v39 = vadd.f32 %v759_v18, %v717_v16  ;;  %v775_v51 = vadd.f32 %v760_v52, %v718_v14  ;;  %v15740_v22 = vld [vmem:[#allocation92_spill] sm:$0xff]  ;;  %v15742_v46 = vmax.f32 %v11709_v40, 0.0  ;;  %v15743_v54 = vmax.f32 %v11706_v0, 0.0  ;;  %v15745_v16 = vld [vmem:[#allocation21_spill] sm:$0xff]  ;;  %v15746_v14 = vld [vmem:[#allocation22_spill] sm:$0xff] }
 0x2fe   :  { %v816_v38 = vsel %vm313_vm3, %v15741_v62, %v15740_v22  ;;  %v11787_v59 = vpop.permute.xlu0 %2611  ;;  %v11789_v43 = vpop.permute.xlu1 %2613  ;;  %4393 = vmatprep.subr.bf16.mxu0 %v8516_v17  ;;  %v8518_v1 = vld [vmem:[%s14647_s5 + $0xc0] ss:$8 sps:$4 sm:$0xff]   ;;  %v404_v52 = vmul.f32 %v15745_v16, %v11188_v30  ;;  %v901_v18 = vmul.f32 %v15746_v14, %v11188_v30  ;;  %v333_v62 = vadd.f32 %v318_v55, %v275_v32  ;;  %v15748_v17 = vld [vmem:[#allocation25_spill] sm:$0xff] }
 0x2ff   :  { %v7718_v10 = vpack.i.bf16 %v15743_v54, %v15742_v46  ;;  %15744 = vst [vmem:[#allocation158_spill] sm:$0xff] %v11789_v43  ;;  %v15747_v33 = vld [vmem:[#allocation23_spill] sm:$0xff]  ;;  %v334_v54 = vadd.f32 %v319_v61, %v276_v24  ;;  %v11806_v23 = vmul.f32 %v15748_v17, %v11188_v30  ;;  %v8519_v16 = vld [vmem:[%s14647_s5 + $0xd4] ss:$8 sps:$4 sm:$0xff]   ;;  %v831_v0 = vadd.f32 %v816_v38, %v774_v39 }
 0x300   :  { %v462_v6 = vmul.f32 %v15747_v33, %v11188_v30  ;;  %v463_v46 = vmul.f32 %v15747_v33, %v11769_v36  ;;  %v15749_v14 = vld [vmem:[#allocation91_spill] sm:$0xff]  ;;  %v15751_v32 = vld [vmem:[#allocation45_spill] sm:$0xff] }
 0x301   :  { %867 = vrot.lane.b32.xlu0 %v844_v5, %s8848_s2  ;;  %7719 = vrot.lane.b32.xlu1 %v7718_v10, %s8844_s22  ;;  %v817_v26 = vsel %vm313_vm3, %v15740_v22, %v15749_v14  ;;  %v15750_v33 = vld [vmem:[#allocation111_spill] sm:$0xff]  ;;  %v15752_v5 = vld [vmem:[#allocation109_spill] sm:$0xff]  ;;  %v15754_v10 = vld [vmem:[#allocation50_spill] sm:$0xff]  ;;  %v7666_v22 = vunpack.i.l.bf16 %v11298_v15  ;;  %v7676_v15 = vunpack.i.l.bf16 %v11326_v9 }
 0x302   :  { %v376_v24 = vsel %vm371_vm4, %v15751_v32, %v15750_v33  ;;  %v377_v55 = vsel %vm371_vm4, %v15750_v33, %v15752_v5  ;;  %4394 = vmatpush1.bf16.msra.mxu0 %v8518_v1  ;;  %v15753_v61 = vld [vmem:[#allocation115_spill] sm:$0xff]  ;;  %v11826_v39 = vpop.permute.xlu0 %1414  ;;  %v11828_v38 = vpop.permute.xlu1 %1416  ;;  %v8521_v33 = vld [vmem:[%s14647_s5 + $0xd0] ss:$8 sps:$4 sm:$0xff]   ;;  %v15757_v1 = vld [vmem:[#allocation112_spill] sm:$0xff]  ;;  %v832_v14 = vadd.f32 %v817_v26, %v775_v51  ;;  %v7672_v26 = vunpack.i.h.bf16 %v11296_v47 }
 0x303   :  { %v873_v40 = vsel %vm371_vm4, %v15754_v10, %v15753_v61  ;;  %15755 = vst [vmem:[#allocation159_spill] sm:$0xff] %v11826_v39  ;;  %15756 = vst [vmem:[#allocation180_spill] sm:$0xff] %v11828_v38  ;;  %4395 = vmatprep.subr.bf16.mxu0 %v8519_v16  ;;  %v874_v32 = vsel %vm371_vm4, %v15753_v61, %v15757_v1  ;;  %v15758_v10 = vld [vmem:[#allocation57_spill] sm:$0xff]  ;;  %v391_v39 = vadd.f32 %v376_v24, %v333_v62  ;;  %v8522_v61 = vld [vmem:[%s14647_s5 + $0xe4] ss:$8 sps:$4 sm:$0xff]  }
 0x304   :  { %v434_v2 = vsel %vm429_vm5, %v15758_v10, %v11097_v25  ;;  %v959_v16 = vmul.f32 %v15748_v17, %v11769_v36  ;;  %v392_v1 = vadd.f32 %v377_v55, %v334_v54  ;;  %v888_v38 = vadd.f32 %v873_v40, %v831_v0  ;;  %v15761_v55 = vld [vmem:[#allocation69_spill] sm:$0xff] }
 0x305   :  { %427 = vrot.lane.b32.xlu0 %v404_v52, %s8842_s28  ;;  %924 = vrot.lane.b32.xlu1 %v901_v18, %s8842_s28  ;;  %v435_v10 = vsel %vm429_vm5, %v11097_v25, %v11095_v49  ;;  %v889_v51 = vadd.f32 %v874_v32, %v832_v14  ;;  %v449_v52 = vadd.f32 %v434_v2, %v391_v39  ;;  %v15759_v18 = vunpack.i.l.bf16 %v11296_v47  ;;  %v8524_v25 = vld [vmem:[%s14647_s5 + $0xe0] ss:$8 sps:$4 sm:$0xff]   ;;  %v15762_v32 = vld [vmem:[#allocation62_spill] sm:$0xff] }
 0x306   :  { %4396 = vmatpush1.bf16.msra.mxu0 %v8521_v33  ;;  %v3212_v17 = vsel %vm139_vm0, %v7666_v22, %v7667_v21  ;;  %v11856_v24 = vpop.permute.xlu0 %1908  ;;  %v11858_v5 = vpop.permute.xlu1 %1910  ;;  %v3219_v40 = vsel %vm139_vm0, %v7672_v26, %v7676_v15  ;;  %v15760_v0 = vunpack.i.h.bf16 %v11326_v9  ;;  %v7682_v54 = vunpack.i.h.bf16 %v11328_v57  ;;  %v15773_v47 = vld [vmem:[#allocation58_spill] sm:$0xff] }
 0x307   :  { %v3213_v62 = vsel %vm139_vm0, %v7667_v21, %v15759_v18  ;;  %4397 = vmatprep.subr.bf16.mxu0 %v8522_v61  ;;  %v7681_v14 = vunpack.i.l.bf16 %v11328_v57  ;;  %v450_v21 = vadd.f32 %v435_v10, %v392_v1  ;;  %v496_v39 = vsel %vm491_vm6, %v15761_v55, %v11171_v34  ;;  %v15763_v1 = vld [vmem:[#allocation82_spill] sm:$0xff] }
 0x308   :  { %v3220_v2 = vsel %vm139_vm0, %v7676_v15, %v15760_v0  ;;  %v497_v33 = vsel %vm491_vm6, %v11171_v34, %v11169_v44  ;;  %v930_v15 = vsel %vm429_vm5, %v15762_v32, %v11132_v53  ;;  %v931_v57 = vsel %vm429_vm5, %v11132_v53, %v11130_v29  ;;  %v15767_v0 = vld [vmem:[#allocation55_spill] sm:$0xff]  ;;  %v8782_v44 = vld [vmem:[%s14642_s0 + $0x28] sm:$0xff] }
 0x309   :  { %487 = vrot.lane.b32.xlu0 %v462_v6, %s8849_s23  ;;  %489 = vrot.lane.b32.xlu1 %v463_v46, %s8849_s23  ;;  %v559_v61 = vsel %vm554_vm7, %v15763_v1, %v11219_v56  ;;  %v560_v34 = vsel %vm554_vm7, %v11219_v56, %v11217_v42  ;;  %v8525_v6 = vld [vmem:[%s14647_s5 + $0xf4] ss:$8 sps:$4 sm:$0xff]   ;;  %v15768_v55 = vmax.f32 %v15767_v0, 0.0  ;;  %v15770_v32 = vld [vmem:[#allocation51_spill] sm:$0xff]  ;;  %v15774_v29 = vmax.f32 %v15773_v47, 0.0 }
 0x30a   :  { %4398 = vmatpush1.bf16.msra.mxu0 %v8524_v25  ;;  %v15764_v46 = vld [vmem:[#allocation49_spill] sm:$0xff]  ;;  %v15771_v9 = vmax.f32 %v15770_v32, 0.0  ;;  %v11908_v25 = vpop.permute.xlu0 %2174  ;;  %v11910_v42 = vpop.permute.xlu1 %2176  ;;  %v3211_v0 = vsel %vm139_vm0, %v7681_v14, %v7666_v22  ;;  %v15777_v47 = vld [vmem:[#allocation74_spill] sm:$0xff] }
 0x30b   :  { %v15765_v10 = vmax.f32 %v15764_v46, 0.0  ;;  %v11898_v53 = vmax.f32 %v15768_v55, %v3212_v17  ;;  %v11906_v56 = vmax.f32 %v15774_v29, %v3220_v2  ;;  %15776 = vst [vmem:[#allocation12_spill] sm:$0xff] %v11910_v42  ;;  %v512_v46 = vadd.f32 %v496_v39, %v449_v52  ;;  %4399 = vmatprep.subr.bf16.mxu0 %v8525_v6  ;;  %v15778_v22 = vld [vmem:[#allocation61_spill] sm:$0xff]  ;;  %v15787_v55 = vld [vmem:[#allocation27_spill] sm:$0xff] }
 0x30c   :  { %v11902_v1 = vmax.f32 %v15771_v9, %v3219_v40  ;;  %v3218_v17 = vsel %vm139_vm0, %v7682_v54, %v7672_v26  ;;  %v945_v9 = vadd.f32 %v930_v15, %v888_v38  ;;  %v946_v40 = vadd.f32 %v931_v57, %v889_v51  ;;  %v15781_v51 = vld [vmem:[#allocation63_spill] sm:$0xff]  ;;  %v15786_v57 = vld [vmem:[#allocation144_spill] sm:$0xff] }
 0x30d   :  { %v11894_v18 = vmax.f32 %v15765_v10, %v3213_v62  ;;  %15769 = vst [vmem:[#allocation204_spill] sm:$0xff] %v11898_v53  ;;  %15775 = vst [vmem:[#allocation11_spill] sm:$0xff] %v11906_v56  ;;  %v8527_v62 = vld [vmem:[%s14647_s5 + $0xf0] ss:$8 sps:$4 sm:$0xff]   ;;  %v513_v10 = vadd.f32 %v497_v33, %v450_v21  ;;  %983 = vrot.lane.b32.xlu0 %v11806_v23, %s8849_s23  ;;  %985 = vrot.lane.b32.xlu1 %v959_v16, %s8849_s23  ;;  %v15779_v54 = vmax.f32 %v15778_v22, 0.0 }
 0x30e   :  { %15772 = vst [vmem:[#allocation205_spill] sm:$0xff] %v11902_v1  ;;  %v991_v29 = vsel %vm491_vm6, %v15777_v47, %v11194_v8  ;;  %v992_v52 = vsel %vm491_vm6, %v11194_v8, %v11192_v37  ;;  %v575_v2 = vadd.f32 %v559_v61, %v512_v46  ;;  %4400 = vmatpush1.bf16.msra.mxu0 %v8527_v62  ;;  %v15782_v14 = vmax.f32 %v15781_v51, 0.0  ;;  %v11934_v16 = vpop.permute.xlu0 %2668  ;;  %v11936_v21 = vpop.permute.xlu1 %2670  ;;  %v15785_v33 = vld [vmem:[#allocation86_spill] sm:$0xff]  ;;  %v15788_v62 = vld [vmem:[#allocation48_spill] sm:$0xff] }
 0x30f   :  { %15766 = vst [vmem:[#allocation181_spill] sm:$0xff] %v11894_v18  ;;  %v576_v26 = vadd.f32 %v560_v34, %v513_v10  ;;  %v11928_v38 = vmax.f32 %v15779_v54, %v3218_v17  ;;  %15784 = vst [vmem:[#allocation152_spill] sm:$0xff] %v11936_v21  ;;  %v7723_v39 = vpack.i.bf16 %v11894_v18, %v11898_v53  ;;  %v15792_v22 = vld [vmem:[#allocation46_spill] sm:$0xff] }
 0x310   :  { %v11932_v23 = vmax.f32 %v15782_v14, %v3211_v0  ;;  %v7728_v8 = vpack.i.bf16 %v11906_v56, %v11902_v1  ;;  %v1053_v15 = vsel %vm554_vm7, %v15785_v33, %v11256_v35  ;;  %v1054_v61 = vsel %vm554_vm7, %v11256_v35, %v15786_v57  ;;  %v15831_v1 = vld [vmem:[#allocation240_spill] sm:$0xff] }
 0x311   :  { %15780 = vst [vmem:[#allocation149_spill] sm:$0xff] %v11928_v38  ;;  %v1007_v34 = vadd.f32 %v991_v29, %v945_v9  ;;  %v1008_v6 = vadd.f32 %v992_v52, %v946_v40  ;;  %7724 = vrot.lane.b32.xlu0 %v7723_v39, %s8846_s14  ;;  %v525_v32 = vmul.f32 %v15787_v55, %v11188_v30  ;;  %v15791_v40 = vld [vmem:[#allocation29_spill] sm:$0xff] }
 0x312   :  { %15783 = vst [vmem:[#allocation150_spill] sm:$0xff] %v11932_v23  ;;  %7729 = vrot.lane.b32.xlu1 %v7728_v8, %s8846_s14  ;;  %v11953_v46 = vadd.f32 %v15788_v62, %v575_v2  ;;  %v11956_v10 = vadd.f32 %v15788_v62, %v576_v26  ;;  %v11958_v47 = vpop.permute.xlu0 %1473  ;;  %v11960_v35 = vpop.permute.xlu1 %1475  ;;  %v7733_v9 = vpack.i.bf16 %v11928_v38, %v11932_v23  ;;  %v15829_v23 = vld [vmem:[#allocation237_spill] sm:$0xff] }
 0x313   :  { %v1069_v17 = vadd.f32 %v1053_v15, %v1007_v34  ;;  %v1070_v0 = vadd.f32 %v1054_v61, %v1008_v6  ;;  %v1020_v29 = vmul.f32 %v15791_v40, %v11188_v30  ;;  %v526_v52 = vmul.f32 %v15787_v55, %v11769_v36  ;;  %v15796_v55 = vld [vmem:[#allocation31_spill] sm:$0xff] }
 0x314   :  { %15789 = vst [vmem:[#allocation154_spill] sm:$0xff] %v11953_v46  ;;  %15790 = vst [vmem:[#allocation155_spill] sm:$0xff] %v11956_v10  ;;  %v15045_v2 = vmax.f32 %v11953_v46, 0.0  ;;  %v15043_v26 = vmax.f32 %v11956_v10, 0.0  ;;  %v1021_v8 = vmul.f32 %v15791_v40, %v11769_v36  ;;  %v15799_v40 = vld [vmem:[#allocation35_spill] sm:$0xff]  ;;  %v1591_v53 = vmul.f32 %v11648_v19, %v15831_v1 }
 0x315   :  { %7734 = vrot.lane.b32.xlu0 %v7733_v9, %s8846_s14  ;;  %v11973_v54 = vadd.f32 %v15792_v22, %v1069_v17  ;;  %v11976_v51 = vadd.f32 %v15792_v22, %v1070_v0  ;;  %v15822_v46 = vld [vmem:[#allocation95_spill] sm:$0xff] }
 0x316   :  { %550 = vrot.lane.b32.xlu1 %v525_v32, %s8850_s26  ;;  %v11978_v14 = vpop.permute.xlu0 %1967  ;;  %v11980_v39 = vpop.permute.xlu1 %1969  ;;  %v7738_v6 = vpack.i.bf16 %v15043_v26, %v15045_v2  ;;  %v1110_v32 = vmul.f32 %v15796_v55, %v11188_v30 }
 0x317   :  { %15793 = vst [vmem:[#allocation157_spill] sm:$0xff] %v11973_v54  ;;  %15794 = vst [vmem:[#allocation160_spill] sm:$0xff] %v11976_v51  ;;  %v15044_v33 = vmax.f32 %v11973_v54, 0.0  ;;  %v15042_v15 = vmax.f32 %v11976_v51, 0.0 }
 0x319   :  { %552 = vrot.lane.b32.xlu0 %v526_v52, %s8850_s26  ;;  %v7743_v9 = vpack.i.bf16 %v15042_v15, %v15044_v33  ;;  %v15800_v52 = vld [vmem:[#allocation33_spill] sm:$0xff]  ;;  %v15802_v15 = vld [vmem:[#allocation42_spill] sm:$0xff] }
 0x31a   :  { %1045 = vrot.lane.b32.xlu1 %v1020_v29, %s8850_s26  ;;  %v11988_v61 = vpop.permute.xlu0 %2231  ;;  %v11990_v34 = vpop.permute.xlu1 %2233  ;;  %v1167_v29 = vmul.f32 %v15799_v40, %v11188_v30  ;;  %v1224_v26 = vmul.f32 %v15802_v15, %v11188_v30 }
 0x31b   :  { %15795 = vst [vmem:[#allocation161_spill] sm:$0xff] %v11990_v34 }
 0x31d   :  { %1047 = vrot.lane.b32.xlu0 %v1021_v8, %s8850_s26  ;;  %v1604_v8 = vmul.f32 %v15800_v52, %v11188_v30  ;;  %v15806_v52 = vld [vmem:[#allocation54_spill] sm:$0xff] }
 0x31e   :  { %7739 = vrot.lane.b32.xlu1 %v7738_v6, %s8844_s22  ;;  %v12000_v17 = vpop.permute.xlu0 %2725  ;;  %v12002_v0 = vpop.permute.xlu1 %2727  ;;  %v1281_v2 = vmul.f32 %v15806_v52, %v11188_v30 }
 0x31f   :  { %15797 = vst [vmem:[#allocation172_spill] sm:$0xff] %v12000_v17  ;;  %15798 = vst [vmem:[#allocation173_spill] sm:$0xff] %v12002_v0  ;;  %v15849_v17 = vld [vmem:[#allocation110_spill] sm:$0xff] }
 0x321   :  { %7744 = vrot.lane.b32.xlu0 %v7743_v9, %s8844_s22 }
 0x322   :  { %1133 = vrot.lane.b32.xlu1 %v1110_v32, %s8844_s22  ;;  %v12014_v6 = vpop.permute.xlu0 %1535  ;;  %v12016_v55 = vpop.permute.xlu1 %1537  ;;  %v15803_v32 = vld [vmem:[#allocation37_spill] sm:$0xff] }
 0x323   :  { %15801 = vst [vmem:[#allocation175_spill] sm:$0xff] %v12016_v55  ;;  %v1661_v9 = vmul.f32 %v15803_v32, %v11188_v30  ;;  %v15810_v32 = vld [vmem:[#allocation66_spill] sm:$0xff]  ;;  %v15851_v55 = vld [vmem:[#allocation153_spill] sm:$0xff] }
 0x324   :  { %v1338_v56 = vmul.f32 %v15810_v32, %v11188_v30 }
 0x325   :  { %1627 = vrot.lane.b32.xlu0 %v1604_v8, %s8844_s22 }
 0x326   :  { %1190 = vrot.lane.b32.xlu1 %v1167_v29, %s8845_s27  ;;  %v12024_v33 = vpop.permute.xlu0 %2029  ;;  %v12026_v40 = vpop.permute.xlu1 %2031  ;;  %v15807_v29 = vld [vmem:[#allocation47_spill] sm:$0xff] }
 0x327   :  { %15804 = vst [vmem:[#allocation176_spill] sm:$0xff] %v12024_v33  ;;  %15805 = vst [vmem:[#allocation177_spill] sm:$0xff] %v12026_v40  ;;  %v1718_v8 = vmul.f32 %v15807_v29, %v11188_v30  ;;  %v15814_v29 = vld [vmem:[#allocation76_spill] sm:$0xff]  ;;  %v15844_v33 = vld [vmem:[#allocation167_spill] sm:$0xff] }
 0x328   :  { %v2098_v18 = vmul.f32 %v15814_v29, %v11188_v30  ;;  %v15818_v29 = vld [vmem:[#allocation81_spill] sm:$0xff] }
 0x329   :  { %1684 = vrot.lane.b32.xlu0 %v1661_v9, %s8845_s27 }
 0x32a   :  { %1247 = vrot.lane.b32.xlu1 %v1224_v26, %s8846_s14  ;;  %v12034_v51 = vpop.permute.xlu0 %2288  ;;  %v12036_v15 = vpop.permute.xlu1 %2290  ;;  %v15811_v26 = vld [vmem:[#allocation59_spill] sm:$0xff] }
 0x32b   :  { %15808 = vst [vmem:[#allocation179_spill] sm:$0xff] %v12034_v51  ;;  %15809 = vst [vmem:[#allocation183_spill] sm:$0xff] %v12036_v15  ;;  %v1775_v9 = vmul.f32 %v15811_v26, %v11188_v30  ;;  %v15817_v26 = vld [vmem:[#allocation90_spill] sm:$0xff]  ;;  %v15839_v51 = vld [vmem:[#allocation129_spill] sm:$0xff] }
 0x32c   :  { %v15838_v15 = vld [vmem:[#allocation138_spill] sm:$0xff] }
 0x32d   :  { %1741 = vrot.lane.b32.xlu0 %v1718_v8, %s8846_s14 }
 0x32e   :  { %1304 = vrot.lane.b32.xlu1 %v1281_v2, %s8847_s17  ;;  %v12044_v10 = vpop.permute.xlu0 %2782  ;;  %v12046_v52 = vpop.permute.xlu1 %2784  ;;  %v15815_v2 = vld [vmem:[#allocation71_spill] sm:$0xff] }
 0x32f   :  { %15812 = vst [vmem:[#allocation184_spill] sm:$0xff] %v12044_v10  ;;  %15813 = vst [vmem:[#allocation194_spill] sm:$0xff] %v12046_v52  ;;  %v1832_v8 = vmul.f32 %v15815_v2, %v11188_v30  ;;  %v15837_v52 = vld [vmem:[#allocation124_spill] sm:$0xff] }
 0x331   :  { %1798 = vrot.lane.b32.xlu0 %v1775_v9, %s8847_s17 }
 0x332   :  { %1361 = vrot.lane.b32.xlu1 %v1338_v56, %s8848_s2  ;;  %v12054_v54 = vpop.permute.xlu0 %7684  ;;  %v12056_v32 = vpop.permute.xlu1 %7689  ;;  %v12063_v56 = vld [vmem:[%s14642_s0 + $0x38] sm:$0xff] }
 0x333   :  { %15816 = vst [vmem:[#allocation195_spill] sm:$0xff] %v12056_v32  ;;  %v1395_v9 = vmul.f32 %v12063_v56, %v15817_v26  ;;  %v2592_v22 = vmul.f32 %v12063_v56, %v15818_v29  ;;  %v1889_v62 = vmul.f32 %v12063_v56, %v15822_v46  ;;  %v15825_v29 = vld [vmem:[#allocation114_spill] sm:$0xff]  ;;  %v1097_v46 = vmul.f32 %v11648_v19, %v15829_v23  ;;  %v15858_v32 = vld [vmem:[#allocation189_spill] sm:$0xff] }
 0x334   :  { %v1452_v37 = vmul.f32 %v12063_v56, %v15825_v29  ;;  %v1453_v49 = vmul.f32 %v15825_v29, %v11769_v36  ;;  %v2212_v10 = vmul.f32 %v12063_v56, %v15837_v52  ;;  %v15841_v52 = vld [vmem:[#allocation143_spill] sm:$0xff] }
 0x335   :  { %1855 = vrot.lane.b32.xlu0 %v1832_v8, %s8848_s2 }
 0x336   :  { %2121 = vrot.lane.b32.xlu1 %v2098_v18, %s8844_s22  ;;  %v12069_v30 = vpop.permute.xlu0 %7694  ;;  %v12071_v2 = vpop.permute.xlu1 %137  ;;  %v15821_v18 = vld [vmem:[#allocation100_spill] sm:$0xff] }
 0x337   :  { %15819 = vst [vmem:[#allocation13_spill] sm:$0xff] %v12069_v30  ;;  %15820 = vst [vmem:[#allocation14_spill] sm:$0xff] %v12071_v2  ;;  %v2155_v8 = vmul.f32 %v12063_v56, %v15821_v18  ;;  %v15832_v2 = vld [vmem:[#allocation126_spill] sm:$0xff] }
 0x339   :  { %2615 = vrot.lane.b32.xlu0 %v2592_v22, %s8844_s22 }
 0x33a   :  { %1418 = vrot.lane.b32.xlu1 %v1395_v9, %s8842_s28  ;;  %v12079_v57 = vpop.permute.xlu0 %639  ;;  %v12081_v26 = vpop.permute.xlu1 %2345  ;;  %v15826_v9 = vld [vmem:[#allocation105_spill] sm:$0xff] }
 0x33b   :  { %15823 = vst [vmem:[#allocation197_spill] sm:$0xff] %v12079_v57  ;;  %15824 = vst [vmem:[#allocation199_spill] sm:$0xff] %v12081_v26  ;;  %v2649_v22 = vmul.f32 %v12063_v56, %v15826_v9  ;;  %v1592_v57 = vmul.f32 %v8782_v44, %v15831_v1 }
 0x33d   :  { %1912 = vrot.lane.b32.xlu0 %v1889_v62, %s8842_s28  ;;  %v15830_v62 = vld [vmem:[#allocation119_spill] sm:$0xff] }
 0x33e   :  { %2178 = vrot.lane.b32.xlu1 %v2155_v8, %s8845_s27  ;;  %v12089_v38 = vpop.permute.xlu0 %2347  ;;  %v12091_v18 = vpop.permute.xlu1 %2839  ;;  %v1098_v8 = vmul.f32 %v8782_v44, %v15829_v23  ;;  %v1946_v9 = vmul.f32 %v12063_v56, %v15830_v62  ;;  %v12113_v23 = vmul.f32 %v8782_v44, %v15832_v2 }
 0x33f   :  { %15827 = vst [vmem:[#allocation200_spill] sm:$0xff] %v12089_v38  ;;  %15828 = vst [vmem:[#allocation202_spill] sm:$0xff] %v12091_v18  ;;  %v12110_v18 = vmul.f32 %v11648_v19, %v15832_v2  ;;  %v15834_v38 = vld [vmem:[#allocation139_spill] sm:$0xff]  ;;  %v1140_v2 = vsel %vm139_vm0, %v11366_v58, %v11368_v13 }
 0x340   :  { %v12120_v26 = vmul.f32 %v11648_v19, %v15834_v38  ;;  %v12123_v29 = vmul.f32 %v8782_v44, %v15834_v38  ;;  %v1514_v19 = vmul.f32 %v12063_v56, %v15838_v15  ;;  %v2706_v44 = vmul.f32 %v12063_v56, %v15839_v51  ;;  %v15840_v38 = vld [vmem:[#allocation98_spill] sm:$0xff]  ;;  %v15842_v51 = vld [vmem:[#allocation148_spill] sm:$0xff] }
 0x341   :  { %2672 = vrot.lane.b32.xlu0 %v2649_v22, %s8845_s27  ;;  %v12154_v0 = vmul.f32 %v12063_v56, %v15842_v51 }
 0x342   :  { %1477 = vrot.lane.b32.xlu1 %v1452_v37, %s8849_s23  ;;  %v15833_v37 = vld [vmem:[#allocation93_spill] sm:$0xff]  ;;  %v12125_v30 = vpop.permute.xlu0 %2841  ;;  %v12127_v1 = vpop.permute.xlu1 %7699 }
 0x343   :  { %v1139_v22 = vsel %vm139_vm0, %v15833_v37, %v11366_v58  ;;  %15835 = vst [vmem:[#allocation206_spill] sm:$0xff] %v12125_v30  ;;  %15836 = vst [vmem:[#allocation207_spill] sm:$0xff] %v12127_v1  ;;  %v1947_v37 = vmul.f32 %v15830_v62, %v11769_v36  ;;  %v1633_v30 = vsel %vm139_vm0, %v15840_v38, %v11397_v60 }
 0x344   :  { %v2008_v58 = vmul.f32 %v12063_v56, %v15841_v52  ;;  %v1515_v62 = vmul.f32 %v15838_v15, %v11769_v36  ;;  %v1154_v13 = vadd.f32 %v1139_v22, %v1097_v46  ;;  %v1634_v1 = vsel %vm139_vm0, %v11397_v60, %v11399_v11  ;;  %v15847_v22 = vld [vmem:[#allocation166_spill] sm:$0xff] }
 0x345   :  { %1479 = vrot.lane.b32.xlu0 %v1453_v49, %s8849_s23  ;;  %v12158_v38 = vmul.f32 %v15841_v52, %v11769_v36  ;;  %v1155_v49 = vadd.f32 %v1140_v2, %v1098_v8  ;;  %v1197_v15 = vsel %vm197_vm1, %v11437_v48, %v15844_v33  ;;  %v12172_v51 = vmul.f32 %v12063_v56, %v15847_v22  ;;  %v15848_v52 = vld [vmem:[#allocation168_spill] sm:$0xff]  ;;  %v15850_v8 = vld [vmem:[#allocation163_spill] sm:$0xff]  ;;  %v15852_v22 = vld [vmem:[#allocation182_spill] sm:$0xff] }
 0x346   :  { %1971 = vrot.lane.b32.xlu1 %v1946_v9, %s8849_s23  ;;  %v15843_v9 = vld [vmem:[#allocation106_spill] sm:$0xff]  ;;  %v12166_v46 = vpop.permute.xlu0 %195  ;;  %v12168_v60 = vpop.permute.xlu1 %696  ;;  %v1648_v11 = vadd.f32 %v1633_v30, %v1591_v53  ;;  %v1690_v2 = vsel %vm197_vm1, %v15849_v17, %v15848_v52  ;;  %v1649_v33 = vadd.f32 %v1634_v1, %v1592_v57  ;;  %v12188_v53 = vmul.f32 %v12063_v56, %v15852_v22  ;;  %v15854_v30 = vld [vmem:[#allocation171_spill] sm:$0xff] }
 0x347   :  { %v1196_v40 = vsel %vm197_vm1, %v15843_v9, %v11437_v48  ;;  %15845 = vst [vmem:[#allocation219_spill] sm:$0xff] %v12166_v46  ;;  %15846 = vst [vmem:[#allocation220_spill] sm:$0xff] %v12168_v60  ;;  %v1691_v9 = vsel %vm197_vm1, %v15848_v52, %v15850_v8  ;;  %v12182_v48 = vmul.f32 %v12063_v56, %v15851_v55  ;;  %v15856_v52 = vld [vmem:[#allocation170_spill] sm:$0xff]  ;;  %v15857_v8 = vld [vmem:[#allocation117_spill] sm:$0xff] }
 0x348   :  { %15853 = vst [vmem:[#allocation223_spill] sm:$0xff] %v12188_v53  ;;  %v12192_v17 = vmul.f32 %v12063_v56, %v15854_v30  ;;  %v1211_v60 = vadd.f32 %v1196_v40, %v1154_v13  ;;  %v1212_v46 = vadd.f32 %v1197_v15, %v1155_v49  ;;  %v1253_v55 = vsel %vm255_vm2, %v15857_v8, %v15856_v52  ;;  %v15860_v53 = vld [vmem:[#allocation198_spill] sm:$0xff]  ;;  %v15861_v13 = vld [vmem:[#allocation187_spill] sm:$0xff]  ;;  %v15862_v49 = vld [vmem:[#allocation185_spill] sm:$0xff] }
 0x349   :  { %1973 = vrot.lane.b32.xlu0 %v1947_v37, %s8849_s23  ;;  %v1254_v1 = vsel %vm255_vm2, %v15856_v52, %v15858_v32  ;;  %v1705_v57 = vadd.f32 %v1690_v2, %v1648_v11  ;;  %v12206_v30 = vmul.f32 %v12063_v56, %v15860_v53  ;;  %v12210_v40 = vmul.f32 %v12063_v56, %v15861_v13  ;;  %v15863_v15 = vld [vmem:[#allocation122_spill] sm:$0xff] }
 0x34a   :  { %2235 = vrot.lane.b32.xlu1 %v2212_v10, %s8846_s14  ;;  %15855 = vst [vmem:[#allocation15_spill] sm:$0xff] %v12192_v17  ;;  %v1706_v10 = vadd.f32 %v1691_v9, %v1649_v33  ;;  %v12200_v37 = vpop.permute.xlu0 %2402  ;;  %v12202_v22 = vpop.permute.xlu1 %2404  ;;  %v1747_v8 = vsel %vm255_vm2, %v15863_v15, %v15862_v49  ;;  %v15864_v17 = vld [vmem:[#allocation190_spill] sm:$0xff]  ;;  %v15865_v33 = vld [vmem:[#allocation203_spill] sm:$0xff]  ;;  %v12224_v9 = vmul.f32 %v15860_v53, %v11769_v36 }
 0x34b   :  { %15859 = vst [vmem:[#allocation16_spill] sm:$0xff] %v12202_v22  ;;  %v1748_v11 = vsel %vm255_vm2, %v15862_v49, %v15864_v17  ;;  %v12220_v2 = vmul.f32 %v12063_v56, %v15865_v33  ;;  %v1268_v52 = vadd.f32 %v1253_v55, %v1211_v60  ;;  %v1269_v32 = vadd.f32 %v1254_v1, %v1212_v46  ;;  %v15866_v13 = vld [vmem:[#allocation130_spill] sm:$0xff] }
 0x34c   :  { %v1310_v22 = vsel %vm313_vm3, %v15866_v13, %v11582_v4  ;;  %v1311_v49 = vsel %vm313_vm3, %v11582_v4, %v11584_v45  ;;  %v15867_v15 = vld [vmem:[#allocation134_spill] sm:$0xff]  ;;  %v12239_v60 = vmul.f32 %v12063_v56, %v15692_v27  ;;  %v12243_v46 = vmul.f32 %v15865_v33, %v11769_v36  ;;  %v15868_v4 = vld [vmem:[#allocation141_spill] sm:$0xff] }
 0x34d   :  { %2729 = vrot.lane.b32.xlu0 %v2706_v44, %s8846_s14  ;;  %v1804_v17 = vsel %vm313_vm3, %v15867_v15, %v11620_v41  ;;  %v1762_v53 = vadd.f32 %v1747_v8, %v1705_v57  ;;  %v1805_v44 = vsel %vm313_vm3, %v11620_v41, %v11622_v63  ;;  %v1367_v55 = vsel %vm371_vm4, %v15868_v4, %v11663_v3  ;;  %v15869_v57 = vld [vmem:[#allocation146_spill] sm:$0xff] }
 0x34e   :  { %1539 = vrot.lane.b32.xlu1 %v1514_v19, %s8850_s26  ;;  %v1763_v19 = vadd.f32 %v1748_v11, %v1706_v10  ;;  %v12251_v1 = vpop.permute.xlu0 %2896  ;;  %v12253_v13 = vpop.permute.xlu1 %2898  ;;  %v1325_v15 = vadd.f32 %v1310_v22, %v1268_v52  ;;  %v1368_v33 = vsel %vm371_vm4, %v11663_v3, %v11665_v31  ;;  %v1861_v10 = vsel %vm371_vm4, %v15869_v57, %v11711_v7 }
 0x34f   :  { %v12263_v41 = vmul.f32 %v12063_v56, %v15700_v12  ;;  %v1326_v8 = vadd.f32 %v1311_v49, %v1269_v32  ;;  %v1819_v11 = vadd.f32 %v1804_v17, %v1762_v53  ;;  %v1862_v4 = vsel %vm371_vm4, %v11711_v7, %v11713_v28  ;;  %v15870_v49 = vld [vmem:[#allocation151_spill] sm:$0xff] }
 0x350   :  { %v1820_v22 = vadd.f32 %v1805_v44, %v1763_v19  ;;  %v1382_v3 = vadd.f32 %v1367_v55, %v1325_v15  ;;  %v12272_v52 = vmul.f32 %v15692_v27, %v11769_v36  ;;  %v12276_v57 = vmul.f32 %v15700_v12, %v11769_v36  ;;  %v15871_v19 = vld [vmem:[#allocation156_spill] sm:$0xff]  ;;  %v15872_v44 = vld [vmem:[#allocation159_spill] sm:$0xff] }
 0x351   :  { %1541 = vrot.lane.b32.xlu0 %v1515_v62, %s8850_s26  ;;  %v1383_v32 = vadd.f32 %v1368_v33, %v1326_v8  ;;  %v1876_v17 = vadd.f32 %v1861_v10, %v1819_v11  ;;  %v2127_v7 = vsel %vm139_vm0, %v15870_v49, %v11745_v50  ;;  %v2621_v12 = vsel %vm139_vm0, %v15871_v19, %v11787_v59  ;;  %v15873_v55 = vld [vmem:[#allocation164_spill] sm:$0xff]  ;;  %v15875_v10 = vld [vmem:[#allocation169_spill] sm:$0xff]  ;;  %v15876_v49 = vld [vmem:[#allocation174_spill] sm:$0xff] }
 0x352   :  { %2033 = vrot.lane.b32.xlu1 %v2008_v58, %s8850_s26  ;;  %v2128_v58 = vsel %vm139_vm0, %v11745_v50, %v11747_v20  ;;  %v12284_v62 = vpop.permute.xlu0 %253  ;;  %v12286_v53 = vpop.permute.xlu1 %753  ;;  %v1877_v27 = vadd.f32 %v1862_v4, %v1820_v22  ;;  %v2622_v36 = vsel %vm139_vm0, %v11787_v59, %v11789_v43  ;;  %v1424_v15 = vsel %vm429_vm5, %v15873_v55, %v15872_v44  ;;  %v15874_v33 = vld [vmem:[#allocation180_spill] sm:$0xff] }
 0x353   :  { %v1425_v50 = vsel %vm429_vm5, %v15872_v44, %v15874_v33  ;;  %v1918_v8 = vsel %vm429_vm5, %v15875_v10, %v11856_v24  ;;  %v1919_v11 = vsel %vm429_vm5, %v11856_v24, %v11858_v5  ;;  %v8530_v59 = vld [vmem:[%s14647_s5 + $0x104] ss:$8 sps:$4 sm:$0xff]   ;;  %v2142_v4 = vadd.f32 %v2127_v7, %v12110_v18  ;;  %v15877_v44 = vld [vmem:[#allocation178_spill] sm:$0xff] }
 0x354   :  { %v2143_v22 = vadd.f32 %v2128_v58, %v12113_v23  ;;  %v2184_v19 = vsel %vm197_vm1, %v15876_v49, %v11908_v25  ;;  %v2185_v24 = vsel %vm197_vm1, %v11908_v25, %v11910_v42  ;;  %v2678_v55 = vsel %vm197_vm1, %v15877_v44, %v11934_v16  ;;  %v15878_v18 = vld [vmem:[#allocation188_spill] sm:$0xff]  ;;  %4432 = vmatprep.subr.bf16.mxu0 %v8530_v59 }
 0x355   :  { %2035 = vrot.lane.b32.xlu0 %v12158_v38, %s8850_s26  ;;  %v2637_v38 = vadd.f32 %v2622_v36, %v12123_v29  ;;  %v1485_v23 = vsel %vm491_vm6, %v15878_v18, %v11958_v47  ;;  %v1439_v10 = vadd.f32 %v1424_v15, %v1382_v3  ;;  %v1440_v49 = vadd.f32 %v1425_v50, %v1383_v32  ;;  %v15879_v29 = vld [vmem:[#allocation210_spill] sm:$0xff]  ;;  %v15884_v18 = vld [vmem:[#allocation223_spill] sm:$0xff]  ;;  %v15914_v42 = vld [vmem:[#allocation44_spill] sm:$0xff] }
 0x356   :  { %2292 = vrot.lane.b32.xlu1 %v12154_v0, %s8847_s17  ;;  %v2636_v0 = vadd.f32 %v2621_v12, %v12120_v26  ;;  %v12329_v7 = vpop.permute.xlu0 %2461  ;;  %v12331_v58 = vpop.permute.xlu1 %2463  ;;  %v1933_v25 = vadd.f32 %v1918_v8, %v1876_v17  ;;  %v1934_v43 = vadd.f32 %v1919_v11, %v1877_v27  ;;  %v2199_v26 = vadd.f32 %v2184_v19, %v2142_v4  ;;  %v15880_v27 = vld [vmem:[#allocation192_spill] sm:$0xff] }
 0x357   :  { %v2200_v12 = vadd.f32 %v2185_v24, %v2143_v22  ;;  %v1547_v36 = vsel %vm554_vm7, %v15879_v29, %v12014_v6  ;;  %v2679_v3 = vsel %vm197_vm1, %v11934_v16, %v11936_v21  ;;  %v1501_v32 = vadd.f32 %v1485_v23, %v1439_v10  ;;  %v15882_v22 = vld [vmem:[#allocation195_spill] sm:$0xff]  ;;  %v15886_v10 = vld [vmem:[#allocation172_spill] sm:$0xff]  ;;  %v15887_v29 = vld [vmem:[#allocation201_spill] sm:$0xff] }
 0x358   :  { %v2693_v44 = vadd.f32 %v2678_v55, %v2636_v0  ;;  %v1486_v17 = vsel %vm491_vm6, %v11958_v47, %v11960_v35  ;;  %v1979_v15 = vsel %vm491_vm6, %v15880_v27, %v11978_v14  ;;  %v2242_v16 = vsel %vm255_vm2, %v11988_v61, %v11990_v34  ;;  %v15883_v0 = vld [vmem:[#allocation175_spill] sm:$0xff]  ;;  %v15915_v20 = vld [vmem:[#allocation200_spill] sm:$0xff] }
 0x359   :  { %2786 = vrot.lane.b32.xlu0 %v12182_v48, %s8847_s17  ;;  %v15881_v48 = vld [vmem:[#allocation196_spill] sm:$0xff]  ;;  %v1563_v47 = vadd.f32 %v1547_v36, %v1501_v32  ;;  %v7687_v59 = vunpack.i.h.bf16 %v12054_v54  ;;  %v7686_v4 = vunpack.i.l.bf16 %v12054_v54  ;;  %v1502_v24 = vadd.f32 %v1486_v17, %v1440_v49  ;;  %v15889_v32 = vld [vmem:[#allocation215_spill] sm:$0xff]  ;;  %v15890_v49 = vld [vmem:[#allocation177_spill] sm:$0xff]  ;;  %s8861_s17 = smov 112  }
 0x35a   :  { %2349 = vrot.lane.b32.xlu1 %v12172_v51, %s8848_s2  ;;  %v1980_v51 = vsel %vm491_vm6, %v11978_v14, %v11980_v39  ;;  %v2241_v50 = vsel %vm255_vm2, %v15881_v48, %v11988_v61  ;;  %v12358_v8 = vpop.permute.xlu0 %2955  ;;  %v12360_v11 = vpop.permute.xlu1 %2957  ;;  %v2694_v14 = vadd.f32 %v2679_v3, %v2637_v38  ;;  %v1548_v55 = vsel %vm554_vm7, %v12014_v6, %v15883_v0  ;;  %v15885_v61 = vld [vmem:[#allocation15_spill] sm:$0xff]  ;;  %v15888_v54 = vld [vmem:[#allocation176_spill] sm:$0xff]  ;;  %v15891_v48 = vld [vmem:[#allocation173_spill] sm:$0xff] }
 0x35b   :  { %v1995_v23 = vadd.f32 %v1979_v15, %v1933_v25  ;;  %v2735_v36 = vsel %vm255_vm2, %v15887_v29, %v15886_v10  ;;  %v2041_v38 = vsel %vm554_vm7, %v15889_v32, %v15888_v54  ;;  %v2042_v3 = vsel %vm554_vm7, %v15888_v54, %v15890_v49  ;;  %v15898_v54 = vld [vmem:[#allocation184_spill] sm:$0xff]  ;;  %v15913_v34 = vld [vmem:[#allocation199_spill] sm:$0xff] }
 0x35c   :  { %v1996_v6 = vadd.f32 %v1980_v51, %v1934_v43  ;;  %v2256_v17 = vadd.f32 %v2241_v50, %v2199_v26  ;;  %v2257_v27 = vadd.f32 %v2242_v16, %v2200_v12  ;;  %v1564_v19 = vadd.f32 %v1548_v55, %v1502_v24  ;;  %v15895_v16 = vld [vmem:[#allocation179_spill] sm:$0xff] }
 0x35d   :  { %2843 = vrot.lane.b32.xlu0 %v15885_v61, %s8848_s2  ;;  %v15892_v61 = vld [vmem:[#allocation120_spill] sm:$0xff]  ;;  %v3226_v32 = vsel %vm139_vm0, %v7686_v4, %v7687_v59  ;;  %v15894_v21 = vunpack.i.l.bf16 %v15882_v22  ;;  %v2750_v26 = vadd.f32 %v2735_v36, %v2693_v44  ;;  %v2057_v12 = vadd.f32 %v2041_v38, %v1995_v23  ;;  %v15897_v55 = vld [vmem:[#allocation183_spill] sm:$0xff]  ;;  %s8862_s2 = smov 97  }
 0x35e   :  { %2406 = vrot.lane.b32.xlu1 %v15884_v18, %s8842_s28  ;;  %v2736_v18 = vsel %vm255_vm2, %v15886_v10, %v15891_v48  ;;  %v12384_v25 = vpop.permute.xlu0 %311  ;;  %v12386_v15 = vpop.permute.xlu1 %810  ;;  %v12389_v29 = vadd.f32 %v15892_v61, %v1563_v47  ;;  %v2058_v51 = vadd.f32 %v2042_v3, %v1996_v6  ;;  %v15896_v47 = vld [vmem:[#allocation222_spill] sm:$0xff]  ;;  %v2299_v10 = vsel %vm313_vm3, %v15895_v16, %v15897_v55  ;;  %v15901_v23 = vld [vmem:[#allocation127_spill] sm:$0xff]  ;;  %v15907_v6 = vld [vmem:[#allocation13_spill] sm:$0xff] }
 0x35f   :  { %v3227_v43 = vsel %vm139_vm0, %v7687_v59, %v15894_v21  ;;  %v2751_v50 = vadd.f32 %v2736_v18, %v2694_v14  ;;  %v2298_v24 = vsel %vm313_vm3, %v15896_v47, %v15895_v16  ;;  %v15899_v21 = vld [vmem:[#allocation224_spill] sm:$0xff]  ;;  %v15900_v59 = vld [vmem:[#allocation194_spill] sm:$0xff]  ;;  %v15902_v36 = vmax.f32 %v15901_v23, 0.0  ;;  %v15904_v14 = vld [vmem:[#allocation121_spill] sm:$0xff] }
 0x360   :  { %15893 = vst [vmem:[#allocation53_spill] sm:$0xff] %v12389_v29  ;;  %v2792_v44 = vsel %vm313_vm3, %v15899_v21, %v15898_v54  ;;  %v15905_v38 = vmax.f32 %v15904_v14, 0.0  ;;  %v7696_v18 = vunpack.i.l.bf16 %v15907_v6  ;;  %v12424_v21 = vadd.f32 %v15892_v61, %v1564_v19 }
 0x361   :  { %2900 = vrot.lane.b32.xlu0 %v12210_v40, %s8842_s28  ;;  %v12413_v40 = vmax.f32 %v15902_v36, %v3226_v32  ;;  %v15910_v32 = vld [vmem:[#allocation116_spill] sm:$0xff]  ;;  %v7692_v14 = vunpack.i.h.bf16 %v15882_v22  ;;  %v2313_v19 = vadd.f32 %v2298_v24, %v2256_v17  ;;  %v2314_v48 = vadd.f32 %v2299_v10, %v2257_v27  ;;  %v15917_v27 = vld [vmem:[#allocation202_spill] sm:$0xff]  ;;  %s8860_s28 = smov 111  }
 0x362   :  { %2465 = vrot.lane.b32.xlu1 %v12206_v30, %s8849_s23  ;;  %v2793_v30 = vsel %vm313_vm3, %v15898_v54, %v15900_v59  ;;  %v12417_v3 = vmax.f32 %v15905_v38, %v3227_v43  ;;  %v2524_v47 = vpop.permute.xlu0 %2523  ;;  %v12420_v16 = vpop.permute.xlu1 %2525  ;;  %15908 = vst [vmem:[#allocation73_spill] sm:$0xff] %v12424_v21  ;;  %v15909_v59 = vld [vmem:[#allocation207_spill] sm:$0xff]  ;;  %v12429_v36 = vadd.f32 %v15910_v32, %v2057_v12  ;;  %v15919_v24 = vld [vmem:[#allocation206_spill] sm:$0xff] }
 0x363   :  { %15903 = vst [vmem:[#allocation64_spill] sm:$0xff] %v12413_v40  ;;  %v7701_v23 = vunpack.i.l.bf16 %v15909_v59  ;;  %v12432_v43 = vadd.f32 %v15910_v32, %v2058_v51  ;;  %v7702_v38 = vunpack.i.h.bf16 %v15909_v59  ;;  %v2807_v54 = vadd.f32 %v2792_v44, %v2750_v26  ;;  %v15918_v26 = vld [vmem:[#allocation52_spill] sm:$0xff] }
 0x364   :  { %15906 = vst [vmem:[#allocation65_spill] sm:$0xff] %v12417_v3  ;;  %15911 = vst [vmem:[#allocation75_spill] sm:$0xff] %v12429_v36  ;;  %v2808_v55 = vadd.f32 %v2793_v30, %v2751_v50  ;;  %v3233_v12 = vsel %vm139_vm0, %v7692_v14, %v7696_v18  ;;  %v2355_v51 = vsel %vm371_vm4, %v15914_v42, %v15913_v34  ;;  %v15920_v30 = vld [vmem:[#allocation83_spill] sm:$0xff] }
 0x365   :  { %15912 = vst [vmem:[#allocation79_spill] sm:$0xff] %v12432_v43  ;;  %2467 = vrot.lane.b32.xlu0 %v12224_v9, %s8849_s23  ;;  %v2356_v59 = vsel %vm371_vm4, %v15913_v34, %v15915_v20  ;;  %v15916_v9 = vunpack.i.h.bf16 %v15907_v6  ;;  %v2849_v50 = vsel %vm371_vm4, %v15918_v26, %v15917_v27  ;;  %v2850_v42 = vsel %vm371_vm4, %v15917_v27, %v15919_v24  ;;  %v15921_v6 = vld [vmem:[#allocation16_spill] sm:$0xff] }
 0x366   :  { %2959 = vrot.lane.b32.xlu1 %v12220_v2, %s8849_s23  ;;  %v3018_v22 = vpop.permute.xlu0 %3017  ;;  %v12447_v32 = vpop.permute.xlu1 %3019  ;;  %v7748_v2 = vpack.i.bf16 %v12417_v3, %v12413_v40  ;;  %v3225_v34 = vsel %vm139_vm0, %v7701_v23, %v7686_v4  ;;  %v3232_v44 = vsel %vm139_vm0, %v7702_v38, %v7692_v14  ;;  %v2412_v3 = vsel %vm429_vm5, %v15920_v30, %v12200_v37  ;;  %v15924_v38 = vld [vmem:[#allocation77_spill] sm:$0xff]  ;;  %v15925_v30 = vld [vmem:[#allocation131_spill] sm:$0xff] }
 0x367   :  { %v3234_v17 = vsel %vm139_vm0, %v7696_v18, %v15916_v9  ;;  %v2413_v18 = vsel %vm429_vm5, %v12200_v37, %v15921_v6  ;;  %v15922_v9 = vld [vmem:[#allocation123_spill] sm:$0xff]  ;;  %v2370_v27 = vadd.f32 %v2355_v51, %v2313_v19  ;;  %v2371_v14 = vadd.f32 %v2356_v59, %v2314_v48  ;;  %v15929_v19 = vld [vmem:[#allocation142_spill] sm:$0xff]  ;;  %v15931_v59 = vld [vmem:[#allocation140_spill] sm:$0xff] }
 0x368   :  { %v15923_v4 = vmax.f32 %v15922_v9, 0.0  ;;  %v2906_v26 = vsel %vm429_vm5, %v15924_v38, %v12251_v1  ;;  %v15926_v10 = vmax.f32 %v15925_v30, 0.0  ;;  %v2864_v37 = vadd.f32 %v2849_v50, %v2807_v54  ;;  %v15933_v50 = vld [vmem:[#allocation229_spill] sm:$0xff] }
 0x369   :  { %2961 = vrot.lane.b32.xlu0 %v12243_v46, %s8849_s23  ;;  %v2865_v24 = vadd.f32 %v2850_v42, %v2808_v55  ;;  %v15930_v48 = vmax.f32 %v15929_v19, 0.0  ;;  %v15932_v9 = vmax.f32 %v15931_v59, 0.0  ;;  %v15105_v55 = vmax.f32 %v12429_v36, 0.0  ;;  %v15969_v36 = vld [vmem:[#allocation70_spill] sm:$0xff]  ;;  %s8863_s23 = smov 98  }
 0x36a   :  { %2527 = vrot.lane.b32.xlu1 %v12239_v60, %s8850_s26  ;;  %v12475_v23 = vmax.f32 %v15923_v4, %v3233_v12  ;;  %v12482_v40 = vmax.f32 %v15926_v10, %v3234_v17  ;;  %v2907_v60 = vsel %vm429_vm5, %v12251_v1, %v12253_v13  ;;  %v12487_v46 = vpop.permute.xlu0 %7704  ;;  %v12489_v12 = vpop.permute.xlu1 %7709  ;;  %v2427_v17 = vadd.f32 %v2412_v3, %v2370_v27  ;;  %v15934_v3 = vld [vmem:[#allocation233_spill] sm:$0xff] }
 0x36b   :  { %15928 = vst [vmem:[#allocation85_spill] sm:$0xff] %v12489_v12  ;;  %v12493_v51 = vmax.f32 %v15930_v48, %v3225_v34  ;;  %v12497_v4 = vmax.f32 %v15932_v9, %v3232_v44  ;;  %v2428_v10 = vadd.f32 %v2413_v18, %v2371_v14  ;;  %v2921_v54 = vadd.f32 %v2906_v26, %v2864_v37  ;;  %v15935_v27 = vld [vmem:[#allocation97_spill] sm:$0xff] }
 0x36c   :  { %15927 = vst [vmem:[#allocation84_spill] sm:$0xff] %v12482_v40  ;;  %v2473_v1 = vsel %vm491_vm6, %v15933_v50, %v12329_v7  ;;  %v2474_v42 = vsel %vm491_vm6, %v12329_v7, %v12331_v58  ;;  %v2922_v34 = vadd.f32 %v2907_v60, %v2865_v24  ;;  %v2967_v44 = vsel %vm491_vm6, %v15934_v3, %v12358_v8  ;;  %v15937_v50 = vld [vmem:[#allocation103_spill] sm:$0xff] }
 0x36d   :  { %2529 = vrot.lane.b32.xlu0 %v12272_v52, %s8850_s26  ;;  %v2968_v18 = vsel %vm491_vm6, %v12358_v8, %v12360_v11  ;;  %v2535_v14 = vsel %vm554_vm7, %v15935_v27, %v2524_v47  ;;  %v2536_v7 = vsel %vm554_vm7, %v2524_v47, %v12420_v16  ;;  %v7706_v38 = vunpack.i.l.bf16 %v12487_v46 }
 0x36e   :  { %3021 = vrot.lane.b32.xlu1 %v12263_v41, %s8850_s26  ;;  %v7707_v41 = vunpack.i.h.bf16 %v12487_v46  ;;  %v15099_v52 = vunpack.i.l.bf16 %v12489_v12  ;;  %v12525_v26 = vpop.permute.xlu1 %369  ;;  %v2489_v30 = vadd.f32 %v2473_v1, %v2427_v17  ;;  %v2490_v37 = vadd.f32 %v2474_v42, %v2428_v10 }
 0x36f   :  { %v12523_v24 = vpop.permute.xlu0 %7714  ;;  %v15104_v19 = vmax.f32 %v12432_v43, 0.0  ;;  %v2983_v48 = vadd.f32 %v2967_v44, %v2921_v54  ;;  %v7758_v47 = vpack.i.bf16 %v12497_v4, %v12493_v51  ;;  %v7753_v46 = vpack.i.bf16 %v12482_v40, %v12475_v23  ;;  %v15944_v40 = vld [vmem:[#allocation208_spill] sm:$0xff] }
 0x370   :  { %15936 = vst [vmem:[#allocation80_spill] sm:$0xff] %v12523_v24  ;;  %v15098_v8 = vunpack.i.h.bf16 %v12523_v24  ;;  %v7716_v60 = vunpack.i.l.bf16 %v12523_v24  ;;  %v2984_v59 = vadd.f32 %v2968_v18, %v2922_v34  ;;  %v2551_v9 = vadd.f32 %v2535_v14, %v2489_v30  ;;  %v15938_v14 = vld [vmem:[#allocation217_spill] sm:$0xff] }
 0x371   :  { %3023 = vrot.lane.b32.xlu0 %v12276_v57, %s8850_s26  ;;  %v2552_v17 = vadd.f32 %v2536_v7, %v2490_v37  ;;  %v7712_v10 = vunpack.i.h.bf16 %v12489_v12  ;;  %v3029_v1 = vsel %vm554_vm7, %v15937_v50, %v3018_v22  ;;  %v3240_v54 = vsel %vm139_vm0, %v7706_v38, %v7707_v41  ;;  %v15941_v50 = vld [vmem:[#allocation186_spill] sm:$0xff]  ;;  %v15946_v12 = vld [vmem:[#allocation193_spill] sm:$0xff]  ;;  %s8864_s26 = smov 115  }
 0x372   :  { %7749 = vrot.lane.b32.xlu1 %v7748_v2, %s8846_s14  ;;  %v3030_v2 = vsel %vm554_vm7, %v3018_v22, %v12447_v32  ;;  %v3241_v57 = vsel %vm139_vm0, %v7707_v41, %v15099_v52  ;;  %v3248_v44 = vsel %vm139_vm0, %v7716_v60, %v15098_v8  ;;  %v12555_v22 = vld [vmem:[%s14642_s0 + $0x30] sm:$0xff]  ;;  %v7768_v41 = vpack.i.bf16 %v15104_v19, %v15105_v55  ;;  %v15949_v55 = vld [vmem:[#allocation211_spill] sm:$0xff] }
 0x373   :  { %v12546_v42 = vpop.permute.xlu0 %867  ;;  %v7720_v3 = vpop.permute.xlu1 %7719  ;;  %v3247_v34 = vsel %vm139_vm0, %v7712_v10, %v7716_v60  ;;  %v103_v7 = vmul.f32 %v12555_v22, %v15938_v14  ;;  %v15939_v30 = vmax.f32 %v12389_v29, 0.0  ;;  %v15940_v37 = vmax.f32 %v12424_v21, 0.0 }
 0x374   :  { %v7722_v18 = vunpack.i.h.bf16 %v7720_v3  ;;  %v7721_v27 = vunpack.i.l.bf16 %v7720_v3  ;;  %v12570_v3 = vadd.f32 %v15941_v50, %v2551_v9  ;;  %v12573_v8 = vadd.f32 %v15941_v50, %v2552_v17 }
 0x375   :  { %7754 = vrot.lane.b32.xlu0 %v7753_v46, %s8846_s14  ;;  %v7763_v60 = vpack.i.bf16 %v15940_v37, %v15939_v30  ;;  %v3045_v52 = vadd.f32 %v3029_v1, %v2983_v48  ;;  %v15945_v46 = vmax.f32 %v15944_v40, 0.0  ;;  %v15947_v43 = vmax.f32 %v15946_v12, 0.0  ;;  %v15951_v30 = vld [vmem:[#allocation213_spill] sm:$0xff]  ;;  %v15956_v1 = vld [vmem:[#allocation39_spill] sm:$0xff] }
 0x376   :  { %7759 = vrot.lane.b32.xlu1 %v7758_v47, %s8846_s14  ;;  %15942 = vst [vmem:[#allocation227_spill] sm:$0xff] %v12570_v3  ;;  %15943 = vst [vmem:[#allocation228_spill] sm:$0xff] %v12573_v8  ;;  %v3046_v47 = vadd.f32 %v3030_v2, %v2984_v59  ;;  %v15950_v29 = vmax.f32 %v15949_v55, 0.0  ;;  %v15952_v9 = vmax.f32 %v15951_v30, 0.0  ;;  %v104_v40 = vmul.f32 %v12063_v56, %v15938_v14  ;;  %v15954_v59 = vld [vmem:[#allocation218_spill] sm:$0xff] }
 0x377   :  { %v12577_v24 = vmax.f32 %v15945_v46, %v3240_v54  ;;  %v12581_v19 = vmax.f32 %v15947_v43, %v3241_v57  ;;  %v12591_v17 = vpop.permute.xlu0 %427  ;;  %v12593_v48 = vpop.permute.xlu1 %924  ;;  %v605_v12 = vmul.f32 %v12555_v22, %v15954_v59  ;;  %v3239_v43 = vsel %vm139_vm0, %v7721_v27, %v7706_v38  ;;  %v15957_v57 = vld [vmem:[#allocation197_spill] sm:$0xff]  ;;  %v15962_v46 = vld [vmem:[#allocation136_spill] sm:$0xff] }
 0x378   :  { %v12585_v21 = vmax.f32 %v15950_v29, %v3247_v34  ;;  %v12589_v37 = vmax.f32 %v15952_v9, %v3248_v44  ;;  %v3246_v55 = vsel %vm139_vm0, %v7722_v18, %v7712_v10  ;;  %v15955_v29 = vld [vmem:[#allocation14_spill] sm:$0xff]  ;;  %v606_v54 = vmul.f32 %v12063_v56, %v15954_v59  ;;  %v15958_v34 = vld [vmem:[#allocation41_spill] sm:$0xff]  ;;  %v15959_v10 = vld [vmem:[#allocation191_spill] sm:$0xff] }
 0x379   :  { %15948 = vst [vmem:[#allocation230_spill] sm:$0xff] %v12581_v19  ;;  %v146_v2 = vsel %vm139_vm0, %v15956_v1, %v15955_v29  ;;  %v647_v44 = vsel %vm139_vm0, %v15958_v34, %v15957_v57  ;;  %7764 = vrot.lane.b32.xlu0 %v7763_v60, %s8844_s22  ;;  %v12614_v18 = vadd.f32 %v15959_v10, %v3045_v52  ;;  %v15963_v30 = vmax.f32 %v15962_v46, 0.0  ;;  %v15964_v59 = vld [vmem:[#allocation216_spill] sm:$0xff]  ;;  %v15966_v46 = vld [vmem:[#allocation219_spill] sm:$0xff] }
 0x37a   :  { %15953 = vst [vmem:[#allocation231_spill] sm:$0xff] %v12589_v37  ;;  %7769 = vrot.lane.b32.xlu1 %v7768_v41, %s8844_s22  ;;  %v12617_v27 = vadd.f32 %v15959_v10, %v3046_v47  ;;  %v15965_v1 = vmax.f32 %v15964_v59, 0.0  ;;  %v7778_v38 = vpack.i.bf16 %v12589_v37, %v12585_v21  ;;  %v7773_v52 = vpack.i.bf16 %v12581_v19, %v12577_v24 }
 0x37b   :  { %15960 = vst [vmem:[#allocation232_spill] sm:$0xff] %v12614_v18  ;;  %v12621_v9 = vmax.f32 %v15963_v30, %v3239_v43  ;;  %v12627_v41 = vpop.permute.xlu0 %487  ;;  %v490_v60 = vpop.permute.xlu1 %489  ;;  %v161_v14 = vadd.f32 %v146_v2, %v103_v7  ;;  %v162_v47 = vadd.f32 %v15955_v29, %v104_v40  ;;  %v662_v43 = vadd.f32 %v647_v44, %v605_v12  ;;  %v15967_v30 = vld [vmem:[#allocation67_spill] sm:$0xff] }
 0x37c   :  { %15961 = vst [vmem:[#allocation17_spill] sm:$0xff] %v12617_v27  ;;  %v12625_v34 = vmax.f32 %v15965_v1, %v3246_v55  ;;  %v663_v55 = vadd.f32 %v15957_v57, %v606_v54  ;;  %v204_v59 = vsel %vm197_vm1, %v15967_v30, %v15966_v46  ;;  %v15968_v1 = vld [vmem:[#allocation220_spill] sm:$0xff]  ;;  %v15970_v2 = vmax.f32 %v12570_v3, 0.0  ;;  %v15973_v30 = vld [vmem:[#allocation225_spill] sm:$0xff] }
 0x37d   :  { %7774 = vrot.lane.b32.xlu0 %v7773_v52, %s8846_s14  ;;  %v704_v37 = vsel %vm197_vm1, %v15969_v36, %v15968_v1  ;;  %v15971_v12 = vmax.f32 %v12573_v8, 0.0  ;;  %v220_v44 = vadd.f32 %v15966_v46, %v162_v47  ;;  %v15972_v36 = vld [vmem:[#allocation88_spill] sm:$0xff]  ;;  %v761_v7 = vsel %vm255_vm2, %v15973_v30, %v12286_v53 }
 0x37e   :  { %7779 = vrot.lane.b32.xlu1 %v7778_v38, %s8846_s14  ;;  %v7783_v57 = vpack.i.bf16 %v12625_v34, %v12621_v9  ;;  %v720_v38 = vadd.f32 %v15968_v1, %v663_v55  ;;  %v262_v52 = vsel %vm255_vm2, %v15972_v36, %v12284_v62  ;;  %v219_v19 = vadd.f32 %v204_v59, %v161_v14  ;;  %v15974_v55 = vld [vmem:[#allocation238_spill] sm:$0xff]  ;;  %v15975_v36 = vld [vmem:[#allocation91_spill] sm:$0xff] }
 0x37f   :  { %v12645_v40 = vpop.permute.xlu0 %983  ;;  %v986_v29 = vpop.permute.xlu1 %985  ;;  %v7788_v54 = vpack.i.bf16 %v15971_v12, %v15970_v2  ;;  %v719_v3 = vadd.f32 %v704_v37, %v662_v43  ;;  %v278_v2 = vadd.f32 %v12284_v62, %v220_v44  ;;  %v320_v46 = vsel %vm313_vm3, %v15974_v55, %v12384_v25 }
 0x380   :  { %v777_v47 = vadd.f32 %v12286_v53, %v720_v38  ;;  %v277_v1 = vadd.f32 %v262_v52, %v219_v19  ;;  %v818_v30 = vsel %vm313_vm3, %v15975_v36, %v12386_v15  ;;  %v15978_v43 = vmax.f32 %v12614_v18, 0.0  ;;  %v15980_v52 = vld [vmem:[#allocation109_spill] sm:$0xff] }
 0x381   :  { %7784 = vrot.lane.b32.xlu0 %v7783_v57, %s8846_s14  ;;  %v776_v12 = vadd.f32 %v761_v7, %v719_v3  ;;  %v15979_v62 = vmax.f32 %v12617_v27, 0.0  ;;  %v336_v57 = vadd.f32 %v12384_v25, %v278_v2  ;;  %v378_v55 = vsel %vm371_vm4, %v15980_v52, %v12525_v26  ;;  %v15981_v25 = vld [vmem:[#allocation112_spill] sm:$0xff] }
 0x382   :  { %7789 = vrot.lane.b32.xlu1 %v7788_v54, %s8844_s22  ;;  %v335_v7 = vadd.f32 %v320_v46, %v277_v1  ;;  %v834_v44 = vadd.f32 %v12386_v15, %v777_v47  ;;  %v875_v15 = vsel %vm371_vm4, %v15981_v25, %v12546_v42  ;;  %v15982_v1 = vld [vmem:[#allocation204_spill] sm:$0xff] }
 0x383   :  { %v12671_v14 = vpop.permute.xlu0 %7724  ;;  %v7793_v59 = vpack.i.bf16 %v15979_v62, %v15978_v43  ;;  %v833_v38 = vadd.f32 %v818_v30, %v776_v12  ;;  %v394_v46 = vadd.f32 %v12525_v26, %v336_v57  ;;  %v15983_v30 = vld [vmem:[#allocation205_spill] sm:$0xff] }
 0x384   :  { %15976 = vst [vmem:[#allocation99_spill] sm:$0xff] %v12671_v14  ;;  %v12673_v37 = vpop.permute.xlu1 %7729  ;;  %v15112_v53 = vunpack.i.h.bf16 %v12671_v14  ;;  %v7726_v54 = vunpack.i.l.bf16 %v12671_v14  ;;  %v393_v26 = vadd.f32 %v378_v55, %v335_v7  ;;  %v891_v57 = vadd.f32 %v12546_v42, %v834_v44  ;;  %v15986_v7 = vld [vmem:[#allocation150_spill] sm:$0xff]  ;;  %v15987_v42 = vld [vmem:[#allocation149_spill] sm:$0xff] }
 0x385   :  { %15977 = vst [vmem:[#allocation94_spill] sm:$0xff] %v12673_v37  ;;  %v15113_v19 = vunpack.i.h.bf16 %v12673_v37  ;;  %v7731_v3 = vunpack.i.l.bf16 %v12673_v37  ;;  %7794 = vrot.lane.b32.xlu0 %v7793_v59, %s8844_s22  ;;  %v15984_v59 = vld [vmem:[#allocation118_spill] sm:$0xff]  ;;  %v452_v25 = vadd.f32 %v12591_v17, %v394_v46  ;;  %v890_v37 = vadd.f32 %v875_v15, %v833_v38  ;;  %v15989_v46 = vld [vmem:[#allocation135_spill] sm:$0xff] }
 0x386   :  { %v3494_v36 = vsel %vm255_vm2, %v7726_v54, %v15112_v53  ;;  %v436_v52 = vsel %vm429_vm5, %v15984_v59, %v12591_v17  ;;  %v499_v53 = vsel %vm491_vm6, %v12627_v41, %v490_v60  ;;  %v15988_v17 = vld [vmem:[#allocation113_spill] sm:$0xff] }
 0x387   :  { %v3501_v43 = vsel %vm255_vm2, %v7731_v3, %v15113_v19  ;;  %v7735_v47 = vpop.permute.xlu0 %7734  ;;  %v3584_v12 = vmax.f32 %v15982_v1, %v3494_v36  ;;  %v15985_v36 = vld [vmem:[#allocation133_spill] sm:$0xff]  ;;  %v451_v59 = vadd.f32 %v436_v52, %v393_v26  ;;  %v515_v14 = vadd.f32 %v499_v53, %v452_v25 }
 0x388   :  { %v551_v2 = vpop.permute.xlu1 %550  ;;  %v3592_v62 = vmax.f32 %v15983_v30, %v3501_v43  ;;  %v7737_v19 = vunpack.i.h.bf16 %v7735_v47  ;;  %v7736_v27 = vunpack.i.l.bf16 %v7735_v47  ;;  %v498_v43 = vsel %vm491_vm6, %v15985_v36, %v12627_v41 }
 0x389   :  { %v932_v38 = vsel %vm429_vm5, %v15988_v17, %v12593_v48  ;;  %v994_v41 = vsel %vm491_vm6, %v12645_v40, %v986_v29  ;;  %v948_v53 = vadd.f32 %v12593_v48, %v891_v57  ;;  %v15990_v29 = vld [vmem:[#allocation125_spill] sm:$0xff] }
 0x38a   :  { %v3632_v8 = vpack.c.bf16 %v3592_v62, %v3584_v12  ;;  %v3493_v1 = vsel %vm255_vm2, %v7736_v27, %v7726_v54  ;;  %v3500_v30 = vsel %vm255_vm2, %v7737_v19, %v7731_v3  ;;  %v561_v27 = vsel %vm554_vm7, %v15989_v46, %v551_v2  ;;  %v8533_v12 = vld [vmem:[%s14647_s5 + $0x114] ss:$8 sps:$4 sm:$0xff]  }
 0x38b   :  { %v553_v47 = vpop.permute.xlu0 %552  ;;  %v3583_v55 = vmax.f32 %v15986_v7, %v3493_v1  ;;  %v3591_v44 = vmax.f32 %v15987_v42, %v3500_v30  ;;  %v514_v19 = vadd.f32 %v498_v43, %v451_v59  ;;  %v993_v62 = vsel %vm491_vm6, %v15990_v29, %v12645_v40  ;;  %v15992_v1 = vld [vmem:[#allocation144_spill] sm:$0xff]  ;;  %v8531_v40 = vld [vmem:[%s14647_s5 + $0x110] ss:$8 sps:$4 sm:$0xff]  }
 0x38c   :  { %v1046_v60 = vpop.permute.xlu1 %1045  ;;  %4401 = vmatprep.mubr.bf16.mxu0 %v3632_v8  ;;  %v562_v54 = vsel %vm554_vm7, %v551_v2, %v553_v47  ;;  %v8528_v8 = vld [vmem:[%s14647_s5 + $0x100] ss:$8 sps:$4 sm:$0xff]   ;;  %v947_v52 = vadd.f32 %v932_v38, %v890_v37  ;;  %v1010_v26 = vadd.f32 %v994_v41, %v948_v53  ;;  %v8536_v7 = vld [vmem:[%s14647_s5 + $0x124] ss:$8 sps:$4 sm:$0xff]  }
 0x38d   :  { %v578_v3 = vadd.f32 %v562_v54, %v515_v14  ;;  %v3631_v15 = vpack.c.bf16 %v3591_v44, %v3583_v55  ;;  %v577_v2 = vadd.f32 %v561_v27, %v514_v19  ;;  %v1055_v48 = vsel %vm554_vm7, %v15992_v1, %v1046_v60  ;;  %v15993_v30 = vld [vmem:[#allocation48_spill] sm:$0xff]  ;;  %v15995_v55 = vld [vmem:[#allocation145_spill] sm:$0xff]  ;;  %v16001_v54 = vld [vmem:[#allocation154_spill] sm:$0xff] }
 0x38e   :  { %v1009_v37 = vadd.f32 %v993_v62, %v947_v52  ;;  %v15996_v42 = vunpack.i.l.bf16 %v15995_v55  ;;  %v15998_v41 = vld [vmem:[#allocation56_spill] sm:$0xff]  ;;  %v16005_v52 = vld [vmem:[#allocation46_spill] sm:$0xff]  ;;  %v16007_v1 = vld [vmem:[#allocation147_spill] sm:$0xff] }
 0x38f   :  { %v1048_v36 = vpop.permute.xlu0 %1047  ;;  %4402 = vmatmul.mubr.bf16.vlgmr.msra.gmra.mrb[0].mxu0 %v3631_v15  ;;  %v12744_v59 = vadd.f32 %v15993_v30, %v578_v3  ;;  %v12756_v17 = vadd.f32 %v15993_v30, %v577_v2  ;;  %v15999_v46 = vmax.f32 %v15998_v41, 0.0  ;;  %v8534_v29 = vld [vmem:[%s14647_s5 + $0x120] ss:$8 sps:$4 sm:$0xff]   ;;  %v16013_v55 = vld [vmem:[#allocation157_spill] sm:$0xff] }
 0x390   :  { %v12733_v25 = vpop.permute.xlu1 %7739  ;;  %v1056_v43 = vsel %vm554_vm7, %v1046_v60, %v1048_v36  ;;  %4433 = vmatpush1.bf16.msra.mxu0 %v8528_v8  ;;  %v1071_v38 = vadd.f32 %v1055_v48, %v1009_v37  ;;  %v16002_v8 = vmax.f32 %v16001_v54, 0.0  ;;  %v8539_v36 = vld [vmem:[%s14647_s5 + $0x134] ss:$8 sps:$4 sm:$0xff]   ;;  %v16008_v48 = vunpack.i.h.bf16 %v16007_v1  ;;  %v16010_v30 = vld [vmem:[#allocation60_spill] sm:$0xff] }
 0x391   :  { %15991 = vst [vmem:[#allocation101_spill] sm:$0xff] %v12733_v25  ;;  %v15123_v14 = vunpack.i.h.bf16 %v12733_v25  ;;  %v7741_v57 = vunpack.i.l.bf16 %v12733_v25  ;;  %15994 = vst [vmem:[#allocation102_spill] sm:$0xff] %v12744_v59  ;;  %v1072_v47 = vadd.f32 %v1056_v43, %v1010_v26  ;;  %4434 = vmatprep.subr.bf16.mxu0 %v8533_v12  ;;  %v15118_v62 = vmax.f32 %v12744_v59, 0.0  ;;  %v8540_v1 = vld [vmem:[%s14647_s5 + $0x140] ss:$8 sps:$4 sm:$0xff]   ;;  %v16023_v25 = vld [vmem:[#allocation190_spill] sm:$0xff] }
 0x392   :  { %15997 = vst [vmem:[#allocation18_spill] sm:$0xff] %v12756_v17  ;;  %v12792_v37 = vadd.f32 %v16005_v52, %v1071_v38  ;;  %v8537_v38 = vld [vmem:[%s14647_s5 + $0x130] ss:$8 sps:$4 sm:$0xff]  }
 0x393   :  { %v3214_v44 = vsel %vm139_vm0, %v15996_v42, %v7741_v57  ;;  %v3215_v60 = vsel %vm139_vm0, %v7741_v57, %v15123_v14  ;;  %v12768_v3 = vpop.permute.xlu0 %7744  ;;  %v12777_v26 = vadd.f32 %v16005_v52, %v1072_v47  ;;  %v16011_v47 = vmax.f32 %v16010_v30, 0.0  ;;  %v8543_v30 = vld [vmem:[%s14647_s5 + $0x150] ss:$8 sps:$4 sm:$0xff]   ;;  %v8560_v14 = vld [vmem:[%s14647_s5 + $0x1a4] ss:$8 sps:$4 sm:$0xff]  }
 0x394   :  { %v12760_v27 = vmax.f32 %v15999_v46, %v3214_v44  ;;  %v12764_v53 = vmax.f32 %v16002_v8, %v3215_v60  ;;  %v12766_v19 = vpop.permute.xlu1 %1133  ;;  %16004 = vst [vmem:[#allocation234_spill] sm:$0xff] %v12768_v3  ;;  %v15121_v15 = vunpack.i.h.bf16 %v12768_v3  ;;  %v7746_v12 = vunpack.i.l.bf16 %v12768_v3  ;;  %4435 = vmatpush1.bf16.msra.mxu0 %v8531_v40  ;;  %16009 = vst [vmem:[#allocation214_spill] sm:$0xff] %v12792_v37  ;;  %v16020_v3 = vld [vmem:[#allocation162_spill] sm:$0xff] }
 0x395   :  { %16006 = vst [vmem:[#allocation87_spill] sm:$0xff] %v12777_v26  ;;  %4436 = vmatprep.subr.bf16.mxu0 %v8536_v7  ;;  %v15122_v40 = vmax.f32 %v12756_v17, 0.0  ;;  %v16014_v42 = vmax.f32 %v16013_v55, 0.0  ;;  %v15119_v54 = vmax.f32 %v12777_v26, 0.0  ;;  %v16019_v26 = vld [vmem:[#allocation240_spill] sm:$0xff] }
 0x396   :  { %16000 = vst [vmem:[#allocation78_spill] sm:$0xff] %v12760_v27  ;;  %16003 = vst [vmem:[#allocation96_spill] sm:$0xff] %v12764_v53  ;;  %v7798_v2 = vpack.i.bf16 %v12764_v53, %v12760_v27  ;;  %v3221_v57 = vsel %vm139_vm0, %v16008_v48, %v7746_v12  ;;  %v3222_v43 = vsel %vm139_vm0, %v7746_v12, %v15121_v15  ;;  %v8542_v12 = vld [vmem:[%s14647_s5 + $0x144] ss:$8 sps:$4 sm:$0xff]   ;;  %v8545_v48 = vld [vmem:[%s14647_s5 + $0x154] ss:$8 sps:$4 sm:$0xff]  }
 0x397   :  { %v12796_v7 = vmax.f32 %v16011_v47, %v3221_v57  ;;  %v12800_v44 = vmax.f32 %v16014_v42, %v3222_v43  ;;  %v12805_v41 = vpop.permute.xlu0 %1627  ;;  %v7808_v46 = vpack.i.bf16 %v15118_v62, %v15122_v40  ;;  %v8548_v47 = vld [vmem:[%s14647_s5 + $0x164] ss:$8 sps:$4 sm:$0xff]   ;;  %v16016_v62 = vld [vmem:[#allocation237_spill] sm:$0xff] }
 0x398   :  { %v12802_v60 = vpop.permute.xlu1 %1190  ;;  %7799 = vrot.lane.b32.xlu1 %v7798_v2, %s8846_s14  ;;  %4437 = vmatpush1.bf16.msra.mxu0 %v8534_v29  ;;  %v15120_v29 = vmax.f32 %v12792_v37, 0.0 }
 0x399   :  { %16012 = vst [vmem:[#allocation104_spill] sm:$0xff] %v12796_v7  ;;  %16015 = vst [vmem:[#allocation235_spill] sm:$0xff] %v12800_v44  ;;  %v7803_v8 = vpack.i.bf16 %v12800_v44, %v12796_v7  ;;  %4438 = vmatprep.subr.bf16.mxu0 %v8539_v36  ;;  %v16021_v7 = vld [vmem:[#allocation189_spill] sm:$0xff] }
 0x39a   :  { %v7813_v36 = vpack.i.bf16 %v15119_v54, %v15120_v29  ;;  %v1100_v54 = vmul.f32 %v12063_v56, %v16016_v62 }
 0x39b   :  { %v12824_v2 = vpop.permute.xlu0 %1684  ;;  %7804 = vrot.lane.b32.xlu0 %v7803_v8, %s8846_s14 }
 0x39c   :  { %v12821_v52 = vpop.permute.xlu1 %1247  ;;  %7809 = vrot.lane.b32.xlu1 %v7808_v46, %s8844_s22  ;;  %4439 = vmatpush1.bf16.msra.mxu0 %v8537_v38  ;;  %v8546_v38 = vld [vmem:[%s14647_s5 + $0x160] ss:$8 sps:$4 sm:$0xff]   ;;  %v8551_v46 = vld [vmem:[%s14647_s5 + $0x174] ss:$8 sps:$4 sm:$0xff]   ;;  %v1157_v59 = vadd.f32 %v12766_v19, %v1100_v54 }
 0x39d   :  { %4440 = vmatprep.subr.bf16.mxu0 %v8542_v12  ;;  %v1255_v27 = vsel %vm255_vm2, %v16021_v7, %v12821_v52  ;;  %v8563_v54 = vld [vmem:[%s14647_s5 + $0x1b4] ss:$8 sps:$4 sm:$0xff]  }
 0x39e   :  { %v1214_v7 = vadd.f32 %v12802_v60, %v1157_v59 }
 0x39f   :  { %v12839_v43 = vpop.permute.xlu0 %1741  ;;  %7814 = vrot.lane.b32.xlu0 %v7813_v36, %s8844_s22  ;;  %v8554_v36 = vld [vmem:[%s14647_s5 + $0x184] ss:$8 sps:$4 sm:$0xff]  }
 0x3a0   :  { %v12837_v57 = vpop.permute.xlu1 %1304  ;;  %4441 = vmatpush1.bf16.msra.mxu0 %v8540_v1  ;;  %v8549_v1 = vld [vmem:[%s14647_s5 + $0x170] ss:$8 sps:$4 sm:$0xff]   ;;  %v1749_v18 = vsel %vm255_vm2, %v16023_v25, %v12839_v43 }
 0x3a1   :  { %4442 = vmatprep.subr.bf16.mxu0 %v8545_v48 }
 0x3a3   :  { %v12850_v42 = vpop.permute.xlu0 %1798 }
 0x3a4   :  { %v12848_v55 = vpop.permute.xlu1 %1361  ;;  %4443 = vmatpush1.bf16.msra.mxu0 %v8543_v30  ;;  %v1806_v25 = vsel %vm313_vm3, %v11622_v63, %v12850_v42 }
 0x3a5   :  { %4444 = vmatprep.subr.bf16.mxu0 %v8548_v47  ;;  %v8552_v47 = vld [vmem:[%s14647_s5 + $0x180] ss:$8 sps:$4 sm:$0xff]  }
 0x3a7   :  { %v12860_v12 = vpop.permute.xlu0 %1855 }
 0x3a8   :  { %v12858_v8 = vpop.permute.xlu1 %2121  ;;  %4445 = vmatpush1.bf16.msra.mxu0 %v8546_v38  ;;  %v8557_v38 = vld [vmem:[%s14647_s5 + $0x194] ss:$8 sps:$4 sm:$0xff]  }
 0x3a9   :  { %4446 = vmatprep.subr.bf16.mxu0 %v8551_v46  ;;  %v1099_v46 = vmul.f32 %v12555_v22, %v16016_v62  ;;  %v16018_v62 = vld [vmem:[#allocation167_spill] sm:$0xff] }
 0x3aa   :  { %v1198_v44 = vsel %vm197_vm1, %v16018_v62, %v12802_v60 }
 0x3ab   :  { %v12870_v30 = vpop.permute.xlu0 %2615 }
 0x3ac   :  { %v12868_v48 = vpop.permute.xlu1 %1418  ;;  %4447 = vmatpush1.bf16.msra.mxu0 %v8549_v1  ;;  %v16017_v1 = vld [vmem:[#allocation165_spill] sm:$0xff] }
 0x3ad   :  { %4448 = vmatprep.subr.bf16.mxu0 %v8554_v36  ;;  %v1141_v40 = vsel %vm139_vm0, %v16017_v1, %v12766_v19  ;;  %v8555_v36 = vld [vmem:[%s14647_s5 + $0x190] ss:$8 sps:$4 sm:$0xff]   ;;  %v1593_v1 = vmul.f32 %v12555_v22, %v16019_v26 }
 0x3ae   :  { %v1156_v53 = vadd.f32 %v1141_v40, %v1099_v46  ;;  %v8558_v40 = vld [vmem:[%s14647_s5 + $0x1a0] ss:$8 sps:$4 sm:$0xff]  }
 0x3af   :  { %v12884_v15 = vpop.permute.xlu0 %1912  ;;  %v16022_v46 = vld [vmem:[#allocation163_spill] sm:$0xff] }
 0x3b0   :  { %v12882_v29 = vpop.permute.xlu1 %2178  ;;  %4449 = vmatpush1.bf16.msra.mxu0 %v8552_v47  ;;  %v1213_v19 = vadd.f32 %v1198_v44, %v1156_v53  ;;  %v1692_v62 = vsel %vm197_vm1, %v16022_v46, %v12824_v2  ;;  %v1369_v46 = vsel %vm371_vm4, %v11665_v31, %v12848_v55  ;;  %v1426_v31 = vsel %vm429_vm5, %v15874_v33, %v12868_v48  ;;  %v8564_v33 = vld [vmem:[%s14647_s5 + $0x1c0] ss:$8 sps:$4 sm:$0xff]  }
 0x3b1   :  { %4450 = vmatprep.subr.bf16.mxu0 %v8557_v38  ;;  %v1635_v38 = vsel %vm139_vm0, %v16020_v3, %v12805_v41  ;;  %v1312_v3 = vsel %vm313_vm3, %v11584_v45, %v12837_v57  ;;  %v8561_v45 = vld [vmem:[%s14647_s5 + $0x1b0] ss:$8 sps:$4 sm:$0xff]  }
 0x3b2   :  { %v1650_v17 = vadd.f32 %v1635_v38, %v1593_v1  ;;  %v1270_v53 = vadd.f32 %v1255_v27, %v1213_v19  ;;  %v1863_v19 = vsel %vm371_vm4, %v11713_v28, %v12860_v12  ;;  %v1920_v28 = vsel %vm429_vm5, %v11858_v5, %v12884_v15  ;;  %v8567_v5 = vld [vmem:[%s14647_s5 + $0x1d0] ss:$8 sps:$4 sm:$0xff]  }
 0x3b3   :  { %v12901_v37 = vpop.permute.xlu0 %2672 }
 0x3b4   :  { %v1478_v47 = vpop.permute.xlu1 %1477  ;;  %4451 = vmatpush1.bf16.msra.mxu0 %v8555_v36  ;;  %v1594_v36 = vmul.f32 %v12063_v56, %v16019_v26  ;;  %v1707_v59 = vadd.f32 %v1692_v62, %v1650_v17  ;;  %v1327_v60 = vadd.f32 %v1312_v3, %v1270_v53  ;;  %v8566_v56 = vld [vmem:[%s14647_s5 + $0x1c4] ss:$8 sps:$4 sm:$0xff]   ;;  %v1271_v26 = vadd.f32 %v12821_v52, %v1214_v7  ;;  %v8569_v62 = vld [vmem:[%s14647_s5 + $0x1d4] ss:$8 sps:$4 sm:$0xff]  }
 0x3b5   :  { %4452 = vmatprep.subr.bf16.mxu0 %v8560_v14  ;;  %v1487_v63 = vsel %vm491_vm6, %v11960_v35, %v1478_v47 }
 0x3b6   :  { %v1651_v27 = vadd.f32 %v12805_v41, %v1594_v36  ;;  %v1764_v1 = vadd.f32 %v1749_v18, %v1707_v59  ;;  %v1384_v17 = vadd.f32 %v1369_v46, %v1327_v60  ;;  %v1328_v18 = vadd.f32 %v12837_v57, %v1271_v26 }
 0x3b7   :  { %v1480_v44 = vpop.permute.xlu0 %1479 }
 0x3b8   :  { %v1972_v14 = vpop.permute.xlu1 %1971  ;;  %4453 = vmatpush1.bf16.msra.mxu0 %v8558_v40  ;;  %v1708_v41 = vadd.f32 %v12824_v2, %v1651_v27  ;;  %v1821_v52 = vadd.f32 %v1806_v25, %v1764_v1  ;;  %v1385_v3 = vadd.f32 %v12848_v55, %v1328_v18  ;;  %v1488_v46 = vsel %vm491_vm6, %v1478_v47, %v1480_v44  ;;  %v8570_v27 = vld [vmem:[%s14647_s5 + $0x1e0] ss:$8 sps:$4 sm:$0xff]  }
 0x3b9   :  { %4454 = vmatprep.subr.bf16.mxu0 %v8563_v54  ;;  %v1441_v54 = vadd.f32 %v1426_v31, %v1384_v17  ;;  %v1981_v57 = vsel %vm491_vm6, %v11980_v39, %v1972_v14  ;;  %v8572_v39 = vld [vmem:[%s14647_s5 + $0x1e4] ss:$8 sps:$4 sm:$0xff]  }
 0x3ba   :  { %v1765_v35 = vadd.f32 %v12839_v43, %v1708_v41  ;;  %v1878_v7 = vadd.f32 %v1863_v19, %v1821_v52  ;;  %v1442_v55 = vadd.f32 %v12868_v48, %v1385_v3  ;;  %v16024_v18 = vld [vmem:[#allocation116_spill] sm:$0xff] }
 0x3bb   :  { %v1974_v40 = vpop.permute.xlu0 %1973  ;;  %v1503_v36 = vadd.f32 %v1487_v63, %v1441_v54 }
 0x3bc   :  { %v12944_v38 = vpop.permute.xlu1 %2235  ;;  %4455 = vmatpush1.bf16.msra.mxu0 %v8561_v45  ;;  %v1822_v43 = vadd.f32 %v12850_v42, %v1765_v35  ;;  %v1935_v59 = vadd.f32 %v1920_v28, %v1878_v7  ;;  %v1982_v31 = vsel %vm491_vm6, %v1972_v14, %v1974_v40  ;;  %v8575_v14 = vld [vmem:[%s14647_s5 + $0x1f4] ss:$8 sps:$4 sm:$0xff]  }
 0x3bd   :  { %4456 = vmatprep.subr.bf16.mxu0 %v8566_v56 }
 0x3be   :  { %v1879_v47 = vadd.f32 %v12860_v12, %v1822_v43  ;;  %v1997_v44 = vadd.f32 %v1981_v57, %v1935_v59  ;;  %v16026_v57 = vld [vmem:[#allocation137_spill] sm:$0xff]  ;;  %v16027_v43 = vld [vmem:[#allocation12_spill] sm:$0xff]  ;;  %v8784_v59 = vld [vmem:[%s14642_s0 + $0x38] sm:$0xff]  ;;  %s8859_s0 = smov 113  }
 0x3bf   :  { %v12964_v53 = vpop.permute.xlu0 %2729 }
 0x3c0   :  { %v1540_v2 = vpop.permute.xlu1 %1539  ;;  %4457 = vmatpush1.bf16.msra.mxu0 %v8564_v33  ;;  %v1936_v26 = vadd.f32 %v12884_v15, %v1879_v47  ;;  %v8573_v15 = vld [vmem:[%s14647_s5 + $0x1f0] ss:$8 sps:$4 sm:$0xff]   ;;  %v16028_v47 = vld [vmem:[#allocation139_spill] sm:$0xff] }
 0x3c1   :  { %v1549_v45 = vsel %vm554_vm7, %v15883_v0, %v1540_v2  ;;  %4458 = vmatprep.subr.bf16.mxu0 %v8569_v62  ;;  %v1504_v0 = vadd.f32 %v1488_v46, %v1442_v55  ;;  %v2129_v46 = vsel %vm139_vm0, %v16026_v57, %v12858_v8  ;;  %v2186_v55 = vsel %vm197_vm1, %v16027_v43, %v12882_v29  ;;  %v16034_v43 = vld [vmem:[#allocation194_spill] sm:$0xff] }
 0x3c2   :  { %v1565_v60 = vadd.f32 %v1549_v45, %v1503_v36 }
 0x3c3   :  { %v1542_v25 = vpop.permute.xlu0 %1541 }
 0x3c4   :  { %v2034_v56 = vpop.permute.xlu1 %2033  ;;  %v1550_v48 = vsel %vm554_vm7, %v1540_v2, %v1542_v25  ;;  %4459 = vmatpush1.bf16.msra.mxu0 %v8567_v5  ;;  %v12989_v12 = vadd.f32 %v15892_v61, %v1565_v60  ;;  %v8578_v2 = vld [vmem:[%s14647_s5 + $0x204] ss:$8 sps:$4 sm:$0xff]  }
 0x3c5   :  { %v2043_v42 = vsel %vm554_vm7, %v15890_v49, %v2034_v56  ;;  %v1566_v17 = vadd.f32 %v1550_v48, %v1504_v0  ;;  %4460 = vmatprep.subr.bf16.mxu0 %v8572_v39  ;;  %v1998_v49 = vadd.f32 %v1982_v31, %v1936_v26  ;;  %v16029_v31 = vld [vmem:[#allocation158_spill] sm:$0xff]  ;;  %v16030_v48 = vld [vmem:[#allocation161_spill] sm:$0xff] }
 0x3c6   :  { %v2059_v1 = vadd.f32 %v2043_v42, %v1997_v44  ;;  %v1583_v41 = vmax.f32 %v12989_v12, 0.0  ;;  %v2581_v44 = vmul.f32 %v12555_v22, %v16028_v47  ;;  %v2623_v42 = vsel %vm139_vm0, %v16029_v31, %v12870_v30  ;;  %v16035_v31 = vld [vmem:[#allocation206_spill] sm:$0xff] }
 0x3c7   :  { %v12995_v40 = vadd.f32 %v15892_v61, %v1566_v17  ;;  %v2036_v63 = vpop.permute.xlu0 %2035  ;;  %v16025_v61 = vld [vmem:[#allocation126_spill] sm:$0xff]  ;;  %v16032_v17 = vld [vmem:[#allocation183_spill] sm:$0xff] }
 0x3c8   :  { %v2293_v19 = vpop.permute.xlu1 %2292  ;;  %v2044_v33 = vsel %vm554_vm7, %v2034_v56, %v2036_v63  ;;  %4461 = vmatpush1.bf16.msra.mxu0 %v8570_v27  ;;  %v13003_v52 = vadd.f32 %v16024_v18, %v2059_v1  ;;  %v2087_v28 = vmul.f32 %v12555_v22, %v16025_v61  ;;  %v2088_v60 = vmul.f32 %v8784_v59, %v16025_v61  ;;  %v16031_v22 = vld [vmem:[#allocation152_spill] sm:$0xff]  ;;  %v16033_v61 = vld [vmem:[#allocation173_spill] sm:$0xff] }
 0x3c9   :  { %v1584_v54 = vmax.f32 %v12995_v40, 0.0  ;;  %v2060_v62 = vadd.f32 %v2044_v33, %v1998_v49  ;;  %4462 = vmatprep.subr.bf16.mxu0 %v8575_v14  ;;  %v2243_v27 = vsel %vm255_vm2, %v16030_v48, %v12944_v38  ;;  %v2680_v1 = vsel %vm197_vm1, %v16031_v22, %v12901_v37 }
 0x3ca   :  { %v2077_v45 = vmax.f32 %v13003_v52, 0.0  ;;  %v2144_v39 = vadd.f32 %v2129_v46, %v2087_v28  ;;  %v2300_v14 = vsel %vm313_vm3, %v16032_v17, %v2293_v19  ;;  %v2145_v49 = vadd.f32 %v12858_v8, %v2088_v60  ;;  %v8618_v52 = vld [vmem:[%s14647_s5 + $0x2e0] ss:$8 sps:$4 sm:$0xff]  }
 0x3cb   :  { %v7818_v35 = vpack.i.bf16 %v1584_v54, %v1583_v41  ;;  %v13013_v3 = vadd.f32 %v16024_v18, %v2060_v62  ;;  %v2787_v36 = vpop.permute.xlu0 %2786  ;;  %v2582_v63 = vmul.f32 %v8784_v59, %v16028_v47  ;;  %v2638_v33 = vadd.f32 %v2623_v42, %v2581_v44 }
 0x3cc   :  { %v2350_v7 = vpop.permute.xlu1 %2349  ;;  %4463 = vmatpush1.bf16.msra.mxu0 %v8573_v15  ;;  %v2201_v26 = vadd.f32 %v2186_v55, %v2144_v39  ;;  %v2737_v28 = vsel %vm255_vm2, %v16033_v61, %v12964_v53  ;;  %v2794_v8 = vsel %vm313_vm3, %v16034_v43, %v2787_v36  ;;  %vm4769_vm3 = vcmask 7168  }
 0x3cd   :  { %v2078_v5 = vmax.f32 %v13013_v3, 0.0  ;;  %7819 = vrot.lane.b32.xlu1 %v7818_v35, %s8844_s22  ;;  %4495 = vmatprep.subr.bf16.mxu0 %v8578_v2  ;;  %v2357_v35 = vsel %vm371_vm4, %v15915_v20, %v2350_v7  ;;  %v2202_v2 = vadd.f32 %v12882_v29, %v2145_v49  ;;  %v2695_v57 = vadd.f32 %v2680_v1, %v2638_v33 }
 0x3ce   :  { %v2258_v15 = vadd.f32 %v2243_v27, %v2201_v26  ;;  %v2639_v59 = vadd.f32 %v12870_v30, %v2582_v63 }
 0x3cf   :  { %v7823_v0 = vpack.i.bf16 %v2078_v5, %v2077_v45  ;;  %v2844_v25 = vpop.permute.xlu0 %2843  ;;  %v2259_v60 = vadd.f32 %v12944_v38, %v2202_v2  ;;  %v2752_v39 = vadd.f32 %v2737_v28, %v2695_v57 }
 0x3d0   :  { %v2407_v56 = vpop.permute.xlu1 %2406  ;;  %v2315_v46 = vadd.f32 %v2300_v14, %v2258_v15  ;;  %v2851_v20 = vsel %vm371_vm4, %v16035_v31, %v2844_v25  ;;  %v2696_v42 = vadd.f32 %v12901_v37, %v2639_v59  ;;  %vm4641_vm4 = vcmask 924672  }
 0x3d1   :  { %7824 = vrot.lane.b32.xlu0 %v7823_v0, %s8844_s22  ;;  %v2414_v55 = vsel %vm429_vm5, %v15921_v6, %v2407_v56  ;;  %v2316_v48 = vadd.f32 %v2293_v19, %v2259_v60  ;;  %v2809_v27 = vadd.f32 %v2794_v8, %v2752_v39 }
 0x3d2   :  { %v2372_v47 = vadd.f32 %v2357_v35, %v2315_v46  ;;  %v2753_v30 = vadd.f32 %v12964_v53, %v2696_v42 }
 0x3d3   :  { %v2901_v62 = vpop.permute.xlu0 %2900  ;;  %v2373_v38 = vadd.f32 %v2350_v7, %v2316_v48  ;;  %v2866_v22 = vadd.f32 %v2851_v20, %v2809_v27 }
 0x3d4   :  { %v2466_v18 = vpop.permute.xlu1 %2465  ;;  %v2429_v26 = vadd.f32 %v2414_v55, %v2372_v47  ;;  %v2908_v6 = vsel %vm429_vm5, %v12253_v13, %v2901_v62  ;;  %v2810_v19 = vadd.f32 %v2787_v36, %v2753_v30 }
 0x3d5   :  { %v2475_v29 = vsel %vm491_vm6, %v12331_v58, %v2466_v18  ;;  %v2430_v63 = vadd.f32 %v2407_v56, %v2373_v38  ;;  %v2923_v33 = vadd.f32 %v2908_v6, %v2866_v22  ;;  %v16036_v6 = vld [vmem:[#allocation64_spill] sm:$0xff] }
 0x3d6   :  { %v2491_v1 = vadd.f32 %v2475_v29, %v2429_v26  ;;  %v2867_v13 = vadd.f32 %v2844_v25, %v2810_v19 }
 0x3d7   :  { %v2468_v0 = vpop.permute.xlu0 %2467 }
 0x3d8   :  { %v2960_v44 = vpop.permute.xlu1 %2959  ;;  %v2476_v58 = vsel %vm491_vm6, %v2466_v18, %v2468_v0  ;;  %v2924_v18 = vadd.f32 %v2901_v62, %v2867_v13 }
 0x3d9   :  { %v2969_v49 = vsel %vm491_vm6, %v12360_v11, %v2960_v44  ;;  %v2492_v53 = vadd.f32 %v2476_v58, %v2430_v63 }
 0x3da   :  { %v2985_v61 = vadd.f32 %v2969_v49, %v2923_v33 }
 0x3db   :  { %v2962_v14 = vpop.permute.xlu0 %2961 }
 0x3dc   :  { %v2528_v17 = vpop.permute.xlu1 %2527  ;;  %v2970_v35 = vsel %vm491_vm6, %v2960_v44, %v2962_v14  ;;  %vm4649_vm6 = vcmask 916480  }
 0x3dd   :  { %v2537_v37 = vsel %vm554_vm7, %v12420_v16, %v2528_v17  ;;  %v2986_v56 = vadd.f32 %v2970_v35, %v2924_v18 }
 0x3de   :  { %v2553_v15 = vadd.f32 %v2537_v37, %v2491_v1 }
 0x3df   :  { %v2530_v28 = vpop.permute.xlu0 %2529 }
 0x3e0   :  { %v3022_v7 = vpop.permute.xlu1 %3021  ;;  %v2538_v11 = vsel %vm554_vm7, %v2528_v17, %v2530_v28  ;;  %v13081_v57 = vadd.f32 %v15941_v50, %v2553_v15 }
 0x3e1   :  { %v3031_v2 = vsel %vm554_vm7, %v12447_v32, %v3022_v7  ;;  %v2554_v36 = vadd.f32 %v2538_v11, %v2492_v53  ;;  %v16037_v53 = vld [vmem:[#allocation13_spill] sm:$0xff]  ;;  %v16041_v11 = vld [vmem:[#allocation132_spill] sm:$0xff] }
 0x3e2   :  { %v3047_v16 = vadd.f32 %v3031_v2, %v2985_v61  ;;  %v2571_v62 = vmax.f32 %v13081_v57, 0.0  ;;  %v16042_v18 = vmax.f32 %v16041_v11, 0.0 }
 0x3e3   :  { %v13084_v25 = vadd.f32 %v15941_v50, %v2554_v36  ;;  %v3024_v43 = vpop.permute.xlu0 %3023  ;;  %v16043_v36 = vld [vmem:[#allocation75_spill] sm:$0xff] }
 0x3e4   :  { %v13086_v46 = vpop.permute.xlu1 %7749  ;;  %v3032_v32 = vsel %vm554_vm7, %v3022_v7, %v3024_v43  ;;  %v13093_v59 = vadd.f32 %v15959_v10, %v3047_v16  ;;  %v16038_v7 = vunpack.i.h.bf16 %v16037_v53  ;;  %vm4657_vm7 = vcmask 908288  }
 0x3e5   :  { %v7752_v8 = vunpack.i.h.bf16 %v13086_v46  ;;  %v7751_v55 = vunpack.i.l.bf16 %v13086_v46  ;;  %v2572_v60 = vmax.f32 %v13084_v25, 0.0  ;;  %v3048_v39 = vadd.f32 %v3032_v32, %v2986_v56 }
 0x3e6   :  { %v3065_v27 = vmax.f32 %v13093_v59, 0.0  ;;  %v16044_v56 = vmax.f32 %v16043_v36, 0.0  ;;  %v16053_v36 = vld [vmem:[#allocation227_spill] sm:$0xff] }
 0x3e7   :  { %v7828_v50 = vpack.i.bf16 %v2572_v60, %v2571_v62  ;;  %v13101_v47 = vadd.f32 %v15959_v10, %v3048_v39  ;;  %v13103_v0 = vpop.permute.xlu0 %7754  ;;  %v3508_v31 = vsel %vm255_vm2, %v7751_v55, %v7752_v8 }
 0x3e8   :  { %v7760_v44 = vpop.permute.xlu1 %7759  ;;  %v7757_v42 = vunpack.i.h.bf16 %v13103_v0  ;;  %v7756_v48 = vunpack.i.l.bf16 %v13103_v0  ;;  %v3600_v30 = vmax.f32 %v16036_v6, %v3508_v31 }
 0x3e9   :  { %v7762_v20 = vunpack.i.h.bf16 %v7760_v44  ;;  %v7761_v29 = vunpack.i.l.bf16 %v7760_v44  ;;  %v3066_v26 = vmax.f32 %v13101_v47, 0.0  ;;  %7829 = vrot.lane.b32.xlu1 %v7828_v50, %s8844_s22  ;;  %v16047_v50 = vld [vmem:[#allocation53_spill] sm:$0xff] }
 0x3ea   :  { %v3515_v10 = vsel %vm255_vm2, %v7756_v48, %v7757_v42  ;;  %v16048_v44 = vmax.f32 %v16047_v50, 0.0 }
 0x3eb   :  { %v3507_v38 = vsel %vm255_vm2, %v7761_v29, %v7751_v55  ;;  %v3514_v22 = vsel %vm255_vm2, %v7762_v20, %v7756_v48  ;;  %v7833_v1 = vpack.i.bf16 %v3066_v26, %v3065_v27  ;;  %v13125_v14 = vpop.permute.xlu0 %7764  ;;  %v3608_v49 = vmax.f32 %v12475_v23, %v3515_v10  ;;  %v16045_v55 = vld [vmem:[#allocation128_spill] sm:$0xff] }
 0x3ec   :  { %v13123_v17 = vpop.permute.xlu1 %7769  ;;  %v3599_v58 = vmax.f32 %v12493_v51, %v3507_v38  ;;  %v3607_v37 = vmax.f32 %v12497_v4, %v3514_v22  ;;  %v7767_v33 = vunpack.i.h.bf16 %v13125_v14  ;;  %v7766_v15 = vunpack.i.l.bf16 %v13125_v14  ;;  %v16039_v4 = vld [vmem:[#allocation195_spill] sm:$0xff] }
 0x3ed   :  { %v7772_v19 = vunpack.i.h.bf16 %v13123_v17  ;;  %v7771_v63 = vunpack.i.l.bf16 %v13123_v17  ;;  %7834 = vrot.lane.b32.xlu0 %v7833_v1, %s8844_s22  ;;  %v3640_v13 = vpack.c.bf16 %v3608_v49, %v3600_v30  ;;  %v16040_v28 = vunpack.i.l.bf16 %v16039_v4  ;;  %v8612_v14 = vld [vmem:[%s14647_s5 + $0x2c0] ss:$8 sps:$4 sm:$0xff]  }
 0x3ee   :  { %v3639_v61 = vpack.c.bf16 %v3607_v37, %v3599_v58  ;;  %v3229_v2 = vsel %vm139_vm0, %v7766_v15, %v7767_v33  ;;  %v16046_v32 = vmax.f32 %v16045_v55, 0.0 }
 0x3ef   :  { %v3235_v23 = vsel %vm139_vm0, %v16038_v7, %v7771_v63  ;;  %v3236_v51 = vsel %vm139_vm0, %v7771_v63, %v7772_v19  ;;  %v3228_v35 = vsel %vm139_vm0, %v16040_v28, %v7766_v15  ;;  %v13161_v31 = vmax.f32 %v16048_v44, %v3229_v2  ;;  %v13165_v29 = vpop.permute.xlu0 %7774  ;;  %4411 = vmatprep.mubr.bf16.mxu0 %v3640_v13 }
 0x3f0   :  { %v13149_v16 = vmax.f32 %v16042_v18, %v3235_v23  ;;  %v13153_v43 = vmax.f32 %v16044_v56, %v3236_v51  ;;  %v13157_v39 = vmax.f32 %v16046_v32, %v3228_v35  ;;  %v13163_v20 = vpop.permute.xlu1 %7779  ;;  %v7777_v6 = vunpack.i.h.bf16 %v13165_v29  ;;  %4412 = vmatmul.mubr.bf16.gmra.mrb[4].mxu0 %v3639_v61  ;;  %v16049_v51 = vld [vmem:[#allocation85_spill] sm:$0xff] }
 0x3f1   :  { %v15136_v48 = vunpack.i.h.bf16 %v13163_v20  ;;  %v7781_v10 = vunpack.i.l.bf16 %v13163_v20  ;;  %v7776_v30 = vunpack.i.l.bf16 %v13165_v29  ;;  %v16050_v4 = vunpack.i.l.bf16 %v16049_v51 }
 0x3f2   :  { %v7838_v38 = vpack.i.bf16 %v13161_v31, %v13157_v39  ;;  %v7843_v22 = vpack.i.bf16 %v13153_v43, %v13149_v16  ;;  %v16054_v56 = vmax.f32 %v16053_v36, 0.0 }
 0x3f3   :  { %v3522_v1 = vsel %vm255_vm2, %v7776_v30, %v7777_v6  ;;  %v3529_v49 = vsel %vm255_vm2, %v7781_v10, %v15136_v48  ;;  %v7785_v37 = vpop.permute.xlu0 %7784 }
 0x3f4   :  { %v13181_v58 = vpop.permute.xlu1 %7789  ;;  %7839 = vrot.lane.b32.xlu1 %v7838_v38, %s8846_s14  ;;  %7844 = vrot.lane.b32.xlu0 %v7843_v22, %s8846_s14  ;;  %v3616_v63 = vmax.f32 %v12577_v24, %v3522_v1  ;;  %v3624_v15 = vmax.f32 %v12585_v21, %v3529_v49  ;;  %v7787_v53 = vunpack.i.h.bf16 %v7785_v37  ;;  %v7786_v7 = vunpack.i.l.bf16 %v7785_v37  ;;  %v16051_v21 = vld [vmem:[#allocation212_spill] sm:$0xff] }
 0x3f5   :  { %v7792_v13 = vunpack.i.h.bf16 %v13181_v58  ;;  %v7791_v61 = vunpack.i.l.bf16 %v13181_v58  ;;  %v16052_v11 = vmax.f32 %v16051_v21, 0.0  ;;  %v16055_v1 = vld [vmem:[#allocation80_spill] sm:$0xff] }
 0x3f6   :  { %v3648_v23 = vpack.c.bf16 %v3624_v15, %v3616_v63  ;;  %v3521_v2 = vsel %vm255_vm2, %v7786_v7, %v7776_v30  ;;  %v3528_v24 = vsel %vm255_vm2, %v7787_v53, %v7781_v10  ;;  %v16056_v49 = vunpack.i.h.bf16 %v16055_v1  ;;  %v16057_v15 = vld [vmem:[#allocation209_spill] sm:$0xff] }
 0x3f7   :  { %v3242_v28 = vsel %vm139_vm0, %v16050_v4, %v7791_v61  ;;  %v3243_v35 = vsel %vm139_vm0, %v7791_v61, %v7792_v13  ;;  %v13205_v32 = vpop.permute.xlu0 %7794  ;;  %v3615_v50 = vmax.f32 %v12621_v9, %v3521_v2  ;;  %v3623_v44 = vmax.f32 %v12625_v34, %v3528_v24  ;;  %v16059_v34 = vld [vmem:[#allocation232_spill] sm:$0xff]  ;;  %v16064_v1 = vld [vmem:[#allocation101_spill] sm:$0xff] }
 0x3f8   :  { %v13199_v18 = vmax.f32 %v16052_v11, %v3242_v28  ;;  %v13203_v55 = vmax.f32 %v16054_v56, %v3243_v35  ;;  %4421 = vmatprep.mubr.bf16.mxu0 %v3648_v23  ;;  %v7797_v38 = vunpack.i.h.bf16 %v13205_v32  ;;  %v7796_v30 = vunpack.i.l.bf16 %v13205_v32  ;;  %v16061_v35 = vld [vmem:[#allocation99_spill] sm:$0xff] }
 0x3f9   :  { %v3647_v22 = vpack.c.bf16 %v3623_v44, %v3615_v50  ;;  %v16058_v9 = vmax.f32 %v16057_v15, 0.0  ;;  %v16060_v53 = vmax.f32 %v16059_v34, 0.0  ;;  %v16062_v2 = vunpack.i.h.bf16 %v16061_v35  ;;  %v16066_v15 = vld [vmem:[#allocation94_spill] sm:$0xff] }
 0x3fa   :  { %v7848_v10 = vpack.i.bf16 %v13203_v55, %v13199_v18  ;;  %v3249_v37 = vsel %vm139_vm0, %v16056_v49, %v7796_v30  ;;  %v3250_v63 = vsel %vm139_vm0, %v7796_v30, %v7797_v38  ;;  %v16065_v49 = vunpack.i.h.bf16 %v16064_v1 }
 0x3fb   :  { %v13221_v61 = vmax.f32 %v16058_v9, %v3249_v37  ;;  %v13225_v7 = vmax.f32 %v16060_v53, %v3250_v63  ;;  %4422 = vmatmul.mubr.bf16.gmra.mrb[8].mxu0 %v3647_v22  ;;  %v16067_v9 = vunpack.i.h.bf16 %v16066_v15  ;;  %v16068_v53 = vld [vmem:[#allocation155_spill] sm:$0xff] }
 0x3fc   :  { %7849 = vrot.lane.b32.xlu1 %v7848_v10, %s8846_s14  ;;  %v16063_v10 = vld [vmem:[#allocation181_spill] sm:$0xff] }
 0x3fd   :  { %v7853_v23 = vpack.i.bf16 %v13225_v7, %v13221_v61 }
 0x3ff   :  { %7854 = vrot.lane.b32.xlu0 %v7853_v23, %s8846_s14  ;;  %v16069_v23 = vmax.f32 %v16068_v53, 0.0 }
 0x40a   :  { %v13231_v51 = vpop.permute.xlu1 %7799 }
 0x40b   :  { %v7801_v4 = vunpack.i.l.bf16 %v13231_v51  ;;  %v15135_v28 = vunpack.i.h.bf16 %v13231_v51 }
 0x40d   :  { %v3495_v24 = vsel %vm255_vm2, %v16062_v2, %v7801_v4  ;;  %v13240_v11 = vpop.permute.xlu0 %7804  ;;  %v3496_v30 = vsel %vm255_vm2, %v7801_v4, %v15135_v28  ;;  %v16070_v2 = vld [vmem:[#allocation18_spill] sm:$0xff] }
 0x40e   :  { %v13238_v21 = vpop.permute.xlu1 %7809  ;;  %v15137_v50 = vunpack.i.h.bf16 %v13240_v11  ;;  %v7806_v44 = vunpack.i.l.bf16 %v13240_v11  ;;  %v3585_v22 = vmax.f32 %v16063_v10, %v3495_v24  ;;  %v16071_v4 = vmax.f32 %v16070_v2, 0.0  ;;  %v16072_v24 = vld [vmem:[#allocation11_spill] sm:$0xff]  ;;  %v16075_v2 = vld [vmem:[#allocation234_spill] sm:$0xff] }
 0x40f   :  { %v7812_v36 = vunpack.i.h.bf16 %v13238_v21  ;;  %v7811_v56 = vunpack.i.l.bf16 %v13238_v21 }
 0x410   :  { %v3502_v34 = vsel %vm255_vm2, %v16067_v9, %v7806_v44  ;;  %v16073_v9 = vld [vmem:[#allocation78_spill] sm:$0xff] }
 0x411   :  { %v3216_v37 = vsel %vm139_vm0, %v16065_v49, %v7811_v56  ;;  %v3217_v63 = vsel %vm139_vm0, %v7811_v56, %v7812_v36  ;;  %v3593_v10 = vmax.f32 %v16072_v24, %v3502_v34  ;;  %v13268_v1 = vpop.permute.xlu0 %7814  ;;  %v3503_v56 = vsel %vm255_vm2, %v7806_v44, %v15137_v50  ;;  %v8576_v50 = vld [vmem:[%s14647_s5 + $0x200] ss:$8 sps:$4 sm:$0xff]  }
 0x412   :  { %v13261_v35 = vmax.f32 %v16069_v23, %v3216_v37  ;;  %v13265_v28 = vmax.f32 %v16071_v4, %v3217_v63  ;;  %v7817_v49 = vunpack.i.h.bf16 %v13268_v1  ;;  %v7816_v15 = vunpack.i.l.bf16 %v13268_v1  ;;  %v16074_v37 = vld [vmem:[#allocation104_spill] sm:$0xff] }
 0x413   :  { %v3586_v53 = vmax.f32 %v16073_v9, %v3496_v30  ;;  %v3594_v23 = vmax.f32 %v16074_v37, %v3503_v56  ;;  %v3633_v48 = vpack.c.bf16 %v3593_v10, %v3585_v22  ;;  %v16076_v34 = vunpack.i.h.bf16 %v16075_v2  ;;  %v16077_v30 = vld [vmem:[#allocation160_spill] sm:$0xff]  ;;  %v16079_v22 = vld [vmem:[#allocation214_spill] sm:$0xff] }
 0x414   :  { %v7858_v63 = vpack.i.bf16 %v13265_v28, %v13261_v35  ;;  %v3224_v44 = vsel %vm139_vm0, %v7816_v15, %v7817_v49  ;;  %v16078_v9 = vmax.f32 %v16077_v30, 0.0  ;;  %v16080_v10 = vmax.f32 %v16079_v22, 0.0  ;;  %v8581_v2 = vld [vmem:[%s14647_s5 + $0x214] ss:$8 sps:$4 sm:$0xff]   ;;  %v8596_v30 = vld [vmem:[%s14647_s5 + $0x264] ss:$8 sps:$4 sm:$0xff]  }
 0x415   :  { %v3223_v4 = vsel %vm139_vm0, %v16076_v34, %v7816_v15  ;;  %v3634_v24 = vpack.c.bf16 %v3594_v23, %v3586_v53  ;;  %v8579_v53 = vld [vmem:[%s14647_s5 + $0x210] ss:$8 sps:$4 sm:$0xff]   ;;  %v8584_v23 = vld [vmem:[%s14647_s5 + $0x224] ss:$8 sps:$4 sm:$0xff]   ;;  %v8599_v22 = vld [vmem:[%s14647_s5 + $0x274] ss:$8 sps:$4 sm:$0xff]  }
 0x416   :  { %v13290_v56 = vmax.f32 %v16078_v9, %v3223_v4  ;;  %v13294_v37 = vmax.f32 %v16080_v10, %v3224_v44  ;;  %7859 = vrot.lane.b32.xlu1 %v7858_v63, %s8846_s14  ;;  %v8585_v63 = vld [vmem:[%s14647_s5 + $0x230] ss:$8 sps:$4 sm:$0xff]   ;;  %v8590_v34 = vld [vmem:[%s14647_s5 + $0x244] ss:$8 sps:$4 sm:$0xff]   ;;  %v8588_v4 = vld [vmem:[%s14647_s5 + $0x240] ss:$8 sps:$4 sm:$0xff]  }
 0x417   :  { %4464 = vmatprep.mubr.bf16.mxu0 %v3634_v24  ;;  %v8593_v44 = vld [vmem:[%s14647_s5 + $0x254] ss:$8 sps:$4 sm:$0xff]   ;;  %v8591_v24 = vld [vmem:[%s14647_s5 + $0x250] ss:$8 sps:$4 sm:$0xff]   ;;  %v8594_v9 = vld [vmem:[%s14647_s5 + $0x260] ss:$8 sps:$4 sm:$0xff]  }
 0x418   :  { %4465 = vmatmul.mubr.bf16.vlgmr.msra.gmra.mrb[0].mxu0 %v3633_v48  ;;  %v7863_v15 = vpack.i.bf16 %v13294_v37, %v13290_v56  ;;  %v8582_v48 = vld [vmem:[%s14647_s5 + $0x220] ss:$8 sps:$4 sm:$0xff]   ;;  %v8597_v10 = vld [vmem:[%s14647_s5 + $0x270] ss:$8 sps:$4 sm:$0xff]  }
 0x419   :  { %4496 = vmatpush1.bf16.msra.mxu0 %v8576_v50  ;;  %v8587_v50 = vld [vmem:[%s14647_s5 + $0x234] ss:$8 sps:$4 sm:$0xff]  }
 0x41a   :  { %7864 = vrot.lane.b32.xlu0 %v7863_v15, %s8846_s14  ;;  %4497 = vmatprep.subr.bf16.mxu0 %v8581_v2  ;;  %v8602_v2 = vld [vmem:[%s14647_s5 + $0x284] ss:$8 sps:$4 sm:$0xff]   ;;  %v8600_v15 = vld [vmem:[%s14647_s5 + $0x280] ss:$8 sps:$4 sm:$0xff]  }
 0x41d   :  { %4498 = vmatpush1.bf16.msra.mxu0 %v8579_v53  ;;  %v8605_v53 = vld [vmem:[%s14647_s5 + $0x294] ss:$8 sps:$4 sm:$0xff]  }
 0x41e   :  { %4499 = vmatprep.subr.bf16.mxu0 %v8584_v23  ;;  %v8603_v23 = vld [vmem:[%s14647_s5 + $0x290] ss:$8 sps:$4 sm:$0xff]  }
 0x421   :  { %4500 = vmatpush1.bf16.msra.mxu0 %v8582_v48  ;;  %v8608_v48 = vld [vmem:[%s14647_s5 + $0x2a4] ss:$8 sps:$4 sm:$0xff]  }
 0x422   :  { %4501 = vmatprep.subr.bf16.mxu0 %v8587_v50  ;;  %v8606_v50 = vld [vmem:[%s14647_s5 + $0x2a0] ss:$8 sps:$4 sm:$0xff]  }
 0x425   :  { %4502 = vmatpush1.bf16.msra.mxu0 %v8585_v63  ;;  %v8611_v63 = vld [vmem:[%s14647_s5 + $0x2b4] ss:$8 sps:$4 sm:$0xff]  }
 0x426   :  { %4503 = vmatprep.subr.bf16.mxu0 %v8590_v34 }
 0x429   :  { %4504 = vmatpush1.bf16.msra.mxu0 %v8588_v4 }
 0x42a   :  { %4505 = vmatprep.subr.bf16.mxu0 %v8593_v44 }
 0x42d   :  { %4506 = vmatpush1.bf16.msra.mxu0 %v8591_v24  ;;  %v8609_v24 = vld [vmem:[%s14647_s5 + $0x2b0] ss:$8 sps:$4 sm:$0xff]  }
 0x42e   :  { %4507 = vmatprep.subr.bf16.mxu0 %v8596_v30  ;;  %v8614_v30 = vld [vmem:[%s14647_s5 + $0x2c4] ss:$8 sps:$4 sm:$0xff]  }
 0x431   :  { %4508 = vmatpush1.bf16.msra.mxu0 %v8594_v9 }
 0x432   :  { %4509 = vmatprep.subr.bf16.mxu0 %v8599_v22 }
 0x435   :  { %4510 = vmatpush1.bf16.msra.mxu0 %v8597_v10  ;;  %v16081_v10 = vld [vmem:[#allocation73_spill] sm:$0xff] }
 0x436   :  { %4511 = vmatprep.subr.bf16.mxu0 %v8602_v2  ;;  %v16082_v2 = vmax.f32 %v16081_v10, 0.0  ;;  %v8626_v10 = vld [vmem:[%s14647_s5 + $0x304] ss:$8 sps:$4 sm:$0xff]  }
 0x439   :  { %4512 = vmatpush1.bf16.msra.mxu0 %v8600_v15 }
 0x43a   :  { %4513 = vmatprep.subr.bf16.mxu0 %v8605_v53 }
 0x43d   :  { %4514 = vmatpush1.bf16.msra.mxu0 %v8603_v23 }
 0x43e   :  { %4515 = vmatprep.subr.bf16.mxu0 %v8608_v48 }
 0x43f   :  { %v7820_v34 = vpop.permute.xlu1 %7819 }
 0x440   :  { %v7822_v4 = vunpack.i.h.bf16 %v7820_v34  ;;  %v7821_v44 = vunpack.i.l.bf16 %v7820_v34  ;;  %v16083_v34 = vld [vmem:[#allocation79_spill] sm:$0xff] }
 0x441   :  { %4516 = vmatpush1.bf16.msra.mxu0 %v8606_v50 }
 0x442   :  { %4517 = vmatprep.subr.bf16.mxu0 %v8611_v63  ;;  %v3230_v9 = vsel %vm139_vm0, %v7767_v33, %v7821_v44  ;;  %v3231_v22 = vsel %vm139_vm0, %v7821_v44, %v7822_v4  ;;  %v8617_v63 = vld [vmem:[%s14647_s5 + $0x2d4] ss:$8 sps:$4 sm:$0xff]   ;;  %v16084_v44 = vmax.f32 %v16083_v34, 0.0  ;;  %v13472_v32 = vmax.f32 %v1584_v54, %v7822_v4 }
 0x443   :  { %v13375_v15 = vmax.f32 %v16082_v2, %v3230_v9  ;;  %v13379_v53 = vmax.f32 %v1583_v41, %v3231_v22  ;;  %v7825_v23 = vpop.permute.xlu0 %7824  ;;  %v8621_v22 = vld [vmem:[%s14647_s5 + $0x2f0] ss:$8 sps:$4 sm:$0xff]  }
 0x444   :  { %v7827_v48 = vunpack.i.h.bf16 %v7825_v23  ;;  %v7826_v50 = vunpack.i.l.bf16 %v7825_v23 }
 0x445   :  { %4518 = vmatpush1.bf16.msra.mxu0 %v8609_v24  ;;  %v7868_v33 = vpack.i.bf16 %v13379_v53, %v13375_v15 }
 0x446   :  { %4519 = vmatprep.subr.bf16.mxu0 %v8614_v30  ;;  %v3237_v12 = vsel %vm139_vm0, %v7772_v19, %v7826_v50  ;;  %v3238_v41 = vsel %vm139_vm0, %v7826_v50, %v7827_v48  ;;  %v8615_v30 = vld [vmem:[%s14647_s5 + $0x2d0] ss:$8 sps:$4 sm:$0xff]   ;;  %v8620_v19 = vld [vmem:[%s14647_s5 + $0x2e4] ss:$8 sps:$4 sm:$0xff]   ;;  %v13455_v1 = vmax.f32 %v2078_v5, %v7827_v48 }
 0x447   :  { %v13395_v24 = vmax.f32 %v16084_v44, %v3237_v12  ;;  %v13399_v9 = vmax.f32 %v2077_v45, %v3238_v41  ;;  %7869 = vrot.lane.b32.xlu1 %v7868_v33, %s8846_s14  ;;  %v8623_v45 = vld [vmem:[%s14647_s5 + $0x2f4] ss:$8 sps:$4 sm:$0xff]  }
 0x449   :  { %4520 = vmatpush1.bf16.msra.mxu0 %v8612_v14  ;;  %v7873_v17 = vpack.i.bf16 %v13399_v9, %v13395_v24 }
 0x44a   :  { %4521 = vmatprep.subr.bf16.mxu0 %v8617_v63  ;;  %v16085_v63 = vld [vmem:[#allocation228_spill] sm:$0xff] }
 0x44b   :  { %7874 = vrot.lane.b32.xlu0 %v7873_v17, %s8846_s14  ;;  %v16086_v12 = vmax.f32 %v16085_v63, 0.0 }
 0x44d   :  { %4522 = vmatpush1.bf16.msra.mxu0 %v8615_v30 }
 0x44e   :  { %4523 = vmatprep.subr.bf16.mxu0 %v8620_v19  ;;  %v16087_v19 = vld [vmem:[#allocation87_spill] sm:$0xff] }
 0x451   :  { %4524 = vmatpush1.bf16.msra.mxu0 %v8618_v52  ;;  %v16088_v52 = vmax.f32 %v16087_v19, 0.0 }
 0x452   :  { %4525 = vmatprep.subr.bf16.mxu0 %v8623_v45  ;;  %v16089_v45 = vld [vmem:[#allocation102_spill] sm:$0xff] }
 0x453   :  { %v13439_v58 = vmax.f32 %v16088_v52, %v7817_v49 }
 0x455   :  { %4526 = vmatpush1.bf16.msra.mxu0 %v8621_v22  ;;  %v16090_v22 = vmax.f32 %v16089_v45, 0.0 }
 0x456   :  { %4558 = vmatprep.subr.bf16.mxu0 %v8626_v10 }
 0x457   :  { %v13447_v10 = vmax.f32 %v16090_v22, %v7812_v36 }
 0x45b   :  { %v7830_v2 = vpop.permute.xlu1 %7829 }
 0x45c   :  { %v7832_v23 = vunpack.i.h.bf16 %v7830_v2  ;;  %v7831_v50 = vunpack.i.l.bf16 %v7830_v2  ;;  %v16091_v2 = vld [vmem:[#allocation17_spill] sm:$0xff] }
 0x45d   :  { %v16092_v21 = vmax.f32 %v16091_v2, 0.0 }
 0x45e   :  { %v3244_v14 = vsel %vm139_vm0, %v7792_v13, %v7831_v50  ;;  %v3245_v33 = vsel %vm139_vm0, %v7831_v50, %v7832_v23  ;;  %v13476_v3 = vmax.f32 %v2572_v60, %v7832_v23 }
 0x45f   :  { %v13429_v41 = vmax.f32 %v16086_v12, %v3244_v14  ;;  %v13433_v34 = vmax.f32 %v2571_v62, %v3245_v33  ;;  %v7835_v44 = vpop.permute.xlu0 %7834  ;;  %v16093_v12 = vld [vmem:[#allocation65_spill] sm:$0xff] }
 0x460   :  { %v7837_v30 = vunpack.i.h.bf16 %v7835_v44  ;;  %v7836_v17 = vunpack.i.l.bf16 %v7835_v44 }
 0x461   :  { %v7878_v13 = vpack.i.bf16 %v13433_v34, %v13429_v41 }
 0x462   :  { %v3251_v57 = vsel %vm139_vm0, %v7797_v38, %v7836_v17  ;;  %v3252_v62 = vsel %vm139_vm0, %v7836_v17, %v7837_v30  ;;  %v13459_v49 = vmax.f32 %v3066_v26, %v7837_v30  ;;  %v7888_v26 = vpack.i.bf16 %v13439_v58, %v13447_v10  ;;  %v16094_v30 = vld [vmem:[#allocation84_spill] sm:$0xff] }
 0x463   :  { %v13463_v50 = vmax.f32 %v16092_v21, %v3251_v57  ;;  %v13467_v36 = vmax.f32 %v3065_v27, %v3252_v62  ;;  %7879 = vrot.lane.b32.xlu1 %v7878_v13, %s8846_s14  ;;  %v7893_v38 = vpack.i.bf16 %v13455_v1, %v13472_v32  ;;  %v16095_v57 = vunpack.i.h.bf16 %v13163_v20 }
 0x464   :  { %v7898_v60 = vpack.i.bf16 %v13459_v49, %v13476_v3 }
 0x465   :  { %v7883_v59 = vpack.i.bf16 %v13467_v36, %v13463_v50 }
 0x466   :  { %v13478_v5 = vpop.permute.xlu1 %7839  ;;  %v13480_v47 = vpop.permute.xlu0 %7844 }
 0x467   :  { %v7842_v27 = vunpack.i.h.bf16 %v13478_v5  ;;  %v7841_v40 = vunpack.i.l.bf16 %v13478_v5  ;;  %v7847_v54 = vunpack.i.h.bf16 %v13480_v47  ;;  %v7846_v25 = vunpack.i.l.bf16 %v13480_v47  ;;  %7889 = vrot.lane.b32.xlu1 %v7888_v26, %s8846_s14  ;;  %7884 = vrot.lane.b32.xlu0 %v7883_v59, %s8846_s14  ;;  %v16096_v26 = vld [vmem:[#allocation230_spill] sm:$0xff] }
 0x469   :  { %v3510_v4 = vsel %vm255_vm2, %v7841_v40, %v7842_v27  ;;  %v3517_v48 = vsel %vm255_vm2, %v7846_v25, %v7847_v54  ;;  %v3509_v23 = vsel %vm255_vm2, %v7752_v8, %v7841_v40  ;;  %v3516_v14 = vsel %vm255_vm2, %v7757_v42, %v7846_v25  ;;  %v16097_v40 = vld [vmem:[#allocation231_spill] sm:$0xff] }
 0x46a   :  { %v3602_v33 = vmax.f32 %v13157_v39, %v3510_v4  ;;  %v3610_v63 = vmax.f32 %v13149_v16, %v3517_v48  ;;  %v3601_v44 = vmax.f32 %v16093_v12, %v3509_v23  ;;  %v3609_v17 = vmax.f32 %v16094_v30, %v3516_v14  ;;  %v16101_v30 = vld [vmem:[#allocation235_spill] sm:$0xff] }
 0x46b   :  { %7899 = vrot.lane.b32.xlu1 %v7898_v60, %s8846_s14  ;;  %7894 = vrot.lane.b32.xlu0 %v7893_v38, %s8846_s14 }
 0x46c   :  { %v3642_v19 = vpack.c.bf16 %v3610_v63, %v3602_v33  ;;  %v3641_v46 = vpack.c.bf16 %v3609_v17, %v3601_v44  ;;  %v16099_v33 = vunpack.i.h.bf16 %v13240_v11  ;;  %v16100_v44 = vld [vmem:[#allocation96_spill] sm:$0xff] }
 0x46d   :  { %v8624_v11 = vld [vmem:[%s14647_s5 + $0x300] ss:$8 sps:$4 sm:$0xff]  }
 0x46e   :  { %v13514_v52 = vpop.permute.xlu1 %7849  ;;  %4474 = vmatprep.mubr.bf16.mxu0 %v3642_v19 }
 0x46f   :  { %v7852_v8 = vunpack.i.h.bf16 %v13514_v52  ;;  %v7851_v0 = vunpack.i.l.bf16 %v13514_v52  ;;  %4475 = vmatmul.mubr.bf16.gmra.mrb[4].mxu0 %v3641_v46 }
 0x471   :  { %v13518_v42 = vpop.permute.xlu0 %7854  ;;  %v3524_v13 = vsel %vm255_vm2, %v7851_v0, %v7852_v8  ;;  %v3523_v45 = vsel %vm255_vm2, %v7777_v6, %v7851_v0 }
 0x472   :  { %v7857_v16 = vunpack.i.h.bf16 %v13518_v42  ;;  %v7856_v39 = vunpack.i.l.bf16 %v13518_v42  ;;  %v3618_v2 = vmax.f32 %v13199_v18, %v3524_v13  ;;  %v3617_v59 = vmax.f32 %v16096_v26, %v3523_v45  ;;  %v8629_v13 = vld [vmem:[%s14647_s5 + $0x314] ss:$8 sps:$4 sm:$0xff]   ;;  %v8627_v45 = vld [vmem:[%s14647_s5 + $0x310] ss:$8 sps:$4 sm:$0xff]  }
 0x473   :  { %v16098_v18 = vunpack.i.h.bf16 %v13231_v51  ;;  %v8639_v26 = vld [vmem:[%s14647_s5 + $0x350] ss:$8 sps:$4 sm:$0xff]  }
 0x474   :  { %v3531_v22 = vsel %vm255_vm2, %v7856_v39, %v7857_v16  ;;  %v3530_v62 = vsel %vm255_vm2, %v16095_v57, %v7856_v39  ;;  %v8633_v57 = vld [vmem:[%s14647_s5 + $0x330] ss:$8 sps:$4 sm:$0xff]  }
 0x475   :  { %v3626_v21 = vmax.f32 %v13221_v61, %v3531_v22  ;;  %v3625_v25 = vmax.f32 %v16097_v40, %v3530_v62  ;;  %v8635_v22 = vld [vmem:[%s14647_s5 + $0x334] ss:$8 sps:$4 sm:$0xff]   ;;  %v8638_v62 = vld [vmem:[%s14647_s5 + $0x344] ss:$8 sps:$4 sm:$0xff]   ;;  %v8642_v40 = vld [vmem:[%s14647_s5 + $0x360] ss:$8 sps:$4 sm:$0xff]  }
 0x477   :  { %v3650_v60 = vpack.c.bf16 %v3626_v21, %v3618_v2  ;;  %v3649_v29 = vpack.c.bf16 %v3625_v25, %v3617_v59  ;;  %v8636_v2 = vld [vmem:[%s14647_s5 + $0x340] ss:$8 sps:$4 sm:$0xff]   ;;  %v8641_v21 = vld [vmem:[%s14647_s5 + $0x354] ss:$8 sps:$4 sm:$0xff]   ;;  %v8644_v59 = vld [vmem:[%s14647_s5 + $0x364] ss:$8 sps:$4 sm:$0xff]  }
 0x478   :  { %v8647_v25 = vld [vmem:[%s14647_s5 + $0x374] ss:$8 sps:$4 sm:$0xff]  }
 0x479   :  { %4484 = vmatprep.mubr.bf16.mxu0 %v3650_v60  ;;  %v8851_v60 = vmov 65535  }
 0x47a   :  { %4485 = vmatmul.mubr.bf16.gmra.mrb[8].mxu0 %v3649_v29  ;;  %v4361_v29 = vsel %vm4359_vm8, 4294967295, %v8851_v60  ;;  %vm4665_vm8 = vcmask 801792  }
 0x488   :  { %v13538_v6 = vpop.permute.xlu1 %7859 }
 0x489   :  { %v7862_v38 = vunpack.i.h.bf16 %v13538_v6  ;;  %v7861_v20 = vunpack.i.l.bf16 %v13538_v6 }
 0x48b   :  { %v3497_v61 = vsel %vm255_vm2, %v16098_v18, %v7861_v20  ;;  %v3498_v14 = vsel %vm255_vm2, %v7861_v20, %v7862_v38  ;;  %v8645_v20 = vld [vmem:[%s14647_s5 + $0x370] ss:$8 sps:$4 sm:$0xff]   ;;  %v8650_v18 = vld [vmem:[%s14647_s5 + $0x384] ss:$8 sps:$4 sm:$0xff]  }
 0x48c   :  { %v13542_v4 = vpop.permute.xlu0 %7864  ;;  %v3587_v51 = vmax.f32 %v16100_v44, %v3497_v61  ;;  %v3588_v19 = vmax.f32 %v13261_v35, %v3498_v14  ;;  %v8632_v35 = vld [vmem:[%s14647_s5 + $0x324] ss:$8 sps:$4 sm:$0xff]   ;;  %v8653_v61 = vld [vmem:[%s14647_s5 + $0x394] ss:$8 sps:$4 sm:$0xff]   ;;  %v8648_v14 = vld [vmem:[%s14647_s5 + $0x380] ss:$8 sps:$4 sm:$0xff]  }
 0x48d   :  { %v7867_v48 = vunpack.i.h.bf16 %v13542_v4  ;;  %v7866_v23 = vunpack.i.l.bf16 %v13542_v4 }
 0x48f   :  { %v3504_v63 = vsel %vm255_vm2, %v16099_v33, %v7866_v23  ;;  %v3505_v12 = vsel %vm255_vm2, %v7866_v23, %v7867_v48  ;;  %v4362_v23 = vsel %vm4360_vm9, %v4361_v29, 0  ;;  %v8651_v33 = vld [vmem:[%s14647_s5 + $0x390] ss:$8 sps:$4 sm:$0xff]   ;;  %vm4673_vm9 = vcmask 793600  }
 0x490   :  { %v3595_v17 = vmax.f32 %v16101_v30, %v3504_v63  ;;  %v3596_v46 = vmax.f32 %v13290_v56, %v3505_v12  ;;  %v8630_v56 = vld [vmem:[%s14647_s5 + $0x320] ss:$8 sps:$4 sm:$0xff]   ;;  %v4367_v63 = vand.u32 %v8653_v61, %v4362_v23  ;;  %v4364_v12 = vand.u32 %v8651_v33, %v4362_v23  ;;  %s8852_s5 = smov 30  }
 0x492   :  { %v3635_v0 = vpack.c.bf16 %v3595_v17, %v3587_v51  ;;  %v3636_v39 = vpack.c.bf16 %v3596_v46, %v3588_v19 }
 0x494   :  { %4527 = vmatprep.mubr.bf16.mxu0 %v3636_v39 }
 0x495   :  { %4528 = vmatmul.mubr.bf16.vlgmr.msra.gmra.mrb[0].mxu0 %v3635_v0 }
 0x496   :  { %4559 = vmatpush1.bf16.msra.mxu0 %v8624_v11 }
 0x497   :  { %4560 = vmatprep.subr.bf16.mxu0 %v8629_v13 }
 0x49a   :  { %4561 = vmatpush1.bf16.msra.mxu0 %v8627_v45 }
 0x49b   :  { %4562 = vmatprep.subr.bf16.mxu0 %v8632_v35 }
 0x49e   :  { %4563 = vmatpush1.bf16.msra.mxu0 %v8630_v56 }
 0x49f   :  { %4564 = vmatprep.subr.bf16.mxu0 %v8635_v22 }
 0x4a2   :  { %4565 = vmatpush1.bf16.msra.mxu0 %v8633_v57 }
 0x4a3   :  { %4566 = vmatprep.subr.bf16.mxu0 %v8638_v62 }
 0x4a6   :  { %4567 = vmatpush1.bf16.msra.mxu0 %v8636_v2 }
 0x4a7   :  { %4568 = vmatprep.subr.bf16.mxu0 %v8641_v21 }
 0x4aa   :  { %4569 = vmatpush1.bf16.msra.mxu0 %v8639_v26 }
 0x4ab   :  { %4570 = vmatprep.subr.bf16.mxu0 %v8644_v59 }
 0x4ae   :  { %4571 = vmatpush1.bf16.msra.mxu0 %v8642_v40 }
 0x4af   :  { %4572 = vmatprep.subr.bf16.mxu0 %v8647_v25 }
 0x4b2   :  { %4573 = vmatpush1.bf16.msra.mxu0 %v8645_v20 }
 0x4b3   :  { %4574 = vmatprep.subr.bf16.mxu0 %v8650_v18 }
 0x4b6   :  { %4575 = vmatpush1.bf16.msra.mxu0 %v8648_v14 }
 0x4b7   :  { %4576 = vmatprep.subr.bf16.mxu0 %v4367_v63 }
 0x4b9   :  { %v7870_v44 = vpop.permute.xlu1 %7869 }
 0x4ba   :  { %4577 = vmatpush1.bf16.msra.mxu0 %v4364_v12  ;;  %v7872_v51 = vunpack.i.h.bf16 %v7870_v44  ;;  %v7871_v30 = vunpack.i.l.bf16 %v7870_v44 }
 0x4bc   :  { %v3512_v0 = vsel %vm255_vm2, %v7871_v30, %v7872_v51  ;;  %v3511_v39 = vsel %vm255_vm2, %v7842_v27, %v7871_v30 }
 0x4bd   :  { %v7875_v17 = vpop.permute.xlu0 %7874  ;;  %v3604_v45 = vmax.f32 %v13375_v15, %v3512_v0  ;;  %v3603_v56 = vmax.f32 %v13161_v31, %v3511_v39 }
 0x4be   :  { %v7877_v19 = vunpack.i.h.bf16 %v7875_v17  ;;  %v7876_v46 = vunpack.i.l.bf16 %v7875_v17 }
 0x4c0   :  { %v3519_v11 = vsel %vm255_vm2, %v7876_v46, %v7877_v19  ;;  %v3518_v13 = vsel %vm255_vm2, %v7847_v54, %v7876_v46 }
 0x4c1   :  { %v3612_v35 = vmax.f32 %v13395_v24, %v3519_v11  ;;  %v3611_v22 = vmax.f32 %v13153_v43, %v3518_v13 }
 0x4c3   :  { %v3644_v57 = vpack.c.bf16 %v3612_v35, %v3604_v45  ;;  %v3643_v62 = vpack.c.bf16 %v3611_v22, %v3603_v56 }
 0x4c5   :  { %4537 = vmatprep.mubr.bf16.mxu0 %v3644_v57 }
 0x4c6   :  { %4538 = vmatmul.mubr.bf16.gmra.mrb[4].mxu0 %v3643_v62 }
 0x4d5   :  { %v7880_v5 = vpop.permute.xlu1 %7879 }
 0x4d6   :  { %v7882_v27 = vunpack.i.h.bf16 %v7880_v5  ;;  %v7881_v2 = vunpack.i.l.bf16 %v7880_v5 }
 0x4d8   :  { %v3526_v15 = vsel %vm255_vm2, %v7881_v2, %v7882_v27  ;;  %v3525_v31 = vsel %vm255_vm2, %v7852_v8, %v7881_v2 }
 0x4d9   :  { %v7890_v21 = vpop.permute.xlu1 %7889  ;;  %v7885_v26 = vpop.permute.xlu0 %7884  ;;  %v3620_v25 = vmax.f32 %v13429_v41, %v3526_v15  ;;  %v3619_v29 = vmax.f32 %v13203_v55, %v3525_v31 }
 0x4da   :  { %v7887_v47 = vunpack.i.h.bf16 %v7885_v26  ;;  %v7886_v59 = vunpack.i.l.bf16 %v7885_v26  ;;  %v7892_v54 = vunpack.i.h.bf16 %v7890_v21  ;;  %v7891_v40 = vunpack.i.l.bf16 %v7890_v21 }
 0x4dc   :  { %v3533_v43 = vsel %vm255_vm2, %v7886_v59, %v7887_v47  ;;  %v3532_v24 = vsel %vm255_vm2, %v7857_v16, %v7886_v59  ;;  %v3598_v20 = vmax.f32 %v13439_v58, %v7892_v54  ;;  %v3590_v18 = vmax.f32 %v13447_v10, %v7891_v40 }
 0x4dd   :  { %v3628_v61 = vmax.f32 %v13463_v50, %v3533_v43  ;;  %v3627_v52 = vmax.f32 %v13225_v7, %v3532_v24  ;;  %v7895_v23 = vpop.permute.xlu0 %7894  ;;  %v3499_v42 = vsel %vm255_vm2, %v7862_v38, %v7891_v40  ;;  %v3506_v55 = vsel %vm255_vm2, %v7867_v48, %v7892_v54  ;;  %v7900_v16 = vpop.permute.xlu1 %7899 }
 0x4de   :  { %v7897_v41 = vunpack.i.h.bf16 %v7895_v23  ;;  %v7896_v58 = vunpack.i.l.bf16 %v7895_v23  ;;  %v3638_v10 = vpack.c.bf16 %v3598_v20, %v3590_v18  ;;  %v3589_v7 = vmax.f32 %v13265_v28, %v3499_v42 }
 0x4df   :  { %v3652_v8 = vpack.c.bf16 %v3628_v61, %v3620_v25  ;;  %v3651_v14 = vpack.c.bf16 %v3627_v52, %v3619_v29  ;;  %v3597_v50 = vmax.f32 %v13294_v37, %v3506_v55  ;;  %v7902_v4 = vunpack.i.h.bf16 %v7900_v16 }
 0x4e0   :  { %v3614_v6 = vmax.f32 %v13455_v1, %v7897_v41  ;;  %v3606_v38 = vmax.f32 %v13472_v32, %v7896_v58  ;;  %v7901_v63 = vunpack.i.l.bf16 %v7900_v16  ;;  %v3513_v12 = vsel %vm255_vm2, %v7872_v51, %v7896_v58 }
 0x4e1   :  { %4547 = vmatprep.mubr.bf16.mxu0 %v3652_v8  ;;  %v3637_v33 = vpack.c.bf16 %v3597_v50, %v3589_v7  ;;  %v3520_v44 = vsel %vm255_vm2, %v7877_v19, %v7897_v41  ;;  %v3605_v28 = vmax.f32 %v13379_v53, %v3513_v12  ;;  %v3630_v30 = vmax.f32 %v13459_v49, %v7902_v4 }
 0x4e2   :  { %4548 = vmatmul.mubr.bf16.gmra.mrb[8].mxu0 %v3651_v14  ;;  %v3646_v48 = vpack.c.bf16 %v3614_v6, %v3606_v38  ;;  %v3613_v37 = vmax.f32 %v13399_v9, %v3520_v44  ;;  %v3622_v1 = vmax.f32 %v13476_v3, %v7901_v63  ;;  %v3527_v46 = vsel %vm255_vm2, %v7882_v27, %v7901_v63 }
 0x4e3   :  { %7283 = vmatprep.mubr.msk.bf16.mxu0 %vm4349_vm10, %v3638_v10  ;;  %v3534_v0 = vsel %vm255_vm2, %v7887_v47, %v7902_v4  ;;  %v3621_v51 = vmax.f32 %v13433_v34, %v3527_v46 }
 0x4e4   :  { %v3645_v32 = vpack.c.bf16 %v3613_v37, %v3605_v28  ;;  %v3654_v17 = vpack.c.bf16 %v3630_v30, %v3622_v1  ;;  %v3629_v19 = vmax.f32 %v13467_v36, %v3534_v0 }
 0x4e6   :  { %v3653_v53 = vpack.c.bf16 %v3629_v19, %v3621_v51 }
 0x4ea   :  { %4591 = vmatmul.mubr.bf16.vlgmr.msra.gmra.mrb[0].mxu0 %v3637_v33 }
 0x4eb   :  { %7284 = vmatprep.mubr.msk.bf16.mxu0 %vm4349_vm10, %v3646_v48 }
 0x4f2   :  { %4601 = vmatmul.mubr.bf16.gmra.mrb[4].mxu0 %v3645_v32 }
 0x4f3   :  { %7285 = vmatprep.mubr.msk.bf16.mxu0 %vm4349_vm10, %v3654_v17 }
 0x4fa   :  { %4611 = vmatmul.mubr.bf16.gmra.mrb[8].mxu0 %v3653_v53 }
 0x5bd   :  { %v13669_v9 = vpop.f32.mrb[0].mxu0 }
 0x5be   :  { %v13671_v49 = vpop.f32.mrb[1].mxu0 }
 0x5bf   :  { %v13673_v3 = vpop.f32.mrb[2].mxu0  ;;  %v7963_v39 = vpack.i.bf16 %v13671_v49, %v13669_v9 }
 0x5c0   :  { %v13677_v11 = vpop.f32.mrb[3].mxu0 }
 0x5c1   :  { %v7903_v13 = vpack.i.bf16 %v13677_v11, %v13673_v3 }
 0x5c3   :  { %7904 = vrot.lane.b32.xlu0 %v7903_v13, %s8844_s22 }
 0x5c5   :  { %v4602_v34 = vpop.f32.mrb[4].mxu0 }
 0x5c6   :  { %v4604_v36 = vpop.f32.mrb[5].mxu0 }
 0x5c7   :  { %v4606_v45 = vpop.f32.mrb[6].mxu0  ;;  %v13682_v35 = vpack.i.bf16 %v4604_v36, %v4602_v34 }
 0x5c8   :  { %v4608_v56 = vpop.f32.mrb[7].mxu0 }
 0x5c9   :  { %7914 = vrot.lane.b32.xlu0 %v13682_v35, %s8852_s5  ;;  %7909 = vrot.lane.b32.xlu1 %v13682_v35, %s8853_s7  ;;  %v13686_v22 = vpack.i.bf16 %v4608_v56, %v4606_v45 }
 0x5cd   :  { %7924 = vrot.lane.b32.xlu0 %v13682_v35, %s8854_s19  ;;  %7919 = vrot.lane.b32.xlu1 %v13682_v35, %s8855_s20  ;;  %v4612_v57 = vpop.f32.mrb[8].mxu0 }
 0x5ce   :  { %v4614_v62 = vpop.f32.mrb[9].mxu0 }
 0x5cf   :  { %v4616_v5 = vpop.f32.mrb[10].mxu0  ;;  %v13691_v27 = vpack.i.bf16 %v4614_v62, %v4612_v57 }
 0x5d0   :  { %v4618_v2 = vpop.f32.mrb[11].mxu0 }
 0x5d1   :  { %7934 = vrot.lane.b32.xlu0 %v13682_v35, %s8856_s21  ;;  %7929 = vrot.lane.b32.xlu1 %v13682_v35, %s8857_s24  ;;  %v13696_v21 = vpack.i.bf16 %v4618_v2, %v4616_v5  ;;  %s8882_s21 = smov 120  }
 0x5d5   :  { %7944 = vrot.lane.b32.xlu0 %v13682_v35, %s8844_s22  ;;  %7939 = vrot.lane.b32.xlu1 %v13682_v35, %s8858_s25 }
 0x5d9   :  { %7954 = vrot.lane.b32.xlu0 %v13686_v22, %s8852_s5  ;;  %7949 = vrot.lane.b32.xlu1 %v13686_v22, %s8853_s7  ;;  %s8878_s5 = smov 12   ;;  %s8879_s7 = smov 68  }
 0x5dd   :  { %7964 = vrot.lane.b32.xlu0 %v7963_v39, %s8844_s22  ;;  %7959 = vrot.lane.b32.xlu1 %v13686_v22, %s8855_s20  ;;  %s8880_s20 = smov 48  }
 0x5e1   :  { %7974 = vrot.lane.b32.xlu0 %v13686_v22, %s8857_s24  ;;  %7969 = vrot.lane.b32.xlu1 %v13686_v22, %s8854_s19 }
 0x5e5   :  { %7984 = vrot.lane.b32.xlu0 %v7963_v39, %s8859_s0  ;;  %7979 = vrot.lane.b32.xlu1 %v7963_v39, %s8845_s27 }
 0x5e9   :  { %7994 = vrot.lane.b32.xlu0 %v7963_v39, %s8860_s28  ;;  %7989 = vrot.lane.b32.xlu1 %v7963_v39, %s8861_s17 }
 0x5ed   :  { %8004 = vrot.lane.b32.xlu0 %v7963_v39, %s8862_s2  ;;  %7999 = vrot.lane.b32.xlu1 %v7963_v39, %s8863_s23 }
 0x5f1   :  { %8014 = vrot.lane.b32.xlu0 %v7903_v13, %s8845_s27  ;;  %8009 = vrot.lane.b32.xlu1 %v7963_v39, %s8846_s14  ;;  %s8866_s14 = smov 17  }
 0x5f5   :  { %8024 = vrot.lane.b32.xlu0 %v7903_v13, %s8861_s17  ;;  %8019 = vrot.lane.b32.xlu1 %v7903_v13, %s8859_s0 }
 0x5f9   :  { %8034 = vrot.lane.b32.xlu0 %v7903_v13, %s8860_s28  ;;  %8029 = vrot.lane.b32.xlu1 %v13686_v22, %s8864_s26 }
 0x5fd   :  { %8044 = vrot.lane.b32.xlu0 %v13686_v22, %s8865_s29  ;;  %8039 = vrot.lane.b32.xlu1 %v7903_v13, %s8863_s23 }
 0x601   :  { %8054 = vrot.lane.b32.xlu0 %v7903_v13, %s8862_s2  ;;  %8049 = vrot.lane.b32.xlu1 %v13686_v22, %s8859_s0 }
 0x605   :  { %8064 = vrot.lane.b32.xlu0 %v13691_v27, %s8866_s14 }
 0x635   :  { %v7905_v26 = vpop.permute.xlu0 %7904 }
 0x636   :  { %v13729_v47 = vunpack.i.h.bf16 %v7905_v26  ;;  %v7906_v59 = vunpack.i.l.bf16 %v7905_v26 }
 0x638   :  { %v13733_v54 = vsel %vm139_vm0, %v7906_v59, %v13729_v47 }
 0x639   :  { %v8058_v40 = vpack.i.bf16 %v13729_v47, %v13733_v54 }
 0x63b   :  { %v7915_v15 = vpop.permute.xlu0 %7914  ;;  %v7910_v31 = vpop.permute.xlu1 %7909  ;;  %8059 = vrot.lane.b32.xlu1 %v8058_v40, %s8862_s2 }
 0x63c   :  { %v7917_v43 = vunpack.i.h.bf16 %v7915_v15  ;;  %v7916_v24 = vunpack.i.l.bf16 %v7915_v15  ;;  %v7912_v25 = vunpack.i.h.bf16 %v7910_v31  ;;  %v7911_v29 = vunpack.i.l.bf16 %v7910_v31 }
 0x63e   :  { %v4740_v20 = vsel %vm4739_vm11, %v7916_v24, %v7917_v43  ;;  %v4734_v18 = vsel %vm4349_vm10, %v7911_v29, %v7912_v25 }
 0x63f   :  { %v8073_v61 = vpack.i.bf16 %v4734_v18, %v7911_v29  ;;  %v7925_v52 = vpop.permute.xlu0 %7924  ;;  %v7920_v23 = vpop.permute.xlu1 %7919  ;;  %8069 = vrot.lane.b32.xlu1 %v13691_v27, %s8854_s19  ;;  %v8078_v42 = vpack.i.bf16 %v4740_v20, %v7916_v24 }
 0x640   :  { %v7922_v8 = vunpack.i.h.bf16 %v7920_v23  ;;  %v7921_v14 = vunpack.i.l.bf16 %v7920_v23  ;;  %v7927_v55 = vunpack.i.h.bf16 %v7925_v52  ;;  %v7926_v41 = vunpack.i.l.bf16 %v7925_v52 }
 0x641   :  { %8074 = vrot.lane.b32.xlu0 %v8073_v61, %s8862_s2 }
 0x642   :  { %v4746_v7 = vsel %vm4745_vm12, %v7921_v14, %v7922_v8  ;;  %v4752_v50 = vsel %vm4751_vm13, %v7926_v41, %v7927_v55 }
 0x643   :  { %v7935_v58 = vpop.permute.xlu0 %7934  ;;  %v7930_v10 = vpop.permute.xlu1 %7929  ;;  %8079 = vrot.lane.b32.xlu1 %v8078_v42, %s8862_s2  ;;  %v8093_v38 = vpack.i.bf16 %v4746_v7, %v7921_v14  ;;  %v8098_v12 = vpack.i.bf16 %v4752_v50, %v7926_v41 }
 0x644   :  { %v7932_v16 = vunpack.i.h.bf16 %v7930_v10  ;;  %v7931_v6 = vunpack.i.l.bf16 %v7930_v10  ;;  %v7937_v63 = vunpack.i.h.bf16 %v7935_v58  ;;  %v7936_v48 = vunpack.i.l.bf16 %v7935_v58 }
 0x645   :  { %8084 = vrot.lane.b32.xlu0 %v13691_v27, %s8857_s24 }
 0x646   :  { %v4758_v44 = vsel %vm4757_vm14, %v7931_v6, %v7932_v16  ;;  %v4764_v30 = vsel %vm4763_vm15, %v7936_v48, %v7937_v63  ;;  %vm6270_vm15 = vcmask 1041408  }
 0x647   :  { %v13748_v33 = vpop.permute.xlu0 %7944  ;;  %v7940_v4 = vpop.permute.xlu1 %7939  ;;  %8089 = vrot.lane.b32.xlu1 %v13691_v27, %s8867_s30  ;;  %v8108_v1 = vpack.i.bf16 %v4758_v44, %v7931_v6  ;;  %v8113_v46 = vpack.i.bf16 %v4764_v30, %v7936_v48 }
 0x648   :  { %v7942_v32 = vunpack.i.h.bf16 %v7940_v4  ;;  %v7941_v17 = vunpack.i.l.bf16 %v7940_v4  ;;  %v7947_v62 = vunpack.i.h.bf16 %v13748_v33 }
 0x649   :  { %8094 = vrot.lane.b32.xlu0 %v8093_v38, %s8862_s2 }
 0x64a   :  { %v4770_v39 = vsel %vm4769_vm3, %v7941_v17, %v7942_v32 }
 0x64b   :  { %v13753_v28 = vpop.permute.xlu0 %7954  ;;  %v13755_v37 = vpop.permute.xlu1 %7949  ;;  %8099 = vrot.lane.b32.xlu1 %v8098_v12, %s8862_s2  ;;  %v8128_v57 = vpack.i.bf16 %v4770_v39, %v7941_v17 }
 0x64c   :  { %v7952_v5 = vunpack.i.h.bf16 %v13755_v37  ;;  %v7951_v2 = vunpack.i.l.bf16 %v13755_v37  ;;  %v7957_v55 = vunpack.i.h.bf16 %v13753_v28  ;;  %v7956_v41 = vunpack.i.l.bf16 %v13753_v28 }
 0x64d   :  { %8104 = vrot.lane.b32.xlu0 %v13691_v27, %s8858_s25 }
 0x64e   :  { %v4782_v20 = vsel %vm4349_vm10, %v7951_v2, %v7952_v5  ;;  %v4787_v28 = vsel %vm4739_vm11, %v7956_v41, %v7957_v55  ;;  %vm4813_vm10 = vcmask 932864   ;;  %vm4826_vm11 = vcmask 138240  }
 0x64f   :  { %v7965_v0 = vpop.permute.xlu0 %7964  ;;  %v13760_v51 = vpop.permute.xlu1 %7959  ;;  %8109 = vrot.lane.b32.xlu1 %v8108_v1, %s8862_s2  ;;  %v8153_v6 = vpack.i.bf16 %v4782_v20, %v7951_v2 }
 0x650   :  { %v7966_v19 = vunpack.i.l.bf16 %v7965_v0  ;;  %v7967_v53 = vunpack.i.h.bf16 %v7965_v0  ;;  %v7962_v58 = vunpack.i.h.bf16 %v13760_v51  ;;  %v7961_v10 = vunpack.i.l.bf16 %v13760_v51 }
 0x651   :  { %8114 = vrot.lane.b32.xlu0 %v8113_v46, %s8862_s2 }
 0x652   :  { %v5168_v13 = vpack.c.bf16 %v7967_v53, %v13671_v49  ;;  %v4627_v34 = vsel %vm139_vm0, %v7966_v19, %v7967_v53  ;;  %v7946_v49 = vunpack.i.l.bf16 %v13748_v33  ;;  %v4792_v37 = vsel %vm4745_vm12, %v7961_v10, %v7962_v58 }
 0x653   :  { %v13767_v36 = vpop.permute.xlu0 %7974  ;;  %v13769_v45 = vpop.permute.xlu1 %7969  ;;  %8119 = vrot.lane.b32.xlu1 %v13691_v27, %s8864_s26  ;;  %v5167_v56 = vpack.c.bf16 %v4627_v34, %v13669_v9  ;;  %vm4842_vm12 = vcmask 15360  }
 0x654   :  { %5526 = vmatprep.subr.bf16.mxu1 %v5168_v13  ;;  %v4775_v43 = vsel %vm139_vm0, %v7946_v49, %v7947_v62  ;;  %v7972_v17 = vunpack.i.h.bf16 %v13769_v45  ;;  %v7971_v46 = vunpack.i.l.bf16 %v13769_v45  ;;  %v7976_v45 = vunpack.i.l.bf16 %v13767_v36 }
 0x655   :  { %5527 = vmatpush1.bf16.msra.mxu1 %v5167_v56  ;;  %8124 = vrot.lane.b32.xlu0 %v13691_v27, %s8865_s29  ;;  %v8148_v42 = vpack.i.bf16 %v7947_v62, %v4775_v43  ;;  %v8168_v56 = vpack.i.bf16 %v4787_v28, %v7956_v41  ;;  %v7977_v62 = vunpack.i.h.bf16 %v13767_v36 }
 0x656   :  { %v4797_v2 = vsel %vm4751_vm13, %v7971_v46, %v7972_v17 }
 0x657   :  { %v7985_v26 = vpop.permute.xlu0 %7984  ;;  %v7980_v59 = vpop.permute.xlu1 %7979  ;;  %8129 = vrot.lane.b32.xlu1 %v8128_v57, %s8862_s2  ;;  %v8173_v57 = vpack.i.bf16 %v4792_v37, %v7961_v10 }
 0x658   :  { %v7987_v9 = vunpack.i.h.bf16 %v7985_v26  ;;  %v7986_v40 = vunpack.i.l.bf16 %v7985_v26  ;;  %v7982_v15 = vunpack.i.h.bf16 %v7980_v59  ;;  %v7981_v31 = vunpack.i.l.bf16 %v7980_v59 }
 0x659   :  { %8134 = vrot.lane.b32.xlu0 %v13682_v35, %s8862_s2 }
 0x65a   :  { %v5170_v24 = vpack.c.bf16 %v7987_v9, %v7982_v15  ;;  %v4634_v25 = vsel %vm197_vm1, %v7981_v31, %v7982_v15  ;;  %v4642_v29 = vsel %vm4641_vm4, %v7986_v40, %v7987_v9 }
 0x65b   :  { %v7995_v18 = vpop.permute.xlu0 %7994  ;;  %v7990_v61 = vpop.permute.xlu1 %7989  ;;  %8139 = vrot.lane.b32.xlu1 %v13691_v27, %s8859_s0  ;;  %v5169_v52 = vpack.c.bf16 %v4642_v29, %v4634_v25  ;;  %v8183_v25 = vpack.i.bf16 %v4797_v2, %v7971_v46 }
 0x65c   :  { %v7997_v23 = vunpack.i.h.bf16 %v7995_v18  ;;  %v7996_v8 = vunpack.i.l.bf16 %v7995_v18  ;;  %v7992_v35 = vunpack.i.h.bf16 %v7990_v61  ;;  %v7991_v14 = vunpack.i.l.bf16 %v7990_v61  ;;  %5528 = vmatprep.subr.bf16.mxu1 %v5170_v24 }
 0x65d   :  { %5529 = vmatpush1.bf16.msra.mxu1 %v5169_v52  ;;  %8144 = vrot.lane.b32.xlu0 %v13696_v21, %s8866_s14 }
 0x65e   :  { %v5172_v7 = vpack.c.bf16 %v7997_v23, %v7992_v35  ;;  %v4650_v50 = vsel %vm4649_vm6, %v7991_v14, %v7992_v35  ;;  %v4658_v16 = vsel %vm4657_vm7, %v7996_v8, %v7997_v23 }
 0x65f   :  { %v8005_v38 = vpop.permute.xlu0 %8004  ;;  %v8000_v33 = vpop.permute.xlu1 %7999  ;;  %8149 = vrot.lane.b32.xlu1 %v8148_v42, %s8862_s2  ;;  %v5171_v4 = vpack.c.bf16 %v4658_v16, %v4650_v50 }
 0x660   :  { %v8007_v63 = vunpack.i.h.bf16 %v8005_v38  ;;  %v8006_v48 = vunpack.i.l.bf16 %v8005_v38  ;;  %v8002_v12 = vunpack.i.h.bf16 %v8000_v33  ;;  %v8001_v44 = vunpack.i.l.bf16 %v8000_v33  ;;  %5530 = vmatprep.subr.bf16.mxu1 %v5172_v7 }
 0x661   :  { %5531 = vmatpush1.bf16.msra.mxu1 %v5171_v4  ;;  %8154 = vrot.lane.b32.xlu0 %v8153_v6, %s8862_s2 }
 0x662   :  { %v5174_v30 = vpack.c.bf16 %v8007_v63, %v8002_v12  ;;  %v4666_v1 = vsel %vm4665_vm8, %v8001_v44, %v8002_v12  ;;  %v4674_v32 = vsel %vm4673_vm9, %v8006_v48, %v8007_v63  ;;  %v8656_v63 = vld [vmem:[%s14645_s3 + $0x4] ss:$16 sps:$4 sm:$0xff]  }
 0x663   :  { %v8015_v0 = vpop.permute.xlu0 %8014  ;;  %v8010_v51 = vpop.permute.xlu1 %8009  ;;  %8159 = vrot.lane.b32.xlu1 %v13696_v21, %s8854_s19  ;;  %v5173_v19 = vpack.c.bf16 %v4674_v32, %v4666_v1  ;;  %5558 = vmatprep.mubr.bf16.mxu1 %v8656_v63 }
 0x664   :  { %v8017_v53 = vunpack.i.h.bf16 %v8015_v0  ;;  %v8016_v39 = vunpack.i.l.bf16 %v8015_v0  ;;  %v8012_v13 = vunpack.i.h.bf16 %v8010_v51  ;;  %v8011_v34 = vunpack.i.l.bf16 %v8010_v51  ;;  %5532 = vmatprep.subr.bf16.mxu1 %v5174_v30 }
 0x665   :  { %5533 = vmatpush1.bf16.msra.mxu1 %v5173_v19  ;;  %8164 = vrot.lane.b32.xlu0 %v13696_v21, %s8857_s24 }
 0x666   :  { %v5176_v49 = vpack.c.bf16 %v13677_v11, %v8012_v13  ;;  %v4681_v5 = vsel %vm255_vm2, %v8011_v34, %v8012_v13  ;;  %v5178_v40 = vpack.c.bf16 %v8017_v53, %v13729_v47  ;;  %v4697_v15 = vsel %vm197_vm1, %v8016_v39, %v8017_v53 }
 0x667   :  { %v8025_v26 = vpop.permute.xlu0 %8024  ;;  %v8020_v59 = vpop.permute.xlu1 %8019  ;;  %8169 = vrot.lane.b32.xlu1 %v8168_v56, %s8862_s2  ;;  %v5175_v9 = vpack.c.bf16 %v13673_v3, %v4681_v5  ;;  %v4802_v11 = vsel %vm4757_vm14, %v7976_v45, %v7977_v62  ;;  %v5177_v3 = vpack.c.bf16 %v4697_v15, %v13733_v54  ;;  %vm4807_vm2 = vcmask 941056  }
 0x668   :  { %v8027_v31 = vunpack.i.h.bf16 %v8025_v26  ;;  %v8026_v43 = vunpack.i.l.bf16 %v8025_v26  ;;  %v8022_v24 = vunpack.i.h.bf16 %v8020_v59  ;;  %v8021_v36 = vunpack.i.l.bf16 %v8020_v59  ;;  %5534 = vmatprep.subr.bf16.mxu1 %v5176_v49 }
 0x669   :  { %5535 = vmatpush1.bf16.msra.mxu1 %v5175_v9  ;;  %8174 = vrot.lane.b32.xlu0 %v8173_v57, %s8862_s2  ;;  %v8188_v52 = vpack.i.bf16 %v4802_v11, %v7976_v45 }
 0x66a   :  { %5536 = vmatprep.subr.bf16.mxu1 %v5178_v40  ;;  %v5180_v47 = vpack.c.bf16 %v8027_v31, %v8022_v24  ;;  %v4704_v18 = vsel %vm4641_vm4, %v8021_v36, %v8022_v24  ;;  %v4711_v61 = vsel %vm4649_vm6, %v8026_v43, %v8027_v31 }
 0x66b   :  { %v8035_v29 = vpop.permute.xlu0 %8034  ;;  %v8030_v20 = vpop.permute.xlu1 %8029  ;;  %8179 = vrot.lane.b32.xlu1 %v13696_v21, %s8844_s22  ;;  %v5179_v42 = vpack.c.bf16 %v4711_v61, %v4704_v18 }
 0x66c   :  { %v8037_v23 = vunpack.i.h.bf16 %v8035_v29  ;;  %v8036_v8 = vunpack.i.l.bf16 %v8035_v29  ;;  %v8032_v54 = vunpack.i.h.bf16 %v8030_v20  ;;  %v8031_v58 = vunpack.i.l.bf16 %v8030_v20 }
 0x66d   :  { %5537 = vmatpush1.bf16.msra.mxu1 %v5177_v3  ;;  %8184 = vrot.lane.b32.xlu0 %v8183_v25, %s8862_s2 }
 0x66e   :  { %5538 = vmatprep.subr.bf16.mxu1 %v5180_v47  ;;  %v4718_v7 = vsel %vm4657_vm7, %v8036_v8, %v8037_v23  ;;  %v4808_v48 = vsel %vm4807_vm2, %v8031_v58, %v8032_v54 }
 0x66f   :  { %v8045_v35 = vpop.permute.xlu0 %8044  ;;  %v8040_v14 = vpop.permute.xlu1 %8039  ;;  %8189 = vrot.lane.b32.xlu1 %v8188_v52, %s8862_s2  ;;  %v8218_v32 = vpack.i.bf16 %v8032_v54, %v4808_v48 }
 0x670   :  { %v8042_v55 = vunpack.i.h.bf16 %v8040_v14  ;;  %v8041_v41 = vunpack.i.l.bf16 %v8040_v14  ;;  %v8047_v33 = vunpack.i.h.bf16 %v8045_v35  ;;  %v8046_v4 = vunpack.i.l.bf16 %v8045_v35 }
 0x671   :  { %5539 = vmatpush1.bf16.msra.mxu1 %v5179_v42  ;;  %8194 = vrot.lane.b32.xlu0 %v13696_v21, %s8845_s27  ;;  %s8873_s27 = smov 88  }
 0x672   :  { %v5182_v10 = vpack.c.bf16 %v8042_v55, %v8037_v23  ;;  %v4725_v50 = vsel %vm4665_vm8, %v8041_v41, %v8042_v55  ;;  %v4814_v37 = vsel %vm4813_vm10, %v8046_v4, %v8047_v33  ;;  %vm6442_vm8 = vcmask 719872  }
 0x673   :  { %v8055_v16 = vpop.permute.xlu0 %8054  ;;  %v8050_v6 = vpop.permute.xlu1 %8049  ;;  %8199 = vrot.lane.b32.xlu1 %v13696_v21, %s8859_s0  ;;  %v5181_v38 = vpack.c.bf16 %v4725_v50, %v4718_v7  ;;  %v8223_v46 = vpack.i.bf16 %v8047_v33, %v4814_v37 }
 0x674   :  { %5540 = vmatprep.subr.bf16.mxu1 %v5182_v10  ;;  %v8052_v12 = vunpack.i.h.bf16 %v8050_v6  ;;  %v8051_v44 = vunpack.i.l.bf16 %v8050_v6  ;;  %v8057_v19 = vunpack.i.h.bf16 %v8055_v16  ;;  %v8056_v53 = vunpack.i.l.bf16 %v8055_v16 }
 0x675   :  { %5541 = vmatpush1.bf16.msra.mxu1 %v5181_v38  ;;  %8204 = vrot.lane.b32.xlu0 %v13696_v21, %s8861_s17 }
 0x676   :  { %v4819_v17 = vsel %vm4641_vm4, %v8051_v44, %v8052_v12  ;;  %v4970_v56 = vsel %vm4673_vm9, %v8056_v53, %v8057_v19 }
 0x677   :  { %v8065_v28 = vpop.permute.xlu0 %8064  ;;  %8209 = vrot.lane.b32.xlu1 %v13696_v21, %s8860_s28  ;;  %v8228_v51 = vpack.i.bf16 %v8052_v12, %v4819_v17 }
 0x678   :  { %v8067_v30 = vunpack.i.h.bf16 %v8065_v28  ;;  %v8066_v1 = vunpack.i.l.bf16 %v8065_v28 }
 0x679   :  { %8214 = vrot.lane.b32.xlu0 %v13686_v22, %s8860_s28 }
 0x67a   :  { %v4827_v0 = vsel %vm4826_vm11, %v8066_v1, %v8067_v30 }
 0x67b   :  { %8219 = vrot.lane.b32.xlu1 %v8218_v32, %s8860_s28  ;;  %v8233_v21 = vpack.i.bf16 %v4827_v0, %v8066_v1 }
 0x67d   :  { %8224 = vrot.lane.b32.xlu0 %v8223_v46, %s8860_s28 }
 0x67f   :  { %8229 = vrot.lane.b32.xlu1 %v8228_v51, %s8860_s28 }
 0x681   :  { %8234 = vrot.lane.b32.xlu0 %v8233_v21, %s8860_s28 }
 0x6ad   :  { %v8060_v39 = vpop.permute.xlu1 %8059 }
 0x6ae   :  { %v8062_v13 = vunpack.i.h.bf16 %v8060_v39  ;;  %v8061_v22 = vunpack.i.l.bf16 %v8060_v39 }
 0x6b0   :  { %v5184_v34 = vpack.c.bf16 %v8062_v13, %v8057_v19  ;;  %v4971_v57 = vsel %vm4673_vm9, %v8061_v22, %v8062_v13 }
 0x6b1   :  { %v8070_v62 = vpop.permute.xlu1 %8069  ;;  %v5183_v45 = vpack.c.bf16 %v4971_v57, %v4970_v56 }
 0x6b2   :  { %v8072_v49 = vunpack.i.h.bf16 %v8070_v62  ;;  %v8071_v5 = vunpack.i.l.bf16 %v8070_v62  ;;  %5542 = vmatprep.subr.bf16.mxu1 %v5184_v34 }
 0x6b3   :  { %5543 = vmatpush1.bf16.msra.mxu1 %v5183_v45  ;;  %v8075_v2 = vpop.permute.xlu0 %8074 }
 0x6b4   :  { %v4832_v26 = vsel %vm4751_vm13, %v8071_v5, %v8072_v49  ;;  %v8077_v59 = vunpack.i.h.bf16 %v8075_v2  ;;  %v8076_v9 = vunpack.i.l.bf16 %v8075_v2 }
 0x6b5   :  { %v8238_v40 = vpack.i.bf16 %v4832_v26, %v8071_v5  ;;  %v8080_v15 = vpop.permute.xlu1 %8079 }
 0x6b6   :  { %v8082_v31 = vunpack.i.h.bf16 %v8080_v15  ;;  %v8081_v43 = vunpack.i.l.bf16 %v8080_v15  ;;  %v4972_v36 = vsel %vm4673_vm9, %v8076_v9, %v8077_v59 }
 0x6b7   :  { %v8085_v24 = vpop.permute.xlu0 %8084  ;;  %8239 = vrot.lane.b32.xlu1 %v8238_v40, %s8860_s28 }
 0x6b8   :  { %v8087_v11 = vunpack.i.h.bf16 %v8085_v24  ;;  %v8086_v25 = vunpack.i.l.bf16 %v8085_v24  ;;  %v5186_v29 = vpack.c.bf16 %v8082_v31, %v8077_v59  ;;  %v4973_v20 = vsel %vm4673_vm9, %v8081_v43, %v8082_v31 }
 0x6b9   :  { %v8090_v3 = vpop.permute.xlu1 %8089  ;;  %v5185_v47 = vpack.c.bf16 %v4973_v20, %v4972_v36 }
 0x6ba   :  { %v4837_v18 = vsel %vm4757_vm14, %v8086_v25, %v8087_v11  ;;  %v8092_v61 = vunpack.i.h.bf16 %v8090_v3  ;;  %v8091_v52 = vunpack.i.l.bf16 %v8090_v3  ;;  %5544 = vmatprep.subr.bf16.mxu1 %v5186_v29 }
 0x6bb   :  { %v8243_v23 = vpack.i.bf16 %v4837_v18, %v8086_v25  ;;  %v8095_v8 = vpop.permute.xlu0 %8094  ;;  %5545 = vmatpush1.bf16.msra.mxu1 %v5185_v47 }
 0x6bc   :  { %v4843_v35 = vsel %vm4842_vm12, %v8091_v52, %v8092_v61  ;;  %v8097_v14 = vunpack.i.h.bf16 %v8095_v8  ;;  %v8096_v42 = vunpack.i.l.bf16 %v8095_v8  ;;  %vm6450_vm12 = vcmask 850944  }
 0x6bd   :  { %v8248_v55 = vpack.i.bf16 %v4843_v35, %v8091_v52  ;;  %v8100_v41 = vpop.permute.xlu1 %8099  ;;  %8244 = vrot.lane.b32.xlu0 %v8243_v23, %s8860_s28 }
 0x6be   :  { %v8102_v54 = vunpack.i.h.bf16 %v8100_v41  ;;  %v8101_v58 = vunpack.i.l.bf16 %v8100_v41  ;;  %v4974_v7 = vsel %vm4673_vm9, %v8096_v42, %v8097_v14 }
 0x6bf   :  { %v8105_v10 = vpop.permute.xlu0 %8104  ;;  %8249 = vrot.lane.b32.xlu1 %v8248_v55, %s8860_s28 }
 0x6c0   :  { %v8107_v50 = vunpack.i.h.bf16 %v8105_v10  ;;  %v8106_v16 = vunpack.i.l.bf16 %v8105_v10  ;;  %v5188_v6 = vpack.c.bf16 %v8102_v54, %v8097_v14  ;;  %v4975_v38 = vsel %vm4673_vm9, %v8101_v58, %v8102_v54 }
 0x6c1   :  { %v8110_v33 = vpop.permute.xlu1 %8109  ;;  %v5187_v4 = vpack.c.bf16 %v4975_v38, %v4974_v7 }
 0x6c2   :  { %v4848_v63 = vsel %vm4769_vm3, %v8106_v16, %v8107_v50  ;;  %v8112_v48 = vunpack.i.h.bf16 %v8110_v33  ;;  %v8111_v12 = vunpack.i.l.bf16 %v8110_v33  ;;  %5546 = vmatprep.subr.bf16.mxu1 %v5188_v6  ;;  %vm6433_vm3 = vcmask 293888  }
 0x6c3   :  { %v8253_v44 = vpack.i.bf16 %v4848_v63, %v8106_v16  ;;  %v8115_v28 = vpop.permute.xlu0 %8114  ;;  %5547 = vmatpush1.bf16.msra.mxu1 %v5187_v4  ;;  %8259 = vrot.lane.b32.xlu1 %v13691_v27, %s8860_s28 }
 0x6c4   :  { %v8117_v37 = vunpack.i.h.bf16 %v8115_v28  ;;  %v8116_v30 = vunpack.i.l.bf16 %v8115_v28  ;;  %v4976_v32 = vsel %vm4673_vm9, %v8111_v12, %v8112_v48 }
 0x6c5   :  { %v8120_v1 = vpop.permute.xlu1 %8119  ;;  %8254 = vrot.lane.b32.xlu0 %v8253_v44, %s8860_s28 }
 0x6c6   :  { %v8122_v17 = vunpack.i.h.bf16 %v8120_v1  ;;  %v8121_v46 = vunpack.i.l.bf16 %v8120_v1  ;;  %v5190_v0 = vpack.c.bf16 %v8117_v37, %v8112_v48  ;;  %v4977_v51 = vsel %vm4673_vm9, %v8116_v30, %v8117_v37 }
 0x6c7   :  { %v8125_v21 = vpop.permute.xlu0 %8124  ;;  %v5189_v19 = vpack.c.bf16 %v4977_v51, %v4976_v32 }
 0x6c8   :  { %v4853_v53 = vsel %vm4807_vm2, %v8121_v46, %v8122_v17  ;;  %v8127_v39 = vunpack.i.h.bf16 %v8125_v21  ;;  %v8126_v13 = vunpack.i.l.bf16 %v8125_v21  ;;  %5548 = vmatprep.subr.bf16.mxu1 %v5190_v0  ;;  %vm8884_vm2 = vmmov 0  }
 0x6c9   :  { %v8263_v27 = vpack.i.bf16 %v8122_v17, %v4853_v53  ;;  %v8130_v22 = vpop.permute.xlu1 %8129  ;;  %5549 = vmatpush1.bf16.msra.mxu1 %v5189_v19 }
 0x6ca   :  { %v4858_v34 = vsel %vm4813_vm10, %v8126_v13, %v8127_v39  ;;  %v8132_v56 = vunpack.i.h.bf16 %v8130_v22  ;;  %v8131_v57 = vunpack.i.l.bf16 %v8130_v22  ;;  %vm6448_vm10 = vcmask 556032  }
 0x6cb   :  { %v8268_v62 = vpack.i.bf16 %v8127_v39, %v4858_v34  ;;  %v8135_v45 = vpop.permute.xlu0 %8134  ;;  %8264 = vrot.lane.b32.xlu0 %v8263_v27, %s8860_s28 }
 0x6cc   :  { %v8137_v49 = vunpack.i.h.bf16 %v8135_v45  ;;  %v8136_v5 = vunpack.i.l.bf16 %v8135_v45  ;;  %v4978_v26 = vsel %vm4673_vm9, %v8131_v57, %v8132_v56 }
 0x6cd   :  { %v8140_v2 = vpop.permute.xlu1 %8139  ;;  %8269 = vrot.lane.b32.xlu1 %v8268_v62, %s8860_s28 }
 0x6ce   :  { %v8142_v59 = vunpack.i.h.bf16 %v8140_v2  ;;  %v8141_v9 = vunpack.i.l.bf16 %v8140_v2  ;;  %v5192_v40 = vpack.c.bf16 %v8137_v49, %v8132_v56  ;;  %v4979_v15 = vsel %vm4673_vm9, %v8136_v5, %v8137_v49 }
 0x6cf   :  { %v8145_v31 = vpop.permute.xlu0 %8144  ;;  %v5191_v43 = vpack.c.bf16 %v4979_v15, %v4978_v26 }
 0x6d0   :  { %v4863_v24 = vsel %vm4641_vm4, %v8141_v9, %v8142_v59  ;;  %v8147_v36 = vunpack.i.h.bf16 %v8145_v31  ;;  %v8146_v11 = vunpack.i.l.bf16 %v8145_v31  ;;  %5550 = vmatprep.subr.bf16.mxu1 %v5192_v40  ;;  %v8654_v9 = vld [vmem:[%s14645_s3] ss:$16 sps:$4 sm:$0xff]   ;;  %v8657_v31 = vld [vmem:[%s14645_s3 + $0x24] ss:$16 sps:$4 sm:$0xff]  }
 0x6d1   :  { %v8273_v25 = vpack.i.bf16 %v8142_v59, %v4863_v24  ;;  %v8150_v29 = vpop.permute.xlu1 %8149  ;;  %5551 = vmatpush1.bf16.msra.mxu1 %v5191_v43 }
 0x6d2   :  { %v4870_v20 = vsel %vm4826_vm11, %v8146_v11, %v8147_v36  ;;  %v8152_v3 = vunpack.i.h.bf16 %v8150_v29  ;;  %v8151_v47 = vunpack.i.l.bf16 %v8150_v29  ;;  %vm6452_vm11 = vcmask 97280  }
 0x6d3   :  { %v8278_v18 = vpack.i.bf16 %v4870_v20, %v8146_v11  ;;  %8274 = vrot.lane.b32.xlu0 %v8273_v25, %s8860_s28  ;;  %v8155_v61 = vpop.permute.xlu0 %8154 }
 0x6d4   :  { %v8157_v52 = vunpack.i.h.bf16 %v8155_v61  ;;  %v8156_v23 = vunpack.i.l.bf16 %v8155_v61  ;;  %v4980_v35 = vsel %vm4673_vm9, %v8151_v47, %v8152_v3 }
 0x6d5   :  { %v8160_v8 = vpop.permute.xlu1 %8159  ;;  %8279 = vrot.lane.b32.xlu1 %v8278_v18, %s8860_s28 }
 0x6d6   :  { %v5194_v14 = vpack.c.bf16 %v8157_v52, %v8152_v3  ;;  %v8162_v42 = vunpack.i.h.bf16 %v8160_v8  ;;  %v8161_v55 = vunpack.i.l.bf16 %v8160_v8  ;;  %v4981_v41 = vsel %vm4673_vm9, %v8156_v23, %v8157_v52 }
 0x6d7   :  { %v8165_v54 = vpop.permute.xlu0 %8164  ;;  %v5193_v58 = vpack.c.bf16 %v4981_v41, %v4980_v35 }
 0x6d8   :  { %v4875_v10 = vsel %vm4751_vm13, %v8161_v55, %v8162_v42  ;;  %v8167_v7 = vunpack.i.h.bf16 %v8165_v54  ;;  %v8166_v50 = vunpack.i.l.bf16 %v8165_v54  ;;  %5552 = vmatprep.subr.bf16.mxu1 %v5194_v14 }
 0x6d9   :  { %v8283_v16 = vpack.i.bf16 %v4875_v10, %v8161_v55  ;;  %v8170_v6 = vpop.permute.xlu1 %8169  ;;  %5553 = vmatpush1.bf16.msra.mxu1 %v5193_v58  ;;  %v8659_v55 = vld [vmem:[%s14645_s3 + $0x20] ss:$16 sps:$4 sm:$0xff]   ;;  %v8660_v58 = vld [vmem:[%s14645_s3 + $0x44] ss:$16 sps:$4 sm:$0xff]  }
 0x6da   :  { %v4880_v38 = vsel %vm4757_vm14, %v8166_v50, %v8167_v7  ;;  %v8172_v33 = vunpack.i.h.bf16 %v8170_v6  ;;  %v8171_v4 = vunpack.i.l.bf16 %v8170_v6  ;;  %vm6269_vm14 = vcmask 1040384  }
 0x6db   :  { %v8288_v63 = vpack.i.bf16 %v4880_v38, %v8166_v50  ;;  %8284 = vrot.lane.b32.xlu0 %v8283_v16, %s8860_s28  ;;  %v8175_v48 = vpop.permute.xlu0 %8174 }
 0x6dc   :  { %v8177_v12 = vunpack.i.h.bf16 %v8175_v48  ;;  %v8176_v44 = vunpack.i.l.bf16 %v8175_v48  ;;  %v4982_v37 = vsel %vm4673_vm9, %v8171_v4, %v8172_v33 }
 0x6dd   :  { %v8180_v28 = vpop.permute.xlu1 %8179  ;;  %8289 = vrot.lane.b32.xlu1 %v8288_v63, %s8860_s28 }
 0x6de   :  { %v5196_v30 = vpack.c.bf16 %v8177_v12, %v8172_v33  ;;  %v8182_v1 = vunpack.i.h.bf16 %v8180_v28  ;;  %v8181_v32 = vunpack.i.l.bf16 %v8180_v28  ;;  %v4983_v17 = vsel %vm4673_vm9, %v8176_v44, %v8177_v12  ;;  %v8662_v28 = vld [vmem:[%s14645_s3 + $0x40] ss:$16 sps:$4 sm:$0xff]  }
 0x6df   :  { %v8185_v46 = vpop.permute.xlu0 %8184  ;;  %v5195_v0 = vpack.c.bf16 %v4983_v17, %v4982_v37  ;;  %v8663_v37 = vld [vmem:[%s14645_s3 + $0x64] ss:$16 sps:$4 sm:$0xff]  }
 0x6e0   :  { %v4885_v51 = vsel %vm139_vm0, %v8181_v32, %v8182_v1  ;;  %v8187_v21 = vunpack.i.h.bf16 %v8185_v46  ;;  %v8186_v19 = vunpack.i.l.bf16 %v8185_v46  ;;  %5554 = vmatprep.subr.bf16.mxu1 %v5196_v30  ;;  %v8665_v30 = vld [vmem:[%s14645_s3 + $0x60] ss:$16 sps:$4 sm:$0xff]   ;;  %v8669_v17 = vld [vmem:[%s14645_s3 + $0xa4] ss:$16 sps:$4 sm:$0xff]  }
 0x6e1   :  { %v8293_v53 = vpack.i.bf16 %v8182_v1, %v4885_v51  ;;  %v8190_v39 = vpop.permute.xlu1 %8189  ;;  %5555 = vmatpush1.bf16.msra.mxu1 %v5195_v0  ;;  %v8666_v1 = vld [vmem:[%s14645_s3 + $0x84] ss:$16 sps:$4 sm:$0xff]   ;;  %v8668_v32 = vld [vmem:[%s14645_s3 + $0x80] ss:$16 sps:$4 sm:$0xff]  }
 0x6e2   :  { %v8192_v13 = vunpack.i.h.bf16 %v8190_v39  ;;  %v8191_v27 = vunpack.i.l.bf16 %v8190_v39  ;;  %v4984_v34 = vsel %vm4673_vm9, %v8186_v19, %v8187_v21  ;;  %v8671_v46 = vld [vmem:[%s14645_s3 + $0xa0] ss:$16 sps:$4 sm:$0xff]   ;;  %v8672_v0 = vld [vmem:[%s14645_s3 + $0xc4] ss:$16 sps:$4 sm:$0xff]  }
 0x6e3   :  { %8294 = vrot.lane.b32.xlu0 %v8293_v53, %s8859_s0  ;;  %v8195_v22 = vpop.permute.xlu0 %8194  ;;  %v8674_v51 = vld [vmem:[%s14645_s3 + $0xc0] ss:$16 sps:$4 sm:$0xff]   ;;  %v8680_v53 = vld [vmem:[%s14645_s3 + $0xc] ss:$16 sps:$4 sm:$0xff]  }
 0x6e4   :  { %v5198_v56 = vpack.c.bf16 %v8192_v13, %v8187_v21  ;;  %v8197_v57 = vunpack.i.h.bf16 %v8195_v22  ;;  %v8196_v62 = vunpack.i.l.bf16 %v8195_v22  ;;  %v4985_v45 = vsel %vm4673_vm9, %v8191_v27, %v8192_v13  ;;  %v8675_v21 = vld [vmem:[%s14645_s3 + $0xe4] ss:$16 sps:$4 sm:$0xff]   ;;  %v8677_v19 = vld [vmem:[%s14645_s3 + $0xe0] ss:$16 sps:$4 sm:$0xff]   ;;  %v5254_v13 = vld [vmem:[%s14646_s4 + $0x8] sm:$0xff] }
 0x6e5   :  { %v8200_v49 = vpop.permute.xlu1 %8199  ;;  %v5197_v5 = vpack.c.bf16 %v4985_v45, %v4984_v34  ;;  %v5253_v39 = vld [vmem:[%s14646_s4] sm:$0xff]  ;;  %v8868_v27 = vmov 0   ;;  %v5255_v34 = vld [vmem:[%s14646_s4 + $0x10] sm:$0xff]  ;;  %vm6444_vm9 = vcmask 1014784  }
 0x6e6   :  { %v4890_v2 = vsel %vm197_vm1, %v8196_v62, %v8197_v57  ;;  %v13890_v26 = vunpack.i.h.bf16 %v8200_v49  ;;  %v8201_v59 = vunpack.i.l.bf16 %v8200_v49  ;;  %5556 = vmatprep.subr.bf16.mxu1 %v5198_v56  ;;  %vm5501_vm1 = vcmask 392192   ;;  %8318 = vset.pattern.permute.xlu1 %v8868_v27  ;;  %v5257_v56 = vld [vmem:[%s14646_s4 + $0x20] sm:$0xff]  ;;  %v5256_v49 = vld [vmem:[%s14646_s4 + $0x18] sm:$0xff] }
 0x6e7   :  { %v8298_v40 = vpack.i.bf16 %v8197_v57, %v4890_v2  ;;  %v8205_v15 = vpop.permute.xlu0 %8204  ;;  %5557 = vmatpush1.bf16.msra.mxu1 %v5197_v5  ;;  %8319 = vset.pattern.permute.xlu0 %v8868_v27 }
 0x6e8   :  { %v13900_v43 = vsel %vm4641_vm4, %v8201_v59, %v13890_v26  ;;  %v8207_v24 = vunpack.i.h.bf16 %v8205_v15  ;;  %v8206_v36 = vunpack.i.l.bf16 %v8205_v15  ;;  %v5259_v59 = vld [vmem:[%s14646_s4 + $0x30] sm:$0xff] }
 0x6e9   :  { %v8303_v11 = vpack.i.bf16 %v13890_v26, %v13900_v43  ;;  %v8210_v25 = vpop.permute.xlu1 %8209  ;;  %8299 = vrot.lane.b32.xlu1 %v8298_v40, %s8859_s0 }
 0x6ea   :  { %v4900_v29 = vsel %vm4649_vm6, %v8206_v36, %v8207_v24  ;;  %v8212_v20 = vunpack.i.h.bf16 %v8210_v25  ;;  %v8211_v3 = vunpack.i.l.bf16 %v8210_v25  ;;  %5559 = vmatmul.mubr.bf16.vlgmr.msra.gmra.mrb[0].mxu1 %v8654_v9  ;;  %v5261_v36 = vld [vmem:[%s14646_s4 + $0x40] sm:$0xff]  ;;  %vm6440_vm6 = vcmask 424960  }
 0x6eb   :  { %v8308_v47 = vpack.i.bf16 %v8207_v24, %v4900_v29  ;;  %8304 = vrot.lane.b32.xlu0 %v8303_v11, %s8859_s0  ;;  %v8215_v18 = vpop.permute.xlu0 %8214  ;;  %5568 = vmatprep.mubr.bf16.mxu1 %v8657_v31  ;;  %v5258_v24 = vld [vmem:[%s14646_s4 + $0x28] sm:$0xff] }
 0x6ec   :  { %v4905_v61 = vsel %vm4657_vm7, %v8211_v3, %v8212_v20  ;;  %v8217_v52 = vunpack.i.h.bf16 %v8215_v18  ;;  %v8216_v23 = vunpack.i.l.bf16 %v8215_v18  ;;  %v5260_v3 = vld [vmem:[%s14646_s4 + $0x38] sm:$0xff] }
 0x6ed   :  { %v8313_v8 = vpack.i.bf16 %v8212_v20, %v4905_v61  ;;  %v8220_v35 = vpop.permute.xlu1 %8219  ;;  %8309 = vrot.lane.b32.xlu1 %v8308_v47, %s8859_s0  ;;  %v5263_v61 = vld [vmem:[%s14646_s4 + $0x50] sm:$0xff] }
 0x6ee   :  { %v8222_v14 = vunpack.i.h.bf16 %v8220_v35  ;;  %v8221_v42 = vunpack.i.l.bf16 %v8220_v35  ;;  %v5082_v41 = vsel %vm4657_vm7, %v8216_v23, %v8217_v52 }
 0x6ef   :  { %8314 = vrot.lane.b32.xlu0 %v8313_v8, %s8859_s0  ;;  %v8225_v54 = vpop.permute.xlu0 %8224 }
 0x6f0   :  { %v5083_v10 = vsel %vm4657_vm7, %v8221_v42, %v8222_v14  ;;  %v5200_v7 = vpack.c.bf16 %v8222_v14, %v8217_v52  ;;  %v8227_v50 = vunpack.i.h.bf16 %v8225_v54  ;;  %v8226_v16 = vunpack.i.l.bf16 %v8225_v54  ;;  %v5262_v42 = vld [vmem:[%s14646_s4 + $0x48] sm:$0xff]  ;;  %v5265_v54 = vld [vmem:[%s14646_s4 + $0x60] sm:$0xff] }
 0x6f1   :  { %v5199_v6 = vpack.c.bf16 %v5083_v10, %v5082_v41  ;;  %v8230_v38 = vpop.permute.xlu1 %8229  ;;  %5271 = vperm.xlu1 %8318, %v5253_v39  }
 0x6f2   :  { %v8232_v33 = vunpack.i.h.bf16 %v8230_v38  ;;  %v8231_v4 = vunpack.i.l.bf16 %v8230_v38  ;;  %5639 = vmatprep.subr.bf16.mxu1 %v5200_v7  ;;  %5569 = vmatmul.mubr.bf16.gmra.mrb[4].mxu1 %v8659_v55  ;;  %v5084_v63 = vsel %vm4657_vm7, %v8226_v16, %v8227_v50 }
 0x6f3   :  { %5640 = vmatpush1.bf16.msra.mxu1 %v5199_v6  ;;  %5578 = vmatprep.mubr.bf16.mxu1 %v8660_v58  ;;  %v8235_v22 = vpop.permute.xlu0 %8234 }
 0x6f4   :  { %v5085_v48 = vsel %vm4657_vm7, %v8231_v4, %v8232_v33  ;;  %v5202_v12 = vpack.c.bf16 %v8232_v33, %v8227_v50  ;;  %5276 = vperm.xlu0 %8319, %v5254_v13   ;;  %v8237_v57 = vunpack.i.h.bf16 %v8235_v22  ;;  %v8236_v62 = vunpack.i.l.bf16 %v8235_v22  ;;  %v5264_v50 = vld [vmem:[%s14646_s4 + $0x58] sm:$0xff]  ;;  %v5267_v33 = vld [vmem:[%s14646_s4 + $0x70] sm:$0xff] }
 0x6f5   :  { %v5201_v44 = vpack.c.bf16 %v5085_v48, %v5084_v63  ;;  %5281 = vperm.xlu1 %8318, %v5255_v34   ;;  %v5266_v48 = vld [vmem:[%s14646_s4 + $0x68] sm:$0xff] }
 0x6f6   :  { %5641 = vmatprep.subr.bf16.mxu1 %v5202_v12  ;;  %v5086_v9 = vsel %vm4657_vm7, %v8236_v62, %v8237_v57 }
 0x6f7   :  { %5642 = vmatpush1.bf16.msra.mxu1 %v5201_v44 }
 0x6f8   :  { %5291 = vperm.xlu0 %8319, %v5257_v56  }
 0x6f9   :  { %5286 = vperm.xlu1 %8318, %v5256_v49  }
 0x6fa   :  { %5579 = vmatmul.mubr.bf16.gmra.mrb[8].mxu1 %v8662_v28 }
 0x6fb   :  { %5588 = vmatprep.mubr.bf16.mxu1 %v8663_v37 }
 0x6fc   :  { %5301 = vperm.xlu0 %8319, %v5259_v59  }
 0x6fd   :  { %5296 = vperm.xlu1 %8318, %v5258_v24  }
 0x700   :  { %5311 = vperm.xlu0 %8319, %v5261_v36  }
 0x701   :  { %5306 = vperm.xlu1 %8318, %v5260_v3  }
 0x702   :  { %5589 = vmatmul.mubr.bf16.gmra.mrb[12].mxu1 %v8665_v30 }
 0x703   :  { %5598 = vmatprep.mubr.bf16.mxu1 %v8666_v1  ;;  %v5268_v1 = vld [vmem:[%s14646_s4 + $0x78] sm:$0xff]  ;;  %s8883_s4 = smov 28  }
 0x704   :  { %5321 = vperm.xlu0 %8319, %v5263_v61  }
 0x705   :  { %5316 = vperm.xlu1 %8318, %v5262_v42  }
 0x708   :  { %5331 = vperm.xlu0 %8319, %v5265_v54  }
 0x709   :  { %5326 = vperm.xlu1 %8318, %v5264_v50  }
 0x70a   :  { %5599 = vmatmul.mubr.bf16.gmra.mrb[16].mxu1 %v8668_v32 }
 0x70b   :  { %5608 = vmatprep.mubr.bf16.mxu1 %v8669_v17 }
 0x70c   :  { %5341 = vperm.xlu0 %8319, %v5267_v33   ;;  %v8683_v33 = vld [vmem:[%s14645_s3 + $0x28] ss:$16 sps:$4 sm:$0xff]  }
 0x70d   :  { %5336 = vperm.xlu1 %8318, %v5266_v48   ;;  %v8687_v48 = vld [vmem:[%s14645_s3 + $0x6c] ss:$16 sps:$4 sm:$0xff]  }
 0x711   :  { %5346 = vperm.xlu1 %8318, %v5268_v1   ;;  %v8696_v1 = vld [vmem:[%s14645_s3 + $0xcc] ss:$16 sps:$4 sm:$0xff]  }
 0x712   :  { %5609 = vmatmul.mubr.bf16.gmra.mrb[20].mxu1 %v8671_v46 }
 0x713   :  { %5618 = vmatprep.mubr.bf16.mxu1 %v8672_v0 }
 0x71a   :  { %5619 = vmatmul.mubr.bf16.gmra.mrb[24].mxu1 %v8674_v51 }
 0x71b   :  { %5628 = vmatprep.mubr.bf16.mxu1 %v8675_v21 }
 0x722   :  { %5629 = vmatmul.mubr.bf16.gmra.mrb[28].mxu1 %v8677_v19 }
 0x723   :  { %7318 = vmatprep.mubr.msk.bf16.mxu1 %vm5501_vm1, %v8680_v53 }
 0x729   :  { %v8240_v45 = vpop.permute.xlu1 %8239 }
 0x72a   :  { %v8242_v5 = vunpack.i.h.bf16 %v8240_v45  ;;  %v8241_v2 = vunpack.i.l.bf16 %v8240_v45 }
 0x72c   :  { %v5087_v40 = vsel %vm4657_vm7, %v8241_v2, %v8242_v5  ;;  %v5204_v15 = vpack.c.bf16 %v8242_v5, %v8237_v57 }
 0x72d   :  { %v5203_v31 = vpack.c.bf16 %v5087_v40, %v5086_v9 }
 0x72e   :  { %5643 = vmatprep.subr.bf16.mxu1 %v5204_v15 }
 0x72f   :  { %v8245_v11 = vpop.permute.xlu0 %8244  ;;  %5644 = vmatpush1.bf16.msra.mxu1 %v5203_v31 }
 0x730   :  { %v8247_v25 = vunpack.i.h.bf16 %v8245_v11  ;;  %v8246_v29 = vunpack.i.l.bf16 %v8245_v11 }
 0x731   :  { %v8250_v20 = vpop.permute.xlu1 %8249 }
 0x732   :  { %v8252_v47 = vunpack.i.h.bf16 %v8250_v20  ;;  %v8251_v18 = vunpack.i.l.bf16 %v8250_v20  ;;  %v5088_v52 = vsel %vm4657_vm7, %v8246_v29, %v8247_v25 }
 0x734   :  { %v5089_v23 = vsel %vm4657_vm7, %v8251_v18, %v8252_v47  ;;  %v5206_v8 = vpack.c.bf16 %v8252_v47, %v8247_v25 }
 0x735   :  { %v5205_v35 = vpack.c.bf16 %v5089_v23, %v5088_v52  ;;  %v8260_v14 = vpop.permute.xlu1 %8259 }
 0x736   :  { %v8262_v55 = vunpack.i.h.bf16 %v8260_v14  ;;  %v8261_v41 = vunpack.i.l.bf16 %v8260_v14  ;;  %5645 = vmatprep.subr.bf16.mxu1 %v5206_v8 }
 0x737   :  { %v8255_v58 = vpop.permute.xlu0 %8254  ;;  %5646 = vmatpush1.bf16.msra.mxu1 %v5205_v35 }
 0x738   :  { %v8257_v10 = vunpack.i.h.bf16 %v8255_v58  ;;  %v8256_v7 = vunpack.i.l.bf16 %v8255_v58  ;;  %v5091_v16 = vsel %vm4657_vm7, %v8261_v41, %v8262_v55 }
 0x73a   :  { %v5208_v6 = vpack.c.bf16 %v8262_v55, %v8257_v10  ;;  %v5090_v38 = vsel %vm4657_vm7, %v8256_v7, %v8257_v10 }
 0x73b   :  { %v5207_v4 = vpack.c.bf16 %v5091_v16, %v5090_v38  ;;  %v8681_v38 = vld [vmem:[%s14645_s3 + $0x2c] ss:$16 sps:$4 sm:$0xff]  }
 0x73c   :  { %5647 = vmatprep.subr.bf16.mxu1 %v5208_v6  ;;  %v8678_v6 = vld [vmem:[%s14645_s3 + $0x8] ss:$16 sps:$4 sm:$0xff]  }
 0x73d   :  { %v8265_v63 = vpop.permute.xlu0 %8264  ;;  %5648 = vmatpush1.bf16.msra.mxu1 %v5207_v4  ;;  %v8684_v4 = vld [vmem:[%s14645_s3 + $0x4c] ss:$16 sps:$4 sm:$0xff]  }
 0x73e   :  { %v8267_v12 = vunpack.i.h.bf16 %v8265_v63  ;;  %v8266_v44 = vunpack.i.l.bf16 %v8265_v63  ;;  %v8686_v63 = vld [vmem:[%s14645_s3 + $0x48] ss:$16 sps:$4 sm:$0xff]  }
 0x73f   :  { %v8270_v28 = vpop.permute.xlu1 %8269 }
 0x740   :  { %v8272_v37 = vunpack.i.h.bf16 %v8270_v28  ;;  %v8271_v30 = vunpack.i.l.bf16 %v8270_v28  ;;  %v5092_v32 = vsel %vm4657_vm7, %v8266_v44, %v8267_v12  ;;  %v8690_v44 = vld [vmem:[%s14645_s3 + $0x8c] ss:$16 sps:$4 sm:$0xff]   ;;  %v8692_v28 = vld [vmem:[%s14645_s3 + $0x88] ss:$16 sps:$4 sm:$0xff]  }
 0x742   :  { %v5093_v17 = vsel %vm4657_vm7, %v8271_v30, %v8272_v37  ;;  %v5210_v46 = vpack.c.bf16 %v8272_v37, %v8267_v12  ;;  %v8689_v12 = vld [vmem:[%s14645_s3 + $0x68] ss:$16 sps:$4 sm:$0xff]   ;;  %v8693_v37 = vld [vmem:[%s14645_s3 + $0xac] ss:$16 sps:$4 sm:$0xff]  }
 0x743   :  { %v5209_v0 = vpack.c.bf16 %v5093_v17, %v5092_v32  ;;  %v8695_v30 = vld [vmem:[%s14645_s3 + $0xa8] ss:$16 sps:$4 sm:$0xff]   ;;  %v8699_v17 = vld [vmem:[%s14645_s3 + $0xec] ss:$16 sps:$4 sm:$0xff]  }
 0x744   :  { %5649 = vmatprep.subr.bf16.mxu1 %v5210_v46  ;;  %v8698_v32 = vld [vmem:[%s14645_s3 + $0xc8] ss:$16 sps:$4 sm:$0xff]  }
 0x745   :  { %v8275_v51 = vpop.permute.xlu0 %8274  ;;  %5650 = vmatpush1.bf16.msra.mxu1 %v5209_v0  ;;  %v8701_v46 = vld [vmem:[%s14645_s3 + $0xe8] ss:$16 sps:$4 sm:$0xff]  }
 0x746   :  { %v8277_v21 = vunpack.i.h.bf16 %v8275_v51  ;;  %v8276_v19 = vunpack.i.l.bf16 %v8275_v51 }
 0x747   :  { %v8280_v53 = vpop.permute.xlu1 %8279 }
 0x748   :  { %v8282_v39 = vunpack.i.h.bf16 %v8280_v53  ;;  %v8281_v13 = vunpack.i.l.bf16 %v8280_v53  ;;  %v5094_v22 = vsel %vm4657_vm7, %v8276_v19, %v8277_v21 }
 0x74a   :  { %v5212_v34 = vpack.c.bf16 %v8282_v39, %v8277_v21  ;;  %v5095_v56 = vsel %vm4657_vm7, %v8281_v13, %v8282_v39 }
 0x74b   :  { %v5211_v57 = vpack.c.bf16 %v5095_v56, %v5094_v22 }
 0x74c   :  { %5651 = vmatprep.subr.bf16.mxu1 %v5212_v34 }
 0x74d   :  { %v8285_v62 = vpop.permute.xlu0 %8284  ;;  %5652 = vmatpush1.bf16.msra.mxu1 %v5211_v57 }
 0x74e   :  { %v8287_v45 = vunpack.i.h.bf16 %v8285_v62  ;;  %v8286_v49 = vunpack.i.l.bf16 %v8285_v62 }
 0x74f   :  { %v8290_v5 = vpop.permute.xlu1 %8289 }
 0x750   :  { %v8292_v2 = vunpack.i.h.bf16 %v8290_v5  ;;  %v8291_v59 = vunpack.i.l.bf16 %v8290_v5  ;;  %v5096_v9 = vsel %vm4657_vm7, %v8286_v49, %v8287_v45 }
 0x752   :  { %v5214_v40 = vpack.c.bf16 %v8292_v2, %v8287_v45  ;;  %v5097_v15 = vsel %vm4657_vm7, %v8291_v59, %v8292_v2  ;;  %vm6437_vm7 = vcmask 883712  }
 0x753   :  { %v5213_v31 = vpack.c.bf16 %v5097_v15, %v5096_v9 }
 0x754   :  { %5653 = vmatprep.subr.bf16.mxu1 %v5214_v40 }
 0x755   :  { %v8295_v24 = vpop.permute.xlu0 %8294  ;;  %5654 = vmatpush1.bf16.msra.mxu1 %v5213_v31 }
 0x756   :  { %v8297_v36 = vunpack.i.h.bf16 %v8295_v24  ;;  %v8296_v11 = vunpack.i.l.bf16 %v8295_v24 }
 0x758   :  { %v5216_v25 = vpack.c.bf16 %v8297_v36, %v13890_v26  ;;  %v5150_v29 = vsel %vm4641_vm4, %v8296_v11, %v8297_v36 }
 0x759   :  { %v5215_v20 = vpack.c.bf16 %v5150_v29, %v13900_v43 }
 0x75a   :  { %5655 = vmatprep.subr.bf16.mxu1 %v5216_v25 }
 0x75b   :  { %v8300_v3 = vpop.permute.xlu1 %8299  ;;  %5656 = vmatpush1.bf16.msra.mxu1 %v5215_v20 }
 0x75c   :  { %v8302_v47 = vunpack.i.h.bf16 %v8300_v3  ;;  %v8301_v18 = vunpack.i.l.bf16 %v8300_v3 }
 0x75d   :  { %v8305_v61 = vpop.permute.xlu0 %8304 }
 0x75e   :  { %v8307_v52 = vunpack.i.h.bf16 %v8305_v61  ;;  %v8306_v23 = vunpack.i.l.bf16 %v8305_v61  ;;  %v5151_v8 = vsel %vm4641_vm4, %v8301_v18, %v8302_v47 }
 0x75f   :  { %v8310_v35 = vpop.permute.xlu1 %8309 }
 0x760   :  { %v5152_v14 = vsel %vm4641_vm4, %v8306_v23, %v8307_v52  ;;  %v5218_v42 = vpack.c.bf16 %v8307_v52, %v8302_v47  ;;  %v8312_v55 = vunpack.i.h.bf16 %v8310_v35  ;;  %v8311_v26 = vunpack.i.l.bf16 %v8310_v35 }
 0x761   :  { %v5217_v41 = vpack.c.bf16 %v5152_v14, %v5151_v8  ;;  %v8315_v54 = vpop.permute.xlu0 %8314 }
 0x762   :  { %v8317_v58 = vunpack.i.h.bf16 %v8315_v54  ;;  %v8316_v43 = vunpack.i.l.bf16 %v8315_v54  ;;  %5657 = vmatprep.subr.bf16.mxu1 %v5218_v42  ;;  %v5153_v10 = vsel %vm4641_vm4, %v8311_v26, %v8312_v55 }
 0x763   :  { %5658 = vmatpush1.bf16.msra.mxu1 %v5217_v41 }
 0x764   :  { %v5154_v7 = vsel %vm4641_vm4, %v8316_v43, %v8317_v58  ;;  %v5220_v50 = vpack.c.bf16 %v8317_v58, %v8312_v55 }
 0x765   :  { %v5219_v16 = vpack.c.bf16 %v5154_v7, %v5153_v10 }
 0x766   :  { %5659 = vmatprep.subr.bf16.mxu1 %v5220_v50 }
 0x767   :  { %5660 = vmatpush1.bf16.msra.mxu1 %v5219_v16 }
 0x768   :  { %6276 = vmatprep.subr.bf16.mxu1 %v8868_v27 }
 0x76a   :  { %5672 = vmatmul.mubr.bf16.vlgmr.msra.gmra.mrb[0].mxu1 %v8678_v6 }
 0x76b   :  { %7319 = vmatprep.mubr.msk.bf16.mxu1 %vm5501_vm1, %v8681_v38 }
 0x770   :  { %v5272_v0 = vpop.permute.xlu1 %5271 }
 0x772   :  { %5682 = vmatmul.mubr.bf16.gmra.mrb[4].mxu1 %v8683_v33 }
 0x773   :  { %7320 = vmatprep.mubr.msk.bf16.mxu1 %vm5501_vm1, %v8684_v4  ;;  %v5277_v53 = vpop.permute.xlu0 %5276 }
 0x774   :  { %v5282_v57 = vpop.permute.xlu1 %5281 }
 0x777   :  { %v5292_v52 = vpop.permute.xlu0 %5291 }
 0x778   :  { %v5287_v31 = vpop.permute.xlu1 %5286 }
 0x77a   :  { %5692 = vmatmul.mubr.bf16.gmra.mrb[8].mxu1 %v8686_v63 }
 0x77b   :  { %7321 = vmatprep.mubr.msk.bf16.mxu1 %vm5501_vm1, %v8687_v48  ;;  %v5302_v6 = vpop.permute.xlu0 %5301 }
 0x77c   :  { %v5297_v42 = vpop.permute.xlu1 %5296 }
 0x780   :  { %v5307_v48 = vpop.permute.xlu1 %5306 }
 0x782   :  { %5702 = vmatmul.mubr.bf16.gmra.mrb[12].mxu1 %v8689_v12 }
 0x783   :  { %7322 = vmatprep.mubr.msk.bf16.mxu1 %vm5501_vm1, %v8690_v44 }
 0x78a   :  { %5712 = vmatmul.mubr.bf16.gmra.mrb[16].mxu1 %v8692_v28 }
 0x78b   :  { %7323 = vmatprep.mubr.msk.bf16.mxu1 %vm5501_vm1, %v8693_v37 }
 0x792   :  { %5722 = vmatmul.mubr.bf16.gmra.mrb[20].mxu1 %v8695_v30 }
 0x793   :  { %7324 = vmatprep.mubr.msk.bf16.mxu1 %vm5501_vm1, %v8696_v1 }
 0x79a   :  { %5732 = vmatmul.mubr.bf16.gmra.mrb[24].mxu1 %v8698_v32 }
 0x79b   :  { %7325 = vmatprep.mubr.msk.bf16.mxu1 %vm5501_vm1, %v8699_v17 }
 0x7a2   :  { %5742 = vmatmul.mubr.bf16.gmra.mrb[28].mxu1 %v8701_v46 }
 0x83d   :  { %v5673_v51 = vpop.f32.mrb[0].mxu1 }
 0x83e   :  { %v14079_v21 = vadd.f32 %v5673_v51, %v5272_v0  ;;  %v5675_v19 = vpop.f32.mrb[1].mxu1  ;;  %v5312_v51 = vpop.permute.xlu0 %5311 }
 0x83f   :  { %v14081_v39 = vadd.f32 %v5675_v19, %v5272_v0  ;;  %v5677_v13 = vpop.f32.mrb[2].mxu1 }
 0x840   :  { %v5752_v22 = vmax.f32 %v14079_v21, 0.0  ;;  %v14084_v34 = vadd.f32 %v5677_v13, %v5277_v53  ;;  %v5679_v56 = vpop.f32.mrb[3].mxu1 }
 0x841   :  { %v5753_v62 = vmax.f32 %v14081_v39, 0.0  ;;  %v14087_v45 = vadd.f32 %v5679_v56, %v5277_v53 }
 0x842   :  { %v5754_v49 = vmax.f32 %v14084_v34, 0.0 }
 0x843   :  { %v8320_v5 = vpack.i.bf16 %v5753_v62, %v5752_v22  ;;  %v5755_v2 = vmax.f32 %v14087_v45, 0.0 }
 0x845   :  { %v8325_v59 = vpack.i.bf16 %v5755_v2, %v5754_v49  ;;  %v5683_v9 = vpop.f32.mrb[4].mxu1  ;;  %8321 = vrot.lane.b32.xlu0 %v8320_v5, %s8844_s22 }
 0x846   :  { %v14100_v40 = vadd.f32 %v5683_v9, %v5282_v57  ;;  %v5685_v15 = vpop.f32.mrb[5].mxu1 }
 0x847   :  { %v14102_v24 = vadd.f32 %v5685_v15, %v5282_v57  ;;  %v5687_v36 = vpop.f32.mrb[6].mxu1  ;;  %8326 = vrot.lane.b32.xlu1 %v8325_v59, %s8844_s22  ;;  %v5317_v57 = vpop.permute.xlu1 %5316 }
 0x848   :  { %v5756_v11 = vmax.f32 %v14100_v40, 0.0  ;;  %v14106_v25 = vadd.f32 %v5687_v36, %v5287_v31  ;;  %v5689_v29 = vpop.f32.mrb[7].mxu1 }
 0x849   :  { %v5757_v20 = vmax.f32 %v14102_v24, 0.0  ;;  %v14109_v3 = vadd.f32 %v5689_v29, %v5287_v31 }
 0x84a   :  { %v5758_v47 = vmax.f32 %v14106_v25, 0.0 }
 0x84b   :  { %v8330_v18 = vpack.i.bf16 %v5757_v20, %v5756_v11  ;;  %v5759_v61 = vmax.f32 %v14109_v3, 0.0 }
 0x84d   :  { %v8335_v23 = vpack.i.bf16 %v5759_v61, %v5758_v47  ;;  %v5693_v8 = vpop.f32.mrb[8].mxu1  ;;  %8331 = vrot.lane.b32.xlu0 %v8330_v18, %s8844_s22 }
 0x84e   :  { %v14122_v35 = vadd.f32 %v5693_v8, %v5292_v52  ;;  %v5695_v14 = vpop.f32.mrb[9].mxu1  ;;  %v5322_v8 = vpop.permute.xlu0 %5321 }
 0x84f   :  { %v14124_v55 = vadd.f32 %v5695_v14, %v5292_v52  ;;  %v5697_v26 = vpop.f32.mrb[10].mxu1  ;;  %8336 = vrot.lane.b32.xlu1 %v8335_v23, %s8844_s22 }
 0x850   :  { %v5760_v41 = vmax.f32 %v14122_v35, 0.0  ;;  %v14128_v54 = vadd.f32 %v5697_v26, %v5297_v42  ;;  %v5699_v58 = vpop.f32.mrb[11].mxu1 }
 0x851   :  { %v5761_v43 = vmax.f32 %v14124_v55, 0.0  ;;  %v14131_v10 = vadd.f32 %v5699_v58, %v5297_v42 }
 0x852   :  { %v5762_v7 = vmax.f32 %v14128_v54, 0.0 }
 0x853   :  { %v8340_v50 = vpack.i.bf16 %v5761_v43, %v5760_v41  ;;  %v5763_v16 = vmax.f32 %v14131_v10, 0.0 }
 0x855   :  { %v8345_v38 = vpack.i.bf16 %v5763_v16, %v5762_v7  ;;  %v5703_v33 = vpop.f32.mrb[12].mxu1  ;;  %8341 = vrot.lane.b32.xlu0 %v8340_v50, %s8844_s22  ;;  %v5327_v50 = vpop.permute.xlu1 %5326 }
 0x856   :  { %v14144_v4 = vadd.f32 %v5703_v33, %v5302_v6  ;;  %v5705_v63 = vpop.f32.mrb[13].mxu1 }
 0x857   :  { %v14146_v12 = vadd.f32 %v5705_v63, %v5302_v6  ;;  %v5707_v44 = vpop.f32.mrb[14].mxu1  ;;  %8346 = vrot.lane.b32.xlu1 %v8345_v38, %s8844_s22 }
 0x858   :  { %v5764_v28 = vmax.f32 %v14144_v4, 0.0  ;;  %v14150_v37 = vadd.f32 %v5707_v44, %v5307_v48  ;;  %v5709_v30 = vpop.f32.mrb[15].mxu1 }
 0x859   :  { %v5765_v1 = vmax.f32 %v14146_v12, 0.0  ;;  %v14153_v32 = vadd.f32 %v5709_v30, %v5307_v48 }
 0x85a   :  { %v5766_v17 = vmax.f32 %v14150_v37, 0.0 }
 0x85b   :  { %v8350_v46 = vpack.i.bf16 %v5765_v1, %v5764_v28  ;;  %v5767_v0 = vmax.f32 %v14153_v32, 0.0 }
 0x85d   :  { %v8355_v19 = vpack.i.bf16 %v5767_v0, %v5766_v17  ;;  %v5713_v53 = vpop.f32.mrb[16].mxu1  ;;  %8351 = vrot.lane.b32.xlu0 %v8350_v46, %s8844_s22 }
 0x85e   :  { %v14166_v13 = vadd.f32 %v5713_v53, %v5312_v51  ;;  %v5715_v56 = vpop.f32.mrb[17].mxu1  ;;  %v5332_v53 = vpop.permute.xlu0 %5331 }
 0x85f   :  { %v14168_v5 = vadd.f32 %v5715_v56, %v5312_v51  ;;  %v5717_v59 = vpop.f32.mrb[18].mxu1  ;;  %8356 = vrot.lane.b32.xlu1 %v8355_v19, %s8844_s22 }
 0x860   :  { %v5768_v9 = vmax.f32 %v14166_v13, 0.0  ;;  %v14172_v15 = vadd.f32 %v5717_v59, %v5317_v57  ;;  %v5719_v31 = vpop.f32.mrb[19].mxu1 }
 0x861   :  { %v5769_v36 = vmax.f32 %v14168_v5, 0.0  ;;  %v14175_v29 = vadd.f32 %v5719_v31, %v5317_v57 }
 0x862   :  { %v15144_v18 = vmax.f32 %v14172_v15, 0.0  ;;  %v16103_v5 = vmax.f32 %v14172_v15, 0.0 }
 0x863   :  { %v8360_v52 = vpack.i.bf16 %v5769_v36, %v5768_v9  ;;  %v15151_v23 = vmax.f32 %v14175_v29, 0.0 }
 0x865   :  { %v8365_v14 = vpack.i.bf16 %v15151_v23, %v15144_v18  ;;  %v5723_v42 = vpop.f32.mrb[20].mxu1  ;;  %8361 = vrot.lane.b32.xlu0 %v8360_v52, %s8844_s22  ;;  %v5337_v52 = vpop.permute.xlu1 %5336 }
 0x866   :  { %v14188_v26 = vadd.f32 %v5723_v42, %v5322_v8  ;;  %v5725_v58 = vpop.f32.mrb[21].mxu1 }
 0x867   :  { %v14190_v6 = vadd.f32 %v5725_v58, %v5322_v8  ;;  %v5727_v38 = vpop.f32.mrb[22].mxu1  ;;  %8366 = vrot.lane.b32.xlu1 %v8365_v14, %s8844_s22 }
 0x868   :  { %v15140_v33 = vmax.f32 %v14188_v26, 0.0  ;;  %v14194_v63 = vadd.f32 %v5727_v38, %v5327_v50  ;;  %v5729_v48 = vpop.f32.mrb[23].mxu1 }
 0x869   :  { %v15143_v44 = vmax.f32 %v14190_v6, 0.0  ;;  %v14197_v30 = vadd.f32 %v5729_v48, %v5327_v50 }
 0x86a   :  { %v15138_v46 = vmax.f32 %v14194_v63, 0.0 }
 0x86b   :  { %v8370_v51 = vpack.i.bf16 %v15143_v44, %v15140_v33  ;;  %v15139_v19 = vmax.f32 %v14197_v30, 0.0 }
 0x86d   :  { %v8375_v56 = vpack.i.bf16 %v15139_v19, %v15138_v46  ;;  %v5733_v57 = vpop.f32.mrb[24].mxu1  ;;  %8371 = vrot.lane.b32.xlu0 %v8370_v51, %s8844_s22  ;;  %v5347_v46 = vpop.permute.xlu1 %5346 }
 0x86e   :  { %v14210_v59 = vadd.f32 %v5733_v57, %v5332_v53  ;;  %v5735_v31 = vpop.f32.mrb[25].mxu1 }
 0x86f   :  { %v14212_v8 = vadd.f32 %v5735_v31, %v5332_v53  ;;  %v5737_v14 = vpop.f32.mrb[26].mxu1  ;;  %8376 = vrot.lane.b32.xlu1 %v8375_v56, %s8844_s22  ;;  %v5342_v31 = vpop.permute.xlu0 %5341 }
 0x870   :  { %v15141_v42 = vmax.f32 %v14210_v59, 0.0  ;;  %v14216_v58 = vadd.f32 %v5737_v14, %v5337_v52  ;;  %v5739_v50 = vpop.f32.mrb[27].mxu1 }
 0x871   :  { %v15142_v38 = vmax.f32 %v14212_v8, 0.0  ;;  %v14219_v48 = vadd.f32 %v5739_v50, %v5337_v52 }
 0x872   :  { %v15145_v51 = vmax.f32 %v14216_v58, 0.0 }
 0x873   :  { %v8380_v53 = vpack.i.bf16 %v15142_v38, %v15141_v42  ;;  %v15150_v57 = vmax.f32 %v14219_v48, 0.0 }
 0x875   :  { %v8385_v56 = vpack.i.bf16 %v15150_v57, %v15145_v51  ;;  %v5743_v14 = vpop.f32.mrb[28].mxu1  ;;  %8381 = vrot.lane.b32.xlu0 %v8380_v53, %s8844_s22  ;;  %v8702_v53 = vld [vmem:[%s14648_s6] sm:$0xff]  }
 0x876   :  { %v14232_v52 = vadd.f32 %v5743_v14, %v5342_v31  ;;  %v5745_v50 = vpop.f32.mrb[29].mxu1  ;;  %6277 = vmatpush1.bf16.msra.mxu1 %v8702_v53  ;;  %v8706_v53 = vld [vmem:[%s14648_s6 + $0x20] sm:$0xff]  }
 0x877   :  { %v14234_v19 = vadd.f32 %v5745_v50, %v5342_v31  ;;  %v5747_v33 = vpop.f32.mrb[30].mxu1  ;;  %8386 = vrot.lane.b32.xlu1 %v8385_v56, %s8844_s22  ;;  %6278 = vmatprep.subr.bf16.mxu1 %v8868_v27  ;;  %v8705_v50 = vld [vmem:[%s14648_s6 + $0x18] sm:$0xff]  }
 0x878   :  { %v15148_v42 = vmax.f32 %v14232_v52, 0.0  ;;  %v14238_v38 = vadd.f32 %v5747_v33, %v5347_v46  ;;  %v5749_v44 = vpop.f32.mrb[31].mxu1  ;;  %v8703_v33 = vld [vmem:[%s14648_s6 + $0x8] sm:$0xff]  }
 0x879   :  { %v15149_v18 = vmax.f32 %v14234_v19, 0.0  ;;  %v14241_v51 = vadd.f32 %v5749_v44, %v5347_v46  ;;  %v8704_v46 = vld [vmem:[%s14648_s6 + $0x10] sm:$0xff]  }
 0x87a   :  { %v15146_v14 = vmax.f32 %v14238_v38, 0.0  ;;  %6279 = vmatpush1.bf16.msra.mxu1 %v8703_v33  ;;  %v8708_v33 = vld [vmem:[%s14648_s6 + $0x30] sm:$0xff]  }
 0x87b   :  { %v8390_v31 = vpack.i.bf16 %v15149_v18, %v15148_v42  ;;  %v15147_v56 = vmax.f32 %v14241_v51, 0.0  ;;  %6280 = vmatprep.subr.bf16.mxu1 %v8868_v27 }
 0x87d   :  { %v8395_v44 = vpack.i.bf16 %v15147_v56, %v15146_v14  ;;  %8391 = vrot.lane.b32.xlu0 %v8390_v31, %s8844_s22  ;;  %v8707_v31 = vld [vmem:[%s14648_s6 + $0x28] sm:$0xff]  }
 0x87e   :  { %6281 = vmatpush1.bf16.msra.mxu1 %v8704_v46  ;;  %v8710_v46 = vld [vmem:[%s14648_s6 + $0x40] sm:$0xff]  }
 0x87f   :  { %8396 = vrot.lane.b32.xlu1 %v8395_v44, %s8844_s22  ;;  %6282 = vmatprep.subr.bf16.mxu1 %v8868_v27  ;;  %v8709_v44 = vld [vmem:[%s14648_s6 + $0x38] sm:$0xff]   ;;  %s8881_s22 = smov 84  }
 0x882   :  { %6283 = vmatpush1.bf16.msra.mxu1 %v8705_v50  ;;  %v8711_v50 = vld [vmem:[%s14648_s6 + $0x48] sm:$0xff]  }
 0x883   :  { %6284 = vmatprep.subr.bf16.mxu1 %v8868_v27 }
 0x886   :  { %6285 = vmatpush1.bf16.msra.mxu1 %v8706_v53  ;;  %v6271_v53 = vsel %vm6269_vm14, 4294967295, %v8851_v60  ;;  %vm6455_vm14 = vcmask 687104  }
 0x887   :  { %6286 = vmatprep.subr.bf16.mxu1 %v8868_v27 }
 0x88a   :  { %6287 = vmatpush1.bf16.msra.mxu1 %v8707_v31  ;;  %v8712_v31 = vld [vmem:[%s14648_s6 + $0x50] sm:$0xff]  }
 0x88b   :  { %6288 = vmatprep.subr.bf16.mxu1 %v8868_v27 }
 0x88e   :  { %6289 = vmatpush1.bf16.msra.mxu1 %v8708_v33 }
 0x88f   :  { %6290 = vmatprep.subr.bf16.mxu1 %v8868_v27 }
 0x892   :  { %6291 = vmatpush1.bf16.msra.mxu1 %v8709_v44 }
 0x893   :  { %6292 = vmatprep.subr.bf16.mxu1 %v8868_v27 }
 0x896   :  { %6293 = vmatpush1.bf16.msra.mxu1 %v8710_v46  ;;  %v8713_v46 = vld [vmem:[%s14648_s6 + $0x58] ss:$0 sps:$4 sm:$0x33]   ;;  %s8869_s6 = smov 36  }
 0x897   :  { %6294 = vmatprep.subr.bf16.mxu1 %v8868_v27 }
 0x89a   :  { %6295 = vmatpush1.bf16.msra.mxu1 %v8711_v50  ;;  %v6272_v50 = vsel %vm6270_vm15, %v6271_v53, 0 }
 0x89b   :  { %6296 = vmatprep.subr.bf16.mxu1 %v8868_v27 }
 0x89e   :  { %6297 = vmatpush1.bf16.msra.mxu1 %v8712_v31 }
 0x89f   :  { %6298 = vmatprep.subr.bf16.mxu1 %v8868_v27 }
 0x8b7   :  { %v8322_v33 = vpop.permute.xlu0 %8321 }
 0x8b8   :  { %v8324_v44 = vunpack.i.h.bf16 %v8322_v33  ;;  %v8323_v14 = vunpack.i.l.bf16 %v8322_v33  ;;  %v6274_v33 = vand.u32 %v8713_v46, %v6272_v50 }
 0x8b9   :  { %v8327_v56 = vpop.permute.xlu1 %8326 }
 0x8ba   :  { %v14306_v60 = vmax.f32 %v5753_v62, %v8324_v44  ;;  %v5880_v42 = vsel %vm139_vm0, %v8323_v14, %v8324_v44  ;;  %v8329_v18 = vunpack.i.h.bf16 %v8327_v56  ;;  %v8328_v57 = vunpack.i.l.bf16 %v8327_v56  ;;  %6299 = vmatpush1.bf16.msra.mxu1 %v6274_v33 }
 0x8bb   :  { %v14311_v31 = vmax.f32 %v5752_v22, %v5880_v42 }
 0x8bc   :  { %v14315_v23 = vmax.f32 %v5755_v2, %v8329_v18  ;;  %v5881_v27 = vsel %vm139_vm0, %v8328_v57, %v8329_v18 }
 0x8bd   :  { %v8400_v39 = vpack.i.bf16 %v14306_v60, %v14311_v31  ;;  %v14322_v62 = vmax.f32 %v5754_v49, %v5881_v27 }
 0x8bf   :  { %v8405_v21 = vpack.i.bf16 %v14315_v23, %v14322_v62  ;;  %v8332_v22 = vpop.permute.xlu0 %8331  ;;  %8401 = vrot.lane.b32.xlu0 %v8400_v39, %s8859_s0 }
 0x8c0   :  { %v8334_v42 = vunpack.i.h.bf16 %v8332_v22  ;;  %v8333_v45 = vunpack.i.l.bf16 %v8332_v22 }
 0x8c1   :  { %v8337_v2 = vpop.permute.xlu1 %8336  ;;  %8406 = vrot.lane.b32.xlu1 %v8405_v21, %s8859_s0 }
 0x8c2   :  { %v14330_v18 = vmax.f32 %v5757_v20, %v8334_v42  ;;  %v5882_v34 = vsel %vm139_vm0, %v8333_v45, %v8334_v42  ;;  %v8339_v49 = vunpack.i.h.bf16 %v8337_v2  ;;  %v8338_v57 = vunpack.i.l.bf16 %v8337_v2 }
 0x8c3   :  { %v14335_v14 = vmax.f32 %v5756_v11, %v5882_v34 }
 0x8c4   :  { %v14339_v56 = vmax.f32 %v5759_v61, %v8339_v49  ;;  %v5883_v53 = vsel %vm139_vm0, %v8338_v57, %v8339_v49 }
 0x8c5   :  { %v8410_v44 = vpack.i.bf16 %v14330_v18, %v14335_v14  ;;  %v14346_v24 = vmax.f32 %v5758_v47, %v5883_v53 }
 0x8c7   :  { %v8415_v20 = vpack.i.bf16 %v14339_v56, %v14346_v24  ;;  %v8342_v46 = vpop.permute.xlu0 %8341  ;;  %8411 = vrot.lane.b32.xlu0 %v8410_v44, %s8859_s0 }
 0x8c8   :  { %v8344_v40 = vunpack.i.h.bf16 %v8342_v46  ;;  %v8343_v11 = vunpack.i.l.bf16 %v8342_v46 }
 0x8c9   :  { %v8347_v3 = vpop.permute.xlu1 %8346  ;;  %8416 = vrot.lane.b32.xlu1 %v8415_v20, %s8859_s0  ;;  %v16102_v20 = vmax.f32 %v14175_v29, 0.0 }
 0x8ca   :  { %v14354_v61 = vmax.f32 %v5761_v43, %v8344_v40  ;;  %v5884_v50 = vsel %vm139_vm0, %v8343_v11, %v8344_v40  ;;  %v8349_v25 = vunpack.i.h.bf16 %v8347_v3  ;;  %v8348_v47 = vunpack.i.l.bf16 %v8347_v3 }
 0x8cb   :  { %v14359_v33 = vmax.f32 %v5760_v41, %v5884_v50 }
 0x8cc   :  { %v14363_v27 = vmax.f32 %v5763_v16, %v8349_v25  ;;  %v5885_v39 = vsel %vm139_vm0, %v8348_v47, %v8349_v25  ;;  %v16104_v25 = vmax.f32 %v14190_v6, 0.0  ;;  %v16107_v6 = vmax.f32 %v14194_v63, 0.0 }
 0x8cd   :  { %v8420_v21 = vpack.i.bf16 %v14354_v61, %v14359_v33  ;;  %v14370_v55 = vmax.f32 %v5762_v7, %v5885_v39 }
 0x8cf   :  { %v8425_v43 = vpack.i.bf16 %v14363_v27, %v14370_v55  ;;  %v8352_v22 = vpop.permute.xlu0 %8351  ;;  %8421 = vrot.lane.b32.xlu0 %v8420_v21, %s8859_s0 }
 0x8d0   :  { %v8354_v35 = vunpack.i.h.bf16 %v8352_v22  ;;  %v8353_v41 = vunpack.i.l.bf16 %v8352_v22 }
 0x8d1   :  { %v8357_v10 = vpop.permute.xlu1 %8356  ;;  %8426 = vrot.lane.b32.xlu1 %v8425_v43, %s8859_s0  ;;  %v16105_v43 = vmax.f32 %v14188_v26, 0.0 }
 0x8d2   :  { %v14378_v16 = vmax.f32 %v5765_v1, %v8354_v35  ;;  %v5886_v42 = vsel %vm139_vm0, %v8353_v41, %v8354_v35  ;;  %v8359_v54 = vunpack.i.h.bf16 %v8357_v10  ;;  %v8358_v7 = vunpack.i.l.bf16 %v8357_v10 }
 0x8d3   :  { %v14383_v45 = vmax.f32 %v5764_v28, %v5886_v42  ;;  %v16106_v35 = vmax.f32 %v14197_v30, 0.0 }
 0x8d4   :  { %v14387_v2 = vmax.f32 %v5767_v0, %v8359_v54  ;;  %v5887_v34 = vsel %vm139_vm0, %v8358_v7, %v8359_v54 }
 0x8d5   :  { %v8430_v49 = vpack.i.bf16 %v14378_v16, %v14383_v45  ;;  %v14394_v12 = vmax.f32 %v5766_v17, %v5887_v34 }
 0x8d7   :  { %v8435_v1 = vpack.i.bf16 %v14387_v2, %v14394_v12  ;;  %v8362_v57 = vpop.permute.xlu0 %8361  ;;  %8431 = vrot.lane.b32.xlu0 %v8430_v49, %s8859_s0 }
 0x8d8   :  { %v8364_v4 = vunpack.i.h.bf16 %v8362_v57  ;;  %v8363_v28 = vunpack.i.l.bf16 %v8362_v57 }
 0x8d9   :  { %v8367_v32 = vpop.permute.xlu1 %8366  ;;  %8436 = vrot.lane.b32.xlu1 %v8435_v1, %s8859_s0  ;;  %v16108_v1 = vmax.f32 %v14212_v8, 0.0  ;;  %v16111_v8 = vmax.f32 %v14216_v58, 0.0 }
 0x8da   :  { %v14402_v0 = vmax.f32 %v5769_v36, %v8364_v4  ;;  %v5888_v53 = vsel %vm139_vm0, %v8363_v28, %v8364_v4  ;;  %v8369_v37 = vunpack.i.h.bf16 %v8367_v32  ;;  %v8368_v17 = vunpack.i.l.bf16 %v8367_v32 }
 0x8db   :  { %v14407_v44 = vmax.f32 %v5768_v9, %v5888_v53  ;;  %v16109_v32 = vmax.f32 %v14210_v59, 0.0 }
 0x8dc   :  { %v14411_v46 = vmax.f32 %v16102_v20, %v8369_v37  ;;  %v5889_v40 = vsel %vm139_vm0, %v8368_v17, %v8369_v37  ;;  %v16110_v37 = vmax.f32 %v14219_v48, 0.0 }
 0x8dd   :  { %v8440_v11 = vpack.i.bf16 %v14402_v0, %v14407_v44  ;;  %v14418_v36 = vmax.f32 %v16103_v5, %v5889_v40 }
 0x8df   :  { %v8445_v3 = vpack.i.bf16 %v14411_v46, %v14418_v36  ;;  %v8372_v50 = vpop.permute.xlu0 %8371  ;;  %8441 = vrot.lane.b32.xlu0 %v8440_v11, %s8859_s0 }
 0x8e0   :  { %v8374_v13 = vunpack.i.h.bf16 %v8372_v50  ;;  %v8373_v9 = vunpack.i.l.bf16 %v8372_v50 }
 0x8e1   :  { %v8377_v29 = vpop.permute.xlu1 %8376  ;;  %8446 = vrot.lane.b32.xlu1 %v8445_v3, %s8859_s0 }
 0x8e2   :  { %v14426_v47 = vmax.f32 %v16104_v25, %v8374_v13  ;;  %v5890_v39 = vsel %vm139_vm0, %v8373_v9, %v8374_v13  ;;  %v8379_v15 = vunpack.i.h.bf16 %v8377_v29  ;;  %v8378_v21 = vunpack.i.l.bf16 %v8377_v29 }
 0x8e3   :  { %v14431_v22 = vmax.f32 %v16105_v43, %v5890_v39  ;;  %v16112_v13 = vmax.f32 %v14234_v19, 0.0  ;;  %v16113_v39 = vmax.f32 %v14232_v52, 0.0  ;;  %v16115_v19 = vmax.f32 %v14238_v38, 0.0 }
 0x8e4   :  { %v14435_v41 = vmax.f32 %v16106_v35, %v8379_v15  ;;  %v5891_v10 = vsel %vm139_vm0, %v8378_v21, %v8379_v15  ;;  %v16114_v21 = vmax.f32 %v14241_v51, 0.0 }
 0x8e5   :  { %v8450_v42 = vpack.i.bf16 %v14426_v47, %v14431_v22  ;;  %v14442_v54 = vmax.f32 %v16107_v6, %v5891_v10 }
 0x8e7   :  { %v8455_v7 = vpack.i.bf16 %v14435_v41, %v14442_v54  ;;  %v8382_v34 = vpop.permute.xlu0 %8381  ;;  %8451 = vrot.lane.b32.xlu0 %v8450_v42, %s8859_s0 }
 0x8e8   :  { %v8384_v26 = vunpack.i.h.bf16 %v8382_v34  ;;  %v8383_v49 = vunpack.i.l.bf16 %v8382_v34 }
 0x8e9   :  { %v8387_v30 = vpop.permute.xlu1 %8386  ;;  %8456 = vrot.lane.b32.xlu1 %v8455_v7, %s8859_s0 }
 0x8ea   :  { %v14450_v57 = vmax.f32 %v16108_v1, %v8384_v26  ;;  %v5892_v4 = vsel %vm139_vm0, %v8383_v49, %v8384_v26  ;;  %v8389_v63 = vunpack.i.h.bf16 %v8387_v30  ;;  %v8388_v28 = vunpack.i.l.bf16 %v8387_v30 }
 0x8eb   :  { %v14455_v53 = vmax.f32 %v16109_v32, %v5892_v4 }
 0x8ec   :  { %v14459_v17 = vmax.f32 %v16110_v37, %v8389_v63  ;;  %v5893_v20 = vsel %vm139_vm0, %v8388_v28, %v8389_v63 }
 0x8ed   :  { %v8460_v40 = vpack.i.bf16 %v14450_v57, %v14455_v53  ;;  %v14466_v11 = vmax.f32 %v16111_v8, %v5893_v20 }
 0x8ef   :  { %v8465_v5 = vpack.i.bf16 %v14459_v17, %v14466_v11  ;;  %v8392_v3 = vpop.permute.xlu0 %8391  ;;  %8461 = vrot.lane.b32.xlu0 %v8460_v40, %s8859_s0 }
 0x8f0   :  { %v8394_v59 = vunpack.i.h.bf16 %v8392_v3  ;;  %v8393_v50 = vunpack.i.l.bf16 %v8392_v3 }
 0x8f1   :  { %v8397_v48 = vpop.permute.xlu1 %8396  ;;  %8466 = vrot.lane.b32.xlu1 %v8465_v5, %s8859_s0 }
 0x8f2   :  { %v14474_v9 = vmax.f32 %v16112_v13, %v8394_v59  ;;  %v5894_v29 = vsel %vm139_vm0, %v8393_v50, %v8394_v59  ;;  %v8399_v58 = vunpack.i.h.bf16 %v8397_v48  ;;  %v8398_v25 = vunpack.i.l.bf16 %v8397_v48 }
 0x8f3   :  { %v14479_v15 = vmax.f32 %v16113_v39, %v5894_v29 }
 0x8f4   :  { %v14483_v43 = vmax.f32 %v16114_v21, %v8399_v58  ;;  %v5895_v35 = vsel %vm139_vm0, %v8398_v25, %v8399_v58  ;;  %vm6244_vm0 = vcmask 416768  }
 0x8f5   :  { %v8470_v10 = vpack.i.bf16 %v14474_v9, %v14479_v15  ;;  %v14490_v42 = vmax.f32 %v16115_v19, %v5895_v35 }
 0x8f7   :  { %v8475_v6 = vpack.i.bf16 %v14483_v43, %v14490_v42  ;;  %8471 = vrot.lane.b32.xlu0 %v8470_v10, %s8859_s0 }
 0x8f9   :  { %8476 = vrot.lane.b32.xlu1 %v8475_v6, %s8859_s0  ;;  %s8870_s0 = smov 72  }
 0x931   :  { %v8402_v52 = vpop.permute.xlu0 %8401 }
 0x932   :  { %v8404_v51 = vunpack.i.h.bf16 %v8402_v52  ;;  %v8403_v7 = vunpack.i.l.bf16 %v8402_v52 }
 0x933   :  { %v8407_v34 = vpop.permute.xlu1 %8406 }
 0x934   :  { %v6056_v26 = vsel %vm4641_vm4, %v8403_v7, %v8404_v51  ;;  %v8409_v49 = vunpack.i.h.bf16 %v8407_v34  ;;  %v8408_v30 = vunpack.i.l.bf16 %v8407_v34  ;;  %v6105_v1 = vmax.f32 %v14306_v60, %v8404_v51 }
 0x935   :  { %v6104_v63 = vmax.f32 %v14311_v31, %v6056_v26 }
 0x936   :  { %v6107_v38 = vmax.f32 %v14315_v23, %v8409_v49  ;;  %v6057_v4 = vsel %vm4641_vm4, %v8408_v30, %v8409_v49 }
 0x937   :  { %v6106_v28 = vmax.f32 %v14322_v62, %v6057_v4 }
 0x938   :  { %v6137_v32 = vpack.c.bf16 %v6107_v38, %v6105_v1 }
 0x939   :  { %v6136_v37 = vpack.c.bf16 %v6106_v28, %v6104_v63  ;;  %v8412_v20 = vpop.permute.xlu0 %8411 }
 0x93a   :  { %v8414_v40 = vunpack.i.h.bf16 %v8412_v20  ;;  %v8413_v8 = vunpack.i.l.bf16 %v8412_v20  ;;  %7338 = vmatprep.mubr.msk.bf16.mxu1 %vm6244_vm0, %v6137_v32 }
 0x93b   :  { %v8417_v5 = vpop.permute.xlu1 %8416  ;;  %6309 = vmatmul.mubr.bf16.vlgmr.msra.gmra.mrb[32].mxu1 %v6136_v37 }
 0x93c   :  { %v6058_v60 = vsel %vm4641_vm4, %v8413_v8, %v8414_v40  ;;  %v8419_v3 = vunpack.i.h.bf16 %v8417_v5  ;;  %v8418_v23 = vunpack.i.l.bf16 %v8417_v5  ;;  %v6109_v59 = vmax.f32 %v14330_v18, %v8414_v40 }
 0x93d   :  { %v6108_v50 = vmax.f32 %v14335_v14, %v6058_v60 }
 0x93e   :  { %v6111_v31 = vmax.f32 %v14339_v56, %v8419_v3  ;;  %v6059_v62 = vsel %vm4641_vm4, %v8418_v23, %v8419_v3 }
 0x93f   :  { %v6110_v48 = vmax.f32 %v14346_v24, %v6059_v62 }
 0x940   :  { %v6139_v13 = vpack.c.bf16 %v6111_v31, %v6109_v59 }
 0x941   :  { %v8422_v29 = vpop.permute.xlu0 %8421  ;;  %v6138_v58 = vpack.c.bf16 %v6110_v48, %v6108_v50 }
 0x942   :  { %v8424_v25 = vunpack.i.h.bf16 %v8422_v29  ;;  %v8423_v39 = vunpack.i.l.bf16 %v8422_v29  ;;  %7339 = vmatprep.mubr.msk.bf16.mxu1 %vm6244_vm0, %v6139_v13 }
 0x943   :  { %v8427_v21 = vpop.permute.xlu1 %8426  ;;  %6317 = vmatmul.mubr.bf16.gmra.mrb[36].mxu1 %v6138_v58 }
 0x944   :  { %v6060_v35 = vsel %vm4641_vm4, %v8423_v39, %v8424_v25  ;;  %v8429_v18 = vunpack.i.h.bf16 %v8427_v21  ;;  %v8428_v10 = vunpack.i.l.bf16 %v8427_v21  ;;  %v6113_v56 = vmax.f32 %v14354_v61, %v8424_v25 }
 0x945   :  { %v6112_v24 = vmax.f32 %v14359_v33, %v6060_v35 }
 0x946   :  { %v6115_v19 = vmax.f32 %v14363_v27, %v8429_v18  ;;  %v6061_v14 = vsel %vm4641_vm4, %v8428_v10, %v8429_v18 }
 0x947   :  { %v6114_v6 = vmax.f32 %v14370_v55, %v6061_v14 }
 0x948   :  { %v6141_v52 = vpack.c.bf16 %v6115_v19, %v6113_v56 }
 0x949   :  { %v8432_v51 = vpop.permute.xlu0 %8431  ;;  %v6140_v7 = vpack.c.bf16 %v6114_v6, %v6112_v24 }
 0x94a   :  { %v8434_v34 = vunpack.i.h.bf16 %v8432_v51  ;;  %v8433_v26 = vunpack.i.l.bf16 %v8432_v51  ;;  %7340 = vmatprep.mubr.msk.bf16.mxu1 %vm6244_vm0, %v6141_v52 }
 0x94b   :  { %v8437_v49 = vpop.permute.xlu1 %8436  ;;  %6325 = vmatmul.mubr.bf16.gmra.mrb[40].mxu1 %v6140_v7 }
 0x94c   :  { %v6062_v30 = vsel %vm4641_vm4, %v8433_v26, %v8434_v34  ;;  %v8439_v61 = vunpack.i.h.bf16 %v8437_v49  ;;  %v8438_v1 = vunpack.i.l.bf16 %v8437_v49  ;;  %v6117_v27 = vmax.f32 %v14378_v16, %v8434_v34 }
 0x94d   :  { %v6116_v55 = vmax.f32 %v14383_v45, %v6062_v30 }
 0x94e   :  { %v6119_v38 = vmax.f32 %v14387_v2, %v8439_v61  ;;  %v6063_v33 = vsel %vm4641_vm4, %v8438_v1, %v8439_v61 }
 0x94f   :  { %v6118_v4 = vmax.f32 %v14394_v12, %v6063_v33 }
 0x950   :  { %v6143_v63 = vpack.c.bf16 %v6119_v38, %v6117_v27 }
 0x951   :  { %v8442_v28 = vpop.permute.xlu0 %8441  ;;  %v6142_v32 = vpack.c.bf16 %v6118_v4, %v6116_v55  ;;  %v8714_v55 = vld [vmem:[#allocation7 + $0x40] sm:$0xff]  }
 0x952   :  { %v8444_v37 = vunpack.i.h.bf16 %v8442_v28  ;;  %v8443_v20 = vunpack.i.l.bf16 %v8442_v28  ;;  %7341 = vmatprep.mubr.msk.bf16.mxu1 %vm6244_vm0, %v6143_v63  ;;  %v8715_v4 = vld [vmem:[#allocation7] sm:$0xff]   ;;  %v8716_v63 = vld [vmem:[#allocation7 + $0x48] sm:$0xff]   ;;  %7402 = vmatprep.subr.bf16.mxu1 %v8714_v55 }
 0x953   :  { %v8447_v40 = vpop.permute.xlu1 %8446  ;;  %6333 = vmatmul.mubr.bf16.gmra.mrb[44].mxu1 %v6142_v32  ;;  %v8717_v28 = vld [vmem:[#allocation7 + $0x8] sm:$0xff]   ;;  %v8721_v32 = vld [vmem:[#allocation7 + $0x18] sm:$0xff]  }
 0x954   :  { %v6064_v8 = vsel %vm4641_vm4, %v8443_v20, %v8444_v37  ;;  %v8449_v16 = vunpack.i.h.bf16 %v8447_v40  ;;  %v8448_v5 = vunpack.i.l.bf16 %v8447_v40  ;;  %v6121_v2 = vmax.f32 %v14402_v0, %v8444_v37  ;;  %7403 = vmatpush3.bf16.msra.mxu1 %v8715_v4 }
 0x955   :  { %v6120_v12 = vmax.f32 %v14407_v44, %v6064_v8  ;;  %7404 = vmatprep.subr.bf16.mxu1 %v8716_v63  ;;  %v8722_v8 = vld [vmem:[#allocation7 + $0x60] sm:$0xff]  }
 0x956   :  { %v6123_v60 = vmax.f32 %v14411_v46, %v8449_v16  ;;  %v6065_v45 = vsel %vm4641_vm4, %v8448_v5, %v8449_v16  ;;  %v8723_v16 = vld [vmem:[#allocation7 + $0x20] sm:$0xff]   ;;  %v8724_v5 = vld [vmem:[#allocation7 + $0x68] sm:$0xff]  }
 0x957   :  { %v6122_v3 = vmax.f32 %v14418_v36, %v6065_v45 }
 0x958   :  { %v6145_v23 = vpack.c.bf16 %v6123_v60, %v6121_v2  ;;  %7405 = vmatpush3.bf16.msra.mxu1 %v8717_v28  ;;  %v8725_v2 = vld [vmem:[#allocation7 + $0x28] sm:$0xff]  }
 0x959   :  { %v8452_v59 = vpop.permute.xlu0 %8451  ;;  %v6144_v31 = vpack.c.bf16 %v6122_v3, %v6120_v12 }
 0x95a   :  { %v8454_v62 = vunpack.i.h.bf16 %v8452_v59  ;;  %v8453_v50 = vunpack.i.l.bf16 %v8452_v59  ;;  %7342 = vmatprep.mubr.msk.bf16.mxu1 %vm6244_vm0, %v6145_v23  ;;  %v8726_v23 = vld [vmem:[#allocation7 + $0x70] sm:$0xff]  }
 0x95b   :  { %v8457_v48 = vpop.permute.xlu1 %8456  ;;  %6341 = vmatmul.mubr.bf16.gmra.mrb[48].mxu1 %v6144_v31  ;;  %v8727_v59 = vld [vmem:[#allocation7 + $0x30] sm:$0xff]  }
 0x95c   :  { %v6066_v13 = vsel %vm4641_vm4, %v8453_v50, %v8454_v62  ;;  %v8459_v0 = vunpack.i.h.bf16 %v8457_v48  ;;  %v8458_v29 = vunpack.i.l.bf16 %v8457_v48  ;;  %v6125_v46 = vmax.f32 %v14426_v47, %v8454_v62  ;;  %v8728_v50 = vld [vmem:[#allocation7 + $0x78] sm:$0xff]   ;;  %v8729_v48 = vld [vmem:[#allocation7 + $0xc0] sm:$0xff]  }
 0x95d   :  { %v6124_v36 = vmax.f32 %v14431_v22, %v6066_v13  ;;  %v8730_v13 = vld [vmem:[#allocation7 + $0x38] sm:$0xff]   ;;  %7424 = vmatprep.subr.bf16.mxu0 %v8729_v48 }
 0x95e   :  { %v6127_v58 = vmax.f32 %v14435_v41, %v8459_v0  ;;  %v6067_v44 = vsel %vm4641_vm4, %v8458_v29, %v8459_v0  ;;  %v8731_v29 = vld [vmem:[#allocation7 + $0x80] sm:$0xff]  }
 0x95f   :  { %v6126_v25 = vmax.f32 %v14442_v54, %v6067_v44  ;;  %7425 = vmatpush3.bf16.msra.mxu0 %v8731_v29  ;;  %v8733_v44 = vld [vmem:[#allocation7 + $0x88] sm:$0xff]  }
 0x960   :  { %v6147_v39 = vpack.c.bf16 %v6127_v58, %v6125_v46  ;;  %v8732_v58 = vld [vmem:[#allocation7 + $0xc8] sm:$0xff]  }
 0x961   :  { %v8462_v21 = vpop.permute.xlu0 %8461  ;;  %v6146_v35 = vpack.c.bf16 %v6126_v25, %v6124_v36  ;;  %7426 = vmatprep.subr.bf16.mxu0 %v8732_v58  ;;  %v8734_v36 = vld [vmem:[#allocation7 + $0xd0] sm:$0xff]  }
 0x962   :  { %v8464_v18 = vunpack.i.h.bf16 %v8462_v21  ;;  %v8463_v10 = vunpack.i.l.bf16 %v8462_v21  ;;  %7343 = vmatprep.mubr.msk.bf16.mxu1 %vm6244_vm0, %v6147_v39  ;;  %v8735_v21 = vld [vmem:[#allocation7 + $0x90] sm:$0xff]  }
 0x963   :  { %v8467_v56 = vpop.permute.xlu1 %8466  ;;  %6349 = vmatmul.mubr.bf16.gmra.mrb[52].mxu1 %v6146_v35  ;;  %7427 = vmatpush3.bf16.msra.mxu0 %v8733_v44 }
 0x964   :  { %v6068_v19 = vsel %vm4641_vm4, %v8463_v10, %v8464_v18  ;;  %v8469_v47 = vunpack.i.h.bf16 %v8467_v56  ;;  %v8468_v14 = vunpack.i.l.bf16 %v8467_v56  ;;  %v6129_v41 = vmax.f32 %v14450_v57, %v8464_v18  ;;  %7428 = vmatprep.subr.bf16.mxu0 %v8734_v36  ;;  %v8736_v10 = vld [vmem:[#allocation7 + $0xd8] sm:$0xff]  }
 0x965   :  { %v6128_v54 = vmax.f32 %v14455_v53, %v6068_v19  ;;  %v8737_v56 = vld [vmem:[#allocation7 + $0x98] sm:$0xff]   ;;  %v8738_v19 = vld [vmem:[#allocation7 + $0xe0] sm:$0xff]  }
 0x966   :  { %v6131_v24 = vmax.f32 %v14459_v17, %v8469_v47  ;;  %v6069_v22 = vsel %vm4641_vm4, %v8468_v14, %v8469_v47  ;;  %v8875_v47 = vmov 0.0  }
 0x967   :  { %v6130_v6 = vmax.f32 %v14466_v11, %v6069_v22  ;;  %7429 = vmatpush3.bf16.msra.mxu0 %v8735_v21 }
 0x968   :  { %v6149_v52 = vpack.c.bf16 %v6131_v24, %v6129_v41  ;;  %7430 = vmatprep.subr.bf16.mxu0 %v8736_v10  ;;  %v8739_v24 = vld [vmem:[#allocation7 + $0xa0] sm:$0xff]  }
 0x969   :  { %v8472_v51 = vpop.permute.xlu0 %8471  ;;  %v6148_v7 = vpack.c.bf16 %v6130_v6, %v6128_v54  ;;  %v8741_v6 = vld [vmem:[#allocation7 + $0xe8] sm:$0xff]  }
 0x96a   :  { %v8474_v34 = vunpack.i.h.bf16 %v8472_v51  ;;  %v8473_v26 = vunpack.i.l.bf16 %v8472_v51  ;;  %7344 = vmatprep.mubr.msk.bf16.mxu1 %vm6244_vm0, %v6149_v52  ;;  %v8742_v52 = vld [vmem:[#allocation7 + $0xa8] sm:$0xff]  }
 0x96b   :  { %v8477_v49 = vpop.permute.xlu1 %8476  ;;  %6357 = vmatmul.mubr.bf16.gmra.mrb[56].mxu1 %v6148_v7  ;;  %7431 = vmatpush3.bf16.msra.mxu0 %v8737_v56  ;;  %v8744_v7 = vld [vmem:[#allocation7 + $0xf0] sm:$0xff]  }
 0x96c   :  { %v6070_v30 = vsel %vm4641_vm4, %v8473_v26, %v8474_v34  ;;  %v8479_v57 = vunpack.i.h.bf16 %v8477_v49  ;;  %v8478_v61 = vunpack.i.l.bf16 %v8477_v49  ;;  %v6133_v17 = vmax.f32 %v14474_v9, %v8474_v34  ;;  %v8718_v9 = vld [vmem:[#allocation7 + $0x50] sm:$0xff]   ;;  %7432 = vmatprep.subr.bf16.mxu0 %v8738_v19  ;;  %v8750_v19 = vld [vmem:[%s14651_s9] sm:$0xff]  }
 0x96d   :  { %v6132_v11 = vmax.f32 %v14479_v15, %v6070_v30  ;;  %7406 = vmatprep.subr.bf16.mxu1 %v8718_v9  ;;  %v8720_v15 = vld [vmem:[#allocation7 + $0x58] sm:$0xff]   ;;  %v8745_v26 = vld [vmem:[#allocation7 + $0xb0] sm:$0xff]  }
 0x96e   :  { %v6135_v1 = vmax.f32 %v14483_v43, %v8479_v57  ;;  %v6071_v53 = vsel %vm4641_vm4, %v8478_v61, %v8479_v57  ;;  %v8719_v43 = vld [vmem:[#allocation7 + $0x10] sm:$0xff]   ;;  %v8747_v57 = vld [vmem:[#allocation7 + $0xf8] sm:$0xff]   ;;  %vm6435_vm4 = vcmask 588800  }
 0x96f   :  { %v6134_v27 = vmax.f32 %v14490_v42, %v6071_v53  ;;  %7407 = vmatpush3.bf16.msra.mxu1 %v8719_v43  ;;  %7433 = vmatpush3.bf16.msra.mxu0 %v8739_v24  ;;  %v8748_v61 = vld [vmem:[#allocation7 + $0xb8] sm:$0xff]  }
 0x970   :  { %v6151_v38 = vpack.c.bf16 %v6135_v1, %v6133_v17  ;;  %7408 = vmatprep.subr.bf16.mxu1 %v8720_v15  ;;  %7434 = vmatprep.subr.bf16.mxu0 %v8741_v6  ;;  %v8753_v24 = vld [vmem:[%s14651_s9 + $0x18] sm:$0xff]   ;;  %v8756_v6 = vld [vmem:[%s14651_s9 + $0x30] sm:$0xff]  }
 0x971   :  { %v6150_v33 = vpack.c.bf16 %v6134_v27, %v6132_v11 }
 0x972   :  { %7345 = vmatprep.mubr.msk.bf16.mxu1 %vm6244_vm0, %v6151_v38  ;;  %vm6457_vm0 = vcmask 982016  }
 0x973   :  { %6365 = vmatmul.mubr.bf16.gmra.mrb[60].mxu1 %v6150_v33  ;;  %7435 = vmatpush3.bf16.msra.mxu0 %v8742_v52  ;;  %v8757_v52 = vld [vmem:[%s14651_s9 + $0x38] ss:$0 sps:$4 sm:$0xff]  }
 0x974   :  { %7409 = vmatpush3.bf16.msra.mxu1 %v8721_v32  ;;  %7436 = vmatprep.subr.bf16.mxu0 %v8744_v7  ;;  %v8758_v7 = vld [vmem:[%s14653_s11] sm:$0xff]  }
 0x975   :  { %7410 = vmatprep.subr.bf16.mxu1 %v8722_v8 }
 0x977   :  { %7437 = vmatpush3.bf16.msra.mxu0 %v8745_v26  ;;  %v8760_v26 = vld [vmem:[%s14653_s11 + $0x10] sm:$0xff]  }
 0x978   :  { %7411 = vmatpush3.bf16.msra.mxu1 %v8723_v16  ;;  %7438 = vmatprep.subr.bf16.mxu0 %v8747_v57 }
 0x979   :  { %7412 = vmatprep.subr.bf16.mxu1 %v8724_v5 }
 0x97b   :  { %7439 = vmatpush3.bf16.msra.mxu0 %v8748_v61 }
 0x97c   :  { %7413 = vmatpush3.bf16.msra.mxu1 %v8725_v2  ;;  %7479 = vmatprep.subr.bf16.mxu0 %v8875_v47 }
 0x97d   :  { %7414 = vmatprep.subr.bf16.mxu1 %v8726_v23 }
 0x980   :  { %7415 = vmatpush3.bf16.msra.mxu1 %v8727_v59  ;;  %v8749_v59 = vld [vmem:[#allocation7 + $0x118] sm:$0xff]  }
 0x981   :  { %7416 = vmatprep.subr.bf16.mxu1 %v8728_v50 }
 0x984   :  { %7417 = vmatpush3.bf16.msra.mxu1 %v8730_v13 }
 0x985   :  { %7467 = vmatprep.subr.bf16.mxu1 %v8875_v47 }
 0xa0e   :  { %v14552_v42 = vpop.f32.mrb[32].mxu1 }
 0xa0f   :  { %v6312_v37 = vpop.f32.mrb[33].mxu1 }
 0xa10   :  { %v6313_v20 = vpop.f32.mrb[34].mxu1 }
 0xa11   :  { %6374 = vrot.lane.b32.xlu1 %v6313_v20, %s8869_s6  ;;  %v6315_v40 = vpop.f32.mrb[35].mxu1 }
 0xa16   :  { %v6318_v60 = vpop.f32.mrb[36].mxu1 }
 0xa17   :  { %6378 = vrot.lane.b32.xlu1 %v6318_v60, %s8870_s0  ;;  %v6320_v45 = vpop.f32.mrb[37].mxu1 }
 0xa18   :  { %v6321_v12 = vpop.f32.mrb[38].mxu1  ;;  %v8740_v45 = vld [vmem:[#allocation7 + $0x100] sm:$0xff]  }
 0xa19   :  { %6382 = vrot.lane.b32.xlu0 %v6321_v12, %s8871_s15  ;;  %v6323_v3 = vpop.f32.mrb[39].mxu1 }
 0xa1a   :  { %v8746_v3 = vld [vmem:[#allocation7 + $0x110] sm:$0xff]  }
 0xa1e   :  { %v6326_v31 = vpop.f32.mrb[40].mxu1 }
 0xa1f   :  { %6386 = vrot.lane.b32.xlu1 %v6326_v31, %s8854_s19  ;;  %v6328_v62 = vpop.f32.mrb[41].mxu1  ;;  %s8874_s19 = smov 124  }
 0xa20   :  { %v6329_v0 = vpop.f32.mrb[42].mxu1 }
 0xa21   :  { %6390 = vrot.lane.b32.xlu0 %v6329_v0, %s8872_s16  ;;  %v6331_v46 = vpop.f32.mrb[43].mxu1 }
 0xa26   :  { %v6334_v25 = vpop.f32.mrb[44].mxu1 }
 0xa27   :  { %6394 = vrot.lane.b32.xlu0 %v6334_v25, %s8873_s27  ;;  %v6336_v39 = vpop.f32.mrb[45].mxu1 }
 0xa28   :  { %v6337_v35 = vpop.f32.mrb[46].mxu1 }
 0xa29   :  { %v6339_v18 = vpop.f32.mrb[47].mxu1 }
 0xa2b   :  { %6398 = vrot.lane.b32.xlu0 %v6337_v35, %s8874_s19 }
 0xa2e   :  { %v6342_v14 = vpop.f32.mrb[48].mxu1 }
 0xa2f   :  { %6402 = vrot.lane.b32.xlu0 %v6342_v14, %s8876_s18  ;;  %v6344_v41 = vpop.f32.mrb[49].mxu1  ;;  %v8751_v14 = vld [vmem:[%s14651_s9 + $0x8] sm:$0xff]  }
 0xa30   :  { %v6345_v22 = vpop.f32.mrb[50].mxu1  ;;  %v8752_v41 = vld [vmem:[%s14651_s9 + $0x10] sm:$0xff]  }
 0xa31   :  { %v6347_v54 = vpop.f32.mrb[51].mxu1 }
 0xa32   :  { %v8755_v54 = vld [vmem:[%s14651_s9 + $0x28] sm:$0xff]  }
 0xa36   :  { %v6350_v51 = vpop.f32.mrb[52].mxu1 }
 0xa37   :  { %6410 = vrot.lane.b32.xlu1 %v6350_v51, %s8877_s1  ;;  %v6352_v34 = vpop.f32.mrb[53].mxu1 }
 0xa38   :  { %v6353_v49 = vpop.f32.mrb[54].mxu1  ;;  %v8759_v34 = vld [vmem:[%s14653_s11 + $0x8] sm:$0xff]  }
 0xa39   :  { %6414 = vrot.lane.b32.xlu0 %v6353_v49, %s8878_s5  ;;  %v6355_v30 = vpop.f32.mrb[55].mxu1  ;;  %v8761_v49 = vld [vmem:[%s14653_s11 + $0x18] sm:$0xff]  }
 0xa3d   :  { %6406 = vrot.lane.b32.xlu0 %v6345_v22, %s8879_s7  ;;  %v8754_v22 = vld [vmem:[%s14651_s9 + $0x20] sm:$0xff]  }
 0xa3e   :  { %v6358_v17 = vpop.f32.mrb[56].mxu1 }
 0xa3f   :  { %6418 = vrot.lane.b32.xlu1 %v6358_v17, %s8880_s20  ;;  %v6360_v1 = vpop.f32.mrb[57].mxu1 }
 0xa40   :  { %v6361_v53 = vpop.f32.mrb[58].mxu1 }
 0xa41   :  { %v6363_v11 = vpop.f32.mrb[59].mxu1 }
 0xa43   :  { %6422 = vrot.lane.b32.xlu1 %v6361_v53, %s8881_s22  ;;  %v7346_v53 = vld [vmem:[%s14650_s8] ss:$0 sm:$0xff] }
 0xa46   :  { %v6366_v27 = vpop.f32.mrb[60].mxu1 }
 0xa47   :  { %6426 = vrot.lane.b32.xlu1 %v6366_v27, %s8882_s21  ;;  %v6368_v38 = vpop.f32.mrb[61].mxu1 }
 0xa48   :  { %v6369_v33 = vpop.f32.mrb[62].mxu1 }
 0xa49   :  { %6430 = vrot.lane.b32.xlu0 %v6369_v33, %s8883_s4  ;;  %v6371_v55 = vpop.f32.mrb[63].mxu1 }
 0xa83   :  { %v6375_v4 = vpop.permute.xlu1 %6374 }
 0xa84   :  { %v6434_v15 = vsel %vm6433_vm3, %v14552_v42, %v6375_v4  ;;  %v8743_v42 = vld [vmem:[#allocation7 + $0x108] sm:$0xff]   ;;  %vm6459_vm3 = vcmask 228352  }
 0xa89   :  { %v6379_v28 = vpop.permute.xlu1 %6378 }
 0xa8a   :  { %v6436_v20 = vsel %vm6435_vm4, %v6434_v15, %v6379_v28 }
 0xa8b   :  { %v6383_v63 = vpop.permute.xlu0 %6382 }
 0xa8c   :  { %v6438_v8 = vsel %vm6437_vm7, %v6436_v20, %v6383_v63 }
 0xa8d   :  { %v6461_v12 = vpack.c.bf16 %v6438_v8, %v6438_v8  ;;  %v8763_v8 = vld [vmem:[%s14653_s11 + $0x28] ss:$0 sps:$4 sm:$0x33]  }
 0xa91   :  { %v6387_v43 = vpop.permute.xlu1 %6386 }
 0xa92   :  { %v6439_v32 = vsel %vm4751_vm13, %v6383_v63, %v6387_v43  ;;  %vm6446_vm13 = vcmask 261120  }
 0xa93   :  { %v6391_v9 = vpop.permute.xlu0 %6390 }
 0xa94   :  { %v6441_v40 = vsel %vm6440_vm6, %v6439_v32, %v6391_v9 }
 0xa99   :  { %v6395_v37 = vpop.permute.xlu0 %6394 }
 0xa9a   :  { %v6443_v16 = vsel %vm6442_vm8, %v6441_v40, %v6395_v37  ;;  %v8762_v40 = vld [vmem:[%s14653_s11 + $0x20] sm:$0xff]  }
 0xa9d   :  { %v6399_v5 = vpop.permute.xlu0 %6398 }
 0xa9e   :  { %v6445_v2 = vsel %vm6444_vm9, %v6443_v16, %v6399_v5  ;;  %v7057_v16 = vsel %vm6270_vm15, %v8763_v8, 0 }
 0xa9f   :  { %v6462_v60 = vpack.c.bf16 %v6445_v2, %v6445_v2 }
 0xaa1   :  { %6796 = vmatprep.mubr.bf16.mxu1 %v6462_v60  ;;  %v6403_v23 = vpop.permute.xlu0 %6402 }
 0xaa2   :  { %6797 = vmatmul.mubr.bf16.vlgmr.msra.gmra.mrb[64].mxu1 %v6461_v12  ;;  %v6447_v13 = vsel %vm6446_vm13, %v6399_v5, %v6403_v23  ;;  %v7384_v5 = vld [vmem:[%s14652_s10] ss:$0 sm:$0xff] }
 0xaa3   :  { %7468 = vmatpush3.bf16.msra.mxu1 %v8740_v45  ;;  %7475 = vmatprep.mubr.msk.bf16.mxu1 %vm8884_vm2, %v8875_v47 }
 0xaa4   :  { %7469 = vmatprep.subr.bf16.mxu1 %v8875_v47 }
 0xaa7   :  { %7470 = vmatpush3.bf16.msra.mxu1 %v8743_v42 }
 0xaa8   :  { %7471 = vmatprep.subr.bf16.mxu1 %v8875_v47 }
 0xaa9   :  { %v6411_v31 = vpop.permute.xlu1 %6410 }
 0xaab   :  { %7472 = vmatpush3.bf16.msra.mxu1 %v8746_v3  ;;  %v6415_v62 = vpop.permute.xlu0 %6414 }
 0xaac   :  { %7473 = vmatprep.subr.bf16.mxu1 %v8875_v47  ;;  %v6453_v46 = vsel %vm6452_vm11, %v6411_v31, %v6415_v62 }
 0xaaf   :  { %7474 = vmatpush3.bf16.msra.mxu1 %v8749_v59  ;;  %v6407_v48 = vpop.permute.xlu0 %6406 }
 0xab0   :  { %7499 = vmatprep.subr.bf16.mxu1 %v8875_v47  ;;  %v6449_v29 = vsel %vm6448_vm10, %v6447_v13, %v6407_v48 }
 0xab1   :  { %v6419_v50 = vpop.permute.xlu1 %6418  ;;  %v6451_v44 = vsel %vm6450_vm12, %v6449_v29, %v6411_v31 }
 0xab2   :  { %v6454_v58 = vsel %vm5501_vm1, %v6453_v46, %v6419_v50  ;;  %v6463_v18 = vpack.c.bf16 %v6451_v44, %v6451_v44  ;;  %vm7099_vm1 = vcmask 80896  }
 0xab5   :  { %v6423_v0 = vpop.permute.xlu1 %6422 }
 0xab6   :  { %v6456_v36 = vsel %vm6455_vm14, %v6454_v58, %v6423_v0 }
 0xab9   :  { %v6427_v25 = vpop.permute.xlu1 %6426 }
 0xaba   :  { %v6458_v39 = vsel %vm6457_vm0, %v6456_v36, %v6427_v25 }
 0xabb   :  { %v6464_v21 = vpack.c.bf16 %v6458_v39, %v6458_v39  ;;  %v6431_v35 = vpop.permute.xlu0 %6430 }
 0xabc   :  { %v6460_v10 = vsel %vm6459_vm3, %v6427_v25, %v6431_v35 }
 0xabd   :  { %v6465_v56 = vpack.c.bf16 %v6460_v10, %v6460_v10  ;;  %6836 = vmatprep.mubr.bf16.mxu0 %v6464_v21 }
 0xabe   :  { %6837 = vmatmul.mubr.bf16.vlgmr.msra.gmra.mrb[12].mxu0 %v6463_v18 }
 0xabf   :  { %7476 = vmatmul.mubr.msk.bf16.vlgmr.msra.gmra.mrb[68].mxu1 %vm429_vm5, %v6465_v56  ;;  %7495 = vmatprep.mubr.msk.bf16.mxu0 %vm8884_vm2, %v8875_v47  ;;  %vm6956_vm5 = vcmask 1043456  }
 0xac0   :  { %7511 = vmatprep.mubr.msk.bf16.mxu1 %vm8884_vm2, %v8875_v47  ;;  %7480 = vmatpush3.bf16.msra.mxu0 %v8750_v19  ;;  %v6958_v51 = vsel %vm6956_vm5, %v8757_v52, 0 }
 0xac1   :  { %7481 = vmatprep.subr.bf16.mxu0 %v8875_v47  ;;  %7500 = vmatpush3.bf16.msra.mxu1 %v8758_v7 }
 0xac2   :  { %7501 = vmatprep.subr.bf16.mxu1 %v8875_v47 }
 0xac4   :  { %7482 = vmatpush3.bf16.msra.mxu0 %v8751_v14 }
 0xac5   :  { %7483 = vmatprep.subr.bf16.mxu0 %v8875_v47  ;;  %7502 = vmatpush3.bf16.msra.mxu1 %v8759_v34 }
 0xac6   :  { %7503 = vmatprep.subr.bf16.mxu1 %v8875_v47 }
 0xac8   :  { %7484 = vmatpush3.bf16.msra.mxu0 %v8752_v41 }
 0xac9   :  { %7485 = vmatprep.subr.bf16.mxu0 %v8875_v47  ;;  %7504 = vmatpush3.bf16.msra.mxu1 %v8760_v26 }
 0xaca   :  { %7505 = vmatprep.subr.bf16.mxu1 %v8875_v47 }
 0xacc   :  { %7486 = vmatpush3.bf16.msra.mxu0 %v8753_v24 }
 0xacd   :  { %7487 = vmatprep.subr.bf16.mxu0 %v8875_v47  ;;  %7506 = vmatpush3.bf16.msra.mxu1 %v8761_v49 }
 0xace   :  { %7507 = vmatprep.subr.bf16.mxu1 %v8875_v47 }
 0xad0   :  { %7488 = vmatpush3.bf16.msra.mxu0 %v8754_v22 }
 0xad1   :  { %7489 = vmatprep.subr.bf16.mxu0 %v8875_v47  ;;  %7508 = vmatpush3.bf16.msra.mxu1 %v8762_v40 }
 0xad2   :  { %7509 = vmatprep.subr.bf16.mxu1 %v8875_v47 }
 0xad4   :  { %7490 = vmatpush3.bf16.msra.mxu0 %v8755_v54 }
 0xad5   :  { %7491 = vmatprep.subr.bf16.mxu0 %v8875_v47  ;;  %7510 = vmatpush3.bf16.msra.mxu1 %v7057_v16 }
 0xad8   :  { %7492 = vmatpush3.bf16.msra.mxu0 %v8756_v6 }
 0xad9   :  { %7493 = vmatprep.subr.bf16.mxu0 %v8875_v47  ;;  %v7394_v47 = vld [vmem:[%s14654_s12] ss:$0 sm:$0xff] }
 0xadc   :  { %7494 = vmatpush3.bf16.msra.mxu0 %v6958_v51 }
 0xb75   :  { %v7418_v30 = vpop.f32.mrb[64].mxu1 }
 0xb76   :  { %v7419_v57 = vpop.f32.mrb[65].mxu1 }
 0xb77   :  { %v7420_v61 = vadd.f32 %v7419_v57, %v7418_v30  ;;  %v7421_v17 = vpop.f32.mrb[66].mxu1 }
 0xb78   :  { %v7422_v1 = vpop.f32.mrb[67].mxu1 }
 0xb79   :  { %v6799_v33 = vadd.f32 %v7420_v61, %v7346_v53 }
 0xb91   :  { %v7440_v11 = vpop.f32.mrb[12].mxu0 }
 0xb92   :  { %v7441_v27 = vpop.f32.mrb[13].mxu0  ;;  %v6878_v38 = vpop.f32.mrb[68].mxu1 }
 0xb93   :  { %v7442_v55 = vadd.f32 %v7441_v27, %v7440_v11  ;;  %v7443_v4 = vpop.f32.mrb[14].mxu0  ;;  %v7477_v63 = vpop.f32.mrb[69].mxu1 }
 0xb94   :  { %v7444_v28 = vpop.f32.mrb[15].mxu0  ;;  %v6881_v9 = vpop.f32.mrb[70].mxu1 }
 0xb95   :  { %v6839_v43 = vadd.f32 %v7442_v55, %v6799_v33  ;;  %v7478_v15 = vpop.f32.mrb[71].mxu1 }
 0xb97   :  { %v6879_v32 = vadd.f32 %v6878_v38, %v6839_v43 }
 0xb99   :  { %v6884_v37 = vmax.f32 %v6879_v32, 0.0 }
 0xb9b   :  { %v6885_v20 = vpack.c.bf16 %v6884_v37, %v6884_v37 }
 0xb9d   :  { %7496 = vmatmul.mubr.msk.bf16.vlgmr.msra.gmra.mrb[16].mxu0 %vm6457_vm0, %v6885_v20 }
 0xc70   :  { %v6994_v2 = vpop.f32.mrb[16].mxu0 }
 0xc71   :  { %v6995_v60 = vadd.f32 %v7384_v5, %v6994_v2  ;;  %v7497_v45 = vpop.f32.mrb[17].mxu0 }
 0xc72   :  { %v6997_v12 = vpop.f32.mrb[18].mxu0 }
 0xc73   :  { %v7000_v42 = vmax.f32 %v6995_v60, 0.0  ;;  %v7498_v3 = vpop.f32.mrb[19].mxu0 }
 0xc75   :  { %v7001_v23 = vpack.c.bf16 %v7000_v42, %v7000_v42 }
 0xc77   :  { %7512 = vmatmul.mubr.msk.bf16.vlgmr.msra.gmra.mrb[72].mxu1 %vm6455_vm14, %v7001_v23 }
 0xd4a   :  { %v7093_v59 = vpop.f32.mrb[72].mxu1 }
 0xd4b   :  { %v7094_v31 = vadd.f32 %v7394_v47, %v7093_v59  ;;  %v7513_v62 = vpop.f32.mrb[73].mxu1 }
 0xd4c   :  { %v7096_v50 = vpop.f32.mrb[74].mxu1 }
 0xd4d   :  { %v7100_v48 = vsel %vm7099_vm1, %v7094_v31, 0.0  ;;  %v7514_v13 = vpop.f32.mrb[75].mxu1 }
 0xd4e   :  { %7101 = vst [vmem:[%s14655_s13] sm:$0xff] %v7100_v48 }
 0xd4f   :  { %7106 = vsyncpa [#allocation3], 1 }
 0xd50   :  { %7107 = vsyncpa [#allocation4], 1 }
 0xd51   :  { %7108 = vsyncpa [#allocation6], 1 }

</bundles_post_ra>
